<compile_context>
chip_gen: v7x
topology: tpu7x:2x2x1
jax: 0.10.0
libtpu: 0.0.40
codegen_flags: <defaults>
</compile_context>

<pallas_src>
import jax
import jax.numpy as jnp
from jax import lax
from jax.experimental import pallas as pl
from jax.experimental.pallas import tpu as pltpu


# Network constants (from the PyTorch module).
C_IN = 4
C1, K1, S1 = 32, 8, 4
C2, K2, S2 = 64, 4, 2
C3, K3, S3 = 64, 3, 1
FC_IN, FC_OUT = 3456, 512


def _conv_out(n, k, s):
    return (n - k) // s + 1


def _ru8(n):
    return (n + 7) // 8 * 8


# ----------------------------------------------------------------------------
# Fused kernel: conv2 -> conv3 -> fc, all activations resident in VMEM.
# ----------------------------------------------------------------------------
def _make_fused_kernel(B, Hh, Wh, H3, W3, R1, M2, M3):
    RB = Hh * Wh  # per-batch row count of the packed (phase-image) row space

    def kernel(z1_ref, b1_ref, w2_ref, b2_ref, w3_ref, b3_ref, wfc_hbm, bfc_ref,
               out_ref,
               act1_ref, act2_ref, act3_ref, fcin_ref, wfc_vmem, wfc_sem):
        # Stream the big fc weight HBM->VMEM now; it is only needed at the very
        # end, so the DMA hides behind conv2/conv3 instead of gating the start.
        wfc_cp = pltpu.make_async_copy(wfc_hbm, wfc_vmem, wfc_sem)
        wfc_cp.start()

        # ---- conv1 epilogue: bias + ReLU (f32), phase-packed layout ---------
        act1_ref[...] = jnp.maximum(z1_ref[...] + b1_ref[...], 0.0)

        # ---- conv2 (4x4, stride 2) as 4 accumulated K=128 GEMMs -------------
        # act1 columns pack (row-parity, col-parity, channel), so each tap
        # group (ii, jj) is one contiguous row slice of the resident act1.
        acc2 = jnp.zeros((M2, C2), jnp.float32)
        for t, (ii, jj) in enumerate(((0, 0), (0, 1), (1, 0), (1, 1))):
            xs = act1_ref[pl.ds(ii * Wh + jj, M2), :].astype(jnp.bfloat16)
            acc2 = acc2 + jnp.dot(xs, w2_ref[t],
                                  preferred_element_type=jnp.float32)
        act2_ref[...] = jnp.maximum(acc2 + b2_ref[...], 0.0)

        # ---- conv3 (3x3, stride 1) as 9 accumulated GEMMs (full-width rows) -
        acc3 = jnp.zeros((M3, C3), jnp.float32)
        for i in range(K3):
            for j in range(K3):
                xs = act2_ref[pl.ds(i * Wh + j, M3), :].astype(jnp.bfloat16)
                acc3 = acc3 + jnp.dot(xs, w3_ref[i * K3 + j],
                                      preferred_element_type=jnp.float32)
        act3_ref[...] = jnp.maximum(acc3 + b3_ref[...], 0.0)

        # ---- fc: repack valid conv3 rows into one lane-dense (B, 3456) slab -
        # (torch's NCHW flatten order is folded into the wfc repack) and run a
        # single big-K GEMM instead of 54 M=2 micro-GEMMs.
        for p in range(H3 * W3):
            h3, w3 = divmod(p, W3)
            rows = act3_ref[pl.ds(h3 * Wh + w3, B, stride=RB), :]   # (B, C3)
            fcin_ref[:, pl.ds(p * C3, C3)] = rows

        wfc_cp.wait()   # weight DMA finished while the convs were running
        y = jnp.dot(fcin_ref[...].astype(jnp.bfloat16), wfc_vmem[...],
                    preferred_element_type=jnp.float32)
        out_ref[...] = jnp.maximum(y + bfc_ref[...], 0.0)

    scratch = [
        pltpu.VMEM((R1, 4 * C1), jnp.float32),      # act1 (phase-packed, padded)
        pltpu.VMEM((M2, C2), jnp.float32),          # act2 (full-width rows)
        pltpu.VMEM((M3, C3), jnp.float32),          # act3 (full-width rows)
        pltpu.VMEM((B, FC_IN), jnp.float32),        # lane-dense fc input slab
        pltpu.VMEM((FC_IN, FC_OUT), jnp.bfloat16),  # streamed fc weight
        pltpu.SemaphoreType.DMA,                    # fc-weight DMA completion
    ]
    return kernel, scratch


# ----------------------------------------------------------------------------
# Parameter init (deterministic, fan-in scaled) and one-time weight repack.
# ----------------------------------------------------------------------------
def init_params(key):
    ks = jax.random.split(key, 8)

    def dense_init(k, shape, fan_in):
        return jax.random.normal(k, shape, jnp.float32) / jnp.sqrt(fan_in)

    return {
        "w1": dense_init(ks[0], (C1, C_IN, K1, K1), C_IN * K1 * K1),
        "b1": dense_init(ks[1], (C1,), C_IN * K1 * K1),
        "w2": dense_init(ks[2], (C2, C1, K2, K2), C1 * K2 * K2),
        "b2": dense_init(ks[3], (C2,), C1 * K2 * K2),
        "w3": dense_init(ks[4], (C3, C2, K3, K3), C2 * K3 * K3),
        "b3": dense_init(ks[5], (C3,), C2 * K3 * K3),
        "wfc": dense_init(ks[6], (FC_IN, FC_OUT), FC_IN),   # (in, out)
        "bfc": dense_init(ks[7], (FC_OUT,), FC_IN),
    }


def prepare_params(params):
    """One-time repack of the weights into the kernel's GEMM layouts."""
    # conv2: 4 tap-group blocks, rows ordered (row-parity, col-parity, in-ch):
    #   w2p[ii*2+jj, (di*2+dj)*C1 + c, o] = w2[o, c, 2*ii+di, 2*jj+dj]
    w2p = (params["w2"].reshape(C2, C1, 2, 2, 2, 2)
           .transpose(2, 4, 3, 5, 1, 0)
           .reshape(4, 4 * C1, C2).astype(jnp.bfloat16))
    # conv3: one (C2, C3) block per tap k = i*3 + j.
    w3p = (params["w3"].transpose(2, 3, 1, 0)
           .reshape(K3 * K3, C2, C3).astype(jnp.bfloat16))
    # fc: torch flatten index is c*(H3*W3) + p; regroup rows to (p, c) so the
    # kernel's lane-dense (B, p*C3 + c) slab multiplies it directly.
    p3 = FC_IN // C3
    wfcp = (params["wfc"].reshape(C3, p3, FC_OUT)
            .transpose(1, 0, 2)
            .reshape(FC_IN, FC_OUT).astype(jnp.bfloat16))
    return {
        "w1": params["w1"].astype(jnp.bfloat16),            # used by the XLA conv1
        "b1": jnp.tile(params["b1"], 4).reshape(1, 4 * C1),  # bias per packed column
        "w2": w2p, "b2": params["b2"].reshape(1, C2),
        "w3": w3p, "b3": params["b3"].reshape(1, C3),
        "wfc": wfcp, "bfc": params["bfc"].reshape(1, FC_OUT),
    }


# ----------------------------------------------------------------------------
# Forward pass: one XLA conv (conv1) + one fused Pallas kernel (rest).
# ----------------------------------------------------------------------------
@jax.jit
def embedding_net_forward(obs, kp):
    """EmbeddingNet.forward(obs) == ConvNet.forward(obs).  obs: (B, 4, H, W) f32."""
    B, C, H, W = obs.shape
    H1, W1 = _conv_out(H, K1, S1), _conv_out(W, K1, S1)
    H2, W2 = _conv_out(H1, K2, S2), _conv_out(W1, K2, S2)
    H3, W3 = _conv_out(H2, K3, S3), _conv_out(W2, K3, S3)
    assert C == C_IN and C3 * H3 * W3 == FC_IN
    assert H1 % 2 == 0 and W1 % 2 == 0     # required by the stride-2 phase packing

    # conv1 as a real XLA conv (bf16 operands, f32 accumulation, NHWC output);
    # bias + ReLU happen inside the kernel.
    z1 = lax.conv_general_dilated(
        obs.astype(jnp.bfloat16), kp["w1"], (S1, S1), "VALID",
        dimension_numbers=("NCHW", "OIHW", "NHWC"),
        preferred_element_type=jnp.float32)                 # (B, H1, W1, C1)

    # Phase-pack for stride-2 conv2: rows = (b, h1//2, w1//2), columns =
    # (h1%2, w1%2, channel).  Pure layout plumbing, done once in XLA.
    Hh, Wh = H1 // 2, W1 // 2
    RB = Hh * Wh
    z1p = (z1.reshape(B, Hh, 2, Wh, 2, C1)
             .transpose(0, 1, 3, 2, 4, 5)
             .reshape(B * RB, 4 * C1))

    # Row-space sizing (full-width trick): each slab gets just enough slack
    # rows so every tap is one contiguous slice; slack rows only ever feed
    # outputs that are discarded.
    M3 = (B - 1) * RB + H3 * Wh                      # conv3 output rows
    M2 = _ru8(M3 + (K3 - 1) * Wh + (K3 - 1))         # conv2 output rows
    R1 = _ru8(max(M2 + Wh + 1, B * RB))              # padded act1 rows
    z1p = jnp.pad(z1p, ((0, R1 - B * RB), (0, 0)))

    kernel, scratch = _make_fused_kernel(B, Hh, Wh, H3, W3, R1, M2, M3)
    vmem = pl.BlockSpec(memory_space=pltpu.MemorySpace.VMEM)
    return pl.pallas_call(
        kernel,
        out_shape=jax.ShapeDtypeStruct((B, FC_OUT), jnp.float32),
        in_specs=[vmem, vmem, vmem, vmem, vmem, vmem,
                  pl.BlockSpec(memory_space=pl.ANY),   # wfc stays in HBM; DMA'd manually
                  vmem],
        out_specs=vmem,
        scratch_shapes=scratch,
    )(z1p, kp["b1"], kp["w2"], kp["b2"], kp["w3"], kp["b3"], kp["wfc"], kp["bfc"])


# Pure-JAX reference for a correctness sanity check (f32, highest precision).
def _ref_forward(obs, params):
    dn = ("NCHW", "OIHW", "NCHW")
    hi = lax.Precision.HIGHEST

    def conv(x, w, b, s):
        y = lax.conv_general_dilated(x, w, (s, s), "VALID",
                                     dimension_numbers=dn, precision=hi)
        return jnp.maximum(y + b[None, :, None, None], 0.0)

    x = conv(obs, params["w1"], params["b1"], S1)
    x = conv(x, params["w2"], params["b2"], S2)
    x = conv(x, params["w3"], params["b3"], S3)
    x = x.reshape(x.shape[0], -1)
    return jnp.maximum(
        jnp.dot(x, params["wfc"], precision=hi) + params["bfc"], 0.0)


if __name__ == "__main__":
    key = jax.random.PRNGKey(0)
    k_obs, k_par = jax.random.split(key)

    # Spatial size chosen so the conv stack flattens to exactly 3456 = 64*6*9
    # (matching nn.Linear(3456, 512)): 76x100 -> 18x24 -> 8x11 -> 6x9.
    B, H, W = 2, 76, 100
    obs = jax.random.normal(k_obs, (B, C_IN, H, W), jnp.float32)
    params = init_params(k_par)
    kparams = prepare_params(params)   # one-time weight repack, off the hot path

    emb = jax.block_until_ready(embedding_net_forward(obs, kparams))
    assert emb.shape == (B, FC_OUT), emb.shape

    ref = _ref_forward(obs, params)
    err = float(jnp.max(jnp.abs(emb - ref)))
    # bf16 GEMM operands with f32 accumulation: expected max-abs error ~1e-2.
    assert err < 5e-2, f"mismatch vs reference: {err}"

    print("KERNEL_OK")
</pallas_src>

<mosaic_0001>
module attributes {stable_mosaic.version = 11 : i64} {
  func.func @kernel(%arg0: memref<224x128xf32, #tpu.memory_space<vmem>>, %arg1: memref<1x128xf32, #tpu.memory_space<vmem>>, %arg2: memref<4x128x64xbf16, #tpu.memory_space<vmem>>, %arg3: memref<1x64xf32, #tpu.memory_space<vmem>>, %arg4: memref<9x64x64xbf16, #tpu.memory_space<vmem>>, %arg5: memref<1x64xf32, #tpu.memory_space<vmem>>, %arg6: memref<3456x512xbf16, #tpu.memory_space<any>>, %arg7: memref<1x512xf32, #tpu.memory_space<vmem>>, %arg8: memref<2x512xf32, #tpu.memory_space<vmem>>, %arg9: memref<224x128xf32, #tpu.memory_space<vmem>>, %arg10: memref<208x64xf32, #tpu.memory_space<vmem>>, %arg11: memref<180x64xf32, #tpu.memory_space<vmem>>, %arg12: memref<2x3456xf32, #tpu.memory_space<vmem>>, %arg13: memref<3456x512xbf16, #tpu.memory_space<vmem>>, %arg14: memref<!tpu.dma_semaphore, #tpu.memory_space<semaphore_mem>>) attributes {dimension_semantics = [], scalar_prefetch = 0 : i64, scratch_operands = 6 : i64, tpu.core_type = #tpu.core_type<tc>} {
    tpu.enqueue_dma source(%arg6 : memref<3456x512xbf16, #tpu.memory_space<any>>) target(%arg13 : memref<3456x512xbf16, #tpu.memory_space<vmem>>) target_semaphore(%arg14 : memref<!tpu.dma_semaphore, #tpu.memory_space<semaphore_mem>>)
    %c0 = arith.constant 0 : index
    %c0_0 = arith.constant 0 : index
    %0 = vector.load %arg0[%c0, %c0_0] : memref<224x128xf32, #tpu.memory_space<vmem>>, vector<224x128xf32>
    %c0_1 = arith.constant 0 : index
    %c0_2 = arith.constant 0 : index
    %1 = vector.load %arg1[%c0_1, %c0_2] : memref<1x128xf32, #tpu.memory_space<vmem>>, vector<1x128xf32>
    %2 = vector.broadcast %1 : vector<1x128xf32> to vector<224x128xf32>
    %3 = arith.addf %0, %2 : vector<224x128xf32>
    %cst = arith.constant 0.000000e+00 : f32
    %4 = vector.broadcast %cst : f32 to vector<224x128xf32>
    %5 = arith.maximumf %3, %4 : vector<224x128xf32>
    %c0_3 = arith.constant 0 : index
    %c0_4 = arith.constant 0 : index
    %6 = vector.load %arg9[%c0_3, %c0_4] : memref<224x128xf32, #tpu.memory_space<vmem>>, vector<224x128xf32>
    tpu.vector_store %arg9[%c0_3, %c0_4], %5 {strides = array<i32>} : memref<224x128xf32, #tpu.memory_space<vmem>>, vector<224x128xf32>,
    %cst_5 = arith.constant 0.000000e+00 : f32
    %7 = vector.broadcast %cst_5 : f32 to vector<208x64xf32>
    %c0_6 = arith.constant 0 : index
    %c0_7 = arith.constant 0 : index
    %8 = vector.load %arg9[%c0_6, %c0_7] : memref<224x128xf32, #tpu.memory_space<vmem>>, vector<208x128xf32>
    %9 = arith.truncf %8 : vector<208x128xf32> to vector<208x128xbf16>
    %c0_8 = arith.constant 0 : index
    %c0_9 = arith.constant 0 : index
    %c0_10 = arith.constant 0 : index
    %10 = vector.load %arg2[%c0_8, %c0_9, %c0_10] : memref<4x128x64xbf16, #tpu.memory_space<vmem>>, vector<1x128x64xbf16>
    %11 = vector.shape_cast %10 : vector<1x128x64xbf16> to vector<128x64xbf16>
    %cst_11 = arith.constant dense<0.000000e+00> : vector<208x64xf32>
    %12 = tpu.matmul %9, %11, %cst_11 {dimension_numbers = #tpu.dot_dimension_numbers<[1], [0], [0], [1], [0, 0, 1, 1], [], []>} : vector<208x128xbf16>, vector<128x64xbf16>, vector<208x64xf32> -> vector<208x64xf32>
    %13 = arith.addf %7, %12 : vector<208x64xf32>
    %c1 = arith.constant 1 : index
    %c0_12 = arith.constant 0 : index
    %14 = vector.load %arg9[%c1, %c0_12] : memref<224x128xf32, #tpu.memory_space<vmem>>, vector<208x128xf32>
    %15 = arith.truncf %14 : vector<208x128xf32> to vector<208x128xbf16>
    %c1_13 = arith.constant 1 : index
    %c0_14 = arith.constant 0 : index
    %c0_15 = arith.constant 0 : index
    %16 = vector.load %arg2[%c1_13, %c0_14, %c0_15] : memref<4x128x64xbf16, #tpu.memory_space<vmem>>, vector<1x128x64xbf16>
    %17 = vector.shape_cast %16 : vector<1x128x64xbf16> to vector<128x64xbf16>
    %cst_16 = arith.constant dense<0.000000e+00> : vector<208x64xf32>
    %18 = tpu.matmul %15, %17, %cst_16 {dimension_numbers = #tpu.dot_dimension_numbers<[1], [0], [0], [1], [0, 0, 1, 1], [], []>} : vector<208x128xbf16>, vector<128x64xbf16>, vector<208x64xf32> -> vector<208x64xf32>
    %19 = arith.addf %13, %18 : vector<208x64xf32>
    %c12 = arith.constant 12 : index
    %c0_17 = arith.constant 0 : index
    %20 = vector.load %arg9[%c12, %c0_17] : memref<224x128xf32, #tpu.memory_space<vmem>>, vector<208x128xf32>
    %21 = arith.truncf %20 : vector<208x128xf32> to vector<208x128xbf16>
    %c2 = arith.constant 2 : index
    %c0_18 = arith.constant 0 : index
    %c0_19 = arith.constant 0 : index
    %22 = vector.load %arg2[%c2, %c0_18, %c0_19] : memref<4x128x64xbf16, #tpu.memory_space<vmem>>, vector<1x128x64xbf16>
    %23 = vector.shape_cast %22 : vector<1x128x64xbf16> to vector<128x64xbf16>
    %cst_20 = arith.constant dense<0.000000e+00> : vector<208x64xf32>
    %24 = tpu.matmul %21, %23, %cst_20 {dimension_numbers = #tpu.dot_dimension_numbers<[1], [0], [0], [1], [0, 0, 1, 1], [], []>} : vector<208x128xbf16>, vector<128x64xbf16>, vector<208x64xf32> -> vector<208x64xf32>
    %25 = arith.addf %19, %24 : vector<208x64xf32>
    %c13 = arith.constant 13 : index
    %c0_21 = arith.constant 0 : index
    %26 = vector.load %arg9[%c13, %c0_21] : memref<224x128xf32, #tpu.memory_space<vmem>>, vector<208x128xf32>
    %27 = arith.truncf %26 : vector<208x128xf32> to vector<208x128xbf16>
    %c3 = arith.constant 3 : index
    %c0_22 = arith.constant 0 : index
    %c0_23 = arith.constant 0 : index
    %28 = vector.load %arg2[%c3, %c0_22, %c0_23] : memref<4x128x64xbf16, #tpu.memory_space<vmem>>, vector<1x128x64xbf16>
    %29 = vector.shape_cast %28 : vector<1x128x64xbf16> to vector<128x64xbf16>
    %cst_24 = arith.constant dense<0.000000e+00> : vector<208x64xf32>
    %30 = tpu.matmul %27, %29, %cst_24 {dimension_numbers = #tpu.dot_dimension_numbers<[1], [0], [0], [1], [0, 0, 1, 1], [], []>} : vector<208x128xbf16>, vector<128x64xbf16>, vector<208x64xf32> -> vector<208x64xf32>
    %31 = arith.addf %25, %30 : vector<208x64xf32>
    %c0_25 = arith.constant 0 : index
    %c0_26 = arith.constant 0 : index
    %32 = vector.load %arg3[%c0_25, %c0_26] : memref<1x64xf32, #tpu.memory_space<vmem>>, vector<1x64xf32>
    %33 = vector.broadcast %32 : vector<1x64xf32> to vector<208x64xf32>
    %34 = arith.addf %31, %33 : vector<208x64xf32>
    %cst_27 = arith.constant 0.000000e+00 : f32
    %35 = vector.broadcast %cst_27 : f32 to vector<208x64xf32>
    %36 = arith.maximumf %34, %35 : vector<208x64xf32>
    %c0_28 = arith.constant 0 : index
    %c0_29 = arith.constant 0 : index
    %37 = vector.load %arg10[%c0_28, %c0_29] : memref<208x64xf32, #tpu.memory_space<vmem>>, vector<208x64xf32>
    tpu.vector_store %arg10[%c0_28, %c0_29], %36 {strides = array<i32>} : memref<208x64xf32, #tpu.memory_space<vmem>>, vector<208x64xf32>,
    %cst_30 = arith.constant 0.000000e+00 : f32
    %38 = vector.broadcast %cst_30 : f32 to vector<180x64xf32>
    %c0_31 = arith.constant 0 : index
    %c0_32 = arith.constant 0 : index
    %39 = vector.load %arg10[%c0_31, %c0_32] : memref<208x64xf32, #tpu.memory_space<vmem>>, vector<180x64xf32>
    %40 = arith.truncf %39 : vector<180x64xf32> to vector<180x64xbf16>
    %c0_33 = arith.constant 0 : index
    %c0_34 = arith.constant 0 : index
    %c0_35 = arith.constant 0 : index
    %41 = vector.load %arg4[%c0_33, %c0_34, %c0_35] : memref<9x64x64xbf16, #tpu.memory_space<vmem>>, vector<1x64x64xbf16>
    %42 = vector.shape_cast %41 : vector<1x64x64xbf16> to vector<64x64xbf16>
    %cst_36 = arith.constant dense<0.000000e+00> : vector<180x64xf32>
    %43 = tpu.matmul %40, %42, %cst_36 {dimension_numbers = #tpu.dot_dimension_numbers<[1], [0], [0], [1], [0, 0, 1, 1], [], []>} : vector<180x64xbf16>, vector<64x64xbf16>, vector<180x64xf32> -> vector<180x64xf32>
    %44 = arith.addf %38, %43 : vector<180x64xf32>
    %c1_37 = arith.constant 1 : index
    %c0_38 = arith.constant 0 : index
    %45 = vector.load %arg10[%c1_37, %c0_38] : memref<208x64xf32, #tpu.memory_space<vmem>>, vector<180x64xf32>
    %46 = arith.truncf %45 : vector<180x64xf32> to vector<180x64xbf16>
    %c1_39 = arith.constant 1 : index
    %c0_40 = arith.constant 0 : index
    %c0_41 = arith.constant 0 : index
    %47 = vector.load %arg4[%c1_39, %c0_40, %c0_41] : memref<9x64x64xbf16, #tpu.memory_space<vmem>>, vector<1x64x64xbf16>
    %48 = vector.shape_cast %47 : vector<1x64x64xbf16> to vector<64x64xbf16>
    %cst_42 = arith.constant dense<0.000000e+00> : vector<180x64xf32>
    %49 = tpu.matmul %46, %48, %cst_42 {dimension_numbers = #tpu.dot_dimension_numbers<[1], [0], [0], [1], [0, 0, 1, 1], [], []>} : vector<180x64xbf16>, vector<64x64xbf16>, vector<180x64xf32> -> vector<180x64xf32>
    %50 = arith.addf %44, %49 : vector<180x64xf32>
    %c2_43 = arith.constant 2 : index
    %c0_44 = arith.constant 0 : index
    %51 = vector.load %arg10[%c2_43, %c0_44] : memref<208x64xf32, #tpu.memory_space<vmem>>, vector<180x64xf32>
    %52 = arith.truncf %51 : vector<180x64xf32> to vector<180x64xbf16>
    %c2_45 = arith.constant 2 : index
    %c0_46 = arith.constant 0 : index
    %c0_47 = arith.constant 0 : index
    %53 = vector.load %arg4[%c2_45, %c0_46, %c0_47] : memref<9x64x64xbf16, #tpu.memory_space<vmem>>, vector<1x64x64xbf16>
    %54 = vector.shape_cast %53 : vector<1x64x64xbf16> to vector<64x64xbf16>
    %cst_48 = arith.constant dense<0.000000e+00> : vector<180x64xf32>
    %55 = tpu.matmul %52, %54, %cst_48 {dimension_numbers = #tpu.dot_dimension_numbers<[1], [0], [0], [1], [0, 0, 1, 1], [], []>} : vector<180x64xbf16>, vector<64x64xbf16>, vector<180x64xf32> -> vector<180x64xf32>
    %56 = arith.addf %50, %55 : vector<180x64xf32>
    %c12_49 = arith.constant 12 : index
    %c0_50 = arith.constant 0 : index
    %57 = vector.load %arg10[%c12_49, %c0_50] : memref<208x64xf32, #tpu.memory_space<vmem>>, vector<180x64xf32>
    %58 = arith.truncf %57 : vector<180x64xf32> to vector<180x64xbf16>
    %c3_51 = arith.constant 3 : index
    %c0_52 = arith.constant 0 : index
    %c0_53 = arith.constant 0 : index
    %59 = vector.load %arg4[%c3_51, %c0_52, %c0_53] : memref<9x64x64xbf16, #tpu.memory_space<vmem>>, vector<1x64x64xbf16>
    %60 = vector.shape_cast %59 : vector<1x64x64xbf16> to vector<64x64xbf16>
    %cst_54 = arith.constant dense<0.000000e+00> : vector<180x64xf32>
    %61 = tpu.matmul %58, %60, %cst_54 {dimension_numbers = #tpu.dot_dimension_numbers<[1], [0], [0], [1], [0, 0, 1, 1], [], []>} : vector<180x64xbf16>, vector<64x64xbf16>, vector<180x64xf32> -> vector<180x64xf32>
    %62 = arith.addf %56, %61 : vector<180x64xf32>
    %c13_55 = arith.constant 13 : index
    %c0_56 = arith.constant 0 : index
    %63 = vector.load %arg10[%c13_55, %c0_56] : memref<208x64xf32, #tpu.memory_space<vmem>>, vector<180x64xf32>
    %64 = arith.truncf %63 : vector<180x64xf32> to vector<180x64xbf16>
    %c4 = arith.constant 4 : index
    %c0_57 = arith.constant 0 : index
    %c0_58 = arith.constant 0 : index
    %65 = vector.load %arg4[%c4, %c0_57, %c0_58] : memref<9x64x64xbf16, #tpu.memory_space<vmem>>, vector<1x64x64xbf16>
    %66 = vector.shape_cast %65 : vector<1x64x64xbf16> to vector<64x64xbf16>
    %cst_59 = arith.constant dense<0.000000e+00> : vector<180x64xf32>
    %67 = tpu.matmul %64, %66, %cst_59 {dimension_numbers = #tpu.dot_dimension_numbers<[1], [0], [0], [1], [0, 0, 1, 1], [], []>} : vector<180x64xbf16>, vector<64x64xbf16>, vector<180x64xf32> -> vector<180x64xf32>
    %68 = arith.addf %62, %67 : vector<180x64xf32>
    %c14 = arith.constant 14 : index
    %c0_60 = arith.constant 0 : index
    %69 = vector.load %arg10[%c14, %c0_60] : memref<208x64xf32, #tpu.memory_space<vmem>>, vector<180x64xf32>
    %70 = arith.truncf %69 : vector<180x64xf32> to vector<180x64xbf16>
    %c5 = arith.constant 5 : index
    %c0_61 = arith.constant 0 : index
    %c0_62 = arith.constant 0 : index
    %71 = vector.load %arg4[%c5, %c0_61, %c0_62] : memref<9x64x64xbf16, #tpu.memory_space<vmem>>, vector<1x64x64xbf16>
    %72 = vector.shape_cast %71 : vector<1x64x64xbf16> to vector<64x64xbf16>
    %cst_63 = arith.constant dense<0.000000e+00> : vector<180x64xf32>
    %73 = tpu.matmul %70, %72, %cst_63 {dimension_numbers = #tpu.dot_dimension_numbers<[1], [0], [0], [1], [0, 0, 1, 1], [], []>} : vector<180x64xbf16>, vector<64x64xbf16>, vector<180x64xf32> -> vector<180x64xf32>
    %74 = arith.addf %68, %73 : vector<180x64xf32>
    %c24 = arith.constant 24 : index
    %c0_64 = arith.constant 0 : index
    %75 = vector.load %arg10[%c24, %c0_64] : memref<208x64xf32, #tpu.memory_space<vmem>>, vector<180x64xf32>
    %76 = arith.truncf %75 : vector<180x64xf32> to vector<180x64xbf16>
    %c6 = arith.constant 6 : index
    %c0_65 = arith.constant 0 : index
    %c0_66 = arith.constant 0 : index
    %77 = vector.load %arg4[%c6, %c0_65, %c0_66] : memref<9x64x64xbf16, #tpu.memory_space<vmem>>, vector<1x64x64xbf16>
    %78 = vector.shape_cast %77 : vector<1x64x64xbf16> to vector<64x64xbf16>
    %cst_67 = arith.constant dense<0.000000e+00> : vector<180x64xf32>
    %79 = tpu.matmul %76, %78, %cst_67 {dimension_numbers = #tpu.dot_dimension_numbers<[1], [0], [0], [1], [0, 0, 1, 1], [], []>} : vector<180x64xbf16>, vector<64x64xbf16>, vector<180x64xf32> -> vector<180x64xf32>
    %80 = arith.addf %74, %79 : vector<180x64xf32>
    %c25 = arith.constant 25 : index
    %c0_68 = arith.constant 0 : index
    %81 = vector.load %arg10[%c25, %c0_68] : memref<208x64xf32, #tpu.memory_space<vmem>>, vector<180x64xf32>
    %82 = arith.truncf %81 : vector<180x64xf32> to vector<180x64xbf16>
    %c7 = arith.constant 7 : index
    %c0_69 = arith.constant 0 : index
    %c0_70 = arith.constant 0 : index
    %83 = vector.load %arg4[%c7, %c0_69, %c0_70] : memref<9x64x64xbf16, #tpu.memory_space<vmem>>, vector<1x64x64xbf16>
    %84 = vector.shape_cast %83 : vector<1x64x64xbf16> to vector<64x64xbf16>
    %cst_71 = arith.constant dense<0.000000e+00> : vector<180x64xf32>
    %85 = tpu.matmul %82, %84, %cst_71 {dimension_numbers = #tpu.dot_dimension_numbers<[1], [0], [0], [1], [0, 0, 1, 1], [], []>} : vector<180x64xbf16>, vector<64x64xbf16>, vector<180x64xf32> -> vector<180x64xf32>
    %86 = arith.addf %80, %85 : vector<180x64xf32>
    %c26 = arith.constant 26 : index
    %c0_72 = arith.constant 0 : index
    %87 = vector.load %arg10[%c26, %c0_72] : memref<208x64xf32, #tpu.memory_space<vmem>>, vector<180x64xf32>
    %88 = arith.truncf %87 : vector<180x64xf32> to vector<180x64xbf16>
    %c8 = arith.constant 8 : index
    %c0_73 = arith.constant 0 : index
    %c0_74 = arith.constant 0 : index
    %89 = vector.load %arg4[%c8, %c0_73, %c0_74] : memref<9x64x64xbf16, #tpu.memory_space<vmem>>, vector<1x64x64xbf16>
    %90 = vector.shape_cast %89 : vector<1x64x64xbf16> to vector<64x64xbf16>
    %cst_75 = arith.constant dense<0.000000e+00> : vector<180x64xf32>
    %91 = tpu.matmul %88, %90, %cst_75 {dimension_numbers = #tpu.dot_dimension_numbers<[1], [0], [0], [1], [0, 0, 1, 1], [], []>} : vector<180x64xbf16>, vector<64x64xbf16>, vector<180x64xf32> -> vector<180x64xf32>
    %92 = arith.addf %86, %91 : vector<180x64xf32>
    %c0_76 = arith.constant 0 : index
    %c0_77 = arith.constant 0 : index
    %93 = vector.load %arg5[%c0_76, %c0_77] : memref<1x64xf32, #tpu.memory_space<vmem>>, vector<1x64xf32>
    %94 = vector.broadcast %93 : vector<1x64xf32> to vector<180x64xf32>
    %95 = arith.addf %92, %94 : vector<180x64xf32>
    %cst_78 = arith.constant 0.000000e+00 : f32
    %96 = vector.broadcast %cst_78 : f32 to vector<180x64xf32>
    %97 = arith.maximumf %95, %96 : vector<180x64xf32>
    %c0_79 = arith.constant 0 : index
    %c0_80 = arith.constant 0 : index
    %98 = vector.load %arg11[%c0_79, %c0_80] : memref<180x64xf32, #tpu.memory_space<vmem>>, vector<180x64xf32>
    tpu.vector_store %arg11[%c0_79, %c0_80], %97 {strides = array<i32>} : memref<180x64xf32, #tpu.memory_space<vmem>>, vector<180x64xf32>,
    %c0_81 = arith.constant 0 : index
    %c0_82 = arith.constant 0 : index
    %99 = tpu.strided_load %arg11[%c0_81, %c0_82] {strides = array<i32: 108, 1>} : memref<180x64xf32, #tpu.memory_space<vmem>>, vector<2x64xf32>
    %c0_83 = arith.constant 0 : index
    %c0_84 = arith.constant 0 : index
    %100 = vector.load %arg12[%c0_83, %c0_84] : memref<2x3456xf32, #tpu.memory_space<vmem>>, vector<2x64xf32>
    tpu.vector_store %arg12[%c0_83, %c0_84], %99 {strides = array<i32>} : memref<2x3456xf32, #tpu.memory_space<vmem>>, vector<2x64xf32>,
    %c1_85 = arith.constant 1 : index
    %c0_86 = arith.constant 0 : index
    %101 = tpu.strided_load %arg11[%c1_85, %c0_86] {strides = array<i32: 108, 1>} : memref<180x64xf32, #tpu.memory_space<vmem>>, vector<2x64xf32>
    %c0_87 = arith.constant 0 : index
    %c64 = arith.constant 64 : index
    %102 = vector.load %arg12[%c0_87, %c64] : memref<2x3456xf32, #tpu.memory_space<vmem>>, vector<2x64xf32>
    tpu.vector_store %arg12[%c0_87, %c64], %101 {strides = array<i32>} : memref<2x3456xf32, #tpu.memory_space<vmem>>, vector<2x64xf32>,
    %c2_88 = arith.constant 2 : index
    %c0_89 = arith.constant 0 : index
    %103 = tpu.strided_load %arg11[%c2_88, %c0_89] {strides = array<i32: 108, 1>} : memref<180x64xf32, #tpu.memory_space<vmem>>, vector<2x64xf32>
    %c0_90 = arith.constant 0 : index
    %c128 = arith.constant 128 : index
    %104 = vector.load %arg12[%c0_90, %c128] : memref<2x3456xf32, #tpu.memory_space<vmem>>, vector<2x64xf32>
    tpu.vector_store %arg12[%c0_90, %c128], %103 {strides = array<i32>} : memref<2x3456xf32, #tpu.memory_space<vmem>>, vector<2x64xf32>,
    %c3_91 = arith.constant 3 : index
    %c0_92 = arith.constant 0 : index
    %105 = tpu.strided_load %arg11[%c3_91, %c0_92] {strides = array<i32: 108, 1>} : memref<180x64xf32, #tpu.memory_space<vmem>>, vector<2x64xf32>
    %c0_93 = arith.constant 0 : index
    %c192 = arith.constant 192 : index
    %106 = vector.load %arg12[%c0_93, %c192] : memref<2x3456xf32, #tpu.memory_space<vmem>>, vector<2x64xf32>
    tpu.vector_store %arg12[%c0_93, %c192], %105 {strides = array<i32>} : memref<2x3456xf32, #tpu.memory_space<vmem>>, vector<2x64xf32>,
    %c4_94 = arith.constant 4 : index
    %c0_95 = arith.constant 0 : index
    %107 = tpu.strided_load %arg11[%c4_94, %c0_95] {strides = array<i32: 108, 1>} : memref<180x64xf32, #tpu.memory_space<vmem>>, vector<2x64xf32>
    %c0_96 = arith.constant 0 : index
    %c256 = arith.constant 256 : index
    %108 = vector.load %arg12[%c0_96, %c256] : memref<2x3456xf32, #tpu.memory_space<vmem>>, vector<2x64xf32>
    tpu.vector_store %arg12[%c0_96, %c256], %107 {strides = array<i32>} : memref<2x3456xf32, #tpu.memory_space<vmem>>, vector<2x64xf32>,
    %c5_97 = arith.constant 5 : index
    %c0_98 = arith.constant 0 : index
    %109 = tpu.strided_load %arg11[%c5_97, %c0_98] {strides = array<i32: 108, 1>} : memref<180x64xf32, #tpu.memory_space<vmem>>, vector<2x64xf32>
    %c0_99 = arith.constant 0 : index
    %c320 = arith.constant 320 : index
    %110 = vector.load %arg12[%c0_99, %c320] : memref<2x3456xf32, #tpu.memory_space<vmem>>, vector<2x64xf32>
    tpu.vector_store %arg12[%c0_99, %c320], %109 {strides = array<i32>} : memref<2x3456xf32, #tpu.memory_space<vmem>>, vector<2x64xf32>,
    %c6_100 = arith.constant 6 : index
    %c0_101 = arith.constant 0 : index
    %111 = tpu.strided_load %arg11[%c6_100, %c0_101] {strides = array<i32: 108, 1>} : memref<180x64xf32, #tpu.memory_space<vmem>>, vector<2x64xf32>
    %c0_102 = arith.constant 0 : index
    %c384 = arith.constant 384 : index
    %112 = vector.load %arg12[%c0_102, %c384] : memref<2x3456xf32, #tpu.memory_space<vmem>>, vector<2x64xf32>
    tpu.vector_store %arg12[%c0_102, %c384], %111 {strides = array<i32>} : memref<2x3456xf32, #tpu.memory_space<vmem>>, vector<2x64xf32>,
    %c7_103 = arith.constant 7 : index
    %c0_104 = arith.constant 0 : index
    %113 = tpu.strided_load %arg11[%c7_103, %c0_104] {strides = array<i32: 108, 1>} : memref<180x64xf32, #tpu.memory_space<vmem>>, vector<2x64xf32>
    %c0_105 = arith.constant 0 : index
    %c448 = arith.constant 448 : index
    %114 = vector.load %arg12[%c0_105, %c448] : memref<2x3456xf32, #tpu.memory_space<vmem>>, vector<2x64xf32>
    tpu.vector_store %arg12[%c0_105, %c448], %113 {strides = array<i32>} : memref<2x3456xf32, #tpu.memory_space<vmem>>, vector<2x64xf32>,
    %c8_106 = arith.constant 8 : index
    %c0_107 = arith.constant 0 : index
    %115 = tpu.strided_load %arg11[%c8_106, %c0_107] {strides = array<i32: 108, 1>} : memref<180x64xf32, #tpu.memory_space<vmem>>, vector<2x64xf32>
    %c0_108 = arith.constant 0 : index
    %c512 = arith.constant 512 : index
    %116 = vector.load %arg12[%c0_108, %c512] : memref<2x3456xf32, #tpu.memory_space<vmem>>, vector<2x64xf32>
    tpu.vector_store %arg12[%c0_108, %c512], %115 {strides = array<i32>} : memref<2x3456xf32, #tpu.memory_space<vmem>>, vector<2x64xf32>,
    %c12_109 = arith.constant 12 : index
    %c0_110 = arith.constant 0 : index
    %117 = tpu.strided_load %arg11[%c12_109, %c0_110] {strides = array<i32: 108, 1>} : memref<180x64xf32, #tpu.memory_space<vmem>>, vector<2x64xf32>
    %c0_111 = arith.constant 0 : index
    %c576 = arith.constant 576 : index
    %118 = vector.load %arg12[%c0_111, %c576] : memref<2x3456xf32, #tpu.memory_space<vmem>>, vector<2x64xf32>
    tpu.vector_store %arg12[%c0_111, %c576], %117 {strides = array<i32>} : memref<2x3456xf32, #tpu.memory_space<vmem>>, vector<2x64xf32>,
    %c13_112 = arith.constant 13 : index
    %c0_113 = arith.constant 0 : index
    %119 = tpu.strided_load %arg11[%c13_112, %c0_113] {strides = array<i32: 108, 1>} : memref<180x64xf32, #tpu.memory_space<vmem>>, vector<2x64xf32>
    %c0_114 = arith.constant 0 : index
    %c640 = arith.constant 640 : index
    %120 = vector.load %arg12[%c0_114, %c640] : memref<2x3456xf32, #tpu.memory_space<vmem>>, vector<2x64xf32>
    tpu.vector_store %arg12[%c0_114, %c640], %119 {strides = array<i32>} : memref<2x3456xf32, #tpu.memory_space<vmem>>, vector<2x64xf32>,
    %c14_115 = arith.constant 14 : index
    %c0_116 = arith.constant 0 : index
    %121 = tpu.strided_load %arg11[%c14_115, %c0_116] {strides = array<i32: 108, 1>} : memref<180x64xf32, #tpu.memory_space<vmem>>, vector<2x64xf32>
    %c0_117 = arith.constant 0 : index
    %c704 = arith.constant 704 : index
    %122 = vector.load %arg12[%c0_117, %c704] : memref<2x3456xf32, #tpu.memory_space<vmem>>, vector<2x64xf32>
    tpu.vector_store %arg12[%c0_117, %c704], %121 {strides = array<i32>} : memref<2x3456xf32, #tpu.memory_space<vmem>>, vector<2x64xf32>,
    %c15 = arith.constant 15 : index
    %c0_118 = arith.constant 0 : index
    %123 = tpu.strided_load %arg11[%c15, %c0_118] {strides = array<i32: 108, 1>} : memref<180x64xf32, #tpu.memory_space<vmem>>, vector<2x64xf32>
    %c0_119 = arith.constant 0 : index
    %c768 = arith.constant 768 : index
    %124 = vector.load %arg12[%c0_119, %c768] : memref<2x3456xf32, #tpu.memory_space<vmem>>, vector<2x64xf32>
    tpu.vector_store %arg12[%c0_119, %c768], %123 {strides = array<i32>} : memref<2x3456xf32, #tpu.memory_space<vmem>>, vector<2x64xf32>,
    %c16 = arith.constant 16 : index
    %c0_120 = arith.constant 0 : index
    %125 = tpu.strided_load %arg11[%c16, %c0_120] {strides = array<i32: 108, 1>} : memref<180x64xf32, #tpu.memory_space<vmem>>, vector<2x64xf32>
    %c0_121 = arith.constant 0 : index
    %c832 = arith.constant 832 : index
    %126 = vector.load %arg12[%c0_121, %c832] : memref<2x3456xf32, #tpu.memory_space<vmem>>, vector<2x64xf32>
    tpu.vector_store %arg12[%c0_121, %c832], %125 {strides = array<i32>} : memref<2x3456xf32, #tpu.memory_space<vmem>>, vector<2x64xf32>,
    %c17 = arith.constant 17 : index
    %c0_122 = arith.constant 0 : index
    %127 = tpu.strided_load %arg11[%c17, %c0_122] {strides = array<i32: 108, 1>} : memref<180x64xf32, #tpu.memory_space<vmem>>, vector<2x64xf32>
    %c0_123 = arith.constant 0 : index
    %c896 = arith.constant 896 : index
    %128 = vector.load %arg12[%c0_123, %c896] : memref<2x3456xf32, #tpu.memory_space<vmem>>, vector<2x64xf32>
    tpu.vector_store %arg12[%c0_123, %c896], %127 {strides = array<i32>} : memref<2x3456xf32, #tpu.memory_space<vmem>>, vector<2x64xf32>,
    %c18 = arith.constant 18 : index
    %c0_124 = arith.constant 0 : index
    %129 = tpu.strided_load %arg11[%c18, %c0_124] {strides = array<i32: 108, 1>} : memref<180x64xf32, #tpu.memory_space<vmem>>, vector<2x64xf32>
    %c0_125 = arith.constant 0 : index
    %c960 = arith.constant 960 : index
    %130 = vector.load %arg12[%c0_125, %c960] : memref<2x3456xf32, #tpu.memory_space<vmem>>, vector<2x64xf32>
    tpu.vector_store %arg12[%c0_125, %c960], %129 {strides = array<i32>} : memref<2x3456xf32, #tpu.memory_space<vmem>>, vector<2x64xf32>,
    %c19 = arith.constant 19 : index
    %c0_126 = arith.constant 0 : index
    %131 = tpu.strided_load %arg11[%c19, %c0_126] {strides = array<i32: 108, 1>} : memref<180x64xf32, #tpu.memory_space<vmem>>, vector<2x64xf32>
    %c0_127 = arith.constant 0 : index
    %c1024 = arith.constant 1024 : index
    %132 = vector.load %arg12[%c0_127, %c1024] : memref<2x3456xf32, #tpu.memory_space<vmem>>, vector<2x64xf32>
    tpu.vector_store %arg12[%c0_127, %c1024], %131 {strides = array<i32>} : memref<2x3456xf32, #tpu.memory_space<vmem>>, vector<2x64xf32>,
    %c20 = arith.constant 20 : index
    %c0_128 = arith.constant 0 : index
    %133 = tpu.strided_load %arg11[%c20, %c0_128] {strides = array<i32: 108, 1>} : memref<180x64xf32, #tpu.memory_space<vmem>>, vector<2x64xf32>
    %c0_129 = arith.constant 0 : index
    %c1088 = arith.constant 1088 : index
    %134 = vector.load %arg12[%c0_129, %c1088] : memref<2x3456xf32, #tpu.memory_space<vmem>>, vector<2x64xf32>
    tpu.vector_store %arg12[%c0_129, %c1088], %133 {strides = array<i32>} : memref<2x3456xf32, #tpu.memory_space<vmem>>, vector<2x64xf32>,
    %c24_130 = arith.constant 24 : index
    %c0_131 = arith.constant 0 : index
    %135 = tpu.strided_load %arg11[%c24_130, %c0_131] {strides = array<i32: 108, 1>} : memref<180x64xf32, #tpu.memory_space<vmem>>, vector<2x64xf32>
    %c0_132 = arith.constant 0 : index
    %c1152 = arith.constant 1152 : index
    %136 = vector.load %arg12[%c0_132, %c1152] : memref<2x3456xf32, #tpu.memory_space<vmem>>, vector<2x64xf32>
    tpu.vector_store %arg12[%c0_132, %c1152], %135 {strides = array<i32>} : memref<2x3456xf32, #tpu.memory_space<vmem>>, vector<2x64xf32>,
    %c25_133 = arith.constant 25 : index
    %c0_134 = arith.constant 0 : index
    %137 = tpu.strided_load %arg11[%c25_133, %c0_134] {strides = array<i32: 108, 1>} : memref<180x64xf32, #tpu.memory_space<vmem>>, vector<2x64xf32>
    %c0_135 = arith.constant 0 : index
    %c1216 = arith.constant 1216 : index
    %138 = vector.load %arg12[%c0_135, %c1216] : memref<2x3456xf32, #tpu.memory_space<vmem>>, vector<2x64xf32>
    tpu.vector_store %arg12[%c0_135, %c1216], %137 {strides = array<i32>} : memref<2x3456xf32, #tpu.memory_space<vmem>>, vector<2x64xf32>,
    %c26_136 = arith.constant 26 : index
    %c0_137 = arith.constant 0 : index
    %139 = tpu.strided_load %arg11[%c26_136, %c0_137] {strides = array<i32: 108, 1>} : memref<180x64xf32, #tpu.memory_space<vmem>>, vector<2x64xf32>
    %c0_138 = arith.constant 0 : index
    %c1280 = arith.constant 1280 : index
    %140 = vector.load %arg12[%c0_138, %c1280] : memref<2x3456xf32, #tpu.memory_space<vmem>>, vector<2x64xf32>
    tpu.vector_store %arg12[%c0_138, %c1280], %139 {strides = array<i32>} : memref<2x3456xf32, #tpu.memory_space<vmem>>, vector<2x64xf32>,
    %c27 = arith.constant 27 : index
    %c0_139 = arith.constant 0 : index
    %141 = tpu.strided_load %arg11[%c27, %c0_139] {strides = array<i32: 108, 1>} : memref<180x64xf32, #tpu.memory_space<vmem>>, vector<2x64xf32>
    %c0_140 = arith.constant 0 : index
    %c1344 = arith.constant 1344 : index
    %142 = vector.load %arg12[%c0_140, %c1344] : memref<2x3456xf32, #tpu.memory_space<vmem>>, vector<2x64xf32>
    tpu.vector_store %arg12[%c0_140, %c1344], %141 {strides = array<i32>} : memref<2x3456xf32, #tpu.memory_space<vmem>>, vector<2x64xf32>,
    %c28 = arith.constant 28 : index
    %c0_141 = arith.constant 0 : index
    %143 = tpu.strided_load %arg11[%c28, %c0_141] {strides = array<i32: 108, 1>} : memref<180x64xf32, #tpu.memory_space<vmem>>, vector<2x64xf32>
    %c0_142 = arith.constant 0 : index
    %c1408 = arith.constant 1408 : index
    %144 = vector.load %arg12[%c0_142, %c1408] : memref<2x3456xf32, #tpu.memory_space<vmem>>, vector<2x64xf32>
    tpu.vector_store %arg12[%c0_142, %c1408], %143 {strides = array<i32>} : memref<2x3456xf32, #tpu.memory_space<vmem>>, vector<2x64xf32>,
    %c29 = arith.constant 29 : index
    %c0_143 = arith.constant 0 : index
    %145 = tpu.strided_load %arg11[%c29, %c0_143] {strides = array<i32: 108, 1>} : memref<180x64xf32, #tpu.memory_space<vmem>>, vector<2x64xf32>
    %c0_144 = arith.constant 0 : index
    %c1472 = arith.constant 1472 : index
    %146 = vector.load %arg12[%c0_144, %c1472] : memref<2x3456xf32, #tpu.memory_space<vmem>>, vector<2x64xf32>
    tpu.vector_store %arg12[%c0_144, %c1472], %145 {strides = array<i32>} : memref<2x3456xf32, #tpu.memory_space<vmem>>, vector<2x64xf32>,
    %c30 = arith.constant 30 : index
    %c0_145 = arith.constant 0 : index
    %147 = tpu.strided_load %arg11[%c30, %c0_145] {strides = array<i32: 108, 1>} : memref<180x64xf32, #tpu.memory_space<vmem>>, vector<2x64xf32>
    %c0_146 = arith.constant 0 : index
    %c1536 = arith.constant 1536 : index
    %148 = vector.load %arg12[%c0_146, %c1536] : memref<2x3456xf32, #tpu.memory_space<vmem>>, vector<2x64xf32>
    tpu.vector_store %arg12[%c0_146, %c1536], %147 {strides = array<i32>} : memref<2x3456xf32, #tpu.memory_space<vmem>>, vector<2x64xf32>,
    %c31 = arith.constant 31 : index
    %c0_147 = arith.constant 0 : index
    %149 = tpu.strided_load %arg11[%c31, %c0_147] {strides = array<i32: 108, 1>} : memref<180x64xf32, #tpu.memory_space<vmem>>, vector<2x64xf32>
    %c0_148 = arith.constant 0 : index
    %c1600 = arith.constant 1600 : index
    %150 = vector.load %arg12[%c0_148, %c1600] : memref<2x3456xf32, #tpu.memory_space<vmem>>, vector<2x64xf32>
    tpu.vector_store %arg12[%c0_148, %c1600], %149 {strides = array<i32>} : memref<2x3456xf32, #tpu.memory_space<vmem>>, vector<2x64xf32>,
    %c32 = arith.constant 32 : index
    %c0_149 = arith.constant 0 : index
    %151 = tpu.strided_load %arg11[%c32, %c0_149] {strides = array<i32: 108, 1>} : memref<180x64xf32, #tpu.memory_space<vmem>>, vector<2x64xf32>
    %c0_150 = arith.constant 0 : index
    %c1664 = arith.constant 1664 : index
    %152 = vector.load %arg12[%c0_150, %c1664] : memref<2x3456xf32, #tpu.memory_space<vmem>>, vector<2x64xf32>
    tpu.vector_store %arg12[%c0_150, %c1664], %151 {strides = array<i32>} : memref<2x3456xf32, #tpu.memory_space<vmem>>, vector<2x64xf32>,
    %c36 = arith.constant 36 : index
    %c0_151 = arith.constant 0 : index
    %153 = tpu.strided_load %arg11[%c36, %c0_151] {strides = array<i32: 108, 1>} : memref<180x64xf32, #tpu.memory_space<vmem>>, vector<2x64xf32>
    %c0_152 = arith.constant 0 : index
    %c1728 = arith.constant 1728 : index
    %154 = vector.load %arg12[%c0_152, %c1728] : memref<2x3456xf32, #tpu.memory_space<vmem>>, vector<2x64xf32>
    tpu.vector_store %arg12[%c0_152, %c1728], %153 {strides = array<i32>} : memref<2x3456xf32, #tpu.memory_space<vmem>>, vector<2x64xf32>,
    %c37 = arith.constant 37 : index
    %c0_153 = arith.constant 0 : index
    %155 = tpu.strided_load %arg11[%c37, %c0_153] {strides = array<i32: 108, 1>} : memref<180x64xf32, #tpu.memory_space<vmem>>, vector<2x64xf32>
    %c0_154 = arith.constant 0 : index
    %c1792 = arith.constant 1792 : index
    %156 = vector.load %arg12[%c0_154, %c1792] : memref<2x3456xf32, #tpu.memory_space<vmem>>, vector<2x64xf32>
    tpu.vector_store %arg12[%c0_154, %c1792], %155 {strides = array<i32>} : memref<2x3456xf32, #tpu.memory_space<vmem>>, vector<2x64xf32>,
    %c38 = arith.constant 38 : index
    %c0_155 = arith.constant 0 : index
    %157 = tpu.strided_load %arg11[%c38, %c0_155] {strides = array<i32: 108, 1>} : memref<180x64xf32, #tpu.memory_space<vmem>>, vector<2x64xf32>
    %c0_156 = arith.constant 0 : index
    %c1856 = arith.constant 1856 : index
    %158 = vector.load %arg12[%c0_156, %c1856] : memref<2x3456xf32, #tpu.memory_space<vmem>>, vector<2x64xf32>
    tpu.vector_store %arg12[%c0_156, %c1856], %157 {strides = array<i32>} : memref<2x3456xf32, #tpu.memory_space<vmem>>, vector<2x64xf32>,
    %c39 = arith.constant 39 : index
    %c0_157 = arith.constant 0 : index
    %159 = tpu.strided_load %arg11[%c39, %c0_157] {strides = array<i32: 108, 1>} : memref<180x64xf32, #tpu.memory_space<vmem>>, vector<2x64xf32>
    %c0_158 = arith.constant 0 : index
    %c1920 = arith.constant 1920 : index
    %160 = vector.load %arg12[%c0_158, %c1920] : memref<2x3456xf32, #tpu.memory_space<vmem>>, vector<2x64xf32>
    tpu.vector_store %arg12[%c0_158, %c1920], %159 {strides = array<i32>} : memref<2x3456xf32, #tpu.memory_space<vmem>>, vector<2x64xf32>,
    %c40 = arith.constant 40 : index
    %c0_159 = arith.constant 0 : index
    %161 = tpu.strided_load %arg11[%c40, %c0_159] {strides = array<i32: 108, 1>} : memref<180x64xf32, #tpu.memory_space<vmem>>, vector<2x64xf32>
    %c0_160 = arith.constant 0 : index
    %c1984 = arith.constant 1984 : index
    %162 = vector.load %arg12[%c0_160, %c1984] : memref<2x3456xf32, #tpu.memory_space<vmem>>, vector<2x64xf32>
    tpu.vector_store %arg12[%c0_160, %c1984], %161 {strides = array<i32>} : memref<2x3456xf32, #tpu.memory_space<vmem>>, vector<2x64xf32>,
    %c41 = arith.constant 41 : index
    %c0_161 = arith.constant 0 : index
    %163 = tpu.strided_load %arg11[%c41, %c0_161] {strides = array<i32: 108, 1>} : memref<180x64xf32, #tpu.memory_space<vmem>>, vector<2x64xf32>
    %c0_162 = arith.constant 0 : index
    %c2048 = arith.constant 2048 : index
    %164 = vector.load %arg12[%c0_162, %c2048] : memref<2x3456xf32, #tpu.memory_space<vmem>>, vector<2x64xf32>
    tpu.vector_store %arg12[%c0_162, %c2048], %163 {strides = array<i32>} : memref<2x3456xf32, #tpu.memory_space<vmem>>, vector<2x64xf32>,
    %c42 = arith.constant 42 : index
    %c0_163 = arith.constant 0 : index
    %165 = tpu.strided_load %arg11[%c42, %c0_163] {strides = array<i32: 108, 1>} : memref<180x64xf32, #tpu.memory_space<vmem>>, vector<2x64xf32>
    %c0_164 = arith.constant 0 : index
    %c2112 = arith.constant 2112 : index
    %166 = vector.load %arg12[%c0_164, %c2112] : memref<2x3456xf32, #tpu.memory_space<vmem>>, vector<2x64xf32>
    tpu.vector_store %arg12[%c0_164, %c2112], %165 {strides = array<i32>} : memref<2x3456xf32, #tpu.memory_space<vmem>>, vector<2x64xf32>,
    %c43 = arith.constant 43 : index
    %c0_165 = arith.constant 0 : index
    %167 = tpu.strided_load %arg11[%c43, %c0_165] {strides = array<i32: 108, 1>} : memref<180x64xf32, #tpu.memory_space<vmem>>, vector<2x64xf32>
    %c0_166 = arith.constant 0 : index
    %c2176 = arith.constant 2176 : index
    %168 = vector.load %arg12[%c0_166, %c2176] : memref<2x3456xf32, #tpu.memory_space<vmem>>, vector<2x64xf32>
    tpu.vector_store %arg12[%c0_166, %c2176], %167 {strides = array<i32>} : memref<2x3456xf32, #tpu.memory_space<vmem>>, vector<2x64xf32>,
    %c44 = arith.constant 44 : index
    %c0_167 = arith.constant 0 : index
    %169 = tpu.strided_load %arg11[%c44, %c0_167] {strides = array<i32: 108, 1>} : memref<180x64xf32, #tpu.memory_space<vmem>>, vector<2x64xf32>
    %c0_168 = arith.constant 0 : index
    %c2240 = arith.constant 2240 : index
    %170 = vector.load %arg12[%c0_168, %c2240] : memref<2x3456xf32, #tpu.memory_space<vmem>>, vector<2x64xf32>
    tpu.vector_store %arg12[%c0_168, %c2240], %169 {strides = array<i32>} : memref<2x3456xf32, #tpu.memory_space<vmem>>, vector<2x64xf32>,
    %c48 = arith.constant 48 : index
    %c0_169 = arith.constant 0 : index
    %171 = tpu.strided_load %arg11[%c48, %c0_169] {strides = array<i32: 108, 1>} : memref<180x64xf32, #tpu.memory_space<vmem>>, vector<2x64xf32>
    %c0_170 = arith.constant 0 : index
    %c2304 = arith.constant 2304 : index
    %172 = vector.load %arg12[%c0_170, %c2304] : memref<2x3456xf32, #tpu.memory_space<vmem>>, vector<2x64xf32>
    tpu.vector_store %arg12[%c0_170, %c2304], %171 {strides = array<i32>} : memref<2x3456xf32, #tpu.memory_space<vmem>>, vector<2x64xf32>,
    %c49 = arith.constant 49 : index
    %c0_171 = arith.constant 0 : index
    %173 = tpu.strided_load %arg11[%c49, %c0_171] {strides = array<i32: 108, 1>} : memref<180x64xf32, #tpu.memory_space<vmem>>, vector<2x64xf32>
    %c0_172 = arith.constant 0 : index
    %c2368 = arith.constant 2368 : index
    %174 = vector.load %arg12[%c0_172, %c2368] : memref<2x3456xf32, #tpu.memory_space<vmem>>, vector<2x64xf32>
    tpu.vector_store %arg12[%c0_172, %c2368], %173 {strides = array<i32>} : memref<2x3456xf32, #tpu.memory_space<vmem>>, vector<2x64xf32>,
    %c50 = arith.constant 50 : index
    %c0_173 = arith.constant 0 : index
    %175 = tpu.strided_load %arg11[%c50, %c0_173] {strides = array<i32: 108, 1>} : memref<180x64xf32, #tpu.memory_space<vmem>>, vector<2x64xf32>
    %c0_174 = arith.constant 0 : index
    %c2432 = arith.constant 2432 : index
    %176 = vector.load %arg12[%c0_174, %c2432] : memref<2x3456xf32, #tpu.memory_space<vmem>>, vector<2x64xf32>
    tpu.vector_store %arg12[%c0_174, %c2432], %175 {strides = array<i32>} : memref<2x3456xf32, #tpu.memory_space<vmem>>, vector<2x64xf32>,
    %c51 = arith.constant 51 : index
    %c0_175 = arith.constant 0 : index
    %177 = tpu.strided_load %arg11[%c51, %c0_175] {strides = array<i32: 108, 1>} : memref<180x64xf32, #tpu.memory_space<vmem>>, vector<2x64xf32>
    %c0_176 = arith.constant 0 : index
    %c2496 = arith.constant 2496 : index
    %178 = vector.load %arg12[%c0_176, %c2496] : memref<2x3456xf32, #tpu.memory_space<vmem>>, vector<2x64xf32>
    tpu.vector_store %arg12[%c0_176, %c2496], %177 {strides = array<i32>} : memref<2x3456xf32, #tpu.memory_space<vmem>>, vector<2x64xf32>,
    %c52 = arith.constant 52 : index
    %c0_177 = arith.constant 0 : index
    %179 = tpu.strided_load %arg11[%c52, %c0_177] {strides = array<i32: 108, 1>} : memref<180x64xf32, #tpu.memory_space<vmem>>, vector<2x64xf32>
    %c0_178 = arith.constant 0 : index
    %c2560 = arith.constant 2560 : index
    %180 = vector.load %arg12[%c0_178, %c2560] : memref<2x3456xf32, #tpu.memory_space<vmem>>, vector<2x64xf32>
    tpu.vector_store %arg12[%c0_178, %c2560], %179 {strides = array<i32>} : memref<2x3456xf32, #tpu.memory_space<vmem>>, vector<2x64xf32>,
    %c53 = arith.constant 53 : index
    %c0_179 = arith.constant 0 : index
    %181 = tpu.strided_load %arg11[%c53, %c0_179] {strides = array<i32: 108, 1>} : memref<180x64xf32, #tpu.memory_space<vmem>>, vector<2x64xf32>
    %c0_180 = arith.constant 0 : index
    %c2624 = arith.constant 2624 : index
    %182 = vector.load %arg12[%c0_180, %c2624] : memref<2x3456xf32, #tpu.memory_space<vmem>>, vector<2x64xf32>
    tpu.vector_store %arg12[%c0_180, %c2624], %181 {strides = array<i32>} : memref<2x3456xf32, #tpu.memory_space<vmem>>, vector<2x64xf32>,
    %c54 = arith.constant 54 : index
    %c0_181 = arith.constant 0 : index
    %183 = tpu.strided_load %arg11[%c54, %c0_181] {strides = array<i32: 108, 1>} : memref<180x64xf32, #tpu.memory_space<vmem>>, vector<2x64xf32>
    %c0_182 = arith.constant 0 : index
    %c2688 = arith.constant 2688 : index
    %184 = vector.load %arg12[%c0_182, %c2688] : memref<2x3456xf32, #tpu.memory_space<vmem>>, vector<2x64xf32>
    tpu.vector_store %arg12[%c0_182, %c2688], %183 {strides = array<i32>} : memref<2x3456xf32, #tpu.memory_space<vmem>>, vector<2x64xf32>,
    %c55 = arith.constant 55 : index
    %c0_183 = arith.constant 0 : index
    %185 = tpu.strided_load %arg11[%c55, %c0_183] {strides = array<i32: 108, 1>} : memref<180x64xf32, #tpu.memory_space<vmem>>, vector<2x64xf32>
    %c0_184 = arith.constant 0 : index
    %c2752 = arith.constant 2752 : index
    %186 = vector.load %arg12[%c0_184, %c2752] : memref<2x3456xf32, #tpu.memory_space<vmem>>, vector<2x64xf32>
    tpu.vector_store %arg12[%c0_184, %c2752], %185 {strides = array<i32>} : memref<2x3456xf32, #tpu.memory_space<vmem>>, vector<2x64xf32>,
    %c56 = arith.constant 56 : index
    %c0_185 = arith.constant 0 : index
    %187 = tpu.strided_load %arg11[%c56, %c0_185] {strides = array<i32: 108, 1>} : memref<180x64xf32, #tpu.memory_space<vmem>>, vector<2x64xf32>
    %c0_186 = arith.constant 0 : index
    %c2816 = arith.constant 2816 : index
    %188 = vector.load %arg12[%c0_186, %c2816] : memref<2x3456xf32, #tpu.memory_space<vmem>>, vector<2x64xf32>
    tpu.vector_store %arg12[%c0_186, %c2816], %187 {strides = array<i32>} : memref<2x3456xf32, #tpu.memory_space<vmem>>, vector<2x64xf32>,
    %c60 = arith.constant 60 : index
    %c0_187 = arith.constant 0 : index
    %189 = tpu.strided_load %arg11[%c60, %c0_187] {strides = array<i32: 108, 1>} : memref<180x64xf32, #tpu.memory_space<vmem>>, vector<2x64xf32>
    %c0_188 = arith.constant 0 : index
    %c2880 = arith.constant 2880 : index
    %190 = vector.load %arg12[%c0_188, %c2880] : memref<2x3456xf32, #tpu.memory_space<vmem>>, vector<2x64xf32>
    tpu.vector_store %arg12[%c0_188, %c2880], %189 {strides = array<i32>} : memref<2x3456xf32, #tpu.memory_space<vmem>>, vector<2x64xf32>,
    %c61 = arith.constant 61 : index
    %c0_189 = arith.constant 0 : index
    %191 = tpu.strided_load %arg11[%c61, %c0_189] {strides = array<i32: 108, 1>} : memref<180x64xf32, #tpu.memory_space<vmem>>, vector<2x64xf32>
    %c0_190 = arith.constant 0 : index
    %c2944 = arith.constant 2944 : index
    %192 = vector.load %arg12[%c0_190, %c2944] : memref<2x3456xf32, #tpu.memory_space<vmem>>, vector<2x64xf32>
    tpu.vector_store %arg12[%c0_190, %c2944], %191 {strides = array<i32>} : memref<2x3456xf32, #tpu.memory_space<vmem>>, vector<2x64xf32>,
    %c62 = arith.constant 62 : index
    %c0_191 = arith.constant 0 : index
    %193 = tpu.strided_load %arg11[%c62, %c0_191] {strides = array<i32: 108, 1>} : memref<180x64xf32, #tpu.memory_space<vmem>>, vector<2x64xf32>
    %c0_192 = arith.constant 0 : index
    %c3008 = arith.constant 3008 : index
    %194 = vector.load %arg12[%c0_192, %c3008] : memref<2x3456xf32, #tpu.memory_space<vmem>>, vector<2x64xf32>
    tpu.vector_store %arg12[%c0_192, %c3008], %193 {strides = array<i32>} : memref<2x3456xf32, #tpu.memory_space<vmem>>, vector<2x64xf32>,
    %c63 = arith.constant 63 : index
    %c0_193 = arith.constant 0 : index
    %195 = tpu.strided_load %arg11[%c63, %c0_193] {strides = array<i32: 108, 1>} : memref<180x64xf32, #tpu.memory_space<vmem>>, vector<2x64xf32>
    %c0_194 = arith.constant 0 : index
    %c3072 = arith.constant 3072 : index
    %196 = vector.load %arg12[%c0_194, %c3072] : memref<2x3456xf32, #tpu.memory_space<vmem>>, vector<2x64xf32>
    tpu.vector_store %arg12[%c0_194, %c3072], %195 {strides = array<i32>} : memref<2x3456xf32, #tpu.memory_space<vmem>>, vector<2x64xf32>,
    %c64_195 = arith.constant 64 : index
    %c0_196 = arith.constant 0 : index
    %197 = tpu.strided_load %arg11[%c64_195, %c0_196] {strides = array<i32: 108, 1>} : memref<180x64xf32, #tpu.memory_space<vmem>>, vector<2x64xf32>
    %c0_197 = arith.constant 0 : index
    %c3136 = arith.constant 3136 : index
    %198 = vector.load %arg12[%c0_197, %c3136] : memref<2x3456xf32, #tpu.memory_space<vmem>>, vector<2x64xf32>
    tpu.vector_store %arg12[%c0_197, %c3136], %197 {strides = array<i32>} : memref<2x3456xf32, #tpu.memory_space<vmem>>, vector<2x64xf32>,
    %c65 = arith.constant 65 : index
    %c0_198 = arith.constant 0 : index
    %199 = tpu.strided_load %arg11[%c65, %c0_198] {strides = array<i32: 108, 1>} : memref<180x64xf32, #tpu.memory_space<vmem>>, vector<2x64xf32>
    %c0_199 = arith.constant 0 : index
    %c3200 = arith.constant 3200 : index
    %200 = vector.load %arg12[%c0_199, %c3200] : memref<2x3456xf32, #tpu.memory_space<vmem>>, vector<2x64xf32>
    tpu.vector_store %arg12[%c0_199, %c3200], %199 {strides = array<i32>} : memref<2x3456xf32, #tpu.memory_space<vmem>>, vector<2x64xf32>,
    %c66 = arith.constant 66 : index
    %c0_200 = arith.constant 0 : index
    %201 = tpu.strided_load %arg11[%c66, %c0_200] {strides = array<i32: 108, 1>} : memref<180x64xf32, #tpu.memory_space<vmem>>, vector<2x64xf32>
    %c0_201 = arith.constant 0 : index
    %c3264 = arith.constant 3264 : index
    %202 = vector.load %arg12[%c0_201, %c3264] : memref<2x3456xf32, #tpu.memory_space<vmem>>, vector<2x64xf32>
    tpu.vector_store %arg12[%c0_201, %c3264], %201 {strides = array<i32>} : memref<2x3456xf32, #tpu.memory_space<vmem>>, vector<2x64xf32>,
    %c67 = arith.constant 67 : index
    %c0_202 = arith.constant 0 : index
    %203 = tpu.strided_load %arg11[%c67, %c0_202] {strides = array<i32: 108, 1>} : memref<180x64xf32, #tpu.memory_space<vmem>>, vector<2x64xf32>
    %c0_203 = arith.constant 0 : index
    %c3328 = arith.constant 3328 : index
    %204 = vector.load %arg12[%c0_203, %c3328] : memref<2x3456xf32, #tpu.memory_space<vmem>>, vector<2x64xf32>
    tpu.vector_store %arg12[%c0_203, %c3328], %203 {strides = array<i32>} : memref<2x3456xf32, #tpu.memory_space<vmem>>, vector<2x64xf32>,
    %c68 = arith.constant 68 : index
    %c0_204 = arith.constant 0 : index
    %205 = tpu.strided_load %arg11[%c68, %c0_204] {strides = array<i32: 108, 1>} : memref<180x64xf32, #tpu.memory_space<vmem>>, vector<2x64xf32>
    %c0_205 = arith.constant 0 : index
    %c3392 = arith.constant 3392 : index
    %206 = vector.load %arg12[%c0_205, %c3392] : memref<2x3456xf32, #tpu.memory_space<vmem>>, vector<2x64xf32>
    tpu.vector_store %arg12[%c0_205, %c3392], %205 {strides = array<i32>} : memref<2x3456xf32, #tpu.memory_space<vmem>>, vector<2x64xf32>,
    tpu.wait_dma2 semaphore(%arg14 : memref<!tpu.dma_semaphore, #tpu.memory_space<semaphore_mem>>) src(%arg6 : memref<3456x512xbf16, #tpu.memory_space<any>>) dst(%arg13 : memref<3456x512xbf16, #tpu.memory_space<vmem>>)
    %c0_206 = arith.constant 0 : index
    %c0_207 = arith.constant 0 : index
    %207 = vector.load %arg12[%c0_206, %c0_207] : memref<2x3456xf32, #tpu.memory_space<vmem>>, vector<2x3456xf32>
    %208 = arith.truncf %207 : vector<2x3456xf32> to vector<2x3456xbf16>
    %c0_208 = arith.constant 0 : index
    %c0_209 = arith.constant 0 : index
    %209 = vector.load %arg13[%c0_208, %c0_209] : memref<3456x512xbf16, #tpu.memory_space<vmem>>, vector<3456x512xbf16>
    %cst_210 = arith.constant dense<0.000000e+00> : vector<2x512xf32>
    %210 = tpu.matmul %208, %209, %cst_210 {dimension_numbers = #tpu.dot_dimension_numbers<[1], [0], [0], [1], [0, 0, 1, 1], [], []>} : vector<2x3456xbf16>, vector<3456x512xbf16>, vector<2x512xf32> -> vector<2x512xf32>
    %c0_211 = arith.constant 0 : index
    %c0_212 = arith.constant 0 : index
    %211 = vector.load %arg7[%c0_211, %c0_212] : memref<1x512xf32, #tpu.memory_space<vmem>>, vector<1x512xf32>
    %212 = vector.broadcast %211 : vector<1x512xf32> to vector<2x512xf32>
    %213 = arith.addf %210, %212 : vector<2x512xf32>
    %cst_213 = arith.constant 0.000000e+00 : f32
    %214 = vector.broadcast %cst_213 : f32 to vector<2x512xf32>
    %215 = arith.maximumf %213, %214 : vector<2x512xf32>
    %c0_214 = arith.constant 0 : index
    %c0_215 = arith.constant 0 : index
    %216 = vector.load %arg8[%c0_214, %c0_215] : memref<2x512xf32, #tpu.memory_space<vmem>>, vector<2x512xf32>
    tpu.vector_store %arg8[%c0_214, %c0_215], %215 {strides = array<i32>} : memref<2x512xf32, #tpu.memory_space<vmem>>, vector<2x512xf32>,
    return
  }
}

</mosaic_0001>

<bundles_post_ra>
// kernel: embedding_net_forward.1
= control target key start
LH: loop header
LB: loop body
LE: loop exit
PB: predicated region body
PF: predicated region fallthrough
CT: control target
= control target key end

     0   :  { %13 = vsyncpa [#allocation9], 0  ;;  %s15012_s27 = smov [#allocation6]   ;;  %s15019_s9 = smov 0   ;;  %s18371_s0 = inlined_call_operand.vmem [shape: f32[224,128], index: 0, kind: input, shape index: {}]   ;;  %s18372_s1 = inlined_call_operand.vmem [shape: f32[1,128], index: 1, kind: input, shape index: {}]   ;;  %s18373_s2 = inlined_call_operand.vmem [shape: bf16[4,128,64], index: 2, kind: input, shape index: {}]   ;;  %s18374_s3 = inlined_call_operand.vmem [shape: f32[1,64], index: 3, kind: input, shape index: {}]   ;;  %s18375_s4 = inlined_call_operand.vmem [shape: bf16[9,64,64], index: 4, kind: input, shape index: {}]   ;;  %s18376_s5 = inlined_call_operand.vmem [shape: f32[1,64], index: 5, kind: input, shape index: {}]   ;;  %s18377_s6 = inlined_call_operand.vmem [shape: bf16[3456,512], index: 6, kind: input, shape index: {}]   ;;  %s18378_s7 = inlined_call_operand.vmem [shape: f32[1,512], index: 7, kind: input, shape index: {}]   ;;  %s18379_s8 = inlined_call_operand.hbm [shape: f32[2,512], index: 8, kind: output, shape index: {}]  }
   0x1   :  { %s18381_s30 = smov %s18377_s6  ;;  %s15021_s10 = smov 0  }
   0x2 LB: > { %v49_v0 = vld [vmem:[%s14951_s30] sm:$0xf]  ;;  %v51_v1 = vld [vmem:[%s14951_s30 + $0x4] sm:$0xf]  ;;  %v53_v2 = vld [vmem:[%s14951_s30 + $0x8] sm:$0xf]  ;;  %s14959_s10 = sphi %s15021_s10, %s45_s10   ;;  %s14955_s9 = sphi %s15019_s9, %s18382_s9   ;;  %s14951_s30 = sphi %s18381_s30, %s1782_s30   ;;  %s14947_s27 = sphi %s15012_s27, %s1783_s27  }
   0x3   : > { %50 = vst [vmem:[%s14947_s27] sm:$0xf] %v49_v0  ;;  %52 = vst [vmem:[%s14947_s27 + $0x8] sm:$0xf] %v51_v1  ;;  %v55_v3 = vld [vmem:[%s14951_s30 + $0xc] sm:$0xf]  ;;  %s1777_s11 = sadd.s32 1, %s14955_s9 }
   0x4   : > { %54 = vst [vmem:[%s14947_s27 + $0x10] sm:$0xf] %v53_v2  ;;  %v57_v4 = vld [vmem:[%s14951_s30 + $0x20] sm:$0xf]  ;;  %v59_v5 = vld [vmem:[%s14951_s30 + $0x24] sm:$0xf] }
   0x5   : > { %56 = vst [vmem:[%s14947_s27 + $0x18] sm:$0xf] %v55_v3  ;;  %58 = vst [vmem:[%s14947_s27 + $0x20] sm:$0xf] %v57_v4  ;;  %v61_v6 = vld [vmem:[%s14951_s30 + $0x28] sm:$0xf] }
   0x6   : > { %60 = vst [vmem:[%s14947_s27 + $0x28] sm:$0xf] %v59_v5  ;;  %v63_v7 = vld [vmem:[%s14951_s30 + $0x2c] sm:$0xf]  ;;  %v65_v8 = vld [vmem:[%s14951_s30 + $0x40] sm:$0xf] }
   0x7   : > { %62 = vst [vmem:[%s14947_s27 + $0x30] sm:$0xf] %v61_v6  ;;  %64 = vst [vmem:[%s14947_s27 + $0x38] sm:$0xf] %v63_v7  ;;  %v67_v9 = vld [vmem:[%s14951_s30 + $0x44] sm:$0xf] }
   0x8   : > { %66 = vst [vmem:[%s14947_s27 + $0x40] sm:$0xf] %v65_v8  ;;  %v69_v10 = vld [vmem:[%s14951_s30 + $0x48] sm:$0xf]  ;;  %v71_v11 = vld [vmem:[%s14951_s30 + $0x4c] sm:$0xf] }
   0x9   : > { %68 = vst [vmem:[%s14947_s27 + $0x48] sm:$0xf] %v67_v9  ;;  %70 = vst [vmem:[%s14947_s27 + $0x50] sm:$0xf] %v69_v10  ;;  %v73_v12 = vld [vmem:[%s14951_s30 + $0x60] sm:$0xf] }
   0xa   : > { %72 = vst [vmem:[%s14947_s27 + $0x58] sm:$0xf] %v71_v11  ;;  %v75_v13 = vld [vmem:[%s14951_s30 + $0x64] sm:$0xf]  ;;  %v77_v14 = vld [vmem:[%s14951_s30 + $0x68] sm:$0xf] }
   0xb   : > { %74 = vst [vmem:[%s14947_s27 + $0x60] sm:$0xf] %v73_v12  ;;  %76 = vst [vmem:[%s14947_s27 + $0x68] sm:$0xf] %v75_v13  ;;  %v79_v15 = vld [vmem:[%s14951_s30 + $0x6c] sm:$0xf] }
   0xc   : > { %78 = vst [vmem:[%s14947_s27 + $0x70] sm:$0xf] %v77_v14  ;;  %v81_v16 = vld [vmem:[%s14951_s30 + $0x80] sm:$0xf]  ;;  %v83_v17 = vld [vmem:[%s14951_s30 + $0x84] sm:$0xf] }
   0xd   : > { %80 = vst [vmem:[%s14947_s27 + $0x78] sm:$0xf] %v79_v15  ;;  %82 = vst [vmem:[%s14947_s27 + $0x80] sm:$0xf] %v81_v16  ;;  %v85_v18 = vld [vmem:[%s14951_s30 + $0x88] sm:$0xf] }
   0xe   : > { %84 = vst [vmem:[%s14947_s27 + $0x88] sm:$0xf] %v83_v17  ;;  %v87_v19 = vld [vmem:[%s14951_s30 + $0x8c] sm:$0xf]  ;;  %v89_v20 = vld [vmem:[%s14951_s30 + $0xa0] sm:$0xf] }
   0xf   : > { %86 = vst [vmem:[%s14947_s27 + $0x90] sm:$0xf] %v85_v18  ;;  %88 = vst [vmem:[%s14947_s27 + $0x98] sm:$0xf] %v87_v19  ;;  %v91_v21 = vld [vmem:[%s14951_s30 + $0xa4] sm:$0xf] }
  0x10   : > { %90 = vst [vmem:[%s14947_s27 + $0xa0] sm:$0xf] %v89_v20  ;;  %v93_v22 = vld [vmem:[%s14951_s30 + $0xa8] sm:$0xf]  ;;  %v95_v23 = vld [vmem:[%s14951_s30 + $0xac] sm:$0xf] }
  0x11   : > { %92 = vst [vmem:[%s14947_s27 + $0xa8] sm:$0xf] %v91_v21  ;;  %94 = vst [vmem:[%s14947_s27 + $0xb0] sm:$0xf] %v93_v22  ;;  %v97_v24 = vld [vmem:[%s14951_s30 + $0xc0] sm:$0xf] }
  0x12   : > { %96 = vst [vmem:[%s14947_s27 + $0xb8] sm:$0xf] %v95_v23  ;;  %v99_v25 = vld [vmem:[%s14951_s30 + $0xc4] sm:$0xf]  ;;  %v101_v26 = vld [vmem:[%s14951_s30 + $0xc8] sm:$0xf] }
  0x13   : > { %98 = vst [vmem:[%s14947_s27 + $0xc0] sm:$0xf] %v97_v24  ;;  %100 = vst [vmem:[%s14947_s27 + $0xc8] sm:$0xf] %v99_v25  ;;  %v103_v27 = vld [vmem:[%s14951_s30 + $0xcc] sm:$0xf] }
  0x14   : > { %102 = vst [vmem:[%s14947_s27 + $0xd0] sm:$0xf] %v101_v26  ;;  %v105_v28 = vld [vmem:[%s14951_s30 + $0xe0] sm:$0xf]  ;;  %v107_v29 = vld [vmem:[%s14951_s30 + $0xe4] sm:$0xf] }
  0x15   : > { %104 = vst [vmem:[%s14947_s27 + $0xd8] sm:$0xf] %v103_v27  ;;  %106 = vst [vmem:[%s14947_s27 + $0xe0] sm:$0xf] %v105_v28  ;;  %v109_v30 = vld [vmem:[%s14951_s30 + $0xe8] sm:$0xf] }
  0x16   : > { %108 = vst [vmem:[%s14947_s27 + $0xe8] sm:$0xf] %v107_v29  ;;  %v111_v31 = vld [vmem:[%s14951_s30 + $0xec] sm:$0xf]  ;;  %v113_v32 = vld [vmem:[%s14951_s30 + $0x100] sm:$0xf] }
  0x17   : > { %110 = vst [vmem:[%s14947_s27 + $0xf0] sm:$0xf] %v109_v30  ;;  %112 = vst [vmem:[%s14947_s27 + $0xf8] sm:$0xf] %v111_v31  ;;  %v115_v33 = vld [vmem:[%s14951_s30 + $0x104] sm:$0xf] }
  0x18   : > { %114 = vst [vmem:[%s14947_s27 + $0x100] sm:$0xf] %v113_v32  ;;  %v117_v34 = vld [vmem:[%s14951_s30 + $0x108] sm:$0xf]  ;;  %v119_v35 = vld [vmem:[%s14951_s30 + $0x10c] sm:$0xf] }
  0x19   : > { %116 = vst [vmem:[%s14947_s27 + $0x108] sm:$0xf] %v115_v33  ;;  %118 = vst [vmem:[%s14947_s27 + $0x110] sm:$0xf] %v117_v34  ;;  %v121_v36 = vld [vmem:[%s14951_s30 + $0x120] sm:$0xf] }
  0x1a   : > { %120 = vst [vmem:[%s14947_s27 + $0x118] sm:$0xf] %v119_v35  ;;  %v123_v37 = vld [vmem:[%s14951_s30 + $0x124] sm:$0xf]  ;;  %v125_v38 = vld [vmem:[%s14951_s30 + $0x128] sm:$0xf] }
  0x1b   : > { %122 = vst [vmem:[%s14947_s27 + $0x120] sm:$0xf] %v121_v36  ;;  %124 = vst [vmem:[%s14947_s27 + $0x128] sm:$0xf] %v123_v37  ;;  %v127_v39 = vld [vmem:[%s14951_s30 + $0x12c] sm:$0xf] }
  0x1c   : > { %126 = vst [vmem:[%s14947_s27 + $0x130] sm:$0xf] %v125_v38  ;;  %v129_v40 = vld [vmem:[%s14951_s30 + $0x140] sm:$0xf]  ;;  %v131_v41 = vld [vmem:[%s14951_s30 + $0x144] sm:$0xf] }
  0x1d   : > { %128 = vst [vmem:[%s14947_s27 + $0x138] sm:$0xf] %v127_v39  ;;  %130 = vst [vmem:[%s14947_s27 + $0x140] sm:$0xf] %v129_v40  ;;  %v133_v42 = vld [vmem:[%s14951_s30 + $0x148] sm:$0xf] }
  0x1e   : > { %132 = vst [vmem:[%s14947_s27 + $0x148] sm:$0xf] %v131_v41  ;;  %v135_v43 = vld [vmem:[%s14951_s30 + $0x14c] sm:$0xf]  ;;  %v137_v44 = vld [vmem:[%s14951_s30 + $0x160] sm:$0xf] }
  0x1f   : > { %134 = vst [vmem:[%s14947_s27 + $0x150] sm:$0xf] %v133_v42  ;;  %136 = vst [vmem:[%s14947_s27 + $0x158] sm:$0xf] %v135_v43  ;;  %v139_v45 = vld [vmem:[%s14951_s30 + $0x164] sm:$0xf] }
  0x20   : > { %138 = vst [vmem:[%s14947_s27 + $0x160] sm:$0xf] %v137_v44  ;;  %v141_v46 = vld [vmem:[%s14951_s30 + $0x168] sm:$0xf]  ;;  %v143_v47 = vld [vmem:[%s14951_s30 + $0x16c] sm:$0xf] }
  0x21   : > { %140 = vst [vmem:[%s14947_s27 + $0x168] sm:$0xf] %v139_v45  ;;  %142 = vst [vmem:[%s14947_s27 + $0x170] sm:$0xf] %v141_v46  ;;  %v145_v48 = vld [vmem:[%s14951_s30 + $0x180] sm:$0xf] }
  0x22   : > { %144 = vst [vmem:[%s14947_s27 + $0x178] sm:$0xf] %v143_v47  ;;  %v147_v49 = vld [vmem:[%s14951_s30 + $0x184] sm:$0xf]  ;;  %v149_v50 = vld [vmem:[%s14951_s30 + $0x188] sm:$0xf] }
  0x23   : > { %146 = vst [vmem:[%s14947_s27 + $0x180] sm:$0xf] %v145_v48  ;;  %148 = vst [vmem:[%s14947_s27 + $0x188] sm:$0xf] %v147_v49  ;;  %v151_v51 = vld [vmem:[%s14951_s30 + $0x18c] sm:$0xf] }
  0x24   : > { %150 = vst [vmem:[%s14947_s27 + $0x190] sm:$0xf] %v149_v50  ;;  %v153_v52 = vld [vmem:[%s14951_s30 + $0x1a0] sm:$0xf]  ;;  %v155_v53 = vld [vmem:[%s14951_s30 + $0x1a4] sm:$0xf] }
  0x25   : > { %152 = vst [vmem:[%s14947_s27 + $0x198] sm:$0xf] %v151_v51  ;;  %154 = vst [vmem:[%s14947_s27 + $0x1a0] sm:$0xf] %v153_v52  ;;  %v157_v54 = vld [vmem:[%s14951_s30 + $0x1a8] sm:$0xf] }
  0x26   : > { %156 = vst [vmem:[%s14947_s27 + $0x1a8] sm:$0xf] %v155_v53  ;;  %v159_v55 = vld [vmem:[%s14951_s30 + $0x1ac] sm:$0xf]  ;;  %v161_v56 = vld [vmem:[%s14951_s30 + $0x1c0] sm:$0xf] }
  0x27   : > { %158 = vst [vmem:[%s14947_s27 + $0x1b0] sm:$0xf] %v157_v54  ;;  %160 = vst [vmem:[%s14947_s27 + $0x1b8] sm:$0xf] %v159_v55  ;;  %v163_v57 = vld [vmem:[%s14951_s30 + $0x1c4] sm:$0xf] }
  0x28   : > { %162 = vst [vmem:[%s14947_s27 + $0x1c0] sm:$0xf] %v161_v56  ;;  %v165_v58 = vld [vmem:[%s14951_s30 + $0x1c8] sm:$0xf]  ;;  %v167_v59 = vld [vmem:[%s14951_s30 + $0x1cc] sm:$0xf] }
  0x29   : > { %164 = vst [vmem:[%s14947_s27 + $0x1c8] sm:$0xf] %v163_v57  ;;  %166 = vst [vmem:[%s14947_s27 + $0x1d0] sm:$0xf] %v165_v58  ;;  %v169_v60 = vld [vmem:[%s14951_s30 + $0x1e0] sm:$0xf] }
  0x2a   : > { %168 = vst [vmem:[%s14947_s27 + $0x1d8] sm:$0xf] %v167_v59  ;;  %v171_v61 = vld [vmem:[%s14951_s30 + $0x1e4] sm:$0xf]  ;;  %v173_v62 = vld [vmem:[%s14951_s30 + $0x1e8] sm:$0xf] }
  0x2b   : > { %170 = vst [vmem:[%s14947_s27 + $0x1e0] sm:$0xf] %v169_v60  ;;  %172 = vst [vmem:[%s14947_s27 + $0x1e8] sm:$0xf] %v171_v61  ;;  %v175_v63 = vld [vmem:[%s14951_s30 + $0x1ec] sm:$0xf] }
  0x2c   : > { %174 = vst [vmem:[%s14947_s27 + $0x1f0] sm:$0xf] %v173_v62  ;;  %v177_v0 = vld [vmem:[%s14951_s30 + $0x200] sm:$0xf]  ;;  %v179_v1 = vld [vmem:[%s14951_s30 + $0x204] sm:$0xf] }
  0x2d   : > { %176 = vst [vmem:[%s14947_s27 + $0x1f8] sm:$0xf] %v175_v63  ;;  %178 = vst [vmem:[%s14947_s27 + $0x200] sm:$0xf] %v177_v0  ;;  %v181_v2 = vld [vmem:[%s14951_s30 + $0x208] sm:$0xf] }
  0x2e   : > { %180 = vst [vmem:[%s14947_s27 + $0x208] sm:$0xf] %v179_v1  ;;  %v183_v3 = vld [vmem:[%s14951_s30 + $0x20c] sm:$0xf]  ;;  %v185_v4 = vld [vmem:[%s14951_s30 + $0x220] sm:$0xf] }
  0x2f   : > { %182 = vst [vmem:[%s14947_s27 + $0x210] sm:$0xf] %v181_v2  ;;  %184 = vst [vmem:[%s14947_s27 + $0x218] sm:$0xf] %v183_v3  ;;  %v187_v5 = vld [vmem:[%s14951_s30 + $0x224] sm:$0xf] }
  0x30   : > { %186 = vst [vmem:[%s14947_s27 + $0x220] sm:$0xf] %v185_v4  ;;  %v189_v6 = vld [vmem:[%s14951_s30 + $0x228] sm:$0xf]  ;;  %v191_v7 = vld [vmem:[%s14951_s30 + $0x22c] sm:$0xf] }
  0x31   : > { %188 = vst [vmem:[%s14947_s27 + $0x228] sm:$0xf] %v187_v5  ;;  %190 = vst [vmem:[%s14947_s27 + $0x230] sm:$0xf] %v189_v6  ;;  %v193_v8 = vld [vmem:[%s14951_s30 + $0x240] sm:$0xf] }
  0x32   : > { %192 = vst [vmem:[%s14947_s27 + $0x238] sm:$0xf] %v191_v7  ;;  %v195_v9 = vld [vmem:[%s14951_s30 + $0x244] sm:$0xf]  ;;  %v197_v10 = vld [vmem:[%s14951_s30 + $0x248] sm:$0xf] }
  0x33   : > { %194 = vst [vmem:[%s14947_s27 + $0x240] sm:$0xf] %v193_v8  ;;  %196 = vst [vmem:[%s14947_s27 + $0x248] sm:$0xf] %v195_v9  ;;  %v199_v11 = vld [vmem:[%s14951_s30 + $0x24c] sm:$0xf] }
  0x34   : > { %198 = vst [vmem:[%s14947_s27 + $0x250] sm:$0xf] %v197_v10  ;;  %v201_v12 = vld [vmem:[%s14951_s30 + $0x260] sm:$0xf]  ;;  %v203_v13 = vld [vmem:[%s14951_s30 + $0x264] sm:$0xf] }
  0x35   : > { %200 = vst [vmem:[%s14947_s27 + $0x258] sm:$0xf] %v199_v11  ;;  %202 = vst [vmem:[%s14947_s27 + $0x260] sm:$0xf] %v201_v12  ;;  %v205_v14 = vld [vmem:[%s14951_s30 + $0x268] sm:$0xf] }
  0x36   : > { %204 = vst [vmem:[%s14947_s27 + $0x268] sm:$0xf] %v203_v13  ;;  %v207_v15 = vld [vmem:[%s14951_s30 + $0x26c] sm:$0xf]  ;;  %v209_v16 = vld [vmem:[%s14951_s30 + $0x280] sm:$0xf] }
  0x37   : > { %206 = vst [vmem:[%s14947_s27 + $0x270] sm:$0xf] %v205_v14  ;;  %208 = vst [vmem:[%s14947_s27 + $0x278] sm:$0xf] %v207_v15  ;;  %v211_v17 = vld [vmem:[%s14951_s30 + $0x284] sm:$0xf] }
  0x38   : > { %210 = vst [vmem:[%s14947_s27 + $0x280] sm:$0xf] %v209_v16  ;;  %v213_v18 = vld [vmem:[%s14951_s30 + $0x288] sm:$0xf]  ;;  %v215_v19 = vld [vmem:[%s14951_s30 + $0x28c] sm:$0xf] }
  0x39   : > { %212 = vst [vmem:[%s14947_s27 + $0x288] sm:$0xf] %v211_v17  ;;  %214 = vst [vmem:[%s14947_s27 + $0x290] sm:$0xf] %v213_v18  ;;  %v217_v20 = vld [vmem:[%s14951_s30 + $0x2a0] sm:$0xf] }
  0x3a   : > { %216 = vst [vmem:[%s14947_s27 + $0x298] sm:$0xf] %v215_v19  ;;  %v219_v21 = vld [vmem:[%s14951_s30 + $0x2a4] sm:$0xf]  ;;  %v221_v22 = vld [vmem:[%s14951_s30 + $0x2a8] sm:$0xf] }
  0x3b   : > { %218 = vst [vmem:[%s14947_s27 + $0x2a0] sm:$0xf] %v217_v20  ;;  %220 = vst [vmem:[%s14947_s27 + $0x2a8] sm:$0xf] %v219_v21  ;;  %v223_v23 = vld [vmem:[%s14951_s30 + $0x2ac] sm:$0xf] }
  0x3c   : > { %222 = vst [vmem:[%s14947_s27 + $0x2b0] sm:$0xf] %v221_v22  ;;  %v225_v24 = vld [vmem:[%s14951_s30 + $0x2c0] sm:$0xf]  ;;  %v227_v25 = vld [vmem:[%s14951_s30 + $0x2c4] sm:$0xf] }
  0x3d   : > { %224 = vst [vmem:[%s14947_s27 + $0x2b8] sm:$0xf] %v223_v23  ;;  %226 = vst [vmem:[%s14947_s27 + $0x2c0] sm:$0xf] %v225_v24  ;;  %v229_v26 = vld [vmem:[%s14951_s30 + $0x2c8] sm:$0xf] }
  0x3e   : > { %228 = vst [vmem:[%s14947_s27 + $0x2c8] sm:$0xf] %v227_v25  ;;  %v231_v27 = vld [vmem:[%s14951_s30 + $0x2cc] sm:$0xf]  ;;  %v233_v28 = vld [vmem:[%s14951_s30 + $0x2e0] sm:$0xf] }
  0x3f   : > { %230 = vst [vmem:[%s14947_s27 + $0x2d0] sm:$0xf] %v229_v26  ;;  %232 = vst [vmem:[%s14947_s27 + $0x2d8] sm:$0xf] %v231_v27  ;;  %v235_v29 = vld [vmem:[%s14951_s30 + $0x2e4] sm:$0xf] }
  0x40   : > { %234 = vst [vmem:[%s14947_s27 + $0x2e0] sm:$0xf] %v233_v28  ;;  %v237_v30 = vld [vmem:[%s14951_s30 + $0x2e8] sm:$0xf]  ;;  %v239_v31 = vld [vmem:[%s14951_s30 + $0x2ec] sm:$0xf] }
  0x41   : > { %236 = vst [vmem:[%s14947_s27 + $0x2e8] sm:$0xf] %v235_v29  ;;  %238 = vst [vmem:[%s14947_s27 + $0x2f0] sm:$0xf] %v237_v30  ;;  %v241_v32 = vld [vmem:[%s14951_s30 + $0x300] sm:$0xf] }
  0x42   : > { %240 = vst [vmem:[%s14947_s27 + $0x2f8] sm:$0xf] %v239_v31  ;;  %v243_v33 = vld [vmem:[%s14951_s30 + $0x304] sm:$0xf]  ;;  %v245_v34 = vld [vmem:[%s14951_s30 + $0x308] sm:$0xf] }
  0x43   : > { %242 = vst [vmem:[%s14947_s27 + $0x300] sm:$0xf] %v241_v32  ;;  %244 = vst [vmem:[%s14947_s27 + $0x308] sm:$0xf] %v243_v33  ;;  %v247_v35 = vld [vmem:[%s14951_s30 + $0x30c] sm:$0xf] }
  0x44   : > { %246 = vst [vmem:[%s14947_s27 + $0x310] sm:$0xf] %v245_v34  ;;  %v249_v36 = vld [vmem:[%s14951_s30 + $0x320] sm:$0xf]  ;;  %v251_v37 = vld [vmem:[%s14951_s30 + $0x324] sm:$0xf] }
  0x45   : > { %248 = vst [vmem:[%s14947_s27 + $0x318] sm:$0xf] %v247_v35  ;;  %250 = vst [vmem:[%s14947_s27 + $0x320] sm:$0xf] %v249_v36  ;;  %v253_v38 = vld [vmem:[%s14951_s30 + $0x328] sm:$0xf] }
  0x46   : > { %252 = vst [vmem:[%s14947_s27 + $0x328] sm:$0xf] %v251_v37  ;;  %v255_v39 = vld [vmem:[%s14951_s30 + $0x32c] sm:$0xf]  ;;  %v257_v40 = vld [vmem:[%s14951_s30 + $0x340] sm:$0xf] }
  0x47   : > { %254 = vst [vmem:[%s14947_s27 + $0x330] sm:$0xf] %v253_v38  ;;  %256 = vst [vmem:[%s14947_s27 + $0x338] sm:$0xf] %v255_v39  ;;  %v259_v41 = vld [vmem:[%s14951_s30 + $0x344] sm:$0xf] }
  0x48   : > { %258 = vst [vmem:[%s14947_s27 + $0x340] sm:$0xf] %v257_v40  ;;  %v261_v42 = vld [vmem:[%s14951_s30 + $0x348] sm:$0xf]  ;;  %v263_v43 = vld [vmem:[%s14951_s30 + $0x34c] sm:$0xf] }
  0x49   : > { %260 = vst [vmem:[%s14947_s27 + $0x348] sm:$0xf] %v259_v41  ;;  %262 = vst [vmem:[%s14947_s27 + $0x350] sm:$0xf] %v261_v42  ;;  %v265_v44 = vld [vmem:[%s14951_s30 + $0x360] sm:$0xf] }
  0x4a   : > { %264 = vst [vmem:[%s14947_s27 + $0x358] sm:$0xf] %v263_v43  ;;  %v267_v45 = vld [vmem:[%s14951_s30 + $0x364] sm:$0xf]  ;;  %v269_v46 = vld [vmem:[%s14951_s30 + $0x368] sm:$0xf] }
  0x4b   : > { %266 = vst [vmem:[%s14947_s27 + $0x360] sm:$0xf] %v265_v44  ;;  %268 = vst [vmem:[%s14947_s27 + $0x368] sm:$0xf] %v267_v45  ;;  %v271_v47 = vld [vmem:[%s14951_s30 + $0x36c] sm:$0xf] }
  0x4c   : > { %270 = vst [vmem:[%s14947_s27 + $0x370] sm:$0xf] %v269_v46  ;;  %v273_v48 = vld [vmem:[%s14951_s30 + $0x380] sm:$0xf]  ;;  %v275_v49 = vld [vmem:[%s14951_s30 + $0x384] sm:$0xf] }
  0x4d   : > { %272 = vst [vmem:[%s14947_s27 + $0x378] sm:$0xf] %v271_v47  ;;  %274 = vst [vmem:[%s14947_s27 + $0x380] sm:$0xf] %v273_v48  ;;  %v277_v50 = vld [vmem:[%s14951_s30 + $0x388] sm:$0xf] }
  0x4e   : > { %276 = vst [vmem:[%s14947_s27 + $0x388] sm:$0xf] %v275_v49  ;;  %v279_v51 = vld [vmem:[%s14951_s30 + $0x38c] sm:$0xf]  ;;  %v281_v52 = vld [vmem:[%s14951_s30 + $0x3a0] sm:$0xf] }
  0x4f   : > { %278 = vst [vmem:[%s14947_s27 + $0x390] sm:$0xf] %v277_v50  ;;  %280 = vst [vmem:[%s14947_s27 + $0x398] sm:$0xf] %v279_v51  ;;  %v283_v53 = vld [vmem:[%s14951_s30 + $0x3a4] sm:$0xf] }
  0x50   : > { %282 = vst [vmem:[%s14947_s27 + $0x3a0] sm:$0xf] %v281_v52  ;;  %v285_v54 = vld [vmem:[%s14951_s30 + $0x3a8] sm:$0xf]  ;;  %v287_v55 = vld [vmem:[%s14951_s30 + $0x3ac] sm:$0xf] }
  0x51   : > { %284 = vst [vmem:[%s14947_s27 + $0x3a8] sm:$0xf] %v283_v53  ;;  %286 = vst [vmem:[%s14947_s27 + $0x3b0] sm:$0xf] %v285_v54  ;;  %v289_v56 = vld [vmem:[%s14951_s30 + $0x3c0] sm:$0xf] }
  0x52   : > { %288 = vst [vmem:[%s14947_s27 + $0x3b8] sm:$0xf] %v287_v55  ;;  %v291_v57 = vld [vmem:[%s14951_s30 + $0x3c4] sm:$0xf]  ;;  %v293_v58 = vld [vmem:[%s14951_s30 + $0x3c8] sm:$0xf] }
  0x53   : > { %290 = vst [vmem:[%s14947_s27 + $0x3c0] sm:$0xf] %v289_v56  ;;  %292 = vst [vmem:[%s14947_s27 + $0x3c8] sm:$0xf] %v291_v57  ;;  %v295_v59 = vld [vmem:[%s14951_s30 + $0x3cc] sm:$0xf] }
  0x54   : > { %294 = vst [vmem:[%s14947_s27 + $0x3d0] sm:$0xf] %v293_v58  ;;  %v297_v60 = vld [vmem:[%s14951_s30 + $0x3e0] sm:$0xf]  ;;  %v299_v61 = vld [vmem:[%s14951_s30 + $0x3e4] sm:$0xf] }
  0x55   : > { %296 = vst [vmem:[%s14947_s27 + $0x3d8] sm:$0xf] %v295_v59  ;;  %298 = vst [vmem:[%s14947_s27 + $0x3e0] sm:$0xf] %v297_v60  ;;  %v301_v62 = vld [vmem:[%s14951_s30 + $0x3e8] sm:$0xf] }
  0x56   : > { %300 = vst [vmem:[%s14947_s27 + $0x3e8] sm:$0xf] %v299_v61  ;;  %v303_v63 = vld [vmem:[%s14951_s30 + $0x3ec] sm:$0xf]  ;;  %v305_v0 = vld [vmem:[%s14951_s30 + $0x400] sm:$0xf] }
  0x57   : > { %302 = vst [vmem:[%s14947_s27 + $0x3f0] sm:$0xf] %v301_v62  ;;  %304 = vst [vmem:[%s14947_s27 + $0x3f8] sm:$0xf] %v303_v63  ;;  %v307_v1 = vld [vmem:[%s14951_s30 + $0x404] sm:$0xf] }
  0x58   : > { %306 = vst [vmem:[%s14947_s27 + $0x400] sm:$0xf] %v305_v0  ;;  %v309_v2 = vld [vmem:[%s14951_s30 + $0x408] sm:$0xf]  ;;  %v311_v3 = vld [vmem:[%s14951_s30 + $0x40c] sm:$0xf] }
  0x59   : > { %308 = vst [vmem:[%s14947_s27 + $0x408] sm:$0xf] %v307_v1  ;;  %310 = vst [vmem:[%s14947_s27 + $0x410] sm:$0xf] %v309_v2  ;;  %v313_v4 = vld [vmem:[%s14951_s30 + $0x420] sm:$0xf] }
  0x5a   : > { %312 = vst [vmem:[%s14947_s27 + $0x418] sm:$0xf] %v311_v3  ;;  %v315_v5 = vld [vmem:[%s14951_s30 + $0x424] sm:$0xf]  ;;  %v317_v6 = vld [vmem:[%s14951_s30 + $0x428] sm:$0xf] }
  0x5b   : > { %314 = vst [vmem:[%s14947_s27 + $0x420] sm:$0xf] %v313_v4  ;;  %316 = vst [vmem:[%s14947_s27 + $0x428] sm:$0xf] %v315_v5  ;;  %v319_v7 = vld [vmem:[%s14951_s30 + $0x42c] sm:$0xf] }
  0x5c   : > { %318 = vst [vmem:[%s14947_s27 + $0x430] sm:$0xf] %v317_v6  ;;  %v321_v8 = vld [vmem:[%s14951_s30 + $0x440] sm:$0xf]  ;;  %v323_v9 = vld [vmem:[%s14951_s30 + $0x444] sm:$0xf] }
  0x5d   : > { %320 = vst [vmem:[%s14947_s27 + $0x438] sm:$0xf] %v319_v7  ;;  %322 = vst [vmem:[%s14947_s27 + $0x440] sm:$0xf] %v321_v8  ;;  %v325_v10 = vld [vmem:[%s14951_s30 + $0x448] sm:$0xf] }
  0x5e   : > { %324 = vst [vmem:[%s14947_s27 + $0x448] sm:$0xf] %v323_v9  ;;  %v327_v11 = vld [vmem:[%s14951_s30 + $0x44c] sm:$0xf]  ;;  %v329_v12 = vld [vmem:[%s14951_s30 + $0x460] sm:$0xf] }
  0x5f   : > { %326 = vst [vmem:[%s14947_s27 + $0x450] sm:$0xf] %v325_v10  ;;  %328 = vst [vmem:[%s14947_s27 + $0x458] sm:$0xf] %v327_v11  ;;  %v331_v13 = vld [vmem:[%s14951_s30 + $0x464] sm:$0xf] }
  0x60   : > { %330 = vst [vmem:[%s14947_s27 + $0x460] sm:$0xf] %v329_v12  ;;  %v333_v14 = vld [vmem:[%s14951_s30 + $0x468] sm:$0xf]  ;;  %v335_v15 = vld [vmem:[%s14951_s30 + $0x46c] sm:$0xf] }
  0x61   : > { %332 = vst [vmem:[%s14947_s27 + $0x468] sm:$0xf] %v331_v13  ;;  %334 = vst [vmem:[%s14947_s27 + $0x470] sm:$0xf] %v333_v14  ;;  %v337_v16 = vld [vmem:[%s14951_s30 + $0x480] sm:$0xf] }
  0x62   : > { %336 = vst [vmem:[%s14947_s27 + $0x478] sm:$0xf] %v335_v15  ;;  %v339_v17 = vld [vmem:[%s14951_s30 + $0x484] sm:$0xf]  ;;  %v341_v18 = vld [vmem:[%s14951_s30 + $0x488] sm:$0xf] }
  0x63   : > { %338 = vst [vmem:[%s14947_s27 + $0x480] sm:$0xf] %v337_v16  ;;  %340 = vst [vmem:[%s14947_s27 + $0x488] sm:$0xf] %v339_v17  ;;  %v343_v19 = vld [vmem:[%s14951_s30 + $0x48c] sm:$0xf] }
  0x64   : > { %342 = vst [vmem:[%s14947_s27 + $0x490] sm:$0xf] %v341_v18  ;;  %v345_v20 = vld [vmem:[%s14951_s30 + $0x4a0] sm:$0xf]  ;;  %v347_v21 = vld [vmem:[%s14951_s30 + $0x4a4] sm:$0xf] }
  0x65   : > { %344 = vst [vmem:[%s14947_s27 + $0x498] sm:$0xf] %v343_v19  ;;  %346 = vst [vmem:[%s14947_s27 + $0x4a0] sm:$0xf] %v345_v20  ;;  %v349_v22 = vld [vmem:[%s14951_s30 + $0x4a8] sm:$0xf] }
  0x66   : > { %348 = vst [vmem:[%s14947_s27 + $0x4a8] sm:$0xf] %v347_v21  ;;  %v351_v23 = vld [vmem:[%s14951_s30 + $0x4ac] sm:$0xf]  ;;  %v353_v24 = vld [vmem:[%s14951_s30 + $0x4c0] sm:$0xf] }
  0x67   : > { %350 = vst [vmem:[%s14947_s27 + $0x4b0] sm:$0xf] %v349_v22  ;;  %352 = vst [vmem:[%s14947_s27 + $0x4b8] sm:$0xf] %v351_v23  ;;  %v355_v25 = vld [vmem:[%s14951_s30 + $0x4c4] sm:$0xf] }
  0x68   : > { %354 = vst [vmem:[%s14947_s27 + $0x4c0] sm:$0xf] %v353_v24  ;;  %v357_v26 = vld [vmem:[%s14951_s30 + $0x4c8] sm:$0xf]  ;;  %v359_v27 = vld [vmem:[%s14951_s30 + $0x4cc] sm:$0xf] }
  0x69   : > { %356 = vst [vmem:[%s14947_s27 + $0x4c8] sm:$0xf] %v355_v25  ;;  %358 = vst [vmem:[%s14947_s27 + $0x4d0] sm:$0xf] %v357_v26  ;;  %v361_v28 = vld [vmem:[%s14951_s30 + $0x4e0] sm:$0xf] }
  0x6a   : > { %360 = vst [vmem:[%s14947_s27 + $0x4d8] sm:$0xf] %v359_v27  ;;  %v363_v29 = vld [vmem:[%s14951_s30 + $0x4e4] sm:$0xf]  ;;  %v365_v30 = vld [vmem:[%s14951_s30 + $0x4e8] sm:$0xf] }
  0x6b   : > { %362 = vst [vmem:[%s14947_s27 + $0x4e0] sm:$0xf] %v361_v28  ;;  %364 = vst [vmem:[%s14947_s27 + $0x4e8] sm:$0xf] %v363_v29  ;;  %v367_v31 = vld [vmem:[%s14951_s30 + $0x4ec] sm:$0xf] }
  0x6c   : > { %366 = vst [vmem:[%s14947_s27 + $0x4f0] sm:$0xf] %v365_v30  ;;  %v369_v32 = vld [vmem:[%s14951_s30 + $0x500] sm:$0xf]  ;;  %v371_v33 = vld [vmem:[%s14951_s30 + $0x504] sm:$0xf] }
  0x6d   : > { %368 = vst [vmem:[%s14947_s27 + $0x4f8] sm:$0xf] %v367_v31  ;;  %370 = vst [vmem:[%s14947_s27 + $0x500] sm:$0xf] %v369_v32  ;;  %v373_v34 = vld [vmem:[%s14951_s30 + $0x508] sm:$0xf] }
  0x6e   : > { %372 = vst [vmem:[%s14947_s27 + $0x508] sm:$0xf] %v371_v33  ;;  %v375_v35 = vld [vmem:[%s14951_s30 + $0x50c] sm:$0xf]  ;;  %v377_v36 = vld [vmem:[%s14951_s30 + $0x520] sm:$0xf] }
  0x6f   : > { %374 = vst [vmem:[%s14947_s27 + $0x510] sm:$0xf] %v373_v34  ;;  %376 = vst [vmem:[%s14947_s27 + $0x518] sm:$0xf] %v375_v35  ;;  %v379_v37 = vld [vmem:[%s14951_s30 + $0x524] sm:$0xf] }
  0x70   : > { %378 = vst [vmem:[%s14947_s27 + $0x520] sm:$0xf] %v377_v36  ;;  %v381_v38 = vld [vmem:[%s14951_s30 + $0x528] sm:$0xf]  ;;  %v383_v39 = vld [vmem:[%s14951_s30 + $0x52c] sm:$0xf] }
  0x71   : > { %380 = vst [vmem:[%s14947_s27 + $0x528] sm:$0xf] %v379_v37  ;;  %382 = vst [vmem:[%s14947_s27 + $0x530] sm:$0xf] %v381_v38  ;;  %v385_v40 = vld [vmem:[%s14951_s30 + $0x540] sm:$0xf] }
  0x72   : > { %384 = vst [vmem:[%s14947_s27 + $0x538] sm:$0xf] %v383_v39  ;;  %v387_v41 = vld [vmem:[%s14951_s30 + $0x544] sm:$0xf]  ;;  %v389_v42 = vld [vmem:[%s14951_s30 + $0x548] sm:$0xf] }
  0x73   : > { %386 = vst [vmem:[%s14947_s27 + $0x540] sm:$0xf] %v385_v40  ;;  %388 = vst [vmem:[%s14947_s27 + $0x548] sm:$0xf] %v387_v41  ;;  %v391_v43 = vld [vmem:[%s14951_s30 + $0x54c] sm:$0xf] }
  0x74   : > { %390 = vst [vmem:[%s14947_s27 + $0x550] sm:$0xf] %v389_v42  ;;  %v393_v44 = vld [vmem:[%s14951_s30 + $0x560] sm:$0xf]  ;;  %v395_v45 = vld [vmem:[%s14951_s30 + $0x564] sm:$0xf] }
  0x75   : > { %392 = vst [vmem:[%s14947_s27 + $0x558] sm:$0xf] %v391_v43  ;;  %394 = vst [vmem:[%s14947_s27 + $0x560] sm:$0xf] %v393_v44  ;;  %v397_v46 = vld [vmem:[%s14951_s30 + $0x568] sm:$0xf] }
  0x76   : > { %396 = vst [vmem:[%s14947_s27 + $0x568] sm:$0xf] %v395_v45  ;;  %v399_v47 = vld [vmem:[%s14951_s30 + $0x56c] sm:$0xf]  ;;  %v401_v48 = vld [vmem:[%s14951_s30 + $0x580] sm:$0xf] }
  0x77   : > { %398 = vst [vmem:[%s14947_s27 + $0x570] sm:$0xf] %v397_v46  ;;  %400 = vst [vmem:[%s14947_s27 + $0x578] sm:$0xf] %v399_v47  ;;  %v403_v49 = vld [vmem:[%s14951_s30 + $0x584] sm:$0xf] }
  0x78   : > { %402 = vst [vmem:[%s14947_s27 + $0x580] sm:$0xf] %v401_v48  ;;  %v405_v50 = vld [vmem:[%s14951_s30 + $0x588] sm:$0xf]  ;;  %v407_v51 = vld [vmem:[%s14951_s30 + $0x58c] sm:$0xf] }
  0x79   : > { %404 = vst [vmem:[%s14947_s27 + $0x588] sm:$0xf] %v403_v49  ;;  %406 = vst [vmem:[%s14947_s27 + $0x590] sm:$0xf] %v405_v50  ;;  %v409_v52 = vld [vmem:[%s14951_s30 + $0x5a0] sm:$0xf] }
  0x7a   : > { %408 = vst [vmem:[%s14947_s27 + $0x598] sm:$0xf] %v407_v51  ;;  %v411_v53 = vld [vmem:[%s14951_s30 + $0x5a4] sm:$0xf]  ;;  %v413_v54 = vld [vmem:[%s14951_s30 + $0x5a8] sm:$0xf] }
  0x7b   : > { %410 = vst [vmem:[%s14947_s27 + $0x5a0] sm:$0xf] %v409_v52  ;;  %412 = vst [vmem:[%s14947_s27 + $0x5a8] sm:$0xf] %v411_v53  ;;  %v415_v55 = vld [vmem:[%s14951_s30 + $0x5ac] sm:$0xf] }
  0x7c   : > { %414 = vst [vmem:[%s14947_s27 + $0x5b0] sm:$0xf] %v413_v54  ;;  %v417_v56 = vld [vmem:[%s14951_s30 + $0x5c0] sm:$0xf]  ;;  %v419_v57 = vld [vmem:[%s14951_s30 + $0x5c4] sm:$0xf] }
  0x7d   : > { %416 = vst [vmem:[%s14947_s27 + $0x5b8] sm:$0xf] %v415_v55  ;;  %418 = vst [vmem:[%s14947_s27 + $0x5c0] sm:$0xf] %v417_v56  ;;  %v421_v58 = vld [vmem:[%s14951_s30 + $0x5c8] sm:$0xf] }
  0x7e   : > { %420 = vst [vmem:[%s14947_s27 + $0x5c8] sm:$0xf] %v419_v57  ;;  %v423_v59 = vld [vmem:[%s14951_s30 + $0x5cc] sm:$0xf]  ;;  %v425_v60 = vld [vmem:[%s14951_s30 + $0x5e0] sm:$0xf] }
  0x7f   : > { %422 = vst [vmem:[%s14947_s27 + $0x5d0] sm:$0xf] %v421_v58  ;;  %424 = vst [vmem:[%s14947_s27 + $0x5d8] sm:$0xf] %v423_v59  ;;  %v427_v61 = vld [vmem:[%s14951_s30 + $0x5e4] sm:$0xf] }
  0x80   : > { %426 = vst [vmem:[%s14947_s27 + $0x5e0] sm:$0xf] %v425_v60  ;;  %v429_v62 = vld [vmem:[%s14951_s30 + $0x5e8] sm:$0xf]  ;;  %v431_v63 = vld [vmem:[%s14951_s30 + $0x5ec] sm:$0xf] }
  0x81   : > { %428 = vst [vmem:[%s14947_s27 + $0x5e8] sm:$0xf] %v427_v61  ;;  %430 = vst [vmem:[%s14947_s27 + $0x5f0] sm:$0xf] %v429_v62  ;;  %v433_v0 = vld [vmem:[%s14951_s30 + $0x600] sm:$0xf] }
  0x82   : > { %432 = vst [vmem:[%s14947_s27 + $0x5f8] sm:$0xf] %v431_v63  ;;  %v435_v1 = vld [vmem:[%s14951_s30 + $0x604] sm:$0xf]  ;;  %v437_v2 = vld [vmem:[%s14951_s30 + $0x608] sm:$0xf] }
  0x83   : > { %434 = vst [vmem:[%s14947_s27 + $0x600] sm:$0xf] %v433_v0  ;;  %436 = vst [vmem:[%s14947_s27 + $0x608] sm:$0xf] %v435_v1  ;;  %v439_v3 = vld [vmem:[%s14951_s30 + $0x60c] sm:$0xf] }
  0x84   : > { %438 = vst [vmem:[%s14947_s27 + $0x610] sm:$0xf] %v437_v2  ;;  %v441_v4 = vld [vmem:[%s14951_s30 + $0x620] sm:$0xf]  ;;  %v443_v5 = vld [vmem:[%s14951_s30 + $0x624] sm:$0xf] }
  0x85   : > { %440 = vst [vmem:[%s14947_s27 + $0x618] sm:$0xf] %v439_v3  ;;  %442 = vst [vmem:[%s14947_s27 + $0x620] sm:$0xf] %v441_v4  ;;  %v445_v6 = vld [vmem:[%s14951_s30 + $0x628] sm:$0xf] }
  0x86   : > { %444 = vst [vmem:[%s14947_s27 + $0x628] sm:$0xf] %v443_v5  ;;  %v447_v7 = vld [vmem:[%s14951_s30 + $0x62c] sm:$0xf]  ;;  %v449_v8 = vld [vmem:[%s14951_s30 + $0x640] sm:$0xf] }
  0x87   : > { %446 = vst [vmem:[%s14947_s27 + $0x630] sm:$0xf] %v445_v6  ;;  %448 = vst [vmem:[%s14947_s27 + $0x638] sm:$0xf] %v447_v7  ;;  %v451_v9 = vld [vmem:[%s14951_s30 + $0x644] sm:$0xf] }
  0x88   : > { %450 = vst [vmem:[%s14947_s27 + $0x640] sm:$0xf] %v449_v8  ;;  %v453_v10 = vld [vmem:[%s14951_s30 + $0x648] sm:$0xf]  ;;  %v455_v11 = vld [vmem:[%s14951_s30 + $0x64c] sm:$0xf] }
  0x89   : > { %452 = vst [vmem:[%s14947_s27 + $0x648] sm:$0xf] %v451_v9  ;;  %454 = vst [vmem:[%s14947_s27 + $0x650] sm:$0xf] %v453_v10  ;;  %v457_v12 = vld [vmem:[%s14951_s30 + $0x660] sm:$0xf] }
  0x8a   : > { %456 = vst [vmem:[%s14947_s27 + $0x658] sm:$0xf] %v455_v11  ;;  %v459_v13 = vld [vmem:[%s14951_s30 + $0x664] sm:$0xf]  ;;  %v461_v14 = vld [vmem:[%s14951_s30 + $0x668] sm:$0xf] }
  0x8b   : > { %458 = vst [vmem:[%s14947_s27 + $0x660] sm:$0xf] %v457_v12  ;;  %460 = vst [vmem:[%s14947_s27 + $0x668] sm:$0xf] %v459_v13  ;;  %v463_v15 = vld [vmem:[%s14951_s30 + $0x66c] sm:$0xf] }
  0x8c   : > { %462 = vst [vmem:[%s14947_s27 + $0x670] sm:$0xf] %v461_v14  ;;  %v465_v16 = vld [vmem:[%s14951_s30 + $0x680] sm:$0xf]  ;;  %v467_v17 = vld [vmem:[%s14951_s30 + $0x684] sm:$0xf] }
  0x8d   : > { %464 = vst [vmem:[%s14947_s27 + $0x678] sm:$0xf] %v463_v15  ;;  %466 = vst [vmem:[%s14947_s27 + $0x680] sm:$0xf] %v465_v16  ;;  %v469_v18 = vld [vmem:[%s14951_s30 + $0x688] sm:$0xf] }
  0x8e   : > { %468 = vst [vmem:[%s14947_s27 + $0x688] sm:$0xf] %v467_v17  ;;  %v471_v19 = vld [vmem:[%s14951_s30 + $0x68c] sm:$0xf]  ;;  %v473_v20 = vld [vmem:[%s14951_s30 + $0x6a0] sm:$0xf] }
  0x8f   : > { %470 = vst [vmem:[%s14947_s27 + $0x690] sm:$0xf] %v469_v18  ;;  %472 = vst [vmem:[%s14947_s27 + $0x698] sm:$0xf] %v471_v19  ;;  %v475_v21 = vld [vmem:[%s14951_s30 + $0x6a4] sm:$0xf] }
  0x90   : > { %474 = vst [vmem:[%s14947_s27 + $0x6a0] sm:$0xf] %v473_v20  ;;  %v477_v22 = vld [vmem:[%s14951_s30 + $0x6a8] sm:$0xf]  ;;  %v479_v23 = vld [vmem:[%s14951_s30 + $0x6ac] sm:$0xf] }
  0x91   : > { %476 = vst [vmem:[%s14947_s27 + $0x6a8] sm:$0xf] %v475_v21  ;;  %478 = vst [vmem:[%s14947_s27 + $0x6b0] sm:$0xf] %v477_v22  ;;  %v481_v24 = vld [vmem:[%s14951_s30 + $0x6c0] sm:$0xf] }
  0x92   : > { %480 = vst [vmem:[%s14947_s27 + $0x6b8] sm:$0xf] %v479_v23  ;;  %v483_v25 = vld [vmem:[%s14951_s30 + $0x6c4] sm:$0xf]  ;;  %v485_v26 = vld [vmem:[%s14951_s30 + $0x6c8] sm:$0xf] }
  0x93   : > { %482 = vst [vmem:[%s14947_s27 + $0x6c0] sm:$0xf] %v481_v24  ;;  %484 = vst [vmem:[%s14947_s27 + $0x6c8] sm:$0xf] %v483_v25  ;;  %v487_v27 = vld [vmem:[%s14951_s30 + $0x6cc] sm:$0xf] }
  0x94   : > { %486 = vst [vmem:[%s14947_s27 + $0x6d0] sm:$0xf] %v485_v26  ;;  %v489_v28 = vld [vmem:[%s14951_s30 + $0x6e0] sm:$0xf]  ;;  %v491_v29 = vld [vmem:[%s14951_s30 + $0x6e4] sm:$0xf] }
  0x95   : > { %488 = vst [vmem:[%s14947_s27 + $0x6d8] sm:$0xf] %v487_v27  ;;  %490 = vst [vmem:[%s14947_s27 + $0x6e0] sm:$0xf] %v489_v28  ;;  %v493_v30 = vld [vmem:[%s14951_s30 + $0x6e8] sm:$0xf] }
  0x96   : > { %492 = vst [vmem:[%s14947_s27 + $0x6e8] sm:$0xf] %v491_v29  ;;  %v495_v31 = vld [vmem:[%s14951_s30 + $0x6ec] sm:$0xf]  ;;  %v497_v32 = vld [vmem:[%s14951_s30 + $0x700] sm:$0xf] }
  0x97   : > { %494 = vst [vmem:[%s14947_s27 + $0x6f0] sm:$0xf] %v493_v30  ;;  %496 = vst [vmem:[%s14947_s27 + $0x6f8] sm:$0xf] %v495_v31  ;;  %v499_v33 = vld [vmem:[%s14951_s30 + $0x704] sm:$0xf] }
  0x98   : > { %498 = vst [vmem:[%s14947_s27 + $0x700] sm:$0xf] %v497_v32  ;;  %v501_v34 = vld [vmem:[%s14951_s30 + $0x708] sm:$0xf]  ;;  %v503_v35 = vld [vmem:[%s14951_s30 + $0x70c] sm:$0xf] }
  0x99   : > { %500 = vst [vmem:[%s14947_s27 + $0x708] sm:$0xf] %v499_v33  ;;  %502 = vst [vmem:[%s14947_s27 + $0x710] sm:$0xf] %v501_v34  ;;  %v505_v36 = vld [vmem:[%s14951_s30 + $0x720] sm:$0xf] }
  0x9a   : > { %504 = vst [vmem:[%s14947_s27 + $0x718] sm:$0xf] %v503_v35  ;;  %v507_v37 = vld [vmem:[%s14951_s30 + $0x724] sm:$0xf]  ;;  %v509_v38 = vld [vmem:[%s14951_s30 + $0x728] sm:$0xf] }
  0x9b   : > { %506 = vst [vmem:[%s14947_s27 + $0x720] sm:$0xf] %v505_v36  ;;  %508 = vst [vmem:[%s14947_s27 + $0x728] sm:$0xf] %v507_v37  ;;  %v511_v39 = vld [vmem:[%s14951_s30 + $0x72c] sm:$0xf] }
  0x9c   : > { %510 = vst [vmem:[%s14947_s27 + $0x730] sm:$0xf] %v509_v38  ;;  %v513_v40 = vld [vmem:[%s14951_s30 + $0x740] sm:$0xf]  ;;  %v515_v41 = vld [vmem:[%s14951_s30 + $0x744] sm:$0xf] }
  0x9d   : > { %512 = vst [vmem:[%s14947_s27 + $0x738] sm:$0xf] %v511_v39  ;;  %514 = vst [vmem:[%s14947_s27 + $0x740] sm:$0xf] %v513_v40  ;;  %v517_v42 = vld [vmem:[%s14951_s30 + $0x748] sm:$0xf] }
  0x9e   : > { %516 = vst [vmem:[%s14947_s27 + $0x748] sm:$0xf] %v515_v41  ;;  %v519_v43 = vld [vmem:[%s14951_s30 + $0x74c] sm:$0xf]  ;;  %v521_v44 = vld [vmem:[%s14951_s30 + $0x760] sm:$0xf] }
  0x9f   : > { %518 = vst [vmem:[%s14947_s27 + $0x750] sm:$0xf] %v517_v42  ;;  %520 = vst [vmem:[%s14947_s27 + $0x758] sm:$0xf] %v519_v43  ;;  %v523_v45 = vld [vmem:[%s14951_s30 + $0x764] sm:$0xf] }
  0xa0   : > { %522 = vst [vmem:[%s14947_s27 + $0x760] sm:$0xf] %v521_v44  ;;  %v525_v46 = vld [vmem:[%s14951_s30 + $0x768] sm:$0xf]  ;;  %v527_v47 = vld [vmem:[%s14951_s30 + $0x76c] sm:$0xf] }
  0xa1   : > { %524 = vst [vmem:[%s14947_s27 + $0x768] sm:$0xf] %v523_v45  ;;  %526 = vst [vmem:[%s14947_s27 + $0x770] sm:$0xf] %v525_v46  ;;  %v529_v48 = vld [vmem:[%s14951_s30 + $0x780] sm:$0xf] }
  0xa2   : > { %528 = vst [vmem:[%s14947_s27 + $0x778] sm:$0xf] %v527_v47  ;;  %v531_v49 = vld [vmem:[%s14951_s30 + $0x784] sm:$0xf]  ;;  %v533_v50 = vld [vmem:[%s14951_s30 + $0x788] sm:$0xf] }
  0xa3   : > { %530 = vst [vmem:[%s14947_s27 + $0x780] sm:$0xf] %v529_v48  ;;  %532 = vst [vmem:[%s14947_s27 + $0x788] sm:$0xf] %v531_v49  ;;  %v535_v51 = vld [vmem:[%s14951_s30 + $0x78c] sm:$0xf] }
  0xa4   : > { %534 = vst [vmem:[%s14947_s27 + $0x790] sm:$0xf] %v533_v50  ;;  %v537_v52 = vld [vmem:[%s14951_s30 + $0x7a0] sm:$0xf]  ;;  %v539_v53 = vld [vmem:[%s14951_s30 + $0x7a4] sm:$0xf] }
  0xa5   : > { %536 = vst [vmem:[%s14947_s27 + $0x798] sm:$0xf] %v535_v51  ;;  %538 = vst [vmem:[%s14947_s27 + $0x7a0] sm:$0xf] %v537_v52  ;;  %v541_v54 = vld [vmem:[%s14951_s30 + $0x7a8] sm:$0xf] }
  0xa6   : > { %540 = vst [vmem:[%s14947_s27 + $0x7a8] sm:$0xf] %v539_v53  ;;  %v543_v55 = vld [vmem:[%s14951_s30 + $0x7ac] sm:$0xf]  ;;  %v545_v56 = vld [vmem:[%s14951_s30 + $0x7c0] sm:$0xf] }
  0xa7   : > { %542 = vst [vmem:[%s14947_s27 + $0x7b0] sm:$0xf] %v541_v54  ;;  %544 = vst [vmem:[%s14947_s27 + $0x7b8] sm:$0xf] %v543_v55  ;;  %v547_v57 = vld [vmem:[%s14951_s30 + $0x7c4] sm:$0xf] }
  0xa8   : > { %546 = vst [vmem:[%s14947_s27 + $0x7c0] sm:$0xf] %v545_v56  ;;  %v549_v58 = vld [vmem:[%s14951_s30 + $0x7c8] sm:$0xf]  ;;  %v551_v59 = vld [vmem:[%s14951_s30 + $0x7cc] sm:$0xf] }
  0xa9   : > { %548 = vst [vmem:[%s14947_s27 + $0x7c8] sm:$0xf] %v547_v57  ;;  %550 = vst [vmem:[%s14947_s27 + $0x7d0] sm:$0xf] %v549_v58  ;;  %v553_v60 = vld [vmem:[%s14951_s30 + $0x7e0] sm:$0xf] }
  0xaa   : > { %552 = vst [vmem:[%s14947_s27 + $0x7d8] sm:$0xf] %v551_v59  ;;  %v555_v61 = vld [vmem:[%s14951_s30 + $0x7e4] sm:$0xf]  ;;  %v557_v62 = vld [vmem:[%s14951_s30 + $0x7e8] sm:$0xf] }
  0xab   : > { %554 = vst [vmem:[%s14947_s27 + $0x7e0] sm:$0xf] %v553_v60  ;;  %556 = vst [vmem:[%s14947_s27 + $0x7e8] sm:$0xf] %v555_v61  ;;  %v559_v63 = vld [vmem:[%s14951_s30 + $0x7ec] sm:$0xf] }
  0xac   : > { %558 = vst [vmem:[%s14947_s27 + $0x7f0] sm:$0xf] %v557_v62  ;;  %v561_v0 = vld [vmem:[%s14951_s30 + $0x800] sm:$0xf]  ;;  %v563_v1 = vld [vmem:[%s14951_s30 + $0x804] sm:$0xf] }
  0xad   : > { %560 = vst [vmem:[%s14947_s27 + $0x7f8] sm:$0xf] %v559_v63  ;;  %562 = vst [vmem:[%s14947_s27 + $0x800] sm:$0xf] %v561_v0  ;;  %v565_v2 = vld [vmem:[%s14951_s30 + $0x808] sm:$0xf] }
  0xae   : > { %564 = vst [vmem:[%s14947_s27 + $0x808] sm:$0xf] %v563_v1  ;;  %v567_v3 = vld [vmem:[%s14951_s30 + $0x80c] sm:$0xf]  ;;  %v569_v4 = vld [vmem:[%s14951_s30 + $0x820] sm:$0xf] }
  0xaf   : > { %566 = vst [vmem:[%s14947_s27 + $0x810] sm:$0xf] %v565_v2  ;;  %568 = vst [vmem:[%s14947_s27 + $0x818] sm:$0xf] %v567_v3  ;;  %v571_v5 = vld [vmem:[%s14951_s30 + $0x824] sm:$0xf] }
  0xb0   : > { %570 = vst [vmem:[%s14947_s27 + $0x820] sm:$0xf] %v569_v4  ;;  %v573_v6 = vld [vmem:[%s14951_s30 + $0x828] sm:$0xf]  ;;  %v575_v7 = vld [vmem:[%s14951_s30 + $0x82c] sm:$0xf] }
  0xb1   : > { %572 = vst [vmem:[%s14947_s27 + $0x828] sm:$0xf] %v571_v5  ;;  %574 = vst [vmem:[%s14947_s27 + $0x830] sm:$0xf] %v573_v6  ;;  %v577_v8 = vld [vmem:[%s14951_s30 + $0x840] sm:$0xf] }
  0xb2   : > { %576 = vst [vmem:[%s14947_s27 + $0x838] sm:$0xf] %v575_v7  ;;  %v579_v9 = vld [vmem:[%s14951_s30 + $0x844] sm:$0xf]  ;;  %v581_v10 = vld [vmem:[%s14951_s30 + $0x848] sm:$0xf] }
  0xb3   : > { %578 = vst [vmem:[%s14947_s27 + $0x840] sm:$0xf] %v577_v8  ;;  %580 = vst [vmem:[%s14947_s27 + $0x848] sm:$0xf] %v579_v9  ;;  %v583_v11 = vld [vmem:[%s14951_s30 + $0x84c] sm:$0xf] }
  0xb4   : > { %582 = vst [vmem:[%s14947_s27 + $0x850] sm:$0xf] %v581_v10  ;;  %v585_v12 = vld [vmem:[%s14951_s30 + $0x860] sm:$0xf]  ;;  %v587_v13 = vld [vmem:[%s14951_s30 + $0x864] sm:$0xf] }
  0xb5   : > { %584 = vst [vmem:[%s14947_s27 + $0x858] sm:$0xf] %v583_v11  ;;  %586 = vst [vmem:[%s14947_s27 + $0x860] sm:$0xf] %v585_v12  ;;  %v589_v14 = vld [vmem:[%s14951_s30 + $0x868] sm:$0xf] }
  0xb6   : > { %588 = vst [vmem:[%s14947_s27 + $0x868] sm:$0xf] %v587_v13  ;;  %v591_v15 = vld [vmem:[%s14951_s30 + $0x86c] sm:$0xf]  ;;  %v593_v16 = vld [vmem:[%s14951_s30 + $0x880] sm:$0xf] }
  0xb7   : > { %590 = vst [vmem:[%s14947_s27 + $0x870] sm:$0xf] %v589_v14  ;;  %592 = vst [vmem:[%s14947_s27 + $0x878] sm:$0xf] %v591_v15  ;;  %v595_v17 = vld [vmem:[%s14951_s30 + $0x884] sm:$0xf] }
  0xb8   : > { %594 = vst [vmem:[%s14947_s27 + $0x880] sm:$0xf] %v593_v16  ;;  %v597_v18 = vld [vmem:[%s14951_s30 + $0x888] sm:$0xf]  ;;  %v599_v19 = vld [vmem:[%s14951_s30 + $0x88c] sm:$0xf] }
  0xb9   : > { %596 = vst [vmem:[%s14947_s27 + $0x888] sm:$0xf] %v595_v17  ;;  %598 = vst [vmem:[%s14947_s27 + $0x890] sm:$0xf] %v597_v18  ;;  %v601_v20 = vld [vmem:[%s14951_s30 + $0x8a0] sm:$0xf] }
  0xba   : > { %600 = vst [vmem:[%s14947_s27 + $0x898] sm:$0xf] %v599_v19  ;;  %v603_v21 = vld [vmem:[%s14951_s30 + $0x8a4] sm:$0xf]  ;;  %v605_v22 = vld [vmem:[%s14951_s30 + $0x8a8] sm:$0xf] }
  0xbb   : > { %602 = vst [vmem:[%s14947_s27 + $0x8a0] sm:$0xf] %v601_v20  ;;  %604 = vst [vmem:[%s14947_s27 + $0x8a8] sm:$0xf] %v603_v21  ;;  %v607_v23 = vld [vmem:[%s14951_s30 + $0x8ac] sm:$0xf] }
  0xbc   : > { %606 = vst [vmem:[%s14947_s27 + $0x8b0] sm:$0xf] %v605_v22  ;;  %v609_v24 = vld [vmem:[%s14951_s30 + $0x8c0] sm:$0xf]  ;;  %v611_v25 = vld [vmem:[%s14951_s30 + $0x8c4] sm:$0xf] }
  0xbd   : > { %608 = vst [vmem:[%s14947_s27 + $0x8b8] sm:$0xf] %v607_v23  ;;  %610 = vst [vmem:[%s14947_s27 + $0x8c0] sm:$0xf] %v609_v24  ;;  %v613_v26 = vld [vmem:[%s14951_s30 + $0x8c8] sm:$0xf] }
  0xbe   : > { %612 = vst [vmem:[%s14947_s27 + $0x8c8] sm:$0xf] %v611_v25  ;;  %v615_v27 = vld [vmem:[%s14951_s30 + $0x8cc] sm:$0xf]  ;;  %v617_v28 = vld [vmem:[%s14951_s30 + $0x8e0] sm:$0xf] }
  0xbf   : > { %614 = vst [vmem:[%s14947_s27 + $0x8d0] sm:$0xf] %v613_v26  ;;  %616 = vst [vmem:[%s14947_s27 + $0x8d8] sm:$0xf] %v615_v27  ;;  %v619_v29 = vld [vmem:[%s14951_s30 + $0x8e4] sm:$0xf] }
  0xc0   : > { %618 = vst [vmem:[%s14947_s27 + $0x8e0] sm:$0xf] %v617_v28  ;;  %v621_v30 = vld [vmem:[%s14951_s30 + $0x8e8] sm:$0xf]  ;;  %v623_v31 = vld [vmem:[%s14951_s30 + $0x8ec] sm:$0xf] }
  0xc1   : > { %620 = vst [vmem:[%s14947_s27 + $0x8e8] sm:$0xf] %v619_v29  ;;  %622 = vst [vmem:[%s14947_s27 + $0x8f0] sm:$0xf] %v621_v30  ;;  %v625_v32 = vld [vmem:[%s14951_s30 + $0x900] sm:$0xf] }
  0xc2   : > { %624 = vst [vmem:[%s14947_s27 + $0x8f8] sm:$0xf] %v623_v31  ;;  %v627_v33 = vld [vmem:[%s14951_s30 + $0x904] sm:$0xf]  ;;  %v629_v34 = vld [vmem:[%s14951_s30 + $0x908] sm:$0xf] }
  0xc3   : > { %626 = vst [vmem:[%s14947_s27 + $0x900] sm:$0xf] %v625_v32  ;;  %628 = vst [vmem:[%s14947_s27 + $0x908] sm:$0xf] %v627_v33  ;;  %v631_v35 = vld [vmem:[%s14951_s30 + $0x90c] sm:$0xf] }
  0xc4   : > { %630 = vst [vmem:[%s14947_s27 + $0x910] sm:$0xf] %v629_v34  ;;  %v633_v36 = vld [vmem:[%s14951_s30 + $0x920] sm:$0xf]  ;;  %v635_v37 = vld [vmem:[%s14951_s30 + $0x924] sm:$0xf] }
  0xc5   : > { %632 = vst [vmem:[%s14947_s27 + $0x918] sm:$0xf] %v631_v35  ;;  %634 = vst [vmem:[%s14947_s27 + $0x920] sm:$0xf] %v633_v36  ;;  %v637_v38 = vld [vmem:[%s14951_s30 + $0x928] sm:$0xf] }
  0xc6   : > { %636 = vst [vmem:[%s14947_s27 + $0x928] sm:$0xf] %v635_v37  ;;  %v639_v39 = vld [vmem:[%s14951_s30 + $0x92c] sm:$0xf]  ;;  %v641_v40 = vld [vmem:[%s14951_s30 + $0x940] sm:$0xf] }
  0xc7   : > { %638 = vst [vmem:[%s14947_s27 + $0x930] sm:$0xf] %v637_v38  ;;  %640 = vst [vmem:[%s14947_s27 + $0x938] sm:$0xf] %v639_v39  ;;  %v643_v41 = vld [vmem:[%s14951_s30 + $0x944] sm:$0xf] }
  0xc8   : > { %642 = vst [vmem:[%s14947_s27 + $0x940] sm:$0xf] %v641_v40  ;;  %v645_v42 = vld [vmem:[%s14951_s30 + $0x948] sm:$0xf]  ;;  %v647_v43 = vld [vmem:[%s14951_s30 + $0x94c] sm:$0xf] }
  0xc9   : > { %644 = vst [vmem:[%s14947_s27 + $0x948] sm:$0xf] %v643_v41  ;;  %646 = vst [vmem:[%s14947_s27 + $0x950] sm:$0xf] %v645_v42  ;;  %v649_v44 = vld [vmem:[%s14951_s30 + $0x960] sm:$0xf] }
  0xca   : > { %648 = vst [vmem:[%s14947_s27 + $0x958] sm:$0xf] %v647_v43  ;;  %v651_v45 = vld [vmem:[%s14951_s30 + $0x964] sm:$0xf]  ;;  %v653_v46 = vld [vmem:[%s14951_s30 + $0x968] sm:$0xf] }
  0xcb   : > { %650 = vst [vmem:[%s14947_s27 + $0x960] sm:$0xf] %v649_v44  ;;  %652 = vst [vmem:[%s14947_s27 + $0x968] sm:$0xf] %v651_v45  ;;  %v655_v47 = vld [vmem:[%s14951_s30 + $0x96c] sm:$0xf] }
  0xcc   : > { %654 = vst [vmem:[%s14947_s27 + $0x970] sm:$0xf] %v653_v46  ;;  %v657_v48 = vld [vmem:[%s14951_s30 + $0x980] sm:$0xf]  ;;  %v659_v49 = vld [vmem:[%s14951_s30 + $0x984] sm:$0xf] }
  0xcd   : > { %656 = vst [vmem:[%s14947_s27 + $0x978] sm:$0xf] %v655_v47  ;;  %658 = vst [vmem:[%s14947_s27 + $0x980] sm:$0xf] %v657_v48  ;;  %v661_v50 = vld [vmem:[%s14951_s30 + $0x988] sm:$0xf] }
  0xce   : > { %660 = vst [vmem:[%s14947_s27 + $0x988] sm:$0xf] %v659_v49  ;;  %v663_v51 = vld [vmem:[%s14951_s30 + $0x98c] sm:$0xf]  ;;  %v665_v52 = vld [vmem:[%s14951_s30 + $0x9a0] sm:$0xf] }
  0xcf   : > { %662 = vst [vmem:[%s14947_s27 + $0x990] sm:$0xf] %v661_v50  ;;  %664 = vst [vmem:[%s14947_s27 + $0x998] sm:$0xf] %v663_v51  ;;  %v667_v53 = vld [vmem:[%s14951_s30 + $0x9a4] sm:$0xf] }
  0xd0   : > { %666 = vst [vmem:[%s14947_s27 + $0x9a0] sm:$0xf] %v665_v52  ;;  %v669_v54 = vld [vmem:[%s14951_s30 + $0x9a8] sm:$0xf]  ;;  %v671_v55 = vld [vmem:[%s14951_s30 + $0x9ac] sm:$0xf] }
  0xd1   : > { %668 = vst [vmem:[%s14947_s27 + $0x9a8] sm:$0xf] %v667_v53  ;;  %670 = vst [vmem:[%s14947_s27 + $0x9b0] sm:$0xf] %v669_v54  ;;  %v673_v56 = vld [vmem:[%s14951_s30 + $0x9c0] sm:$0xf] }
  0xd2   : > { %672 = vst [vmem:[%s14947_s27 + $0x9b8] sm:$0xf] %v671_v55  ;;  %v675_v57 = vld [vmem:[%s14951_s30 + $0x9c4] sm:$0xf]  ;;  %v677_v58 = vld [vmem:[%s14951_s30 + $0x9c8] sm:$0xf] }
  0xd3   : > { %674 = vst [vmem:[%s14947_s27 + $0x9c0] sm:$0xf] %v673_v56  ;;  %676 = vst [vmem:[%s14947_s27 + $0x9c8] sm:$0xf] %v675_v57  ;;  %v679_v59 = vld [vmem:[%s14951_s30 + $0x9cc] sm:$0xf] }
  0xd4   : > { %678 = vst [vmem:[%s14947_s27 + $0x9d0] sm:$0xf] %v677_v58  ;;  %v681_v60 = vld [vmem:[%s14951_s30 + $0x9e0] sm:$0xf]  ;;  %v683_v61 = vld [vmem:[%s14951_s30 + $0x9e4] sm:$0xf] }
  0xd5   : > { %680 = vst [vmem:[%s14947_s27 + $0x9d8] sm:$0xf] %v679_v59  ;;  %682 = vst [vmem:[%s14947_s27 + $0x9e0] sm:$0xf] %v681_v60  ;;  %v685_v62 = vld [vmem:[%s14951_s30 + $0x9e8] sm:$0xf] }
  0xd6   : > { %684 = vst [vmem:[%s14947_s27 + $0x9e8] sm:$0xf] %v683_v61  ;;  %v687_v63 = vld [vmem:[%s14951_s30 + $0x9ec] sm:$0xf]  ;;  %v689_v0 = vld [vmem:[%s14951_s30 + $0xa00] sm:$0xf] }
  0xd7   : > { %686 = vst [vmem:[%s14947_s27 + $0x9f0] sm:$0xf] %v685_v62  ;;  %688 = vst [vmem:[%s14947_s27 + $0x9f8] sm:$0xf] %v687_v63  ;;  %v691_v1 = vld [vmem:[%s14951_s30 + $0xa04] sm:$0xf] }
  0xd8   : > { %690 = vst [vmem:[%s14947_s27 + $0xa00] sm:$0xf] %v689_v0  ;;  %v693_v2 = vld [vmem:[%s14951_s30 + $0xa08] sm:$0xf]  ;;  %v695_v3 = vld [vmem:[%s14951_s30 + $0xa0c] sm:$0xf] }
  0xd9   : > { %692 = vst [vmem:[%s14947_s27 + $0xa08] sm:$0xf] %v691_v1  ;;  %694 = vst [vmem:[%s14947_s27 + $0xa10] sm:$0xf] %v693_v2  ;;  %v697_v4 = vld [vmem:[%s14951_s30 + $0xa20] sm:$0xf] }
  0xda   : > { %696 = vst [vmem:[%s14947_s27 + $0xa18] sm:$0xf] %v695_v3  ;;  %v699_v5 = vld [vmem:[%s14951_s30 + $0xa24] sm:$0xf]  ;;  %v701_v6 = vld [vmem:[%s14951_s30 + $0xa28] sm:$0xf] }
  0xdb   : > { %698 = vst [vmem:[%s14947_s27 + $0xa20] sm:$0xf] %v697_v4  ;;  %700 = vst [vmem:[%s14947_s27 + $0xa28] sm:$0xf] %v699_v5  ;;  %v703_v7 = vld [vmem:[%s14951_s30 + $0xa2c] sm:$0xf] }
  0xdc   : > { %702 = vst [vmem:[%s14947_s27 + $0xa30] sm:$0xf] %v701_v6  ;;  %v705_v8 = vld [vmem:[%s14951_s30 + $0xa40] sm:$0xf]  ;;  %v707_v9 = vld [vmem:[%s14951_s30 + $0xa44] sm:$0xf] }
  0xdd   : > { %704 = vst [vmem:[%s14947_s27 + $0xa38] sm:$0xf] %v703_v7  ;;  %706 = vst [vmem:[%s14947_s27 + $0xa40] sm:$0xf] %v705_v8  ;;  %v709_v10 = vld [vmem:[%s14951_s30 + $0xa48] sm:$0xf] }
  0xde   : > { %708 = vst [vmem:[%s14947_s27 + $0xa48] sm:$0xf] %v707_v9  ;;  %v711_v11 = vld [vmem:[%s14951_s30 + $0xa4c] sm:$0xf]  ;;  %v713_v12 = vld [vmem:[%s14951_s30 + $0xa60] sm:$0xf] }
  0xdf   : > { %710 = vst [vmem:[%s14947_s27 + $0xa50] sm:$0xf] %v709_v10  ;;  %712 = vst [vmem:[%s14947_s27 + $0xa58] sm:$0xf] %v711_v11  ;;  %v715_v13 = vld [vmem:[%s14951_s30 + $0xa64] sm:$0xf] }
  0xe0   : > { %714 = vst [vmem:[%s14947_s27 + $0xa60] sm:$0xf] %v713_v12  ;;  %v717_v14 = vld [vmem:[%s14951_s30 + $0xa68] sm:$0xf]  ;;  %v719_v15 = vld [vmem:[%s14951_s30 + $0xa6c] sm:$0xf] }
  0xe1   : > { %716 = vst [vmem:[%s14947_s27 + $0xa68] sm:$0xf] %v715_v13  ;;  %718 = vst [vmem:[%s14947_s27 + $0xa70] sm:$0xf] %v717_v14  ;;  %v721_v16 = vld [vmem:[%s14951_s30 + $0xa80] sm:$0xf] }
  0xe2   : > { %720 = vst [vmem:[%s14947_s27 + $0xa78] sm:$0xf] %v719_v15  ;;  %v723_v17 = vld [vmem:[%s14951_s30 + $0xa84] sm:$0xf]  ;;  %v725_v18 = vld [vmem:[%s14951_s30 + $0xa88] sm:$0xf] }
  0xe3   : > { %722 = vst [vmem:[%s14947_s27 + $0xa80] sm:$0xf] %v721_v16  ;;  %724 = vst [vmem:[%s14947_s27 + $0xa88] sm:$0xf] %v723_v17  ;;  %v727_v19 = vld [vmem:[%s14951_s30 + $0xa8c] sm:$0xf] }
  0xe4   : > { %726 = vst [vmem:[%s14947_s27 + $0xa90] sm:$0xf] %v725_v18  ;;  %v729_v20 = vld [vmem:[%s14951_s30 + $0xaa0] sm:$0xf]  ;;  %v731_v21 = vld [vmem:[%s14951_s30 + $0xaa4] sm:$0xf] }
  0xe5   : > { %728 = vst [vmem:[%s14947_s27 + $0xa98] sm:$0xf] %v727_v19  ;;  %730 = vst [vmem:[%s14947_s27 + $0xaa0] sm:$0xf] %v729_v20  ;;  %v733_v22 = vld [vmem:[%s14951_s30 + $0xaa8] sm:$0xf] }
  0xe6   : > { %732 = vst [vmem:[%s14947_s27 + $0xaa8] sm:$0xf] %v731_v21  ;;  %v735_v23 = vld [vmem:[%s14951_s30 + $0xaac] sm:$0xf]  ;;  %v737_v24 = vld [vmem:[%s14951_s30 + $0xac0] sm:$0xf] }
  0xe7   : > { %734 = vst [vmem:[%s14947_s27 + $0xab0] sm:$0xf] %v733_v22  ;;  %736 = vst [vmem:[%s14947_s27 + $0xab8] sm:$0xf] %v735_v23  ;;  %v739_v25 = vld [vmem:[%s14951_s30 + $0xac4] sm:$0xf] }
  0xe8   : > { %738 = vst [vmem:[%s14947_s27 + $0xac0] sm:$0xf] %v737_v24  ;;  %v741_v26 = vld [vmem:[%s14951_s30 + $0xac8] sm:$0xf]  ;;  %v743_v27 = vld [vmem:[%s14951_s30 + $0xacc] sm:$0xf] }
  0xe9   : > { %740 = vst [vmem:[%s14947_s27 + $0xac8] sm:$0xf] %v739_v25  ;;  %742 = vst [vmem:[%s14947_s27 + $0xad0] sm:$0xf] %v741_v26  ;;  %v745_v28 = vld [vmem:[%s14951_s30 + $0xae0] sm:$0xf] }
  0xea   : > { %744 = vst [vmem:[%s14947_s27 + $0xad8] sm:$0xf] %v743_v27  ;;  %v747_v29 = vld [vmem:[%s14951_s30 + $0xae4] sm:$0xf]  ;;  %v749_v30 = vld [vmem:[%s14951_s30 + $0xae8] sm:$0xf] }
  0xeb   : > { %746 = vst [vmem:[%s14947_s27 + $0xae0] sm:$0xf] %v745_v28  ;;  %748 = vst [vmem:[%s14947_s27 + $0xae8] sm:$0xf] %v747_v29  ;;  %v751_v31 = vld [vmem:[%s14951_s30 + $0xaec] sm:$0xf] }
  0xec   : > { %750 = vst [vmem:[%s14947_s27 + $0xaf0] sm:$0xf] %v749_v30  ;;  %v753_v32 = vld [vmem:[%s14951_s30 + $0xb00] sm:$0xf]  ;;  %v755_v33 = vld [vmem:[%s14951_s30 + $0xb04] sm:$0xf] }
  0xed   : > { %752 = vst [vmem:[%s14947_s27 + $0xaf8] sm:$0xf] %v751_v31  ;;  %754 = vst [vmem:[%s14947_s27 + $0xb00] sm:$0xf] %v753_v32  ;;  %v757_v34 = vld [vmem:[%s14951_s30 + $0xb08] sm:$0xf] }
  0xee   : > { %756 = vst [vmem:[%s14947_s27 + $0xb08] sm:$0xf] %v755_v33  ;;  %v759_v35 = vld [vmem:[%s14951_s30 + $0xb0c] sm:$0xf]  ;;  %v761_v36 = vld [vmem:[%s14951_s30 + $0xb20] sm:$0xf] }
  0xef   : > { %758 = vst [vmem:[%s14947_s27 + $0xb10] sm:$0xf] %v757_v34  ;;  %760 = vst [vmem:[%s14947_s27 + $0xb18] sm:$0xf] %v759_v35  ;;  %v763_v37 = vld [vmem:[%s14951_s30 + $0xb24] sm:$0xf] }
  0xf0   : > { %762 = vst [vmem:[%s14947_s27 + $0xb20] sm:$0xf] %v761_v36  ;;  %v765_v38 = vld [vmem:[%s14951_s30 + $0xb28] sm:$0xf]  ;;  %v767_v39 = vld [vmem:[%s14951_s30 + $0xb2c] sm:$0xf] }
  0xf1   : > { %764 = vst [vmem:[%s14947_s27 + $0xb28] sm:$0xf] %v763_v37  ;;  %766 = vst [vmem:[%s14947_s27 + $0xb30] sm:$0xf] %v765_v38  ;;  %v769_v40 = vld [vmem:[%s14951_s30 + $0xb40] sm:$0xf] }
  0xf2   : > { %768 = vst [vmem:[%s14947_s27 + $0xb38] sm:$0xf] %v767_v39  ;;  %v771_v41 = vld [vmem:[%s14951_s30 + $0xb44] sm:$0xf]  ;;  %v773_v42 = vld [vmem:[%s14951_s30 + $0xb48] sm:$0xf] }
  0xf3   : > { %770 = vst [vmem:[%s14947_s27 + $0xb40] sm:$0xf] %v769_v40  ;;  %772 = vst [vmem:[%s14947_s27 + $0xb48] sm:$0xf] %v771_v41  ;;  %v775_v43 = vld [vmem:[%s14951_s30 + $0xb4c] sm:$0xf] }
  0xf4   : > { %774 = vst [vmem:[%s14947_s27 + $0xb50] sm:$0xf] %v773_v42  ;;  %v777_v44 = vld [vmem:[%s14951_s30 + $0xb60] sm:$0xf]  ;;  %v779_v45 = vld [vmem:[%s14951_s30 + $0xb64] sm:$0xf] }
  0xf5   : > { %776 = vst [vmem:[%s14947_s27 + $0xb58] sm:$0xf] %v775_v43  ;;  %778 = vst [vmem:[%s14947_s27 + $0xb60] sm:$0xf] %v777_v44  ;;  %v781_v46 = vld [vmem:[%s14951_s30 + $0xb68] sm:$0xf] }
  0xf6   : > { %780 = vst [vmem:[%s14947_s27 + $0xb68] sm:$0xf] %v779_v45  ;;  %v783_v47 = vld [vmem:[%s14951_s30 + $0xb6c] sm:$0xf]  ;;  %v785_v48 = vld [vmem:[%s14951_s30 + $0xb80] sm:$0xf] }
  0xf7   : > { %782 = vst [vmem:[%s14947_s27 + $0xb70] sm:$0xf] %v781_v46  ;;  %784 = vst [vmem:[%s14947_s27 + $0xb78] sm:$0xf] %v783_v47  ;;  %v787_v49 = vld [vmem:[%s14951_s30 + $0xb84] sm:$0xf] }
  0xf8   : > { %786 = vst [vmem:[%s14947_s27 + $0xb80] sm:$0xf] %v785_v48  ;;  %v789_v50 = vld [vmem:[%s14951_s30 + $0xb88] sm:$0xf]  ;;  %v791_v51 = vld [vmem:[%s14951_s30 + $0xb8c] sm:$0xf] }
  0xf9   : > { %788 = vst [vmem:[%s14947_s27 + $0xb88] sm:$0xf] %v787_v49  ;;  %790 = vst [vmem:[%s14947_s27 + $0xb90] sm:$0xf] %v789_v50  ;;  %v793_v52 = vld [vmem:[%s14951_s30 + $0xba0] sm:$0xf] }
  0xfa   : > { %792 = vst [vmem:[%s14947_s27 + $0xb98] sm:$0xf] %v791_v51  ;;  %v795_v53 = vld [vmem:[%s14951_s30 + $0xba4] sm:$0xf]  ;;  %v797_v54 = vld [vmem:[%s14951_s30 + $0xba8] sm:$0xf] }
  0xfb   : > { %794 = vst [vmem:[%s14947_s27 + $0xba0] sm:$0xf] %v793_v52  ;;  %796 = vst [vmem:[%s14947_s27 + $0xba8] sm:$0xf] %v795_v53  ;;  %v799_v55 = vld [vmem:[%s14951_s30 + $0xbac] sm:$0xf] }
  0xfc   : > { %798 = vst [vmem:[%s14947_s27 + $0xbb0] sm:$0xf] %v797_v54  ;;  %v801_v56 = vld [vmem:[%s14951_s30 + $0xbc0] sm:$0xf]  ;;  %v803_v57 = vld [vmem:[%s14951_s30 + $0xbc4] sm:$0xf] }
  0xfd   : > { %800 = vst [vmem:[%s14947_s27 + $0xbb8] sm:$0xf] %v799_v55  ;;  %802 = vst [vmem:[%s14947_s27 + $0xbc0] sm:$0xf] %v801_v56  ;;  %v805_v58 = vld [vmem:[%s14951_s30 + $0xbc8] sm:$0xf] }
  0xfe   : > { %804 = vst [vmem:[%s14947_s27 + $0xbc8] sm:$0xf] %v803_v57  ;;  %v807_v59 = vld [vmem:[%s14951_s30 + $0xbcc] sm:$0xf]  ;;  %v809_v60 = vld [vmem:[%s14951_s30 + $0xbe0] sm:$0xf] }
  0xff   : > { %806 = vst [vmem:[%s14947_s27 + $0xbd0] sm:$0xf] %v805_v58  ;;  %808 = vst [vmem:[%s14947_s27 + $0xbd8] sm:$0xf] %v807_v59  ;;  %v811_v61 = vld [vmem:[%s14951_s30 + $0xbe4] sm:$0xf] }
 0x100   : > { %810 = vst [vmem:[%s14947_s27 + $0xbe0] sm:$0xf] %v809_v60  ;;  %v813_v62 = vld [vmem:[%s14951_s30 + $0xbe8] sm:$0xf]  ;;  %v815_v63 = vld [vmem:[%s14951_s30 + $0xbec] sm:$0xf] }
 0x101   : > { %812 = vst [vmem:[%s14947_s27 + $0xbe8] sm:$0xf] %v811_v61  ;;  %814 = vst [vmem:[%s14947_s27 + $0xbf0] sm:$0xf] %v813_v62  ;;  %v817_v0 = vld [vmem:[%s14951_s30 + $0xc00] sm:$0xf] }
 0x102   : > { %816 = vst [vmem:[%s14947_s27 + $0xbf8] sm:$0xf] %v815_v63  ;;  %v819_v1 = vld [vmem:[%s14951_s30 + $0xc04] sm:$0xf]  ;;  %v821_v2 = vld [vmem:[%s14951_s30 + $0xc08] sm:$0xf] }
 0x103   : > { %818 = vst [vmem:[%s14947_s27 + $0xc00] sm:$0xf] %v817_v0  ;;  %820 = vst [vmem:[%s14947_s27 + $0xc08] sm:$0xf] %v819_v1  ;;  %v823_v3 = vld [vmem:[%s14951_s30 + $0xc0c] sm:$0xf] }
 0x104   : > { %822 = vst [vmem:[%s14947_s27 + $0xc10] sm:$0xf] %v821_v2  ;;  %v825_v4 = vld [vmem:[%s14951_s30 + $0xc20] sm:$0xf]  ;;  %v827_v5 = vld [vmem:[%s14951_s30 + $0xc24] sm:$0xf] }
 0x105   : > { %824 = vst [vmem:[%s14947_s27 + $0xc18] sm:$0xf] %v823_v3  ;;  %826 = vst [vmem:[%s14947_s27 + $0xc20] sm:$0xf] %v825_v4  ;;  %v829_v6 = vld [vmem:[%s14951_s30 + $0xc28] sm:$0xf] }
 0x106   : > { %828 = vst [vmem:[%s14947_s27 + $0xc28] sm:$0xf] %v827_v5  ;;  %v831_v7 = vld [vmem:[%s14951_s30 + $0xc2c] sm:$0xf]  ;;  %v833_v8 = vld [vmem:[%s14951_s30 + $0xc40] sm:$0xf] }
 0x107   : > { %830 = vst [vmem:[%s14947_s27 + $0xc30] sm:$0xf] %v829_v6  ;;  %832 = vst [vmem:[%s14947_s27 + $0xc38] sm:$0xf] %v831_v7  ;;  %v835_v9 = vld [vmem:[%s14951_s30 + $0xc44] sm:$0xf] }
 0x108   : > { %834 = vst [vmem:[%s14947_s27 + $0xc40] sm:$0xf] %v833_v8  ;;  %v837_v10 = vld [vmem:[%s14951_s30 + $0xc48] sm:$0xf]  ;;  %v839_v11 = vld [vmem:[%s14951_s30 + $0xc4c] sm:$0xf] }
 0x109   : > { %836 = vst [vmem:[%s14947_s27 + $0xc48] sm:$0xf] %v835_v9  ;;  %838 = vst [vmem:[%s14947_s27 + $0xc50] sm:$0xf] %v837_v10  ;;  %v841_v12 = vld [vmem:[%s14951_s30 + $0xc60] sm:$0xf] }
 0x10a   : > { %840 = vst [vmem:[%s14947_s27 + $0xc58] sm:$0xf] %v839_v11  ;;  %v843_v13 = vld [vmem:[%s14951_s30 + $0xc64] sm:$0xf]  ;;  %v845_v14 = vld [vmem:[%s14951_s30 + $0xc68] sm:$0xf] }
 0x10b   : > { %842 = vst [vmem:[%s14947_s27 + $0xc60] sm:$0xf] %v841_v12  ;;  %844 = vst [vmem:[%s14947_s27 + $0xc68] sm:$0xf] %v843_v13  ;;  %v847_v15 = vld [vmem:[%s14951_s30 + $0xc6c] sm:$0xf] }
 0x10c   : > { %846 = vst [vmem:[%s14947_s27 + $0xc70] sm:$0xf] %v845_v14  ;;  %v849_v16 = vld [vmem:[%s14951_s30 + $0xc80] sm:$0xf]  ;;  %v851_v17 = vld [vmem:[%s14951_s30 + $0xc84] sm:$0xf] }
 0x10d   : > { %848 = vst [vmem:[%s14947_s27 + $0xc78] sm:$0xf] %v847_v15  ;;  %850 = vst [vmem:[%s14947_s27 + $0xc80] sm:$0xf] %v849_v16  ;;  %v853_v18 = vld [vmem:[%s14951_s30 + $0xc88] sm:$0xf] }
 0x10e   : > { %852 = vst [vmem:[%s14947_s27 + $0xc88] sm:$0xf] %v851_v17  ;;  %v855_v19 = vld [vmem:[%s14951_s30 + $0xc8c] sm:$0xf]  ;;  %v857_v20 = vld [vmem:[%s14951_s30 + $0xca0] sm:$0xf] }
 0x10f   : > { %854 = vst [vmem:[%s14947_s27 + $0xc90] sm:$0xf] %v853_v18  ;;  %856 = vst [vmem:[%s14947_s27 + $0xc98] sm:$0xf] %v855_v19  ;;  %v859_v21 = vld [vmem:[%s14951_s30 + $0xca4] sm:$0xf] }
 0x110   : > { %858 = vst [vmem:[%s14947_s27 + $0xca0] sm:$0xf] %v857_v20  ;;  %v861_v22 = vld [vmem:[%s14951_s30 + $0xca8] sm:$0xf]  ;;  %v863_v23 = vld [vmem:[%s14951_s30 + $0xcac] sm:$0xf] }
 0x111   : > { %860 = vst [vmem:[%s14947_s27 + $0xca8] sm:$0xf] %v859_v21  ;;  %862 = vst [vmem:[%s14947_s27 + $0xcb0] sm:$0xf] %v861_v22  ;;  %v865_v24 = vld [vmem:[%s14951_s30 + $0xcc0] sm:$0xf] }
 0x112   : > { %864 = vst [vmem:[%s14947_s27 + $0xcb8] sm:$0xf] %v863_v23  ;;  %v867_v25 = vld [vmem:[%s14951_s30 + $0xcc4] sm:$0xf]  ;;  %v869_v26 = vld [vmem:[%s14951_s30 + $0xcc8] sm:$0xf] }
 0x113   : > { %866 = vst [vmem:[%s14947_s27 + $0xcc0] sm:$0xf] %v865_v24  ;;  %868 = vst [vmem:[%s14947_s27 + $0xcc8] sm:$0xf] %v867_v25  ;;  %v871_v27 = vld [vmem:[%s14951_s30 + $0xccc] sm:$0xf] }
 0x114   : > { %870 = vst [vmem:[%s14947_s27 + $0xcd0] sm:$0xf] %v869_v26  ;;  %v873_v28 = vld [vmem:[%s14951_s30 + $0xce0] sm:$0xf]  ;;  %v875_v29 = vld [vmem:[%s14951_s30 + $0xce4] sm:$0xf] }
 0x115   : > { %872 = vst [vmem:[%s14947_s27 + $0xcd8] sm:$0xf] %v871_v27  ;;  %874 = vst [vmem:[%s14947_s27 + $0xce0] sm:$0xf] %v873_v28  ;;  %v877_v30 = vld [vmem:[%s14951_s30 + $0xce8] sm:$0xf] }
 0x116   : > { %876 = vst [vmem:[%s14947_s27 + $0xce8] sm:$0xf] %v875_v29  ;;  %v879_v31 = vld [vmem:[%s14951_s30 + $0xcec] sm:$0xf]  ;;  %v881_v32 = vld [vmem:[%s14951_s30 + $0xd00] sm:$0xf] }
 0x117   : > { %878 = vst [vmem:[%s14947_s27 + $0xcf0] sm:$0xf] %v877_v30  ;;  %880 = vst [vmem:[%s14947_s27 + $0xcf8] sm:$0xf] %v879_v31  ;;  %v883_v33 = vld [vmem:[%s14951_s30 + $0xd04] sm:$0xf] }
 0x118   : > { %882 = vst [vmem:[%s14947_s27 + $0xd00] sm:$0xf] %v881_v32  ;;  %v885_v34 = vld [vmem:[%s14951_s30 + $0xd08] sm:$0xf]  ;;  %v887_v35 = vld [vmem:[%s14951_s30 + $0xd0c] sm:$0xf] }
 0x119   : > { %884 = vst [vmem:[%s14947_s27 + $0xd08] sm:$0xf] %v883_v33  ;;  %886 = vst [vmem:[%s14947_s27 + $0xd10] sm:$0xf] %v885_v34  ;;  %v889_v36 = vld [vmem:[%s14951_s30 + $0xd20] sm:$0xf] }
 0x11a   : > { %888 = vst [vmem:[%s14947_s27 + $0xd18] sm:$0xf] %v887_v35  ;;  %v891_v37 = vld [vmem:[%s14951_s30 + $0xd24] sm:$0xf]  ;;  %v893_v38 = vld [vmem:[%s14951_s30 + $0xd28] sm:$0xf] }
 0x11b   : > { %890 = vst [vmem:[%s14947_s27 + $0xd20] sm:$0xf] %v889_v36  ;;  %892 = vst [vmem:[%s14947_s27 + $0xd28] sm:$0xf] %v891_v37  ;;  %v895_v39 = vld [vmem:[%s14951_s30 + $0xd2c] sm:$0xf] }
 0x11c   : > { %894 = vst [vmem:[%s14947_s27 + $0xd30] sm:$0xf] %v893_v38  ;;  %v897_v40 = vld [vmem:[%s14951_s30 + $0xd40] sm:$0xf]  ;;  %v899_v41 = vld [vmem:[%s14951_s30 + $0xd44] sm:$0xf] }
 0x11d   : > { %896 = vst [vmem:[%s14947_s27 + $0xd38] sm:$0xf] %v895_v39  ;;  %898 = vst [vmem:[%s14947_s27 + $0xd40] sm:$0xf] %v897_v40  ;;  %v901_v42 = vld [vmem:[%s14951_s30 + $0xd48] sm:$0xf] }
 0x11e   : > { %900 = vst [vmem:[%s14947_s27 + $0xd48] sm:$0xf] %v899_v41  ;;  %v903_v43 = vld [vmem:[%s14951_s30 + $0xd4c] sm:$0xf]  ;;  %v905_v44 = vld [vmem:[%s14951_s30 + $0xd60] sm:$0xf] }
 0x11f   : > { %902 = vst [vmem:[%s14947_s27 + $0xd50] sm:$0xf] %v901_v42  ;;  %904 = vst [vmem:[%s14947_s27 + $0xd58] sm:$0xf] %v903_v43  ;;  %v907_v45 = vld [vmem:[%s14951_s30 + $0xd64] sm:$0xf] }
 0x120   : > { %906 = vst [vmem:[%s14947_s27 + $0xd60] sm:$0xf] %v905_v44  ;;  %v909_v46 = vld [vmem:[%s14951_s30 + $0xd68] sm:$0xf]  ;;  %v911_v47 = vld [vmem:[%s14951_s30 + $0xd6c] sm:$0xf] }
 0x121   : > { %908 = vst [vmem:[%s14947_s27 + $0xd68] sm:$0xf] %v907_v45  ;;  %910 = vst [vmem:[%s14947_s27 + $0xd70] sm:$0xf] %v909_v46  ;;  %v913_v48 = vld [vmem:[%s14951_s30 + $0xd80] sm:$0xf] }
 0x122   : > { %912 = vst [vmem:[%s14947_s27 + $0xd78] sm:$0xf] %v911_v47  ;;  %v915_v49 = vld [vmem:[%s14951_s30 + $0xd84] sm:$0xf]  ;;  %v917_v50 = vld [vmem:[%s14951_s30 + $0xd88] sm:$0xf] }
 0x123   : > { %914 = vst [vmem:[%s14947_s27 + $0xd80] sm:$0xf] %v913_v48  ;;  %916 = vst [vmem:[%s14947_s27 + $0xd88] sm:$0xf] %v915_v49  ;;  %v919_v51 = vld [vmem:[%s14951_s30 + $0xd8c] sm:$0xf] }
 0x124   : > { %918 = vst [vmem:[%s14947_s27 + $0xd90] sm:$0xf] %v917_v50  ;;  %v921_v52 = vld [vmem:[%s14951_s30 + $0xda0] sm:$0xf]  ;;  %v923_v53 = vld [vmem:[%s14951_s30 + $0xda4] sm:$0xf] }
 0x125   : > { %920 = vst [vmem:[%s14947_s27 + $0xd98] sm:$0xf] %v919_v51  ;;  %922 = vst [vmem:[%s14947_s27 + $0xda0] sm:$0xf] %v921_v52  ;;  %v925_v54 = vld [vmem:[%s14951_s30 + $0xda8] sm:$0xf] }
 0x126   : > { %924 = vst [vmem:[%s14947_s27 + $0xda8] sm:$0xf] %v923_v53  ;;  %v927_v55 = vld [vmem:[%s14951_s30 + $0xdac] sm:$0xf]  ;;  %v929_v56 = vld [vmem:[%s14951_s30 + $0xdc0] sm:$0xf] }
 0x127   : > { %926 = vst [vmem:[%s14947_s27 + $0xdb0] sm:$0xf] %v925_v54  ;;  %928 = vst [vmem:[%s14947_s27 + $0xdb8] sm:$0xf] %v927_v55  ;;  %v931_v57 = vld [vmem:[%s14951_s30 + $0xdc4] sm:$0xf] }
 0x128   : > { %930 = vst [vmem:[%s14947_s27 + $0xdc0] sm:$0xf] %v929_v56  ;;  %v933_v58 = vld [vmem:[%s14951_s30 + $0xdc8] sm:$0xf]  ;;  %v935_v59 = vld [vmem:[%s14951_s30 + $0xdcc] sm:$0xf] }
 0x129   : > { %932 = vst [vmem:[%s14947_s27 + $0xdc8] sm:$0xf] %v931_v57  ;;  %934 = vst [vmem:[%s14947_s27 + $0xdd0] sm:$0xf] %v933_v58  ;;  %v937_v60 = vld [vmem:[%s14951_s30 + $0xde0] sm:$0xf] }
 0x12a   : > { %936 = vst [vmem:[%s14947_s27 + $0xdd8] sm:$0xf] %v935_v59  ;;  %v939_v61 = vld [vmem:[%s14951_s30 + $0xde4] sm:$0xf]  ;;  %v941_v62 = vld [vmem:[%s14951_s30 + $0xde8] sm:$0xf] }
 0x12b   : > { %938 = vst [vmem:[%s14947_s27 + $0xde0] sm:$0xf] %v937_v60  ;;  %940 = vst [vmem:[%s14947_s27 + $0xde8] sm:$0xf] %v939_v61  ;;  %v943_v63 = vld [vmem:[%s14951_s30 + $0xdec] sm:$0xf] }
 0x12c   : > { %942 = vst [vmem:[%s14947_s27 + $0xdf0] sm:$0xf] %v941_v62  ;;  %v945_v0 = vld [vmem:[%s14951_s30 + $0xe00] sm:$0xf]  ;;  %v947_v1 = vld [vmem:[%s14951_s30 + $0xe04] sm:$0xf] }
 0x12d   : > { %944 = vst [vmem:[%s14947_s27 + $0xdf8] sm:$0xf] %v943_v63  ;;  %946 = vst [vmem:[%s14947_s27 + $0xe00] sm:$0xf] %v945_v0  ;;  %v949_v2 = vld [vmem:[%s14951_s30 + $0xe08] sm:$0xf] }
 0x12e   : > { %948 = vst [vmem:[%s14947_s27 + $0xe08] sm:$0xf] %v947_v1  ;;  %v951_v3 = vld [vmem:[%s14951_s30 + $0xe0c] sm:$0xf]  ;;  %v953_v4 = vld [vmem:[%s14951_s30 + $0xe20] sm:$0xf] }
 0x12f   : > { %950 = vst [vmem:[%s14947_s27 + $0xe10] sm:$0xf] %v949_v2  ;;  %952 = vst [vmem:[%s14947_s27 + $0xe18] sm:$0xf] %v951_v3  ;;  %v955_v5 = vld [vmem:[%s14951_s30 + $0xe24] sm:$0xf] }
 0x130   : > { %954 = vst [vmem:[%s14947_s27 + $0xe20] sm:$0xf] %v953_v4  ;;  %v957_v6 = vld [vmem:[%s14951_s30 + $0xe28] sm:$0xf]  ;;  %v959_v7 = vld [vmem:[%s14951_s30 + $0xe2c] sm:$0xf] }
 0x131   : > { %956 = vst [vmem:[%s14947_s27 + $0xe28] sm:$0xf] %v955_v5  ;;  %958 = vst [vmem:[%s14947_s27 + $0xe30] sm:$0xf] %v957_v6  ;;  %v961_v8 = vld [vmem:[%s14951_s30 + $0xe40] sm:$0xf] }
 0x132   : > { %960 = vst [vmem:[%s14947_s27 + $0xe38] sm:$0xf] %v959_v7  ;;  %v963_v9 = vld [vmem:[%s14951_s30 + $0xe44] sm:$0xf]  ;;  %v965_v10 = vld [vmem:[%s14951_s30 + $0xe48] sm:$0xf] }
 0x133   : > { %962 = vst [vmem:[%s14947_s27 + $0xe40] sm:$0xf] %v961_v8  ;;  %964 = vst [vmem:[%s14947_s27 + $0xe48] sm:$0xf] %v963_v9  ;;  %v967_v11 = vld [vmem:[%s14951_s30 + $0xe4c] sm:$0xf] }
 0x134   : > { %966 = vst [vmem:[%s14947_s27 + $0xe50] sm:$0xf] %v965_v10  ;;  %v969_v12 = vld [vmem:[%s14951_s30 + $0xe60] sm:$0xf]  ;;  %v971_v13 = vld [vmem:[%s14951_s30 + $0xe64] sm:$0xf] }
 0x135   : > { %968 = vst [vmem:[%s14947_s27 + $0xe58] sm:$0xf] %v967_v11  ;;  %970 = vst [vmem:[%s14947_s27 + $0xe60] sm:$0xf] %v969_v12  ;;  %v973_v14 = vld [vmem:[%s14951_s30 + $0xe68] sm:$0xf] }
 0x136   : > { %972 = vst [vmem:[%s14947_s27 + $0xe68] sm:$0xf] %v971_v13  ;;  %v975_v15 = vld [vmem:[%s14951_s30 + $0xe6c] sm:$0xf]  ;;  %v977_v16 = vld [vmem:[%s14951_s30 + $0xe80] sm:$0xf] }
 0x137   : > { %974 = vst [vmem:[%s14947_s27 + $0xe70] sm:$0xf] %v973_v14  ;;  %976 = vst [vmem:[%s14947_s27 + $0xe78] sm:$0xf] %v975_v15  ;;  %v979_v17 = vld [vmem:[%s14951_s30 + $0xe84] sm:$0xf] }
 0x138   : > { %978 = vst [vmem:[%s14947_s27 + $0xe80] sm:$0xf] %v977_v16  ;;  %v981_v18 = vld [vmem:[%s14951_s30 + $0xe88] sm:$0xf]  ;;  %v983_v19 = vld [vmem:[%s14951_s30 + $0xe8c] sm:$0xf] }
 0x139   : > { %980 = vst [vmem:[%s14947_s27 + $0xe88] sm:$0xf] %v979_v17  ;;  %982 = vst [vmem:[%s14947_s27 + $0xe90] sm:$0xf] %v981_v18  ;;  %v985_v20 = vld [vmem:[%s14951_s30 + $0xea0] sm:$0xf] }
 0x13a   : > { %984 = vst [vmem:[%s14947_s27 + $0xe98] sm:$0xf] %v983_v19  ;;  %v987_v21 = vld [vmem:[%s14951_s30 + $0xea4] sm:$0xf]  ;;  %v989_v22 = vld [vmem:[%s14951_s30 + $0xea8] sm:$0xf] }
 0x13b   : > { %986 = vst [vmem:[%s14947_s27 + $0xea0] sm:$0xf] %v985_v20  ;;  %988 = vst [vmem:[%s14947_s27 + $0xea8] sm:$0xf] %v987_v21  ;;  %v991_v23 = vld [vmem:[%s14951_s30 + $0xeac] sm:$0xf] }
 0x13c   : > { %990 = vst [vmem:[%s14947_s27 + $0xeb0] sm:$0xf] %v989_v22  ;;  %v993_v24 = vld [vmem:[%s14951_s30 + $0xec0] sm:$0xf]  ;;  %v995_v25 = vld [vmem:[%s14951_s30 + $0xec4] sm:$0xf] }
 0x13d   : > { %992 = vst [vmem:[%s14947_s27 + $0xeb8] sm:$0xf] %v991_v23  ;;  %994 = vst [vmem:[%s14947_s27 + $0xec0] sm:$0xf] %v993_v24  ;;  %v997_v26 = vld [vmem:[%s14951_s30 + $0xec8] sm:$0xf] }
 0x13e   : > { %996 = vst [vmem:[%s14947_s27 + $0xec8] sm:$0xf] %v995_v25  ;;  %v999_v27 = vld [vmem:[%s14951_s30 + $0xecc] sm:$0xf]  ;;  %v1001_v28 = vld [vmem:[%s14951_s30 + $0xee0] sm:$0xf] }
 0x13f   : > { %998 = vst [vmem:[%s14947_s27 + $0xed0] sm:$0xf] %v997_v26  ;;  %1000 = vst [vmem:[%s14947_s27 + $0xed8] sm:$0xf] %v999_v27  ;;  %v1003_v29 = vld [vmem:[%s14951_s30 + $0xee4] sm:$0xf] }
 0x140   : > { %1002 = vst [vmem:[%s14947_s27 + $0xee0] sm:$0xf] %v1001_v28  ;;  %v1005_v30 = vld [vmem:[%s14951_s30 + $0xee8] sm:$0xf]  ;;  %v1007_v31 = vld [vmem:[%s14951_s30 + $0xeec] sm:$0xf] }
 0x141   : > { %1004 = vst [vmem:[%s14947_s27 + $0xee8] sm:$0xf] %v1003_v29  ;;  %1006 = vst [vmem:[%s14947_s27 + $0xef0] sm:$0xf] %v1005_v30  ;;  %v1009_v32 = vld [vmem:[%s14951_s30 + $0xf00] sm:$0xf] }
 0x142   : > { %1008 = vst [vmem:[%s14947_s27 + $0xef8] sm:$0xf] %v1007_v31  ;;  %v1011_v33 = vld [vmem:[%s14951_s30 + $0xf04] sm:$0xf]  ;;  %v1013_v34 = vld [vmem:[%s14951_s30 + $0xf08] sm:$0xf] }
 0x143   : > { %1010 = vst [vmem:[%s14947_s27 + $0xf00] sm:$0xf] %v1009_v32  ;;  %1012 = vst [vmem:[%s14947_s27 + $0xf08] sm:$0xf] %v1011_v33  ;;  %v1015_v35 = vld [vmem:[%s14951_s30 + $0xf0c] sm:$0xf] }
 0x144   : > { %1014 = vst [vmem:[%s14947_s27 + $0xf10] sm:$0xf] %v1013_v34  ;;  %v1017_v36 = vld [vmem:[%s14951_s30 + $0xf20] sm:$0xf]  ;;  %v1019_v37 = vld [vmem:[%s14951_s30 + $0xf24] sm:$0xf] }
 0x145   : > { %1016 = vst [vmem:[%s14947_s27 + $0xf18] sm:$0xf] %v1015_v35  ;;  %1018 = vst [vmem:[%s14947_s27 + $0xf20] sm:$0xf] %v1017_v36  ;;  %v1021_v38 = vld [vmem:[%s14951_s30 + $0xf28] sm:$0xf] }
 0x146   : > { %1020 = vst [vmem:[%s14947_s27 + $0xf28] sm:$0xf] %v1019_v37  ;;  %v1023_v39 = vld [vmem:[%s14951_s30 + $0xf2c] sm:$0xf]  ;;  %v1025_v40 = vld [vmem:[%s14951_s30 + $0xf40] sm:$0xf] }
 0x147   : > { %1022 = vst [vmem:[%s14947_s27 + $0xf30] sm:$0xf] %v1021_v38  ;;  %1024 = vst [vmem:[%s14947_s27 + $0xf38] sm:$0xf] %v1023_v39  ;;  %v1027_v41 = vld [vmem:[%s14951_s30 + $0xf44] sm:$0xf] }
 0x148   : > { %1026 = vst [vmem:[%s14947_s27 + $0xf40] sm:$0xf] %v1025_v40  ;;  %v1029_v42 = vld [vmem:[%s14951_s30 + $0xf48] sm:$0xf]  ;;  %v1031_v43 = vld [vmem:[%s14951_s30 + $0xf4c] sm:$0xf] }
 0x149   : > { %1028 = vst [vmem:[%s14947_s27 + $0xf48] sm:$0xf] %v1027_v41  ;;  %1030 = vst [vmem:[%s14947_s27 + $0xf50] sm:$0xf] %v1029_v42  ;;  %v1033_v44 = vld [vmem:[%s14951_s30 + $0xf60] sm:$0xf] }
 0x14a   : > { %1032 = vst [vmem:[%s14947_s27 + $0xf58] sm:$0xf] %v1031_v43  ;;  %v1035_v45 = vld [vmem:[%s14951_s30 + $0xf64] sm:$0xf]  ;;  %v1037_v46 = vld [vmem:[%s14951_s30 + $0xf68] sm:$0xf] }
 0x14b   : > { %1034 = vst [vmem:[%s14947_s27 + $0xf60] sm:$0xf] %v1033_v44  ;;  %1036 = vst [vmem:[%s14947_s27 + $0xf68] sm:$0xf] %v1035_v45  ;;  %v1039_v47 = vld [vmem:[%s14951_s30 + $0xf6c] sm:$0xf] }
 0x14c   : > { %1038 = vst [vmem:[%s14947_s27 + $0xf70] sm:$0xf] %v1037_v46  ;;  %v1041_v48 = vld [vmem:[%s14951_s30 + $0xf80] sm:$0xf]  ;;  %v1043_v49 = vld [vmem:[%s14951_s30 + $0xf84] sm:$0xf] }
 0x14d   : > { %1040 = vst [vmem:[%s14947_s27 + $0xf78] sm:$0xf] %v1039_v47  ;;  %1042 = vst [vmem:[%s14947_s27 + $0xf80] sm:$0xf] %v1041_v48  ;;  %v1045_v50 = vld [vmem:[%s14951_s30 + $0xf88] sm:$0xf] }
 0x14e   : > { %1044 = vst [vmem:[%s14947_s27 + $0xf88] sm:$0xf] %v1043_v49  ;;  %v1047_v51 = vld [vmem:[%s14951_s30 + $0xf8c] sm:$0xf]  ;;  %v1049_v52 = vld [vmem:[%s14951_s30 + $0xfa0] sm:$0xf] }
 0x14f   : > { %1046 = vst [vmem:[%s14947_s27 + $0xf90] sm:$0xf] %v1045_v50  ;;  %1048 = vst [vmem:[%s14947_s27 + $0xf98] sm:$0xf] %v1047_v51  ;;  %v1051_v53 = vld [vmem:[%s14951_s30 + $0xfa4] sm:$0xf] }
 0x150   : > { %1050 = vst [vmem:[%s14947_s27 + $0xfa0] sm:$0xf] %v1049_v52  ;;  %v1053_v54 = vld [vmem:[%s14951_s30 + $0xfa8] sm:$0xf]  ;;  %v1055_v55 = vld [vmem:[%s14951_s30 + $0xfac] sm:$0xf] }
 0x151   : > { %1052 = vst [vmem:[%s14947_s27 + $0xfa8] sm:$0xf] %v1051_v53  ;;  %1054 = vst [vmem:[%s14947_s27 + $0xfb0] sm:$0xf] %v1053_v54  ;;  %v1057_v56 = vld [vmem:[%s14951_s30 + $0xfc0] sm:$0xf] }
 0x152   : > { %1056 = vst [vmem:[%s14947_s27 + $0xfb8] sm:$0xf] %v1055_v55  ;;  %v1059_v57 = vld [vmem:[%s14951_s30 + $0xfc4] sm:$0xf]  ;;  %v1061_v58 = vld [vmem:[%s14951_s30 + $0xfc8] sm:$0xf] }
 0x153   : > { %1058 = vst [vmem:[%s14947_s27 + $0xfc0] sm:$0xf] %v1057_v56  ;;  %1060 = vst [vmem:[%s14947_s27 + $0xfc8] sm:$0xf] %v1059_v57  ;;  %v1063_v59 = vld [vmem:[%s14951_s30 + $0xfcc] sm:$0xf] }
 0x154   : > { %1062 = vst [vmem:[%s14947_s27 + $0xfd0] sm:$0xf] %v1061_v58  ;;  %v1065_v60 = vld [vmem:[%s14951_s30 + $0xfe0] sm:$0xf]  ;;  %v1067_v61 = vld [vmem:[%s14951_s30 + $0xfe4] sm:$0xf] }
 0x155   : > { %1064 = vst [vmem:[%s14947_s27 + $0xfd8] sm:$0xf] %v1063_v59  ;;  %1066 = vst [vmem:[%s14947_s27 + $0xfe0] sm:$0xf] %v1065_v60  ;;  %v1069_v62 = vld [vmem:[%s14951_s30 + $0xfe8] sm:$0xf] }
 0x156   : > { %1068 = vst [vmem:[%s14947_s27 + $0xfe8] sm:$0xf] %v1067_v61  ;;  %v1071_v63 = vld [vmem:[%s14951_s30 + $0xfec] sm:$0xf]  ;;  %v1073_v0 = vld [vmem:[%s14951_s30 + $0x1000] sm:$0xf] }
 0x157   : > { %1070 = vst [vmem:[%s14947_s27 + $0xff0] sm:$0xf] %v1069_v62  ;;  %1072 = vst [vmem:[%s14947_s27 + $0xff8] sm:$0xf] %v1071_v63  ;;  %v1075_v1 = vld [vmem:[%s14951_s30 + $0x1004] sm:$0xf] }
 0x158   : > { %1074 = vst [vmem:[%s14947_s27 + $0x1000] sm:$0xf] %v1073_v0  ;;  %v1077_v2 = vld [vmem:[%s14951_s30 + $0x1008] sm:$0xf]  ;;  %v1079_v3 = vld [vmem:[%s14951_s30 + $0x100c] sm:$0xf] }
 0x159   : > { %1076 = vst [vmem:[%s14947_s27 + $0x1008] sm:$0xf] %v1075_v1  ;;  %1078 = vst [vmem:[%s14947_s27 + $0x1010] sm:$0xf] %v1077_v2  ;;  %v1081_v4 = vld [vmem:[%s14951_s30 + $0x1020] sm:$0xf] }
 0x15a   : > { %1080 = vst [vmem:[%s14947_s27 + $0x1018] sm:$0xf] %v1079_v3  ;;  %v1083_v5 = vld [vmem:[%s14951_s30 + $0x1024] sm:$0xf]  ;;  %v1085_v6 = vld [vmem:[%s14951_s30 + $0x1028] sm:$0xf] }
 0x15b   : > { %1082 = vst [vmem:[%s14947_s27 + $0x1020] sm:$0xf] %v1081_v4  ;;  %1084 = vst [vmem:[%s14947_s27 + $0x1028] sm:$0xf] %v1083_v5  ;;  %v1087_v7 = vld [vmem:[%s14951_s30 + $0x102c] sm:$0xf] }
 0x15c   : > { %1086 = vst [vmem:[%s14947_s27 + $0x1030] sm:$0xf] %v1085_v6  ;;  %v1089_v8 = vld [vmem:[%s14951_s30 + $0x1040] sm:$0xf]  ;;  %v1091_v9 = vld [vmem:[%s14951_s30 + $0x1044] sm:$0xf] }
 0x15d   : > { %1088 = vst [vmem:[%s14947_s27 + $0x1038] sm:$0xf] %v1087_v7  ;;  %1090 = vst [vmem:[%s14947_s27 + $0x1040] sm:$0xf] %v1089_v8  ;;  %v1093_v10 = vld [vmem:[%s14951_s30 + $0x1048] sm:$0xf] }
 0x15e   : > { %1092 = vst [vmem:[%s14947_s27 + $0x1048] sm:$0xf] %v1091_v9  ;;  %v1095_v11 = vld [vmem:[%s14951_s30 + $0x104c] sm:$0xf]  ;;  %v1097_v12 = vld [vmem:[%s14951_s30 + $0x1060] sm:$0xf] }
 0x15f   : > { %1094 = vst [vmem:[%s14947_s27 + $0x1050] sm:$0xf] %v1093_v10  ;;  %1096 = vst [vmem:[%s14947_s27 + $0x1058] sm:$0xf] %v1095_v11  ;;  %v1099_v13 = vld [vmem:[%s14951_s30 + $0x1064] sm:$0xf] }
 0x160   : > { %1098 = vst [vmem:[%s14947_s27 + $0x1060] sm:$0xf] %v1097_v12  ;;  %v1101_v14 = vld [vmem:[%s14951_s30 + $0x1068] sm:$0xf]  ;;  %v1103_v15 = vld [vmem:[%s14951_s30 + $0x106c] sm:$0xf] }
 0x161   : > { %1100 = vst [vmem:[%s14947_s27 + $0x1068] sm:$0xf] %v1099_v13  ;;  %1102 = vst [vmem:[%s14947_s27 + $0x1070] sm:$0xf] %v1101_v14  ;;  %v1105_v16 = vld [vmem:[%s14951_s30 + $0x1080] sm:$0xf] }
 0x162   : > { %1104 = vst [vmem:[%s14947_s27 + $0x1078] sm:$0xf] %v1103_v15  ;;  %v1107_v17 = vld [vmem:[%s14951_s30 + $0x1084] sm:$0xf]  ;;  %v1109_v18 = vld [vmem:[%s14951_s30 + $0x1088] sm:$0xf] }
 0x163   : > { %1106 = vst [vmem:[%s14947_s27 + $0x1080] sm:$0xf] %v1105_v16  ;;  %1108 = vst [vmem:[%s14947_s27 + $0x1088] sm:$0xf] %v1107_v17  ;;  %v1111_v19 = vld [vmem:[%s14951_s30 + $0x108c] sm:$0xf] }
 0x164   : > { %1110 = vst [vmem:[%s14947_s27 + $0x1090] sm:$0xf] %v1109_v18  ;;  %v1113_v20 = vld [vmem:[%s14951_s30 + $0x10a0] sm:$0xf]  ;;  %v1115_v21 = vld [vmem:[%s14951_s30 + $0x10a4] sm:$0xf] }
 0x165   : > { %1112 = vst [vmem:[%s14947_s27 + $0x1098] sm:$0xf] %v1111_v19  ;;  %1114 = vst [vmem:[%s14947_s27 + $0x10a0] sm:$0xf] %v1113_v20  ;;  %v1117_v22 = vld [vmem:[%s14951_s30 + $0x10a8] sm:$0xf] }
 0x166   : > { %1116 = vst [vmem:[%s14947_s27 + $0x10a8] sm:$0xf] %v1115_v21  ;;  %v1119_v23 = vld [vmem:[%s14951_s30 + $0x10ac] sm:$0xf]  ;;  %v1121_v24 = vld [vmem:[%s14951_s30 + $0x10c0] sm:$0xf] }
 0x167   : > { %1118 = vst [vmem:[%s14947_s27 + $0x10b0] sm:$0xf] %v1117_v22  ;;  %1120 = vst [vmem:[%s14947_s27 + $0x10b8] sm:$0xf] %v1119_v23  ;;  %v1123_v25 = vld [vmem:[%s14951_s30 + $0x10c4] sm:$0xf] }
 0x168   : > { %1122 = vst [vmem:[%s14947_s27 + $0x10c0] sm:$0xf] %v1121_v24  ;;  %v1125_v26 = vld [vmem:[%s14951_s30 + $0x10c8] sm:$0xf]  ;;  %v1127_v27 = vld [vmem:[%s14951_s30 + $0x10cc] sm:$0xf] }
 0x169   : > { %1124 = vst [vmem:[%s14947_s27 + $0x10c8] sm:$0xf] %v1123_v25  ;;  %1126 = vst [vmem:[%s14947_s27 + $0x10d0] sm:$0xf] %v1125_v26  ;;  %v1129_v28 = vld [vmem:[%s14951_s30 + $0x10e0] sm:$0xf] }
 0x16a   : > { %1128 = vst [vmem:[%s14947_s27 + $0x10d8] sm:$0xf] %v1127_v27  ;;  %v1131_v29 = vld [vmem:[%s14951_s30 + $0x10e4] sm:$0xf]  ;;  %v1133_v30 = vld [vmem:[%s14951_s30 + $0x10e8] sm:$0xf] }
 0x16b   : > { %1130 = vst [vmem:[%s14947_s27 + $0x10e0] sm:$0xf] %v1129_v28  ;;  %1132 = vst [vmem:[%s14947_s27 + $0x10e8] sm:$0xf] %v1131_v29  ;;  %v1135_v31 = vld [vmem:[%s14951_s30 + $0x10ec] sm:$0xf] }
 0x16c   : > { %1134 = vst [vmem:[%s14947_s27 + $0x10f0] sm:$0xf] %v1133_v30  ;;  %v1137_v32 = vld [vmem:[%s14951_s30 + $0x1100] sm:$0xf]  ;;  %v1139_v33 = vld [vmem:[%s14951_s30 + $0x1104] sm:$0xf] }
 0x16d   : > { %1136 = vst [vmem:[%s14947_s27 + $0x10f8] sm:$0xf] %v1135_v31  ;;  %1138 = vst [vmem:[%s14947_s27 + $0x1100] sm:$0xf] %v1137_v32  ;;  %v1141_v34 = vld [vmem:[%s14951_s30 + $0x1108] sm:$0xf] }
 0x16e   : > { %1140 = vst [vmem:[%s14947_s27 + $0x1108] sm:$0xf] %v1139_v33  ;;  %v1143_v35 = vld [vmem:[%s14951_s30 + $0x110c] sm:$0xf]  ;;  %v1145_v36 = vld [vmem:[%s14951_s30 + $0x1120] sm:$0xf] }
 0x16f   : > { %1142 = vst [vmem:[%s14947_s27 + $0x1110] sm:$0xf] %v1141_v34  ;;  %1144 = vst [vmem:[%s14947_s27 + $0x1118] sm:$0xf] %v1143_v35  ;;  %v1147_v37 = vld [vmem:[%s14951_s30 + $0x1124] sm:$0xf] }
 0x170   : > { %1146 = vst [vmem:[%s14947_s27 + $0x1120] sm:$0xf] %v1145_v36  ;;  %v1149_v38 = vld [vmem:[%s14951_s30 + $0x1128] sm:$0xf]  ;;  %v1151_v39 = vld [vmem:[%s14951_s30 + $0x112c] sm:$0xf] }
 0x171   : > { %1148 = vst [vmem:[%s14947_s27 + $0x1128] sm:$0xf] %v1147_v37  ;;  %1150 = vst [vmem:[%s14947_s27 + $0x1130] sm:$0xf] %v1149_v38  ;;  %v1153_v40 = vld [vmem:[%s14951_s30 + $0x1140] sm:$0xf] }
 0x172   : > { %1152 = vst [vmem:[%s14947_s27 + $0x1138] sm:$0xf] %v1151_v39  ;;  %v1155_v41 = vld [vmem:[%s14951_s30 + $0x1144] sm:$0xf]  ;;  %v1157_v42 = vld [vmem:[%s14951_s30 + $0x1148] sm:$0xf] }
 0x173   : > { %1154 = vst [vmem:[%s14947_s27 + $0x1140] sm:$0xf] %v1153_v40  ;;  %1156 = vst [vmem:[%s14947_s27 + $0x1148] sm:$0xf] %v1155_v41  ;;  %v1159_v43 = vld [vmem:[%s14951_s30 + $0x114c] sm:$0xf] }
 0x174   : > { %1158 = vst [vmem:[%s14947_s27 + $0x1150] sm:$0xf] %v1157_v42  ;;  %v1161_v44 = vld [vmem:[%s14951_s30 + $0x1160] sm:$0xf]  ;;  %v1163_v45 = vld [vmem:[%s14951_s30 + $0x1164] sm:$0xf] }
 0x175   : > { %1160 = vst [vmem:[%s14947_s27 + $0x1158] sm:$0xf] %v1159_v43  ;;  %1162 = vst [vmem:[%s14947_s27 + $0x1160] sm:$0xf] %v1161_v44  ;;  %v1165_v46 = vld [vmem:[%s14951_s30 + $0x1168] sm:$0xf] }
 0x176   : > { %1164 = vst [vmem:[%s14947_s27 + $0x1168] sm:$0xf] %v1163_v45  ;;  %v1167_v47 = vld [vmem:[%s14951_s30 + $0x116c] sm:$0xf]  ;;  %v1169_v48 = vld [vmem:[%s14951_s30 + $0x1180] sm:$0xf] }
 0x177   : > { %1166 = vst [vmem:[%s14947_s27 + $0x1170] sm:$0xf] %v1165_v46  ;;  %1168 = vst [vmem:[%s14947_s27 + $0x1178] sm:$0xf] %v1167_v47  ;;  %v1171_v49 = vld [vmem:[%s14951_s30 + $0x1184] sm:$0xf] }
 0x178   : > { %1170 = vst [vmem:[%s14947_s27 + $0x1180] sm:$0xf] %v1169_v48  ;;  %v1173_v50 = vld [vmem:[%s14951_s30 + $0x1188] sm:$0xf]  ;;  %v1175_v51 = vld [vmem:[%s14951_s30 + $0x118c] sm:$0xf] }
 0x179   : > { %1172 = vst [vmem:[%s14947_s27 + $0x1188] sm:$0xf] %v1171_v49  ;;  %1174 = vst [vmem:[%s14947_s27 + $0x1190] sm:$0xf] %v1173_v50  ;;  %v1177_v52 = vld [vmem:[%s14951_s30 + $0x11a0] sm:$0xf] }
 0x17a   : > { %1176 = vst [vmem:[%s14947_s27 + $0x1198] sm:$0xf] %v1175_v51  ;;  %v1179_v53 = vld [vmem:[%s14951_s30 + $0x11a4] sm:$0xf]  ;;  %v1181_v54 = vld [vmem:[%s14951_s30 + $0x11a8] sm:$0xf] }
 0x17b   : > { %1178 = vst [vmem:[%s14947_s27 + $0x11a0] sm:$0xf] %v1177_v52  ;;  %1180 = vst [vmem:[%s14947_s27 + $0x11a8] sm:$0xf] %v1179_v53  ;;  %v1183_v55 = vld [vmem:[%s14951_s30 + $0x11ac] sm:$0xf] }
 0x17c   : > { %1182 = vst [vmem:[%s14947_s27 + $0x11b0] sm:$0xf] %v1181_v54  ;;  %v1185_v56 = vld [vmem:[%s14951_s30 + $0x11c0] sm:$0xf]  ;;  %v1187_v57 = vld [vmem:[%s14951_s30 + $0x11c4] sm:$0xf] }
 0x17d   : > { %1184 = vst [vmem:[%s14947_s27 + $0x11b8] sm:$0xf] %v1183_v55  ;;  %1186 = vst [vmem:[%s14947_s27 + $0x11c0] sm:$0xf] %v1185_v56  ;;  %v1189_v58 = vld [vmem:[%s14951_s30 + $0x11c8] sm:$0xf] }
 0x17e   : > { %1188 = vst [vmem:[%s14947_s27 + $0x11c8] sm:$0xf] %v1187_v57  ;;  %v1191_v59 = vld [vmem:[%s14951_s30 + $0x11cc] sm:$0xf]  ;;  %v1193_v60 = vld [vmem:[%s14951_s30 + $0x11e0] sm:$0xf] }
 0x17f   : > { %1190 = vst [vmem:[%s14947_s27 + $0x11d0] sm:$0xf] %v1189_v58  ;;  %1192 = vst [vmem:[%s14947_s27 + $0x11d8] sm:$0xf] %v1191_v59  ;;  %v1195_v61 = vld [vmem:[%s14951_s30 + $0x11e4] sm:$0xf] }
 0x180   : > { %1194 = vst [vmem:[%s14947_s27 + $0x11e0] sm:$0xf] %v1193_v60  ;;  %v1197_v62 = vld [vmem:[%s14951_s30 + $0x11e8] sm:$0xf]  ;;  %v1199_v63 = vld [vmem:[%s14951_s30 + $0x11ec] sm:$0xf] }
 0x181   : > { %1196 = vst [vmem:[%s14947_s27 + $0x11e8] sm:$0xf] %v1195_v61  ;;  %1198 = vst [vmem:[%s14947_s27 + $0x11f0] sm:$0xf] %v1197_v62  ;;  %v1201_v0 = vld [vmem:[%s14951_s30 + $0x1200] sm:$0xf] }
 0x182   : > { %1200 = vst [vmem:[%s14947_s27 + $0x11f8] sm:$0xf] %v1199_v63  ;;  %v1203_v1 = vld [vmem:[%s14951_s30 + $0x1204] sm:$0xf]  ;;  %v1205_v2 = vld [vmem:[%s14951_s30 + $0x1208] sm:$0xf] }
 0x183   : > { %1202 = vst [vmem:[%s14947_s27 + $0x1200] sm:$0xf] %v1201_v0  ;;  %1204 = vst [vmem:[%s14947_s27 + $0x1208] sm:$0xf] %v1203_v1  ;;  %v1207_v3 = vld [vmem:[%s14951_s30 + $0x120c] sm:$0xf] }
 0x184   : > { %1206 = vst [vmem:[%s14947_s27 + $0x1210] sm:$0xf] %v1205_v2  ;;  %v1209_v4 = vld [vmem:[%s14951_s30 + $0x1220] sm:$0xf]  ;;  %v1211_v5 = vld [vmem:[%s14951_s30 + $0x1224] sm:$0xf] }
 0x185   : > { %1208 = vst [vmem:[%s14947_s27 + $0x1218] sm:$0xf] %v1207_v3  ;;  %1210 = vst [vmem:[%s14947_s27 + $0x1220] sm:$0xf] %v1209_v4  ;;  %v1213_v6 = vld [vmem:[%s14951_s30 + $0x1228] sm:$0xf] }
 0x186   : > { %1212 = vst [vmem:[%s14947_s27 + $0x1228] sm:$0xf] %v1211_v5  ;;  %v1215_v7 = vld [vmem:[%s14951_s30 + $0x122c] sm:$0xf]  ;;  %v1217_v8 = vld [vmem:[%s14951_s30 + $0x1240] sm:$0xf] }
 0x187   : > { %1214 = vst [vmem:[%s14947_s27 + $0x1230] sm:$0xf] %v1213_v6  ;;  %1216 = vst [vmem:[%s14947_s27 + $0x1238] sm:$0xf] %v1215_v7  ;;  %v1219_v9 = vld [vmem:[%s14951_s30 + $0x1244] sm:$0xf] }
 0x188   : > { %1218 = vst [vmem:[%s14947_s27 + $0x1240] sm:$0xf] %v1217_v8  ;;  %v1221_v10 = vld [vmem:[%s14951_s30 + $0x1248] sm:$0xf]  ;;  %v1223_v11 = vld [vmem:[%s14951_s30 + $0x124c] sm:$0xf] }
 0x189   : > { %1220 = vst [vmem:[%s14947_s27 + $0x1248] sm:$0xf] %v1219_v9  ;;  %1222 = vst [vmem:[%s14947_s27 + $0x1250] sm:$0xf] %v1221_v10  ;;  %v1225_v12 = vld [vmem:[%s14951_s30 + $0x1260] sm:$0xf] }
 0x18a   : > { %1224 = vst [vmem:[%s14947_s27 + $0x1258] sm:$0xf] %v1223_v11  ;;  %v1227_v13 = vld [vmem:[%s14951_s30 + $0x1264] sm:$0xf]  ;;  %v1229_v14 = vld [vmem:[%s14951_s30 + $0x1268] sm:$0xf] }
 0x18b   : > { %1226 = vst [vmem:[%s14947_s27 + $0x1260] sm:$0xf] %v1225_v12  ;;  %1228 = vst [vmem:[%s14947_s27 + $0x1268] sm:$0xf] %v1227_v13  ;;  %v1231_v15 = vld [vmem:[%s14951_s30 + $0x126c] sm:$0xf] }
 0x18c   : > { %1230 = vst [vmem:[%s14947_s27 + $0x1270] sm:$0xf] %v1229_v14  ;;  %v1233_v16 = vld [vmem:[%s14951_s30 + $0x1280] sm:$0xf]  ;;  %v1235_v17 = vld [vmem:[%s14951_s30 + $0x1284] sm:$0xf] }
 0x18d   : > { %1232 = vst [vmem:[%s14947_s27 + $0x1278] sm:$0xf] %v1231_v15  ;;  %1234 = vst [vmem:[%s14947_s27 + $0x1280] sm:$0xf] %v1233_v16  ;;  %v1237_v18 = vld [vmem:[%s14951_s30 + $0x1288] sm:$0xf] }
 0x18e   : > { %1236 = vst [vmem:[%s14947_s27 + $0x1288] sm:$0xf] %v1235_v17  ;;  %v1239_v19 = vld [vmem:[%s14951_s30 + $0x128c] sm:$0xf]  ;;  %v1241_v20 = vld [vmem:[%s14951_s30 + $0x12a0] sm:$0xf] }
 0x18f   : > { %1238 = vst [vmem:[%s14947_s27 + $0x1290] sm:$0xf] %v1237_v18  ;;  %1240 = vst [vmem:[%s14947_s27 + $0x1298] sm:$0xf] %v1239_v19  ;;  %v1243_v21 = vld [vmem:[%s14951_s30 + $0x12a4] sm:$0xf] }
 0x190   : > { %1242 = vst [vmem:[%s14947_s27 + $0x12a0] sm:$0xf] %v1241_v20  ;;  %v1245_v22 = vld [vmem:[%s14951_s30 + $0x12a8] sm:$0xf]  ;;  %v1247_v23 = vld [vmem:[%s14951_s30 + $0x12ac] sm:$0xf] }
 0x191   : > { %1244 = vst [vmem:[%s14947_s27 + $0x12a8] sm:$0xf] %v1243_v21  ;;  %1246 = vst [vmem:[%s14947_s27 + $0x12b0] sm:$0xf] %v1245_v22  ;;  %v1249_v24 = vld [vmem:[%s14951_s30 + $0x12c0] sm:$0xf] }
 0x192   : > { %1248 = vst [vmem:[%s14947_s27 + $0x12b8] sm:$0xf] %v1247_v23  ;;  %v1251_v25 = vld [vmem:[%s14951_s30 + $0x12c4] sm:$0xf]  ;;  %v1253_v26 = vld [vmem:[%s14951_s30 + $0x12c8] sm:$0xf] }
 0x193   : > { %1250 = vst [vmem:[%s14947_s27 + $0x12c0] sm:$0xf] %v1249_v24  ;;  %1252 = vst [vmem:[%s14947_s27 + $0x12c8] sm:$0xf] %v1251_v25  ;;  %v1255_v27 = vld [vmem:[%s14951_s30 + $0x12cc] sm:$0xf] }
 0x194   : > { %1254 = vst [vmem:[%s14947_s27 + $0x12d0] sm:$0xf] %v1253_v26  ;;  %v1257_v28 = vld [vmem:[%s14951_s30 + $0x12e0] sm:$0xf]  ;;  %v1259_v29 = vld [vmem:[%s14951_s30 + $0x12e4] sm:$0xf] }
 0x195   : > { %1256 = vst [vmem:[%s14947_s27 + $0x12d8] sm:$0xf] %v1255_v27  ;;  %1258 = vst [vmem:[%s14947_s27 + $0x12e0] sm:$0xf] %v1257_v28  ;;  %v1261_v30 = vld [vmem:[%s14951_s30 + $0x12e8] sm:$0xf] }
 0x196   : > { %1260 = vst [vmem:[%s14947_s27 + $0x12e8] sm:$0xf] %v1259_v29  ;;  %v1263_v31 = vld [vmem:[%s14951_s30 + $0x12ec] sm:$0xf]  ;;  %v1265_v32 = vld [vmem:[%s14951_s30 + $0x1300] sm:$0xf] }
 0x197   : > { %1262 = vst [vmem:[%s14947_s27 + $0x12f0] sm:$0xf] %v1261_v30  ;;  %1264 = vst [vmem:[%s14947_s27 + $0x12f8] sm:$0xf] %v1263_v31  ;;  %v1267_v33 = vld [vmem:[%s14951_s30 + $0x1304] sm:$0xf] }
 0x198   : > { %1266 = vst [vmem:[%s14947_s27 + $0x1300] sm:$0xf] %v1265_v32  ;;  %v1269_v34 = vld [vmem:[%s14951_s30 + $0x1308] sm:$0xf]  ;;  %v1271_v35 = vld [vmem:[%s14951_s30 + $0x130c] sm:$0xf] }
 0x199   : > { %1268 = vst [vmem:[%s14947_s27 + $0x1308] sm:$0xf] %v1267_v33  ;;  %1270 = vst [vmem:[%s14947_s27 + $0x1310] sm:$0xf] %v1269_v34  ;;  %v1273_v36 = vld [vmem:[%s14951_s30 + $0x1320] sm:$0xf] }
 0x19a   : > { %1272 = vst [vmem:[%s14947_s27 + $0x1318] sm:$0xf] %v1271_v35  ;;  %v1275_v37 = vld [vmem:[%s14951_s30 + $0x1324] sm:$0xf]  ;;  %v1277_v38 = vld [vmem:[%s14951_s30 + $0x1328] sm:$0xf] }
 0x19b   : > { %1274 = vst [vmem:[%s14947_s27 + $0x1320] sm:$0xf] %v1273_v36  ;;  %1276 = vst [vmem:[%s14947_s27 + $0x1328] sm:$0xf] %v1275_v37  ;;  %v1279_v39 = vld [vmem:[%s14951_s30 + $0x132c] sm:$0xf] }
 0x19c   : > { %1278 = vst [vmem:[%s14947_s27 + $0x1330] sm:$0xf] %v1277_v38  ;;  %v1281_v40 = vld [vmem:[%s14951_s30 + $0x1340] sm:$0xf]  ;;  %v1283_v41 = vld [vmem:[%s14951_s30 + $0x1344] sm:$0xf] }
 0x19d   : > { %1280 = vst [vmem:[%s14947_s27 + $0x1338] sm:$0xf] %v1279_v39  ;;  %1282 = vst [vmem:[%s14947_s27 + $0x1340] sm:$0xf] %v1281_v40  ;;  %v1285_v42 = vld [vmem:[%s14951_s30 + $0x1348] sm:$0xf] }
 0x19e   : > { %1284 = vst [vmem:[%s14947_s27 + $0x1348] sm:$0xf] %v1283_v41  ;;  %v1287_v43 = vld [vmem:[%s14951_s30 + $0x134c] sm:$0xf]  ;;  %v1289_v44 = vld [vmem:[%s14951_s30 + $0x1360] sm:$0xf] }
 0x19f   : > { %1286 = vst [vmem:[%s14947_s27 + $0x1350] sm:$0xf] %v1285_v42  ;;  %1288 = vst [vmem:[%s14947_s27 + $0x1358] sm:$0xf] %v1287_v43  ;;  %v1291_v45 = vld [vmem:[%s14951_s30 + $0x1364] sm:$0xf] }
 0x1a0   : > { %1290 = vst [vmem:[%s14947_s27 + $0x1360] sm:$0xf] %v1289_v44  ;;  %v1293_v46 = vld [vmem:[%s14951_s30 + $0x1368] sm:$0xf]  ;;  %v1295_v47 = vld [vmem:[%s14951_s30 + $0x136c] sm:$0xf] }
 0x1a1   : > { %1292 = vst [vmem:[%s14947_s27 + $0x1368] sm:$0xf] %v1291_v45  ;;  %1294 = vst [vmem:[%s14947_s27 + $0x1370] sm:$0xf] %v1293_v46  ;;  %v1297_v48 = vld [vmem:[%s14951_s30 + $0x1380] sm:$0xf] }
 0x1a2   : > { %1296 = vst [vmem:[%s14947_s27 + $0x1378] sm:$0xf] %v1295_v47  ;;  %v1299_v49 = vld [vmem:[%s14951_s30 + $0x1384] sm:$0xf]  ;;  %v1301_v50 = vld [vmem:[%s14951_s30 + $0x1388] sm:$0xf] }
 0x1a3   : > { %1298 = vst [vmem:[%s14947_s27 + $0x1380] sm:$0xf] %v1297_v48  ;;  %1300 = vst [vmem:[%s14947_s27 + $0x1388] sm:$0xf] %v1299_v49  ;;  %v1303_v51 = vld [vmem:[%s14951_s30 + $0x138c] sm:$0xf] }
 0x1a4   : > { %1302 = vst [vmem:[%s14947_s27 + $0x1390] sm:$0xf] %v1301_v50  ;;  %v1305_v52 = vld [vmem:[%s14951_s30 + $0x13a0] sm:$0xf]  ;;  %v1307_v53 = vld [vmem:[%s14951_s30 + $0x13a4] sm:$0xf] }
 0x1a5   : > { %1304 = vst [vmem:[%s14947_s27 + $0x1398] sm:$0xf] %v1303_v51  ;;  %1306 = vst [vmem:[%s14947_s27 + $0x13a0] sm:$0xf] %v1305_v52  ;;  %v1309_v54 = vld [vmem:[%s14951_s30 + $0x13a8] sm:$0xf] }
 0x1a6   : > { %1308 = vst [vmem:[%s14947_s27 + $0x13a8] sm:$0xf] %v1307_v53  ;;  %v1311_v55 = vld [vmem:[%s14951_s30 + $0x13ac] sm:$0xf]  ;;  %v1313_v56 = vld [vmem:[%s14951_s30 + $0x13c0] sm:$0xf] }
 0x1a7   : > { %1310 = vst [vmem:[%s14947_s27 + $0x13b0] sm:$0xf] %v1309_v54  ;;  %1312 = vst [vmem:[%s14947_s27 + $0x13b8] sm:$0xf] %v1311_v55  ;;  %v1315_v57 = vld [vmem:[%s14951_s30 + $0x13c4] sm:$0xf] }
 0x1a8   : > { %1314 = vst [vmem:[%s14947_s27 + $0x13c0] sm:$0xf] %v1313_v56  ;;  %v1317_v58 = vld [vmem:[%s14951_s30 + $0x13c8] sm:$0xf]  ;;  %v1319_v59 = vld [vmem:[%s14951_s30 + $0x13cc] sm:$0xf] }
 0x1a9   : > { %1316 = vst [vmem:[%s14947_s27 + $0x13c8] sm:$0xf] %v1315_v57  ;;  %1318 = vst [vmem:[%s14947_s27 + $0x13d0] sm:$0xf] %v1317_v58  ;;  %v1321_v60 = vld [vmem:[%s14951_s30 + $0x13e0] sm:$0xf] }
 0x1aa   : > { %1320 = vst [vmem:[%s14947_s27 + $0x13d8] sm:$0xf] %v1319_v59  ;;  %v1323_v61 = vld [vmem:[%s14951_s30 + $0x13e4] sm:$0xf]  ;;  %v1325_v62 = vld [vmem:[%s14951_s30 + $0x13e8] sm:$0xf] }
 0x1ab   : > { %1322 = vst [vmem:[%s14947_s27 + $0x13e0] sm:$0xf] %v1321_v60  ;;  %1324 = vst [vmem:[%s14947_s27 + $0x13e8] sm:$0xf] %v1323_v61  ;;  %v1327_v63 = vld [vmem:[%s14951_s30 + $0x13ec] sm:$0xf] }
 0x1ac   : > { %1326 = vst [vmem:[%s14947_s27 + $0x13f0] sm:$0xf] %v1325_v62  ;;  %v1329_v0 = vld [vmem:[%s14951_s30 + $0x1400] sm:$0xf]  ;;  %v1331_v1 = vld [vmem:[%s14951_s30 + $0x1404] sm:$0xf] }
 0x1ad   : > { %1328 = vst [vmem:[%s14947_s27 + $0x13f8] sm:$0xf] %v1327_v63  ;;  %1330 = vst [vmem:[%s14947_s27 + $0x1400] sm:$0xf] %v1329_v0  ;;  %v1333_v2 = vld [vmem:[%s14951_s30 + $0x1408] sm:$0xf] }
 0x1ae   : > { %1332 = vst [vmem:[%s14947_s27 + $0x1408] sm:$0xf] %v1331_v1  ;;  %v1335_v3 = vld [vmem:[%s14951_s30 + $0x140c] sm:$0xf]  ;;  %v1337_v4 = vld [vmem:[%s14951_s30 + $0x1420] sm:$0xf] }
 0x1af   : > { %1334 = vst [vmem:[%s14947_s27 + $0x1410] sm:$0xf] %v1333_v2  ;;  %1336 = vst [vmem:[%s14947_s27 + $0x1418] sm:$0xf] %v1335_v3  ;;  %v1339_v5 = vld [vmem:[%s14951_s30 + $0x1424] sm:$0xf] }
 0x1b0   : > { %1338 = vst [vmem:[%s14947_s27 + $0x1420] sm:$0xf] %v1337_v4  ;;  %v1341_v6 = vld [vmem:[%s14951_s30 + $0x1428] sm:$0xf]  ;;  %v1343_v7 = vld [vmem:[%s14951_s30 + $0x142c] sm:$0xf] }
 0x1b1   : > { %1340 = vst [vmem:[%s14947_s27 + $0x1428] sm:$0xf] %v1339_v5  ;;  %1342 = vst [vmem:[%s14947_s27 + $0x1430] sm:$0xf] %v1341_v6  ;;  %v1345_v8 = vld [vmem:[%s14951_s30 + $0x1440] sm:$0xf] }
 0x1b2   : > { %1344 = vst [vmem:[%s14947_s27 + $0x1438] sm:$0xf] %v1343_v7  ;;  %v1347_v9 = vld [vmem:[%s14951_s30 + $0x1444] sm:$0xf]  ;;  %v1349_v10 = vld [vmem:[%s14951_s30 + $0x1448] sm:$0xf] }
 0x1b3   : > { %1346 = vst [vmem:[%s14947_s27 + $0x1440] sm:$0xf] %v1345_v8  ;;  %1348 = vst [vmem:[%s14947_s27 + $0x1448] sm:$0xf] %v1347_v9  ;;  %v1351_v11 = vld [vmem:[%s14951_s30 + $0x144c] sm:$0xf] }
 0x1b4   : > { %1350 = vst [vmem:[%s14947_s27 + $0x1450] sm:$0xf] %v1349_v10  ;;  %v1353_v12 = vld [vmem:[%s14951_s30 + $0x1460] sm:$0xf]  ;;  %v1355_v13 = vld [vmem:[%s14951_s30 + $0x1464] sm:$0xf] }
 0x1b5   : > { %1352 = vst [vmem:[%s14947_s27 + $0x1458] sm:$0xf] %v1351_v11  ;;  %1354 = vst [vmem:[%s14947_s27 + $0x1460] sm:$0xf] %v1353_v12  ;;  %v1357_v14 = vld [vmem:[%s14951_s30 + $0x1468] sm:$0xf] }
 0x1b6   : > { %1356 = vst [vmem:[%s14947_s27 + $0x1468] sm:$0xf] %v1355_v13  ;;  %v1359_v15 = vld [vmem:[%s14951_s30 + $0x146c] sm:$0xf]  ;;  %v1361_v16 = vld [vmem:[%s14951_s30 + $0x1480] sm:$0xf] }
 0x1b7   : > { %1358 = vst [vmem:[%s14947_s27 + $0x1470] sm:$0xf] %v1357_v14  ;;  %1360 = vst [vmem:[%s14947_s27 + $0x1478] sm:$0xf] %v1359_v15  ;;  %v1363_v17 = vld [vmem:[%s14951_s30 + $0x1484] sm:$0xf] }
 0x1b8   : > { %1362 = vst [vmem:[%s14947_s27 + $0x1480] sm:$0xf] %v1361_v16  ;;  %v1365_v18 = vld [vmem:[%s14951_s30 + $0x1488] sm:$0xf]  ;;  %v1367_v19 = vld [vmem:[%s14951_s30 + $0x148c] sm:$0xf] }
 0x1b9   : > { %1364 = vst [vmem:[%s14947_s27 + $0x1488] sm:$0xf] %v1363_v17  ;;  %1366 = vst [vmem:[%s14947_s27 + $0x1490] sm:$0xf] %v1365_v18  ;;  %v1369_v20 = vld [vmem:[%s14951_s30 + $0x14a0] sm:$0xf] }
 0x1ba   : > { %1368 = vst [vmem:[%s14947_s27 + $0x1498] sm:$0xf] %v1367_v19  ;;  %v1371_v21 = vld [vmem:[%s14951_s30 + $0x14a4] sm:$0xf]  ;;  %v1373_v22 = vld [vmem:[%s14951_s30 + $0x14a8] sm:$0xf] }
 0x1bb   : > { %1370 = vst [vmem:[%s14947_s27 + $0x14a0] sm:$0xf] %v1369_v20  ;;  %1372 = vst [vmem:[%s14947_s27 + $0x14a8] sm:$0xf] %v1371_v21  ;;  %v1375_v23 = vld [vmem:[%s14951_s30 + $0x14ac] sm:$0xf] }
 0x1bc   : > { %1374 = vst [vmem:[%s14947_s27 + $0x14b0] sm:$0xf] %v1373_v22  ;;  %v1377_v24 = vld [vmem:[%s14951_s30 + $0x14c0] sm:$0xf]  ;;  %v1379_v25 = vld [vmem:[%s14951_s30 + $0x14c4] sm:$0xf] }
 0x1bd   : > { %1376 = vst [vmem:[%s14947_s27 + $0x14b8] sm:$0xf] %v1375_v23  ;;  %1378 = vst [vmem:[%s14947_s27 + $0x14c0] sm:$0xf] %v1377_v24  ;;  %v1381_v26 = vld [vmem:[%s14951_s30 + $0x14c8] sm:$0xf] }
 0x1be   : > { %1380 = vst [vmem:[%s14947_s27 + $0x14c8] sm:$0xf] %v1379_v25  ;;  %v1383_v27 = vld [vmem:[%s14951_s30 + $0x14cc] sm:$0xf]  ;;  %v1385_v28 = vld [vmem:[%s14951_s30 + $0x14e0] sm:$0xf] }
 0x1bf   : > { %1382 = vst [vmem:[%s14947_s27 + $0x14d0] sm:$0xf] %v1381_v26  ;;  %1384 = vst [vmem:[%s14947_s27 + $0x14d8] sm:$0xf] %v1383_v27  ;;  %v1387_v29 = vld [vmem:[%s14951_s30 + $0x14e4] sm:$0xf] }
 0x1c0   : > { %1386 = vst [vmem:[%s14947_s27 + $0x14e0] sm:$0xf] %v1385_v28  ;;  %v1389_v30 = vld [vmem:[%s14951_s30 + $0x14e8] sm:$0xf]  ;;  %v1391_v31 = vld [vmem:[%s14951_s30 + $0x14ec] sm:$0xf] }
 0x1c1   : > { %1388 = vst [vmem:[%s14947_s27 + $0x14e8] sm:$0xf] %v1387_v29  ;;  %1390 = vst [vmem:[%s14947_s27 + $0x14f0] sm:$0xf] %v1389_v30  ;;  %v1393_v32 = vld [vmem:[%s14951_s30 + $0x1500] sm:$0xf] }
 0x1c2   : > { %1392 = vst [vmem:[%s14947_s27 + $0x14f8] sm:$0xf] %v1391_v31  ;;  %v1395_v33 = vld [vmem:[%s14951_s30 + $0x1504] sm:$0xf]  ;;  %v1397_v34 = vld [vmem:[%s14951_s30 + $0x1508] sm:$0xf] }
 0x1c3   : > { %1394 = vst [vmem:[%s14947_s27 + $0x1500] sm:$0xf] %v1393_v32  ;;  %1396 = vst [vmem:[%s14947_s27 + $0x1508] sm:$0xf] %v1395_v33  ;;  %v1399_v35 = vld [vmem:[%s14951_s30 + $0x150c] sm:$0xf] }
 0x1c4   : > { %1398 = vst [vmem:[%s14947_s27 + $0x1510] sm:$0xf] %v1397_v34  ;;  %v1401_v36 = vld [vmem:[%s14951_s30 + $0x1520] sm:$0xf]  ;;  %v1403_v37 = vld [vmem:[%s14951_s30 + $0x1524] sm:$0xf] }
 0x1c5   : > { %1400 = vst [vmem:[%s14947_s27 + $0x1518] sm:$0xf] %v1399_v35  ;;  %1402 = vst [vmem:[%s14947_s27 + $0x1520] sm:$0xf] %v1401_v36  ;;  %v1405_v38 = vld [vmem:[%s14951_s30 + $0x1528] sm:$0xf] }
 0x1c6   : > { %1404 = vst [vmem:[%s14947_s27 + $0x1528] sm:$0xf] %v1403_v37  ;;  %v1407_v39 = vld [vmem:[%s14951_s30 + $0x152c] sm:$0xf]  ;;  %v1409_v40 = vld [vmem:[%s14951_s30 + $0x1540] sm:$0xf] }
 0x1c7   : > { %1406 = vst [vmem:[%s14947_s27 + $0x1530] sm:$0xf] %v1405_v38  ;;  %1408 = vst [vmem:[%s14947_s27 + $0x1538] sm:$0xf] %v1407_v39  ;;  %v1411_v41 = vld [vmem:[%s14951_s30 + $0x1544] sm:$0xf] }
 0x1c8   : > { %1410 = vst [vmem:[%s14947_s27 + $0x1540] sm:$0xf] %v1409_v40  ;;  %v1413_v42 = vld [vmem:[%s14951_s30 + $0x1548] sm:$0xf]  ;;  %v1415_v43 = vld [vmem:[%s14951_s30 + $0x154c] sm:$0xf] }
 0x1c9   : > { %1412 = vst [vmem:[%s14947_s27 + $0x1548] sm:$0xf] %v1411_v41  ;;  %1414 = vst [vmem:[%s14947_s27 + $0x1550] sm:$0xf] %v1413_v42  ;;  %v1417_v44 = vld [vmem:[%s14951_s30 + $0x1560] sm:$0xf] }
 0x1ca   : > { %1416 = vst [vmem:[%s14947_s27 + $0x1558] sm:$0xf] %v1415_v43  ;;  %v1419_v45 = vld [vmem:[%s14951_s30 + $0x1564] sm:$0xf]  ;;  %v1421_v46 = vld [vmem:[%s14951_s30 + $0x1568] sm:$0xf] }
 0x1cb   : > { %1418 = vst [vmem:[%s14947_s27 + $0x1560] sm:$0xf] %v1417_v44  ;;  %1420 = vst [vmem:[%s14947_s27 + $0x1568] sm:$0xf] %v1419_v45  ;;  %v1423_v47 = vld [vmem:[%s14951_s30 + $0x156c] sm:$0xf] }
 0x1cc   : > { %1422 = vst [vmem:[%s14947_s27 + $0x1570] sm:$0xf] %v1421_v46  ;;  %v1425_v48 = vld [vmem:[%s14951_s30 + $0x1580] sm:$0xf]  ;;  %v1427_v49 = vld [vmem:[%s14951_s30 + $0x1584] sm:$0xf] }
 0x1cd   : > { %1424 = vst [vmem:[%s14947_s27 + $0x1578] sm:$0xf] %v1423_v47  ;;  %1426 = vst [vmem:[%s14947_s27 + $0x1580] sm:$0xf] %v1425_v48  ;;  %v1429_v50 = vld [vmem:[%s14951_s30 + $0x1588] sm:$0xf] }
 0x1ce   : > { %1428 = vst [vmem:[%s14947_s27 + $0x1588] sm:$0xf] %v1427_v49  ;;  %v1431_v51 = vld [vmem:[%s14951_s30 + $0x158c] sm:$0xf]  ;;  %v1433_v52 = vld [vmem:[%s14951_s30 + $0x15a0] sm:$0xf] }
 0x1cf   : > { %1430 = vst [vmem:[%s14947_s27 + $0x1590] sm:$0xf] %v1429_v50  ;;  %1432 = vst [vmem:[%s14947_s27 + $0x1598] sm:$0xf] %v1431_v51  ;;  %v1435_v53 = vld [vmem:[%s14951_s30 + $0x15a4] sm:$0xf] }
 0x1d0   : > { %1434 = vst [vmem:[%s14947_s27 + $0x15a0] sm:$0xf] %v1433_v52  ;;  %v1437_v54 = vld [vmem:[%s14951_s30 + $0x15a8] sm:$0xf]  ;;  %v1439_v55 = vld [vmem:[%s14951_s30 + $0x15ac] sm:$0xf] }
 0x1d1   : > { %1436 = vst [vmem:[%s14947_s27 + $0x15a8] sm:$0xf] %v1435_v53  ;;  %1438 = vst [vmem:[%s14947_s27 + $0x15b0] sm:$0xf] %v1437_v54  ;;  %v1441_v56 = vld [vmem:[%s14951_s30 + $0x15c0] sm:$0xf] }
 0x1d2   : > { %1440 = vst [vmem:[%s14947_s27 + $0x15b8] sm:$0xf] %v1439_v55  ;;  %v1443_v57 = vld [vmem:[%s14951_s30 + $0x15c4] sm:$0xf]  ;;  %v1445_v58 = vld [vmem:[%s14951_s30 + $0x15c8] sm:$0xf] }
 0x1d3   : > { %1442 = vst [vmem:[%s14947_s27 + $0x15c0] sm:$0xf] %v1441_v56  ;;  %1444 = vst [vmem:[%s14947_s27 + $0x15c8] sm:$0xf] %v1443_v57  ;;  %v1447_v59 = vld [vmem:[%s14951_s30 + $0x15cc] sm:$0xf] }
 0x1d4   : > { %1446 = vst [vmem:[%s14947_s27 + $0x15d0] sm:$0xf] %v1445_v58  ;;  %v1449_v60 = vld [vmem:[%s14951_s30 + $0x15e0] sm:$0xf]  ;;  %v1451_v61 = vld [vmem:[%s14951_s30 + $0x15e4] sm:$0xf] }
 0x1d5   : > { %1448 = vst [vmem:[%s14947_s27 + $0x15d8] sm:$0xf] %v1447_v59  ;;  %1450 = vst [vmem:[%s14947_s27 + $0x15e0] sm:$0xf] %v1449_v60  ;;  %v1453_v62 = vld [vmem:[%s14951_s30 + $0x15e8] sm:$0xf] }
 0x1d6   : > { %1452 = vst [vmem:[%s14947_s27 + $0x15e8] sm:$0xf] %v1451_v61  ;;  %v1455_v63 = vld [vmem:[%s14951_s30 + $0x15ec] sm:$0xf]  ;;  %v1457_v0 = vld [vmem:[%s14951_s30 + $0x1600] sm:$0xf] }
 0x1d7   : > { %1454 = vst [vmem:[%s14947_s27 + $0x15f0] sm:$0xf] %v1453_v62  ;;  %1456 = vst [vmem:[%s14947_s27 + $0x15f8] sm:$0xf] %v1455_v63  ;;  %v1459_v1 = vld [vmem:[%s14951_s30 + $0x1604] sm:$0xf] }
 0x1d8   : > { %1458 = vst [vmem:[%s14947_s27 + $0x1600] sm:$0xf] %v1457_v0  ;;  %v1461_v2 = vld [vmem:[%s14951_s30 + $0x1608] sm:$0xf]  ;;  %v1463_v3 = vld [vmem:[%s14951_s30 + $0x160c] sm:$0xf] }
 0x1d9   : > { %1460 = vst [vmem:[%s14947_s27 + $0x1608] sm:$0xf] %v1459_v1  ;;  %1462 = vst [vmem:[%s14947_s27 + $0x1610] sm:$0xf] %v1461_v2  ;;  %v1465_v4 = vld [vmem:[%s14951_s30 + $0x1620] sm:$0xf] }
 0x1da   : > { %1464 = vst [vmem:[%s14947_s27 + $0x1618] sm:$0xf] %v1463_v3  ;;  %v1467_v5 = vld [vmem:[%s14951_s30 + $0x1624] sm:$0xf]  ;;  %v1469_v6 = vld [vmem:[%s14951_s30 + $0x1628] sm:$0xf] }
 0x1db   : > { %1466 = vst [vmem:[%s14947_s27 + $0x1620] sm:$0xf] %v1465_v4  ;;  %1468 = vst [vmem:[%s14947_s27 + $0x1628] sm:$0xf] %v1467_v5  ;;  %v1471_v7 = vld [vmem:[%s14951_s30 + $0x162c] sm:$0xf] }
 0x1dc   : > { %1470 = vst [vmem:[%s14947_s27 + $0x1630] sm:$0xf] %v1469_v6  ;;  %v1473_v8 = vld [vmem:[%s14951_s30 + $0x1640] sm:$0xf]  ;;  %v1475_v9 = vld [vmem:[%s14951_s30 + $0x1644] sm:$0xf] }
 0x1dd   : > { %1472 = vst [vmem:[%s14947_s27 + $0x1638] sm:$0xf] %v1471_v7  ;;  %1474 = vst [vmem:[%s14947_s27 + $0x1640] sm:$0xf] %v1473_v8  ;;  %v1477_v10 = vld [vmem:[%s14951_s30 + $0x1648] sm:$0xf] }
 0x1de   : > { %1476 = vst [vmem:[%s14947_s27 + $0x1648] sm:$0xf] %v1475_v9  ;;  %v1479_v11 = vld [vmem:[%s14951_s30 + $0x164c] sm:$0xf]  ;;  %v1481_v12 = vld [vmem:[%s14951_s30 + $0x1660] sm:$0xf] }
 0x1df   : > { %1478 = vst [vmem:[%s14947_s27 + $0x1650] sm:$0xf] %v1477_v10  ;;  %1480 = vst [vmem:[%s14947_s27 + $0x1658] sm:$0xf] %v1479_v11  ;;  %v1483_v13 = vld [vmem:[%s14951_s30 + $0x1664] sm:$0xf] }
 0x1e0   : > { %1482 = vst [vmem:[%s14947_s27 + $0x1660] sm:$0xf] %v1481_v12  ;;  %v1485_v14 = vld [vmem:[%s14951_s30 + $0x1668] sm:$0xf]  ;;  %v1487_v15 = vld [vmem:[%s14951_s30 + $0x166c] sm:$0xf] }
 0x1e1   : > { %1484 = vst [vmem:[%s14947_s27 + $0x1668] sm:$0xf] %v1483_v13  ;;  %1486 = vst [vmem:[%s14947_s27 + $0x1670] sm:$0xf] %v1485_v14  ;;  %v1489_v16 = vld [vmem:[%s14951_s30 + $0x1680] sm:$0xf] }
 0x1e2   : > { %1488 = vst [vmem:[%s14947_s27 + $0x1678] sm:$0xf] %v1487_v15  ;;  %v1491_v17 = vld [vmem:[%s14951_s30 + $0x1684] sm:$0xf]  ;;  %v1493_v18 = vld [vmem:[%s14951_s30 + $0x1688] sm:$0xf] }
 0x1e3   : > { %1490 = vst [vmem:[%s14947_s27 + $0x1680] sm:$0xf] %v1489_v16  ;;  %1492 = vst [vmem:[%s14947_s27 + $0x1688] sm:$0xf] %v1491_v17  ;;  %v1495_v19 = vld [vmem:[%s14951_s30 + $0x168c] sm:$0xf] }
 0x1e4   : > { %1494 = vst [vmem:[%s14947_s27 + $0x1690] sm:$0xf] %v1493_v18  ;;  %v1497_v20 = vld [vmem:[%s14951_s30 + $0x16a0] sm:$0xf]  ;;  %v1499_v21 = vld [vmem:[%s14951_s30 + $0x16a4] sm:$0xf] }
 0x1e5   : > { %1496 = vst [vmem:[%s14947_s27 + $0x1698] sm:$0xf] %v1495_v19  ;;  %1498 = vst [vmem:[%s14947_s27 + $0x16a0] sm:$0xf] %v1497_v20  ;;  %v1501_v22 = vld [vmem:[%s14951_s30 + $0x16a8] sm:$0xf] }
 0x1e6   : > { %1500 = vst [vmem:[%s14947_s27 + $0x16a8] sm:$0xf] %v1499_v21  ;;  %v1503_v23 = vld [vmem:[%s14951_s30 + $0x16ac] sm:$0xf]  ;;  %v1505_v24 = vld [vmem:[%s14951_s30 + $0x16c0] sm:$0xf] }
 0x1e7   : > { %1502 = vst [vmem:[%s14947_s27 + $0x16b0] sm:$0xf] %v1501_v22  ;;  %1504 = vst [vmem:[%s14947_s27 + $0x16b8] sm:$0xf] %v1503_v23  ;;  %v1507_v25 = vld [vmem:[%s14951_s30 + $0x16c4] sm:$0xf] }
 0x1e8   : > { %1506 = vst [vmem:[%s14947_s27 + $0x16c0] sm:$0xf] %v1505_v24  ;;  %v1509_v26 = vld [vmem:[%s14951_s30 + $0x16c8] sm:$0xf]  ;;  %v1511_v27 = vld [vmem:[%s14951_s30 + $0x16cc] sm:$0xf] }
 0x1e9   : > { %1508 = vst [vmem:[%s14947_s27 + $0x16c8] sm:$0xf] %v1507_v25  ;;  %1510 = vst [vmem:[%s14947_s27 + $0x16d0] sm:$0xf] %v1509_v26  ;;  %v1513_v28 = vld [vmem:[%s14951_s30 + $0x16e0] sm:$0xf] }
 0x1ea   : > { %1512 = vst [vmem:[%s14947_s27 + $0x16d8] sm:$0xf] %v1511_v27  ;;  %v1515_v29 = vld [vmem:[%s14951_s30 + $0x16e4] sm:$0xf]  ;;  %v1517_v30 = vld [vmem:[%s14951_s30 + $0x16e8] sm:$0xf] }
 0x1eb   : > { %1514 = vst [vmem:[%s14947_s27 + $0x16e0] sm:$0xf] %v1513_v28  ;;  %1516 = vst [vmem:[%s14947_s27 + $0x16e8] sm:$0xf] %v1515_v29  ;;  %v1519_v31 = vld [vmem:[%s14951_s30 + $0x16ec] sm:$0xf] }
 0x1ec   : > { %1518 = vst [vmem:[%s14947_s27 + $0x16f0] sm:$0xf] %v1517_v30  ;;  %v1521_v32 = vld [vmem:[%s14951_s30 + $0x1700] sm:$0xf]  ;;  %v1523_v33 = vld [vmem:[%s14951_s30 + $0x1704] sm:$0xf] }
 0x1ed   : > { %1520 = vst [vmem:[%s14947_s27 + $0x16f8] sm:$0xf] %v1519_v31  ;;  %1522 = vst [vmem:[%s14947_s27 + $0x1700] sm:$0xf] %v1521_v32  ;;  %v1525_v34 = vld [vmem:[%s14951_s30 + $0x1708] sm:$0xf] }
 0x1ee   : > { %1524 = vst [vmem:[%s14947_s27 + $0x1708] sm:$0xf] %v1523_v33  ;;  %v1527_v35 = vld [vmem:[%s14951_s30 + $0x170c] sm:$0xf]  ;;  %v1529_v36 = vld [vmem:[%s14951_s30 + $0x1720] sm:$0xf] }
 0x1ef   : > { %1526 = vst [vmem:[%s14947_s27 + $0x1710] sm:$0xf] %v1525_v34  ;;  %1528 = vst [vmem:[%s14947_s27 + $0x1718] sm:$0xf] %v1527_v35  ;;  %v1531_v37 = vld [vmem:[%s14951_s30 + $0x1724] sm:$0xf] }
 0x1f0   : > { %1530 = vst [vmem:[%s14947_s27 + $0x1720] sm:$0xf] %v1529_v36  ;;  %v1533_v38 = vld [vmem:[%s14951_s30 + $0x1728] sm:$0xf]  ;;  %v1535_v39 = vld [vmem:[%s14951_s30 + $0x172c] sm:$0xf] }
 0x1f1   : > { %1532 = vst [vmem:[%s14947_s27 + $0x1728] sm:$0xf] %v1531_v37  ;;  %1534 = vst [vmem:[%s14947_s27 + $0x1730] sm:$0xf] %v1533_v38  ;;  %v1537_v40 = vld [vmem:[%s14951_s30 + $0x1740] sm:$0xf] }
 0x1f2   : > { %1536 = vst [vmem:[%s14947_s27 + $0x1738] sm:$0xf] %v1535_v39  ;;  %v1539_v41 = vld [vmem:[%s14951_s30 + $0x1744] sm:$0xf]  ;;  %v1541_v42 = vld [vmem:[%s14951_s30 + $0x1748] sm:$0xf] }
 0x1f3   : > { %1538 = vst [vmem:[%s14947_s27 + $0x1740] sm:$0xf] %v1537_v40  ;;  %1540 = vst [vmem:[%s14947_s27 + $0x1748] sm:$0xf] %v1539_v41  ;;  %v1543_v43 = vld [vmem:[%s14951_s30 + $0x174c] sm:$0xf] }
 0x1f4   : > { %1542 = vst [vmem:[%s14947_s27 + $0x1750] sm:$0xf] %v1541_v42  ;;  %v1545_v44 = vld [vmem:[%s14951_s30 + $0x1760] sm:$0xf]  ;;  %v1547_v45 = vld [vmem:[%s14951_s30 + $0x1764] sm:$0xf] }
 0x1f5   : > { %1544 = vst [vmem:[%s14947_s27 + $0x1758] sm:$0xf] %v1543_v43  ;;  %1546 = vst [vmem:[%s14947_s27 + $0x1760] sm:$0xf] %v1545_v44  ;;  %v1549_v46 = vld [vmem:[%s14951_s30 + $0x1768] sm:$0xf] }
 0x1f6   : > { %1548 = vst [vmem:[%s14947_s27 + $0x1768] sm:$0xf] %v1547_v45  ;;  %v1551_v47 = vld [vmem:[%s14951_s30 + $0x176c] sm:$0xf]  ;;  %v1553_v48 = vld [vmem:[%s14951_s30 + $0x1780] sm:$0xf] }
 0x1f7   : > { %1550 = vst [vmem:[%s14947_s27 + $0x1770] sm:$0xf] %v1549_v46  ;;  %1552 = vst [vmem:[%s14947_s27 + $0x1778] sm:$0xf] %v1551_v47  ;;  %v1555_v49 = vld [vmem:[%s14951_s30 + $0x1784] sm:$0xf] }
 0x1f8   : > { %1554 = vst [vmem:[%s14947_s27 + $0x1780] sm:$0xf] %v1553_v48  ;;  %v1557_v50 = vld [vmem:[%s14951_s30 + $0x1788] sm:$0xf]  ;;  %v1559_v51 = vld [vmem:[%s14951_s30 + $0x178c] sm:$0xf] }
 0x1f9   : > { %1556 = vst [vmem:[%s14947_s27 + $0x1788] sm:$0xf] %v1555_v49  ;;  %1558 = vst [vmem:[%s14947_s27 + $0x1790] sm:$0xf] %v1557_v50  ;;  %v1561_v52 = vld [vmem:[%s14951_s30 + $0x17a0] sm:$0xf] }
 0x1fa   : > { %1560 = vst [vmem:[%s14947_s27 + $0x1798] sm:$0xf] %v1559_v51  ;;  %v1563_v53 = vld [vmem:[%s14951_s30 + $0x17a4] sm:$0xf]  ;;  %v1565_v54 = vld [vmem:[%s14951_s30 + $0x17a8] sm:$0xf] }
 0x1fb   : > { %1562 = vst [vmem:[%s14947_s27 + $0x17a0] sm:$0xf] %v1561_v52  ;;  %1564 = vst [vmem:[%s14947_s27 + $0x17a8] sm:$0xf] %v1563_v53  ;;  %v1567_v55 = vld [vmem:[%s14951_s30 + $0x17ac] sm:$0xf] }
 0x1fc   : > { %1566 = vst [vmem:[%s14947_s27 + $0x17b0] sm:$0xf] %v1565_v54  ;;  %v1569_v56 = vld [vmem:[%s14951_s30 + $0x17c0] sm:$0xf]  ;;  %v1571_v57 = vld [vmem:[%s14951_s30 + $0x17c4] sm:$0xf] }
 0x1fd   : > { %1568 = vst [vmem:[%s14947_s27 + $0x17b8] sm:$0xf] %v1567_v55  ;;  %1570 = vst [vmem:[%s14947_s27 + $0x17c0] sm:$0xf] %v1569_v56  ;;  %v1573_v58 = vld [vmem:[%s14951_s30 + $0x17c8] sm:$0xf] }
 0x1fe   : > { %1572 = vst [vmem:[%s14947_s27 + $0x17c8] sm:$0xf] %v1571_v57  ;;  %v1575_v59 = vld [vmem:[%s14951_s30 + $0x17cc] sm:$0xf]  ;;  %v1577_v60 = vld [vmem:[%s14951_s30 + $0x17e0] sm:$0xf] }
 0x1ff   : > { %1574 = vst [vmem:[%s14947_s27 + $0x17d0] sm:$0xf] %v1573_v58  ;;  %1576 = vst [vmem:[%s14947_s27 + $0x17d8] sm:$0xf] %v1575_v59  ;;  %v1579_v61 = vld [vmem:[%s14951_s30 + $0x17e4] sm:$0xf] }
 0x200   : > { %1578 = vst [vmem:[%s14947_s27 + $0x17e0] sm:$0xf] %v1577_v60  ;;  %v1581_v62 = vld [vmem:[%s14951_s30 + $0x17e8] sm:$0xf]  ;;  %v1583_v63 = vld [vmem:[%s14951_s30 + $0x17ec] sm:$0xf] }
 0x201   : > { %1580 = vst [vmem:[%s14947_s27 + $0x17e8] sm:$0xf] %v1579_v61  ;;  %1582 = vst [vmem:[%s14947_s27 + $0x17f0] sm:$0xf] %v1581_v62  ;;  %v1585_v0 = vld [vmem:[%s14951_s30 + $0x1800] sm:$0xf] }
 0x202   : > { %1584 = vst [vmem:[%s14947_s27 + $0x17f8] sm:$0xf] %v1583_v63  ;;  %v1587_v1 = vld [vmem:[%s14951_s30 + $0x1804] sm:$0xf]  ;;  %v1589_v2 = vld [vmem:[%s14951_s30 + $0x1808] sm:$0xf] }
 0x203   : > { %1586 = vst [vmem:[%s14947_s27 + $0x1800] sm:$0xf] %v1585_v0  ;;  %1588 = vst [vmem:[%s14947_s27 + $0x1808] sm:$0xf] %v1587_v1  ;;  %v1591_v3 = vld [vmem:[%s14951_s30 + $0x180c] sm:$0xf] }
 0x204   : > { %1590 = vst [vmem:[%s14947_s27 + $0x1810] sm:$0xf] %v1589_v2  ;;  %v1593_v4 = vld [vmem:[%s14951_s30 + $0x1820] sm:$0xf]  ;;  %v1595_v5 = vld [vmem:[%s14951_s30 + $0x1824] sm:$0xf] }
 0x205   : > { %1592 = vst [vmem:[%s14947_s27 + $0x1818] sm:$0xf] %v1591_v3  ;;  %1594 = vst [vmem:[%s14947_s27 + $0x1820] sm:$0xf] %v1593_v4  ;;  %v1597_v6 = vld [vmem:[%s14951_s30 + $0x1828] sm:$0xf] }
 0x206   : > { %1596 = vst [vmem:[%s14947_s27 + $0x1828] sm:$0xf] %v1595_v5  ;;  %v1599_v7 = vld [vmem:[%s14951_s30 + $0x182c] sm:$0xf]  ;;  %v1601_v8 = vld [vmem:[%s14951_s30 + $0x1840] sm:$0xf] }
 0x207   : > { %1598 = vst [vmem:[%s14947_s27 + $0x1830] sm:$0xf] %v1597_v6  ;;  %1600 = vst [vmem:[%s14947_s27 + $0x1838] sm:$0xf] %v1599_v7  ;;  %v1603_v9 = vld [vmem:[%s14951_s30 + $0x1844] sm:$0xf] }
 0x208   : > { %1602 = vst [vmem:[%s14947_s27 + $0x1840] sm:$0xf] %v1601_v8  ;;  %v1605_v10 = vld [vmem:[%s14951_s30 + $0x1848] sm:$0xf]  ;;  %v1607_v11 = vld [vmem:[%s14951_s30 + $0x184c] sm:$0xf] }
 0x209   : > { %1604 = vst [vmem:[%s14947_s27 + $0x1848] sm:$0xf] %v1603_v9  ;;  %1606 = vst [vmem:[%s14947_s27 + $0x1850] sm:$0xf] %v1605_v10  ;;  %v1609_v12 = vld [vmem:[%s14951_s30 + $0x1860] sm:$0xf] }
 0x20a   : > { %1608 = vst [vmem:[%s14947_s27 + $0x1858] sm:$0xf] %v1607_v11  ;;  %v1611_v13 = vld [vmem:[%s14951_s30 + $0x1864] sm:$0xf]  ;;  %v1613_v14 = vld [vmem:[%s14951_s30 + $0x1868] sm:$0xf] }
 0x20b   : > { %1610 = vst [vmem:[%s14947_s27 + $0x1860] sm:$0xf] %v1609_v12  ;;  %1612 = vst [vmem:[%s14947_s27 + $0x1868] sm:$0xf] %v1611_v13  ;;  %v1615_v15 = vld [vmem:[%s14951_s30 + $0x186c] sm:$0xf] }
 0x20c   : > { %1614 = vst [vmem:[%s14947_s27 + $0x1870] sm:$0xf] %v1613_v14  ;;  %v1617_v16 = vld [vmem:[%s14951_s30 + $0x1880] sm:$0xf]  ;;  %v1619_v17 = vld [vmem:[%s14951_s30 + $0x1884] sm:$0xf] }
 0x20d   : > { %1616 = vst [vmem:[%s14947_s27 + $0x1878] sm:$0xf] %v1615_v15  ;;  %1618 = vst [vmem:[%s14947_s27 + $0x1880] sm:$0xf] %v1617_v16  ;;  %v1621_v18 = vld [vmem:[%s14951_s30 + $0x1888] sm:$0xf] }
 0x20e   : > { %1620 = vst [vmem:[%s14947_s27 + $0x1888] sm:$0xf] %v1619_v17  ;;  %v1623_v19 = vld [vmem:[%s14951_s30 + $0x188c] sm:$0xf]  ;;  %v1625_v20 = vld [vmem:[%s14951_s30 + $0x18a0] sm:$0xf] }
 0x20f   : > { %1622 = vst [vmem:[%s14947_s27 + $0x1890] sm:$0xf] %v1621_v18  ;;  %1624 = vst [vmem:[%s14947_s27 + $0x1898] sm:$0xf] %v1623_v19  ;;  %v1627_v21 = vld [vmem:[%s14951_s30 + $0x18a4] sm:$0xf] }
 0x210   : > { %1626 = vst [vmem:[%s14947_s27 + $0x18a0] sm:$0xf] %v1625_v20  ;;  %v1629_v22 = vld [vmem:[%s14951_s30 + $0x18a8] sm:$0xf]  ;;  %v1631_v23 = vld [vmem:[%s14951_s30 + $0x18ac] sm:$0xf] }
 0x211   : > { %1628 = vst [vmem:[%s14947_s27 + $0x18a8] sm:$0xf] %v1627_v21  ;;  %1630 = vst [vmem:[%s14947_s27 + $0x18b0] sm:$0xf] %v1629_v22  ;;  %v1633_v24 = vld [vmem:[%s14951_s30 + $0x18c0] sm:$0xf] }
 0x212   : > { %1632 = vst [vmem:[%s14947_s27 + $0x18b8] sm:$0xf] %v1631_v23  ;;  %v1635_v25 = vld [vmem:[%s14951_s30 + $0x18c4] sm:$0xf]  ;;  %v1637_v26 = vld [vmem:[%s14951_s30 + $0x18c8] sm:$0xf] }
 0x213   : > { %1634 = vst [vmem:[%s14947_s27 + $0x18c0] sm:$0xf] %v1633_v24  ;;  %1636 = vst [vmem:[%s14947_s27 + $0x18c8] sm:$0xf] %v1635_v25  ;;  %v1639_v27 = vld [vmem:[%s14951_s30 + $0x18cc] sm:$0xf] }
 0x214   : > { %1638 = vst [vmem:[%s14947_s27 + $0x18d0] sm:$0xf] %v1637_v26  ;;  %v1641_v28 = vld [vmem:[%s14951_s30 + $0x18e0] sm:$0xf]  ;;  %v1643_v29 = vld [vmem:[%s14951_s30 + $0x18e4] sm:$0xf] }
 0x215   : > { %1640 = vst [vmem:[%s14947_s27 + $0x18d8] sm:$0xf] %v1639_v27  ;;  %1642 = vst [vmem:[%s14947_s27 + $0x18e0] sm:$0xf] %v1641_v28  ;;  %v1645_v30 = vld [vmem:[%s14951_s30 + $0x18e8] sm:$0xf] }
 0x216   : > { %1644 = vst [vmem:[%s14947_s27 + $0x18e8] sm:$0xf] %v1643_v29  ;;  %v1647_v31 = vld [vmem:[%s14951_s30 + $0x18ec] sm:$0xf]  ;;  %v1649_v32 = vld [vmem:[%s14951_s30 + $0x1900] sm:$0xf] }
 0x217   : > { %1646 = vst [vmem:[%s14947_s27 + $0x18f0] sm:$0xf] %v1645_v30  ;;  %1648 = vst [vmem:[%s14947_s27 + $0x18f8] sm:$0xf] %v1647_v31  ;;  %v1651_v33 = vld [vmem:[%s14951_s30 + $0x1904] sm:$0xf] }
 0x218   : > { %1650 = vst [vmem:[%s14947_s27 + $0x1900] sm:$0xf] %v1649_v32  ;;  %v1653_v34 = vld [vmem:[%s14951_s30 + $0x1908] sm:$0xf]  ;;  %v1655_v35 = vld [vmem:[%s14951_s30 + $0x190c] sm:$0xf] }
 0x219   : > { %1652 = vst [vmem:[%s14947_s27 + $0x1908] sm:$0xf] %v1651_v33  ;;  %1654 = vst [vmem:[%s14947_s27 + $0x1910] sm:$0xf] %v1653_v34  ;;  %v1657_v36 = vld [vmem:[%s14951_s30 + $0x1920] sm:$0xf] }
 0x21a   : > { %1656 = vst [vmem:[%s14947_s27 + $0x1918] sm:$0xf] %v1655_v35  ;;  %v1659_v37 = vld [vmem:[%s14951_s30 + $0x1924] sm:$0xf]  ;;  %v1661_v38 = vld [vmem:[%s14951_s30 + $0x1928] sm:$0xf] }
 0x21b   : > { %1658 = vst [vmem:[%s14947_s27 + $0x1920] sm:$0xf] %v1657_v36  ;;  %1660 = vst [vmem:[%s14947_s27 + $0x1928] sm:$0xf] %v1659_v37  ;;  %v1663_v39 = vld [vmem:[%s14951_s30 + $0x192c] sm:$0xf] }
 0x21c   : > { %1662 = vst [vmem:[%s14947_s27 + $0x1930] sm:$0xf] %v1661_v38  ;;  %v1665_v40 = vld [vmem:[%s14951_s30 + $0x1940] sm:$0xf]  ;;  %v1667_v41 = vld [vmem:[%s14951_s30 + $0x1944] sm:$0xf] }
 0x21d   : > { %1664 = vst [vmem:[%s14947_s27 + $0x1938] sm:$0xf] %v1663_v39  ;;  %1666 = vst [vmem:[%s14947_s27 + $0x1940] sm:$0xf] %v1665_v40  ;;  %v1669_v42 = vld [vmem:[%s14951_s30 + $0x1948] sm:$0xf] }
 0x21e   : > { %1668 = vst [vmem:[%s14947_s27 + $0x1948] sm:$0xf] %v1667_v41  ;;  %v1671_v43 = vld [vmem:[%s14951_s30 + $0x194c] sm:$0xf]  ;;  %v1673_v44 = vld [vmem:[%s14951_s30 + $0x1960] sm:$0xf] }
 0x21f   : > { %1670 = vst [vmem:[%s14947_s27 + $0x1950] sm:$0xf] %v1669_v42  ;;  %1672 = vst [vmem:[%s14947_s27 + $0x1958] sm:$0xf] %v1671_v43  ;;  %v1675_v45 = vld [vmem:[%s14951_s30 + $0x1964] sm:$0xf] }
 0x220   : > { %1674 = vst [vmem:[%s14947_s27 + $0x1960] sm:$0xf] %v1673_v44  ;;  %v1677_v46 = vld [vmem:[%s14951_s30 + $0x1968] sm:$0xf]  ;;  %v1679_v47 = vld [vmem:[%s14951_s30 + $0x196c] sm:$0xf] }
 0x221   : > { %1676 = vst [vmem:[%s14947_s27 + $0x1968] sm:$0xf] %v1675_v45  ;;  %1678 = vst [vmem:[%s14947_s27 + $0x1970] sm:$0xf] %v1677_v46  ;;  %v1681_v48 = vld [vmem:[%s14951_s30 + $0x1980] sm:$0xf] }
 0x222   : > { %1680 = vst [vmem:[%s14947_s27 + $0x1978] sm:$0xf] %v1679_v47  ;;  %v1683_v49 = vld [vmem:[%s14951_s30 + $0x1984] sm:$0xf]  ;;  %v1685_v50 = vld [vmem:[%s14951_s30 + $0x1988] sm:$0xf] }
 0x223   : > { %1682 = vst [vmem:[%s14947_s27 + $0x1980] sm:$0xf] %v1681_v48  ;;  %1684 = vst [vmem:[%s14947_s27 + $0x1988] sm:$0xf] %v1683_v49  ;;  %v1687_v51 = vld [vmem:[%s14951_s30 + $0x198c] sm:$0xf] }
 0x224   : > { %1686 = vst [vmem:[%s14947_s27 + $0x1990] sm:$0xf] %v1685_v50  ;;  %v1689_v52 = vld [vmem:[%s14951_s30 + $0x19a0] sm:$0xf]  ;;  %v1691_v53 = vld [vmem:[%s14951_s30 + $0x19a4] sm:$0xf] }
 0x225   : > { %1688 = vst [vmem:[%s14947_s27 + $0x1998] sm:$0xf] %v1687_v51  ;;  %1690 = vst [vmem:[%s14947_s27 + $0x19a0] sm:$0xf] %v1689_v52  ;;  %v1693_v54 = vld [vmem:[%s14951_s30 + $0x19a8] sm:$0xf] }
 0x226   : > { %1692 = vst [vmem:[%s14947_s27 + $0x19a8] sm:$0xf] %v1691_v53  ;;  %v1695_v55 = vld [vmem:[%s14951_s30 + $0x19ac] sm:$0xf]  ;;  %v1697_v56 = vld [vmem:[%s14951_s30 + $0x19c0] sm:$0xf] }
 0x227   : > { %1694 = vst [vmem:[%s14947_s27 + $0x19b0] sm:$0xf] %v1693_v54  ;;  %1696 = vst [vmem:[%s14947_s27 + $0x19b8] sm:$0xf] %v1695_v55  ;;  %v1699_v57 = vld [vmem:[%s14951_s30 + $0x19c4] sm:$0xf] }
 0x228   : > { %1698 = vst [vmem:[%s14947_s27 + $0x19c0] sm:$0xf] %v1697_v56  ;;  %v1701_v58 = vld [vmem:[%s14951_s30 + $0x19c8] sm:$0xf]  ;;  %v1703_v59 = vld [vmem:[%s14951_s30 + $0x19cc] sm:$0xf] }
 0x229   : > { %1700 = vst [vmem:[%s14947_s27 + $0x19c8] sm:$0xf] %v1699_v57  ;;  %1702 = vst [vmem:[%s14947_s27 + $0x19d0] sm:$0xf] %v1701_v58  ;;  %v1705_v60 = vld [vmem:[%s14951_s30 + $0x19e0] sm:$0xf] }
 0x22a   : > { %1704 = vst [vmem:[%s14947_s27 + $0x19d8] sm:$0xf] %v1703_v59  ;;  %v1707_v61 = vld [vmem:[%s14951_s30 + $0x19e4] sm:$0xf]  ;;  %v1709_v62 = vld [vmem:[%s14951_s30 + $0x19e8] sm:$0xf] }
 0x22b   : > { %1706 = vst [vmem:[%s14947_s27 + $0x19e0] sm:$0xf] %v1705_v60  ;;  %1708 = vst [vmem:[%s14947_s27 + $0x19e8] sm:$0xf] %v1707_v61  ;;  %v1711_v63 = vld [vmem:[%s14951_s30 + $0x19ec] sm:$0xf] }
 0x22c   : > { %1710 = vst [vmem:[%s14947_s27 + $0x19f0] sm:$0xf] %v1709_v62  ;;  %v1713_v0 = vld [vmem:[%s14951_s30 + $0x1a00] sm:$0xf]  ;;  %v1715_v1 = vld [vmem:[%s14951_s30 + $0x1a04] sm:$0xf] }
 0x22d   : > { %1712 = vst [vmem:[%s14947_s27 + $0x19f8] sm:$0xf] %v1711_v63  ;;  %1714 = vst [vmem:[%s14947_s27 + $0x1a00] sm:$0xf] %v1713_v0  ;;  %v1717_v2 = vld [vmem:[%s14951_s30 + $0x1a08] sm:$0xf] }
 0x22e   : > { %1716 = vst [vmem:[%s14947_s27 + $0x1a08] sm:$0xf] %v1715_v1  ;;  %v1719_v3 = vld [vmem:[%s14951_s30 + $0x1a0c] sm:$0xf]  ;;  %v1721_v4 = vld [vmem:[%s14951_s30 + $0x1a20] sm:$0xf] }
 0x22f   : > { %1718 = vst [vmem:[%s14947_s27 + $0x1a10] sm:$0xf] %v1717_v2  ;;  %1720 = vst [vmem:[%s14947_s27 + $0x1a18] sm:$0xf] %v1719_v3  ;;  %v1723_v5 = vld [vmem:[%s14951_s30 + $0x1a24] sm:$0xf] }
 0x230   : > { %1722 = vst [vmem:[%s14947_s27 + $0x1a20] sm:$0xf] %v1721_v4  ;;  %v1725_v6 = vld [vmem:[%s14951_s30 + $0x1a28] sm:$0xf]  ;;  %v1727_v7 = vld [vmem:[%s14951_s30 + $0x1a2c] sm:$0xf] }
 0x231   : > { %1724 = vst [vmem:[%s14947_s27 + $0x1a28] sm:$0xf] %v1723_v5  ;;  %1726 = vst [vmem:[%s14947_s27 + $0x1a30] sm:$0xf] %v1725_v6  ;;  %v1729_v8 = vld [vmem:[%s14951_s30 + $0x1a40] sm:$0xf] }
 0x232   : > { %1728 = vst [vmem:[%s14947_s27 + $0x1a38] sm:$0xf] %v1727_v7  ;;  %v1731_v9 = vld [vmem:[%s14951_s30 + $0x1a44] sm:$0xf]  ;;  %v1733_v10 = vld [vmem:[%s14951_s30 + $0x1a48] sm:$0xf] }
 0x233   : > { %1730 = vst [vmem:[%s14947_s27 + $0x1a40] sm:$0xf] %v1729_v8  ;;  %1732 = vst [vmem:[%s14947_s27 + $0x1a48] sm:$0xf] %v1731_v9  ;;  %v1735_v11 = vld [vmem:[%s14951_s30 + $0x1a4c] sm:$0xf] }
 0x234   : > { %1734 = vst [vmem:[%s14947_s27 + $0x1a50] sm:$0xf] %v1733_v10  ;;  %v1737_v12 = vld [vmem:[%s14951_s30 + $0x1a60] sm:$0xf]  ;;  %v1739_v13 = vld [vmem:[%s14951_s30 + $0x1a64] sm:$0xf] }
 0x235   : > { %1736 = vst [vmem:[%s14947_s27 + $0x1a58] sm:$0xf] %v1735_v11  ;;  %1738 = vst [vmem:[%s14947_s27 + $0x1a60] sm:$0xf] %v1737_v12  ;;  %v1741_v14 = vld [vmem:[%s14951_s30 + $0x1a68] sm:$0xf] }
 0x236   : > { %1740 = vst [vmem:[%s14947_s27 + $0x1a68] sm:$0xf] %v1739_v13  ;;  %v1743_v15 = vld [vmem:[%s14951_s30 + $0x1a6c] sm:$0xf]  ;;  %v1745_v16 = vld [vmem:[%s14951_s30 + $0x1a80] sm:$0xf] }
 0x237   : > { %1742 = vst [vmem:[%s14947_s27 + $0x1a70] sm:$0xf] %v1741_v14  ;;  %1744 = vst [vmem:[%s14947_s27 + $0x1a78] sm:$0xf] %v1743_v15  ;;  %v1747_v17 = vld [vmem:[%s14951_s30 + $0x1a84] sm:$0xf] }
 0x238   : > { %1746 = vst [vmem:[%s14947_s27 + $0x1a80] sm:$0xf] %v1745_v16  ;;  %v1749_v18 = vld [vmem:[%s14951_s30 + $0x1a88] sm:$0xf]  ;;  %v1751_v19 = vld [vmem:[%s14951_s30 + $0x1a8c] sm:$0xf] }
 0x239   : > { %1748 = vst [vmem:[%s14947_s27 + $0x1a88] sm:$0xf] %v1747_v17  ;;  %1750 = vst [vmem:[%s14947_s27 + $0x1a90] sm:$0xf] %v1749_v18  ;;  %v1753_v20 = vld [vmem:[%s14951_s30 + $0x1aa0] sm:$0xf] }
 0x23a   : > { %1752 = vst [vmem:[%s14947_s27 + $0x1a98] sm:$0xf] %v1751_v19  ;;  %v1755_v21 = vld [vmem:[%s14951_s30 + $0x1aa4] sm:$0xf]  ;;  %v1757_v22 = vld [vmem:[%s14951_s30 + $0x1aa8] sm:$0xf] }
 0x23b   : > { %1754 = vst [vmem:[%s14947_s27 + $0x1aa0] sm:$0xf] %v1753_v20  ;;  %1756 = vst [vmem:[%s14947_s27 + $0x1aa8] sm:$0xf] %v1755_v21  ;;  %v1759_v23 = vld [vmem:[%s14951_s30 + $0x1aac] sm:$0xf] }
 0x23c   : > { %1758 = vst [vmem:[%s14947_s27 + $0x1ab0] sm:$0xf] %v1757_v22  ;;  %v1761_v24 = vld [vmem:[%s14951_s30 + $0x1ac0] sm:$0xf]  ;;  %v1763_v25 = vld [vmem:[%s14951_s30 + $0x1ac4] sm:$0xf] }
 0x23d   : > { %1760 = vst [vmem:[%s14947_s27 + $0x1ab8] sm:$0xf] %v1759_v23  ;;  %1762 = vst [vmem:[%s14947_s27 + $0x1ac0] sm:$0xf] %v1761_v24  ;;  %v1765_v26 = vld [vmem:[%s14951_s30 + $0x1ac8] sm:$0xf] }
 0x23e   : > { %1764 = vst [vmem:[%s14947_s27 + $0x1ac8] sm:$0xf] %v1763_v25  ;;  %v1767_v27 = vld [vmem:[%s14951_s30 + $0x1acc] sm:$0xf]  ;;  %v1769_v28 = vld [vmem:[%s14951_s30 + $0x1ae0] sm:$0xf] }
 0x23f   : > { %1766 = vst [vmem:[%s14947_s27 + $0x1ad0] sm:$0xf] %v1765_v26  ;;  %1768 = vst [vmem:[%s14947_s27 + $0x1ad8] sm:$0xf] %v1767_v27  ;;  %v1771_v29 = vld [vmem:[%s14951_s30 + $0x1ae4] sm:$0xf] }
 0x240   : > { %1770 = vst [vmem:[%s14947_s27 + $0x1ae0] sm:$0xf] %v1769_v28  ;;  %v1773_v30 = vld [vmem:[%s14951_s30 + $0x1ae8] sm:$0xf]  ;;  %v1775_v31 = vld [vmem:[%s14951_s30 + $0x1aec] sm:$0xf] }
 0x241   : > { %1772 = vst [vmem:[%s14947_s27 + $0x1ae8] sm:$0xf] %v1771_v29  ;;  %1774 = vst [vmem:[%s14947_s27 + $0x1af0] sm:$0xf] %v1773_v30  ;;  %p1778_p0 = scmp.ge.s32.totalorder %s1777_s11, 2  ;;  %s45_s10 = sadd.s32 1, %s14959_s10  }
 0x242   : > { %1776 = vst [vmem:[%s14947_s27 + $0x1af8] sm:$0xf] %v1775_v31  ;;  %p42_p1 = scmp.ge.s32.totalorder %s45_s10, 2  }
 0x243   : > { %s18407_s11 = smov (%p1778_p0, %s1777_s11), 0 }
 0x244   : > { %s13440_s12 = sshll.u32 %s18407_s11, 4  ;;  %s13441_s13 = sshll.u32 %s18407_s11, 2 }
 0x245   : > { %s1782_s30 = scalar_lea.vmem %s18377_s6, %s13440_s12   ;;  %s1783_s27 = scalar_lea.vmem [#allocation6], %s13441_s13  }
 0x246   : > { %s18382_s9 = smov %s18407_s11  ;;  %44 = sbr.rel (!%p42_p1) target bundleno = 2 (0x2), region = 203 }
 0x24d   :  { %7065 = vsyncadd [#allocation7], 110592  ;;  %v14828_v32 = vld [vmem:[%s18373_s2 + $0x40] sm:$0xff]   ;;  %v14961_v33 = vmov 0.0   ;;  %v14829_v34 = vld [vmem:[%s18373_s2 + $0x48] sm:$0xff]   ;;  %vm14962_vm0 = vmmov 0  }
 0x24e   :  { %13962 = vmatprep.subr.bf16.mxu1 %v14961_v33  ;;  %13978 = vmatprep.mubr.msk.bf16.mxu1 %vm14962_vm0, %v14961_v33  ;;  %v14830_v35 = vld [vmem:[%s18373_s2 + $0x50] sm:$0xff]   ;;  %v7066_v36 = vld [vmem:[%s18371_s0] sm:$0xff]  ;;  %v7067_v37 = vld [vmem:[%s18371_s0 + $0x8] sm:$0xff]  ;;  %vm8259_vm1 = vcmask 523264   ;;  %vm10612_vm2 = vcmask 517120   ;;  %vm10609_vm3 = vcmask 519168  }
 0x24f   :  { %13963 = vmatpush3.bf16.msra.mxu1 %v14828_v32  ;;  %v7068_v38 = vld [vmem:[%s18371_s0 + $0x10] sm:$0xff]  ;;  %v16802_v39 = vld [vmem:[%s18372_s1] ss:$0 sm:$0xff]  ;;  %v14831_v40 = vld [vmem:[%s18373_s2 + $0x58] sm:$0xff]   ;;  %vm10627_vm4 = vcmask 1041920  }
 0x250   :  { %13964 = vmatprep.subr.bf16.mxu1 %v14961_v33  ;;  %v7101_v41 = vadd.f32 %v16802_v39, %v7066_v36  ;;  %v7102_v42 = vadd.f32 %v16802_v39, %v7067_v37  ;;  %v7103_v43 = vadd.f32 %v16802_v39, %v7068_v38  ;;  %v7069_v44 = vld [vmem:[%s18371_s0 + $0x18] sm:$0xff]  ;;  %v7070_v45 = vld [vmem:[%s18371_s0 + $0x20] sm:$0xff]  ;;  %v7071_v51 = vld [vmem:[%s18371_s0 + $0x28] sm:$0xff] }
 0x251   :  { %v7104_v46 = vadd.f32 %v16802_v39, %v7069_v44  ;;  %v7105_v50 = vadd.f32 %v16802_v39, %v7070_v45  ;;  %v7072_v52 = vld [vmem:[%s18371_s0 + $0x30] sm:$0xff]  ;;  %v7106_v54 = vadd.f32 %v16802_v39, %v7071_v51  ;;  %v7073_v56 = vld [vmem:[%s18371_s0 + $0x38] sm:$0xff]  ;;  %v7074_v57 = vld [vmem:[%s18371_s0 + $0x40] sm:$0xff] }
 0x252   :  { %v7129_v47 = vmax.f32 %v7101_v41, 0.0  ;;  %v7130_v48 = vmax.f32 %v7102_v42, 0.0  ;;  %v7131_v49 = vmax.f32 %v7103_v43, 0.0  ;;  %v16827_v55 = vadd.f32 %v16802_v39, %v7072_v52  ;;  %v14832_v58 = vld [vmem:[%s18373_s2 + $0x60] sm:$0xff]   ;;  %v7075_v62 = vld [vmem:[%s18371_s0 + $0x48] sm:$0xff]  ;;  %v7076_v2 = vld [vmem:[%s18371_s0 + $0x50] sm:$0xff] }
 0x253   :  { %13965 = vmatpush3.bf16.msra.mxu1 %v14829_v34  ;;  %v7132_v53 = vmax.f32 %v7104_v46, 0.0  ;;  %v7133_v59 = vmax.f32 %v7105_v50, 0.0  ;;  %v16839_v60 = vadd.f32 %v16802_v39, %v7073_v56  ;;  %v16842_v61 = vadd.f32 %v16802_v39, %v7074_v57  ;;  %v7077_v4 = vld [vmem:[%s18371_s0 + $0x58] sm:$0xff]  ;;  %v7078_v5 = vld [vmem:[%s18371_s0 + $0x60] sm:$0xff]  ;;  %v14833_v11 = vld [vmem:[%s18373_s2 + $0x68] sm:$0xff]  }
 0x254   :  { %13966 = vmatprep.subr.bf16.mxu1 %v14961_v33  ;;  %7157 = vst [vmem:[#allocation2] sm:$0xff] %v7129_v47  ;;  %7158 = vst [vmem:[#allocation2 + $0x8] sm:$0xff] %v7130_v48  ;;  %v16847_v63 = vpack.c.bf16 %v7130_v48, %v7129_v47  ;;  %v7134_v0 = vmax.f32 %v7106_v54, 0.0  ;;  %v7135_v1 = vmax.f32 %v16827_v55, 0.0  ;;  %v16855_v3 = vadd.f32 %v16802_v39, %v7075_v62  ;;  %v7079_v14 = vld [vmem:[%s18371_s0 + $0x68] sm:$0xff]  ;;  %v7080_v15 = vld [vmem:[%s18371_s0 + $0x70] sm:$0xff] }
 0x255   :  { %7159 = vst [vmem:[#allocation2 + $0x10] sm:$0xff] %v7131_v49  ;;  %7160 = vst [vmem:[#allocation2 + $0x18] sm:$0xff] %v7132_v53  ;;  %v16863_v6 = vpack.c.bf16 %v7132_v53, %v7131_v49  ;;  %v7136_v7 = vmax.f32 %v16839_v60, 0.0  ;;  %v7137_v8 = vmax.f32 %v16842_v61, 0.0  ;;  %v16868_v9 = vadd.f32 %v16802_v39, %v7076_v2  ;;  %v7081_v21 = vld [vmem:[%s18371_s0 + $0x78] sm:$0xff]  ;;  %v7082_v22 = vld [vmem:[%s18371_s0 + $0x80] sm:$0xff] }
 0x256   :  { %7161 = vst [vmem:[#allocation2 + $0x20] sm:$0xff] %v7133_v59  ;;  %v16871_v10 = vadd.f32 %v16802_v39, %v7077_v4  ;;  %7162 = vst [vmem:[#allocation2 + $0x28] sm:$0xff] %v7134_v0  ;;  %v7138_v12 = vmax.f32 %v16855_v3, 0.0  ;;  %v16880_v13 = vadd.f32 %v16802_v39, %v7078_v5  ;;  %v16893_v18 = vadd.f32 %v16802_v39, %v7079_v14  ;;  %v7083_v28 = vld [vmem:[%s18371_s0 + $0x88] sm:$0xff]  ;;  %v7084_v29 = vld [vmem:[%s18371_s0 + $0x90] sm:$0xff] }
 0x257   :  { %13967 = vmatpush3.bf16.msra.mxu1 %v14830_v35  ;;  %7163 = vst [vmem:[#allocation2 + $0x30] sm:$0xff] %v7135_v1  ;;  %7164 = vst [vmem:[#allocation2 + $0x38] sm:$0xff] %v7136_v7  ;;  %v7139_v16 = vmax.f32 %v16868_v9, 0.0  ;;  %v16896_v19 = vadd.f32 %v16802_v39, %v7080_v15  ;;  %v16908_v23 = vpack.c.bf16 %v7134_v0, %v7133_v59  ;;  %v14834_v32 = vld [vmem:[%s18373_s2 + $0x70] sm:$0xff]   ;;  %v7085_v36 = vld [vmem:[%s18371_s0 + $0x98] sm:$0xff] }
 0x258   :  { %13968 = vmatprep.subr.bf16.mxu1 %v14961_v33  ;;  %7165 = vst [vmem:[#allocation2 + $0x40] sm:$0xff] %v7137_v8  ;;  %v7140_v17 = vmax.f32 %v16871_v10, 0.0  ;;  %7166 = vst [vmem:[#allocation2 + $0x48] sm:$0xff] %v7138_v12  ;;  %v7141_v20 = vmax.f32 %v16880_v13, 0.0  ;;  %v7142_v24 = vmax.f32 %v16893_v18, 0.0  ;;  %v16917_v26 = vadd.f32 %v16802_v39, %v7081_v21  ;;  %v14835_v43 = vld [vmem:[%s18373_s2 + $0x78] sm:$0xff]  }
 0x259   :  { %7167 = vst [vmem:[#allocation2 + $0x50] sm:$0xff] %v7139_v16  ;;  %v7143_v25 = vmax.f32 %v16896_v19, 0.0  ;;  %v16920_v27 = vadd.f32 %v16802_v39, %v7082_v22  ;;  %v16931_v30 = vadd.f32 %v16802_v39, %v7083_v28  ;;  %v16934_v31 = vadd.f32 %v16802_v39, %v7084_v29  ;;  %v7087_v48 = vld [vmem:[%s18371_s0 + $0xa8] sm:$0xff]  ;;  %v7088_v49 = vld [vmem:[%s18371_s0 + $0xb0] sm:$0xff]  ;;  %v7089_v53 = vld [vmem:[%s18371_s0 + $0xb8] sm:$0xff] }
 0x25a   :  { %7168 = vst [vmem:[#allocation2 + $0x58] sm:$0xff] %v7140_v17  ;;  %7169 = vst [vmem:[#allocation2 + $0x60] sm:$0xff] %v7141_v20  ;;  %v7144_v34 = vmax.f32 %v16917_v26, 0.0  ;;  %v16955_v41 = vadd.f32 %v16802_v39, %v7085_v36  ;;  %v16981_v50 = vpack.c.bf16 %v7136_v7, %v7135_v1  ;;  %v16987_v51 = vadd.f32 %v16802_v39, %v7087_v48  ;;  %v7090_v54 = vld [vmem:[%s18371_s0 + $0xc0] sm:$0xff]  ;;  %v7091_v0 = vld [vmem:[%s18371_s0 + $0xc8] sm:$0xff] }
 0x25b   :  { %13969 = vmatpush3.bf16.msra.mxu1 %v14831_v40  ;;  %7170 = vst [vmem:[#allocation2 + $0x68] sm:$0xff] %v7142_v24  ;;  %7171 = vst [vmem:[#allocation2 + $0x70] sm:$0xff] %v7143_v25  ;;  %v7145_v35 = vmax.f32 %v16920_v27, 0.0  ;;  %v7146_v37 = vmax.f32 %v16931_v30, 0.0  ;;  %v7147_v38 = vmax.f32 %v16934_v31, 0.0  ;;  %v7086_v40 = vld [vmem:[%s18371_s0 + $0xa0] sm:$0xff]  ;;  %v16990_v52 = vadd.f32 %v16802_v39, %v7088_v49 }
 0x25c   :  { %13970 = vmatprep.subr.bf16.mxu1 %v14961_v33  ;;  %7172 = vst [vmem:[#allocation2 + $0x78] sm:$0xff] %v7144_v34  ;;  %v16962_v42 = vadd.f32 %v16802_v39, %v7086_v40  ;;  %v7240_v44 = vld [vmem:[#allocation2 + $0x1] sm:$0xff]  ;;  %v7148_v45 = vmax.f32 %v16955_v41, 0.0  ;;  %v7241_v46 = vld [vmem:[#allocation2 + $0x9] sm:$0xff]  ;;  %v17001_v55 = vadd.f32 %v16802_v39, %v7089_v53  ;;  %v7150_v57 = vmax.f32 %v16987_v51, 0.0  ;;  %v7242_v7 = vld [vmem:[#allocation2 + $0x11] sm:$0xff] }
 0x25d   :  { %7173 = vst [vmem:[#allocation2 + $0x80] sm:$0xff] %v7145_v35  ;;  %7174 = vst [vmem:[#allocation2 + $0x88] sm:$0xff] %v7146_v37  ;;  %v7266_v56 = vpack.c.bf16 %v7241_v46, %v7240_v44  ;;  %v17006_v59 = vadd.f32 %v16802_v39, %v7090_v54  ;;  %v14836_v60 = vld [vmem:[%s18373_s2] sm:$0xff]   ;;  %v7092_v1 = vld [vmem:[%s18371_s0 + $0xd0] sm:$0xff]  ;;  %v17025_v4 = vadd.f32 %v16802_v39, %v7091_v0 }
 0x25e   :  { %7175 = vst [vmem:[#allocation2 + $0x90] sm:$0xff] %v7147_v38  ;;  %v7149_v47 = vmax.f32 %v16962_v42, 0.0  ;;  %7176 = vst [vmem:[#allocation2 + $0x98] sm:$0xff] %v7148_v45  ;;  %v7152_v62 = vmax.f32 %v17001_v55, 0.0  ;;  %v7127_v5 = vadd.f32 %v16802_v39, %v7092_v1  ;;  %v7243_v21 = vld [vmem:[#allocation2 + $0x19] sm:$0xff]  ;;  %v17042_v22 = vpack.c.bf16 %v7138_v12, %v7137_v8  ;;  %v14838_v29 = vld [vmem:[%s18373_s2 + $0x10] sm:$0xff]  }
 0x25f   :  { %13971 = vmatpush3.bf16.msra.mxu1 %v14832_v58  ;;  %v7151_v58 = vmax.f32 %v16990_v52, 0.0  ;;  %7178 = vst [vmem:[#allocation2 + $0xa8] sm:$0xff] %v7150_v57  ;;  %v7153_v2 = vmax.f32 %v17006_v59, 0.0  ;;  %v7154_v14 = vmax.f32 %v17025_v4, 0.0  ;;  %v7267_v28 = vpack.c.bf16 %v7243_v21, %v7242_v7  ;;  %v14839_v61 = vld [vmem:[%s18373_s2 + $0x18] sm:$0xff]   ;;  %v7244_v3 = vld [vmem:[#allocation2 + $0x21] sm:$0xff] }
 0x260   :  { %13972 = vmatprep.subr.bf16.mxu1 %v14961_v33  ;;  %7177 = vst [vmem:[#allocation2 + $0xa0] sm:$0xff] %v7149_v47  ;;  %7180 = vst [vmem:[#allocation2 + $0xb8] sm:$0xff] %v7152_v62  ;;  %v7155_v15 = vmax.f32 %v7127_v5, 0.0  ;;  %v7245_v8 = vld [vmem:[#allocation2 + $0x29] sm:$0xff]  ;;  %v17060_v12 = vpack.c.bf16 %v7140_v17, %v7139_v16  ;;  %v7246_v40 = vld [vmem:[#allocation2 + $0x31] sm:$0xff]  ;;  %v17076_v10 = vpack.c.bf16 %v7142_v24, %v7141_v20 }
 0x261   :  { %7179 = vst [vmem:[#allocation2 + $0xb0] sm:$0xff] %v7151_v58  ;;  %7181 = vst [vmem:[#allocation2 + $0xc0] sm:$0xff] %v7153_v2  ;;  %v7268_v36 = vpack.c.bf16 %v7245_v8, %v7244_v3  ;;  %v7247_v9 = vld [vmem:[#allocation2 + $0x39] sm:$0xff]  ;;  %v14842_v16 = vld [vmem:[%s18373_s2 + $0x30] sm:$0xff]   ;;  %v17092_v18 = vpack.c.bf16 %v7144_v34, %v7143_v25  ;;  %v17102_v19 = vpack.c.bf16 %v7146_v37, %v7145_v35 }
 0x262   :  { %7182 = vst [vmem:[#allocation2 + $0xc8] sm:$0xff] %v7154_v14  ;;  %7183 = vst [vmem:[#allocation2 + $0xd0] sm:$0xff] %v7155_v15  ;;  %v7269_v17 = vpack.c.bf16 %v7247_v9, %v7246_v40  ;;  %v7248_v44 = vld [vmem:[#allocation2 + $0x41] sm:$0xff]  ;;  %v7249_v46 = vld [vmem:[#allocation2 + $0x49] sm:$0xff]  ;;  %v17110_v49 = vpack.c.bf16 %v7148_v45, %v7147_v38  ;;  %v17118_v35 = vpack.c.bf16 %v7150_v57, %v7149_v47 }
 0x263   :  { %13973 = vmatpush3.bf16.msra.mxu1 %v14833_v11  ;;  %v14837_v11 = vld [vmem:[%s18373_s2 + $0x8] sm:$0xff]   ;;  %v14843_v13 = vld [vmem:[%s18373_s2 + $0x38] sm:$0xff]   ;;  %v7270_v20 = vpack.c.bf16 %v7249_v46, %v7248_v44  ;;  %v17126_v41 = vpack.c.bf16 %v7152_v62, %v7151_v58  ;;  %v14844_v1 = vld [vmem:[%s18373_s2 + $0x80] sm:$0xff]  }
 0x264   :  { %13974 = vmatprep.subr.bf16.mxu1 %v14961_v33  ;;  %v7250_v24 = vld [vmem:[#allocation2 + $0x51] sm:$0xff]  ;;  %v7251_v48 = vld [vmem:[#allocation2 + $0x59] sm:$0xff]  ;;  %v7252_v26 = vld [vmem:[#allocation2 + $0x61] sm:$0xff] }
 0x265   :  { %v7271_v25 = vpack.c.bf16 %v7251_v48, %v7250_v24  ;;  %v7253_v34 = vld [vmem:[#allocation2 + $0x69] sm:$0xff]  ;;  %v7254_v27 = vld [vmem:[#allocation2 + $0x71] sm:$0xff]  ;;  %v7255_v30 = vld [vmem:[#allocation2 + $0x79] sm:$0xff] }
 0x266   :  { %v7272_v53 = vpack.c.bf16 %v7253_v34, %v7252_v26  ;;  %v7273_v37 = vpack.c.bf16 %v7255_v30, %v7254_v27  ;;  %v7256_v31 = vld [vmem:[#allocation2 + $0x81] sm:$0xff]  ;;  %v7257_v38 = vld [vmem:[#allocation2 + $0x89] sm:$0xff]  ;;  %v7258_v42 = vld [vmem:[#allocation2 + $0x91] sm:$0xff] }
 0x267   :  { %13975 = vmatpush3.bf16.msra.mxu1 %v14834_v32  ;;  %v14840_v32 = vld [vmem:[%s18373_s2 + $0x20] sm:$0xff]   ;;  %v7274_v45 = vpack.c.bf16 %v7257_v38, %v7256_v31  ;;  %v14845_v5 = vld [vmem:[%s18373_s2 + $0x88] sm:$0xff]   ;;  %v14846_v7 = vld [vmem:[%s18373_s2 + $0x90] sm:$0xff]  }
 0x268   :  { %13976 = vmatprep.subr.bf16.mxu1 %v14961_v33  ;;  %v7259_v47 = vld [vmem:[#allocation2 + $0x99] sm:$0xff]  ;;  %v7260_v54 = vld [vmem:[#allocation2 + $0xa1] sm:$0xff]  ;;  %v7262_v52 = vld [vmem:[#allocation2 + $0xb1] sm:$0xff] }
 0x269   :  { %v7275_v51 = vpack.c.bf16 %v7259_v47, %v7258_v42  ;;  %v7263_v55 = vld [vmem:[#allocation2 + $0xb9] sm:$0xff]  ;;  %v7265_v62 = vld [vmem:[#allocation2 + $0xc9] sm:$0xff] }
 0x26a   :  { %v7277_v58 = vpack.c.bf16 %v7263_v55, %v7262_v52  ;;  %v14850_v15 = vld [vmem:[%s18373_s2 + $0xb0] sm:$0xff]   ;;  %v14852_v3 = vld [vmem:[%s18373_s2 + $0xc0] sm:$0xff]   ;;  %v14857_v48 = vld [vmem:[%s18373_s2 + $0xe8] sm:$0xff]  }
 0x26b   :  { %13977 = vmatpush3.bf16.msra.mxu1 %v14835_v43  ;;  %v14841_v43 = vld [vmem:[%s18373_s2 + $0x28] sm:$0xff]   ;;  %v7668_v59 = vld [vmem:[#allocation2 + $0x1c] sm:$0xff]  ;;  %v7671_v9 = vld [vmem:[#allocation2 + $0x34] sm:$0xff] }
 0x26c   :  { %14030 = vmatprep.subr.bf16.mxu1 %v14961_v33  ;;  %v7669_v8 = vld [vmem:[#allocation2 + $0x24] sm:$0xff]  ;;  %v7674_v27 = vld [vmem:[#allocation2 + $0x4c] sm:$0xff]  ;;  %v7675_v30 = vld [vmem:[#allocation2 + $0x54] sm:$0xff] }
 0x26d   :  { %v7673_v24 = vld [vmem:[#allocation2 + $0x44] sm:$0xff]  ;;  %v7696_v38 = vpack.c.bf16 %v7675_v30, %v7674_v27  ;;  %v7676_v42 = vld [vmem:[#allocation2 + $0x5c] sm:$0xff]  ;;  %v7678_v55 = vld [vmem:[#allocation2 + $0x6c] sm:$0xff] }
 0x26e   :  { %13979 = vmatmul.mubr.bf16.vlgmr.msra.gmra.mrb[0].mxu1 %v7266_v56  ;;  %v7261_v56 = vld [vmem:[#allocation2 + $0xa9] sm:$0xff] }
 0x26f   :  { %14031 = vmatpush3.bf16.msra.mxu1 %v14836_v60  ;;  %13982 = vmatprep.mubr.msk.bf16.mxu1 %vm14962_vm0, %v14961_v33  ;;  %v7276_v57 = vpack.c.bf16 %v7261_v56, %v7260_v54  ;;  %v7264_v60 = vld [vmem:[#allocation2 + $0xc1] sm:$0xff]  ;;  %v7690_v27 = vld [vmem:[#allocation2 + $0xcc] sm:$0xff] }
 0x270   :  { %14032 = vmatprep.subr.bf16.mxu1 %v14961_v33  ;;  %v7278_v0 = vpack.c.bf16 %v7265_v62, %v7264_v60  ;;  %v7677_v47 = vld [vmem:[#allocation2 + $0x64] sm:$0xff] }
 0x271   :  { %v7697_v56 = vpack.c.bf16 %v7677_v47, %v7676_v42  ;;  %v7933_v47 = vld [vmem:[#allocation2 + $0xd] sm:$0xff] }
 0x273   :  { %14033 = vmatpush3.bf16.msra.mxu1 %v14837_v11  ;;  %v14848_v11 = vld [vmem:[%s18373_s2 + $0xa0] sm:$0xff]  }
 0x274   :  { %14034 = vmatprep.subr.bf16.mxu1 %v14961_v33 }
 0x276   :  { %13983 = vmatmul.mubr.bf16.gmra.mrb[4].mxu1 %v7267_v28  ;;  %v7666_v28 = vld [vmem:[#allocation2 + $0xc] sm:$0xff] }
 0x277   :  { %13986 = vmatprep.mubr.msk.bf16.mxu1 %vm14962_vm0, %v14961_v33  ;;  %14035 = vmatpush3.bf16.msra.mxu1 %v14838_v29  ;;  %v7667_v29 = vld [vmem:[#allocation2 + $0x14] sm:$0xff] }
 0x278   :  { %14036 = vmatprep.subr.bf16.mxu1 %v14961_v33 }
 0x27b   :  { %14037 = vmatpush3.bf16.msra.mxu1 %v14839_v61  ;;  %v7692_v61 = vpack.c.bf16 %v7667_v29, %v7666_v28 }
 0x27c   :  { %14038 = vmatprep.subr.bf16.mxu1 %v14961_v33 }
 0x27e   :  { %13987 = vmatmul.mubr.bf16.gmra.mrb[8].mxu1 %v7268_v36  ;;  %v14854_v36 = vld [vmem:[%s18373_s2 + $0xd0] sm:$0xff]  }
 0x27f   :  { %13990 = vmatprep.mubr.msk.bf16.mxu1 %vm14962_vm0, %v14961_v33  ;;  %14039 = vmatpush3.bf16.msra.mxu1 %v14840_v32 }
 0x280   :  { %14040 = vmatprep.subr.bf16.mxu1 %v14961_v33 }
 0x283   :  { %14041 = vmatpush3.bf16.msra.mxu1 %v14841_v43  ;;  %v7670_v43 = vld [vmem:[#allocation2 + $0x2c] sm:$0xff] }
 0x284   :  { %14042 = vmatprep.subr.bf16.mxu1 %v14961_v33  ;;  %v7694_v44 = vpack.c.bf16 %v7671_v9, %v7670_v43  ;;  %v7686_v43 = vld [vmem:[#allocation2 + $0xac] sm:$0xff]  ;;  %v7687_v9 = vld [vmem:[#allocation2 + $0xb4] sm:$0xff] }
 0x286   :  { %13991 = vmatmul.mubr.bf16.gmra.mrb[12].mxu1 %v7269_v17 }
 0x287   :  { %13994 = vmatprep.mubr.msk.bf16.mxu1 %vm14962_vm0, %v14961_v33  ;;  %14043 = vmatpush3.bf16.msra.mxu1 %v14842_v16 }
 0x288   :  { %14044 = vmatprep.subr.bf16.mxu1 %v14961_v33 }
 0x28b   :  { %14045 = vmatpush3.bf16.msra.mxu1 %v14843_v13  ;;  %v14856_v13 = vld [vmem:[%s18373_s2 + $0xe0] sm:$0xff]  }
 0x28c   :  { %14098 = vmatprep.subr.bf16.mxu1 %v14961_v33 }
 0x28e   :  { %13995 = vmatmul.mubr.bf16.gmra.mrb[16].mxu1 %v7270_v20  ;;  %v7672_v20 = vld [vmem:[#allocation2 + $0x3c] sm:$0xff] }
 0x28f   :  { %13998 = vmatprep.mubr.msk.bf16.mxu1 %vm14962_vm0, %v14961_v33  ;;  %v7695_v26 = vpack.c.bf16 %v7673_v24, %v7672_v20  ;;  %v7688_v20 = vld [vmem:[#allocation2 + $0xbc] sm:$0xff]  ;;  %v7689_v24 = vld [vmem:[#allocation2 + $0xc4] sm:$0xff] }
 0x296   :  { %13999 = vmatmul.mubr.bf16.gmra.mrb[20].mxu1 %v7271_v25 }
 0x297   :  { %14002 = vmatprep.mubr.msk.bf16.mxu1 %vm14962_vm0, %v14961_v33 }
 0x29e   :  { %14003 = vmatmul.mubr.bf16.gmra.mrb[24].mxu1 %v7272_v53 }
 0x29f   :  { %14006 = vmatprep.mubr.msk.bf16.mxu1 %vm14962_vm0, %v14961_v33 }
 0x2a6   :  { %14007 = vmatmul.mubr.bf16.gmra.mrb[28].mxu1 %v7273_v37 }
 0x2a7   :  { %14010 = vmatprep.mubr.msk.bf16.mxu1 %vm14962_vm0, %v14961_v33 }
 0x2ae   :  { %14011 = vmatmul.mubr.bf16.gmra.mrb[32].mxu1 %v7274_v45 }
 0x2af   :  { %14014 = vmatprep.mubr.msk.bf16.mxu1 %vm14962_vm0, %v14961_v33 }
 0x2b6   :  { %14015 = vmatmul.mubr.bf16.gmra.mrb[36].mxu1 %v7275_v51 }
 0x2b7   :  { %14018 = vmatprep.mubr.msk.bf16.mxu1 %vm14962_vm0, %v14961_v33 }
 0x2be   :  { %14019 = vmatmul.mubr.bf16.gmra.mrb[40].mxu1 %v7276_v57 }
 0x2bf   :  { %14022 = vmatprep.mubr.msk.bf16.mxu1 %vm14962_vm0, %v14961_v33 }
 0x2c6   :  { %14023 = vmatmul.mubr.bf16.gmra.mrb[44].mxu1 %v7277_v58  ;;  %v7679_v58 = vld [vmem:[#allocation2 + $0x74] sm:$0xff] }
 0x2c7   :  { %14026 = vmatprep.mubr.msk.bf16.mxu1 %vm14962_vm0, %v14961_v33 }
 0x2ce   :  { %14027 = vmatmul.mubr.bf16.gmra.mrb[48].mxu1 %v7278_v0  ;;  %v7698_v0 = vpack.c.bf16 %v7679_v58, %v7678_v55 }
 0x2cf   :  { %14046 = vmatprep.mubr.msk.bf16.mxu1 %vm14962_vm0, %v14961_v33 }
 0x2d6   :  { %14047 = vmatmul.mubr.bf16.vlgmr.msra.gmra.mrb[52].mxu1 %v16847_v63  ;;  %v14847_v63 = vld [vmem:[%s18373_s2 + $0x98] sm:$0xff]  }
 0x2d7   :  { %14099 = vmatpush3.bf16.msra.mxu1 %v14844_v1  ;;  %14050 = vmatprep.mubr.msk.bf16.mxu1 %vm14962_vm0, %v14961_v33 }
 0x2d8   :  { %14100 = vmatprep.subr.bf16.mxu1 %v14961_v33 }
 0x2db   :  { %14101 = vmatpush3.bf16.msra.mxu1 %v14845_v5 }
 0x2dc   :  { %14102 = vmatprep.subr.bf16.mxu1 %v14961_v33 }
 0x2de   :  { %14051 = vmatmul.mubr.bf16.gmra.mrb[56].mxu1 %v16863_v6  ;;  %v14849_v6 = vld [vmem:[%s18373_s2 + $0xa8] sm:$0xff]  }
 0x2df   :  { %14054 = vmatprep.mubr.msk.bf16.mxu1 %vm14962_vm0, %v14961_v33  ;;  %14103 = vmatpush3.bf16.msra.mxu1 %v14846_v7  ;;  %v7680_v7 = vld [vmem:[#allocation2 + $0x7c] sm:$0xff] }
 0x2e0   :  { %14104 = vmatprep.subr.bf16.mxu1 %v14961_v33 }
 0x2e3   :  { %14105 = vmatpush3.bf16.msra.mxu1 %v14847_v63  ;;  %v7681_v63 = vld [vmem:[#allocation2 + $0x84] sm:$0xff] }
 0x2e4   :  { %14106 = vmatprep.subr.bf16.mxu1 %v14961_v33 }
 0x2e6   :  { %14055 = vmatmul.mubr.bf16.gmra.mrb[60].mxu1 %v16908_v23  ;;  %v14851_v23 = vld [vmem:[%s18373_s2 + $0xb8] sm:$0xff]  }
 0x2e7   :  { %14058 = vmatprep.mubr.msk.bf16.mxu1 %vm14962_vm0, %v14961_v33  ;;  %14107 = vmatpush3.bf16.msra.mxu1 %v14848_v11 }
 0x2e8   :  { %14108 = vmatprep.subr.bf16.mxu1 %v14961_v33 }
 0x2eb   :  { %14109 = vmatpush3.bf16.msra.mxu1 %v14849_v6 }
 0x2ec   :  { %14110 = vmatprep.subr.bf16.mxu1 %v14961_v33 }
 0x2ee   :  { %14059 = vmatmul.mubr.bf16.gmra.mrb[64].mxu1 %v16981_v50  ;;  %v7093_v50 = vld [vmem:[%s18371_s0 + $0xd8] sm:$0xff] }
 0x2ef   :  { %14062 = vmatprep.mubr.msk.bf16.mxu1 %vm14962_vm0, %v14961_v33  ;;  %14111 = vmatpush3.bf16.msra.mxu1 %v14850_v15  ;;  %v7128_v21 = vadd.f32 %v16802_v39, %v7093_v50  ;;  %v7223_v39 = vpack.c.bf16 %v7154_v14, %v7153_v2  ;;  %v14853_v2 = vld [vmem:[%s18373_s2 + $0xc8] sm:$0xff]   ;;  %v7699_v15 = vpack.c.bf16 %v7681_v63, %v7680_v7 }
 0x2f0   :  { %14112 = vmatprep.subr.bf16.mxu1 %v14961_v33 }
 0x2f3   :  { %14113 = vmatpush3.bf16.msra.mxu1 %v14851_v23 }
 0x2f4   :  { %14166 = vmatprep.subr.bf16.mxu1 %v14961_v33 }
 0x2f6   :  { %14063 = vmatmul.mubr.bf16.gmra.mrb[68].mxu1 %v17042_v22  ;;  %v7156_v22 = vmax.f32 %v7128_v21, 0.0  ;;  %v7682_v21 = vld [vmem:[#allocation2 + $0x8c] sm:$0xff] }
 0x2f7   :  { %14066 = vmatprep.mubr.msk.bf16.mxu1 %vm14962_vm0, %v14961_v33 }
 0x2f8   :  { %7184 = vst [vmem:[#allocation2 + $0xd8] sm:$0xff] %v7156_v22  ;;  %v7683_v22 = vld [vmem:[#allocation2 + $0x94] sm:$0xff] }
 0x2f9   :  { %v7700_v29 = vpack.c.bf16 %v7683_v22, %v7682_v21 }
 0x2fe   :  { %14067 = vmatmul.mubr.bf16.gmra.mrb[72].mxu1 %v17060_v12  ;;  %v7693_v12 = vpack.c.bf16 %v7669_v8, %v7668_v59  ;;  %v7684_v59 = vld [vmem:[#allocation2 + $0x9c] sm:$0xff]  ;;  %v7685_v8 = vld [vmem:[#allocation2 + $0xa4] sm:$0xff] }
 0x2ff   :  { %14070 = vmatprep.mubr.msk.bf16.mxu1 %vm14962_vm0, %v14961_v33  ;;  %v7691_v30 = vld [vmem:[#allocation2 + $0xd4] sm:$0xff] }
 0x306   :  { %14071 = vmatmul.mubr.bf16.gmra.mrb[76].mxu1 %v17076_v10  ;;  %v14855_v10 = vld [vmem:[%s18373_s2 + $0xd8] sm:$0xff]  }
 0x307   :  { %14074 = vmatprep.mubr.msk.bf16.mxu1 %vm14962_vm0, %v14961_v33 }
 0x30e   :  { %14075 = vmatmul.mubr.bf16.gmra.mrb[80].mxu1 %v17092_v18 }
 0x30f   :  { %14078 = vmatprep.mubr.msk.bf16.mxu1 %vm14962_vm0, %v14961_v33 }
 0x316   :  { %14079 = vmatmul.mubr.bf16.gmra.mrb[84].mxu1 %v17102_v19 }
 0x317   :  { %14082 = vmatprep.mubr.msk.bf16.mxu1 %vm14962_vm0, %v14961_v33 }
 0x31e   :  { %14083 = vmatmul.mubr.bf16.gmra.mrb[88].mxu1 %v17110_v49  ;;  %v14858_v49 = vld [vmem:[%s18373_s2 + $0xf0] sm:$0xff]  }
 0x31f   :  { %14086 = vmatprep.mubr.msk.bf16.mxu1 %vm14962_vm0, %v14961_v33 }
 0x326   :  { %14087 = vmatmul.mubr.bf16.gmra.mrb[92].mxu1 %v17118_v35  ;;  %v14859_v35 = vld [vmem:[%s18373_s2 + $0xf8] sm:$0xff]  }
 0x327   :  { %14090 = vmatprep.mubr.msk.bf16.mxu1 %vm14962_vm0, %v14961_v33 }
 0x32e   :  { %14091 = vmatmul.mubr.bf16.gmra.mrb[96].mxu1 %v17126_v41 }
 0x32f   :  { %14094 = vmatprep.mubr.msk.bf16.mxu1 %vm14962_vm0, %v14961_v33 }
 0x336   :  { %14095 = vmatmul.mubr.bf16.gmra.mrb[100].mxu1 %v7223_v39 }
 0x337   :  { %14114 = vmatprep.mubr.msk.bf16.mxu1 %vm14962_vm0, %v14961_v33 }
 0x33e   :  { %14115 = vmatmul.mubr.bf16.vlgmr.msra.gmra.mrb[104].mxu1 %v7692_v61 }
 0x33f   :  { %14167 = vmatpush3.bf16.msra.mxu1 %v14852_v3  ;;  %14118 = vmatprep.mubr.msk.bf16.mxu1 %vm14962_vm0, %v14961_v33 }
 0x340   :  { %14168 = vmatprep.subr.bf16.mxu1 %v14961_v33 }
 0x341   :  { %v17225_v4 = vpop.f32.mrb[0].mxu1 }
 0x342   :  { %v13980_v14 = vpop.f32.mrb[1].mxu1 }
 0x343   :  { %v17227_v32 = vpop.f32.mrb[2].mxu1  ;;  %14169 = vmatpush3.bf16.msra.mxu1 %v14853_v2 }
 0x344   :  { %v13981_v40 = vpop.f32.mrb[3].mxu1  ;;  %14170 = vmatprep.subr.bf16.mxu1 %v14961_v33 }
 0x346   :  { %14119 = vmatmul.mubr.bf16.gmra.mrb[108].mxu1 %v7693_v12  ;;  %v7701_v12 = vpack.c.bf16 %v7685_v8, %v7684_v59 }
 0x347   :  { %14122 = vmatprep.mubr.msk.bf16.mxu1 %vm14962_vm0, %v14961_v33  ;;  %14171 = vmatpush3.bf16.msra.mxu1 %v14854_v36 }
 0x348   :  { %14172 = vmatprep.subr.bf16.mxu1 %v14961_v33 }
 0x349   :  { %v17239_v16 = vpop.f32.mrb[4].mxu1 }
 0x34a   :  { %v13984_v17 = vpop.f32.mrb[5].mxu1 }
 0x34b   :  { %v17241_v46 = vpop.f32.mrb[6].mxu1  ;;  %14173 = vmatpush3.bf16.msra.mxu1 %v14855_v10 }
 0x34c   :  { %v13985_v18 = vpop.f32.mrb[7].mxu1  ;;  %14174 = vmatprep.subr.bf16.mxu1 %v14961_v33 }
 0x34e   :  { %14123 = vmatmul.mubr.bf16.gmra.mrb[112].mxu1 %v7694_v44  ;;  %v7702_v44 = vpack.c.bf16 %v7687_v9, %v7686_v43  ;;  %v7940_v43 = vld [vmem:[#allocation2 + $0x45] sm:$0xff] }
 0x34f   :  { %14126 = vmatprep.mubr.msk.bf16.mxu1 %vm14962_vm0, %v14961_v33  ;;  %14175 = vmatpush3.bf16.msra.mxu1 %v14856_v13 }
 0x350   :  { %14176 = vmatprep.subr.bf16.mxu1 %v14961_v33 }
 0x351   :  { %v17253_v19 = vpop.f32.mrb[8].mxu1 }
 0x352   :  { %v13988_v25 = vpop.f32.mrb[9].mxu1 }
 0x353   :  { %v17255_v34 = vpop.f32.mrb[10].mxu1  ;;  %14177 = vmatpush3.bf16.msra.mxu1 %v14857_v48 }
 0x354   :  { %v13989_v53 = vpop.f32.mrb[11].mxu1  ;;  %14178 = vmatprep.subr.bf16.mxu1 %v14961_v33 }
 0x356   :  { %14127 = vmatmul.mubr.bf16.gmra.mrb[116].mxu1 %v7695_v26  ;;  %v7703_v26 = vpack.c.bf16 %v7689_v24, %v7688_v20 }
 0x357   :  { %14130 = vmatprep.mubr.msk.bf16.mxu1 %vm14962_vm0, %v14961_v33  ;;  %14179 = vmatpush3.bf16.msra.mxu1 %v14858_v49 }
 0x358   :  { %14180 = vmatprep.subr.bf16.mxu1 %v14961_v33 }
 0x359   :  { %v17267_v37 = vpop.f32.mrb[12].mxu1 }
 0x35a   :  { %v13992_v31 = vpop.f32.mrb[13].mxu1 }
 0x35b   :  { %v17269_v41 = vpop.f32.mrb[14].mxu1  ;;  %14181 = vmatpush3.bf16.msra.mxu1 %v14859_v35 }
 0x35c   :  { %v13993_v45 = vpop.f32.mrb[15].mxu1 }
 0x35e   :  { %14131 = vmatmul.mubr.bf16.gmra.mrb[120].mxu1 %v7696_v38  ;;  %v7704_v38 = vpack.c.bf16 %v7691_v30, %v7690_v27 }
 0x35f   :  { %14134 = vmatprep.mubr.msk.bf16.mxu1 %vm14962_vm0, %v14961_v33 }
 0x361   :  { %v17273_v51 = vpop.f32.mrb[16].mxu1 }
 0x362   :  { %v13996_v54 = vpop.f32.mrb[17].mxu1 }
 0x363   :  { %v17275_v57 = vpop.f32.mrb[18].mxu1  ;;  %v7934_v54 = vld [vmem:[#allocation2 + $0x15] sm:$0xff] }
 0x364   :  { %v13997_v52 = vpop.f32.mrb[19].mxu1  ;;  %v7959_v55 = vpack.c.bf16 %v7934_v54, %v7933_v47 }
 0x366   :  { %14135 = vmatmul.mubr.bf16.gmra.mrb[124].mxu1 %v7697_v56 }
 0x367   :  { %14138 = vmatprep.mubr.msk.bf16.mxu1 %vm14962_vm0, %v14961_v33 }
 0x369   :  { %v17279_v60 = vpop.f32.mrb[20].mxu1 }
 0x36a   :  { %v14000_v62 = vpop.f32.mrb[21].mxu1 }
 0x36b   :  { %v17281_v1 = vpop.f32.mrb[22].mxu1 }
 0x36c   :  { %v14001_v5 = vpop.f32.mrb[23].mxu1 }
 0x36d   :  { %v7936_v5 = vld [vmem:[#allocation2 + $0x25] sm:$0xff] }
 0x36e   :  { %14139 = vmatmul.mubr.bf16.gmra.mrb[128].mxu1 %v7698_v0  ;;  %v7935_v0 = vld [vmem:[#allocation2 + $0x1d] sm:$0xff] }
 0x36f   :  { %14142 = vmatprep.mubr.msk.bf16.mxu1 %vm14962_vm0, %v14961_v33 }
 0x371   :  { %v17285_v11 = vpop.f32.mrb[24].mxu1 }
 0x372   :  { %v14004_v6 = vpop.f32.mrb[25].mxu1 }
 0x373   :  { %v17287_v23 = vpop.f32.mrb[26].mxu1 }
 0x374   :  { %v14005_v50 = vpop.f32.mrb[27].mxu1 }
 0x376   :  { %14143 = vmatmul.mubr.bf16.gmra.mrb[132].mxu1 %v7699_v15  ;;  %v7960_v15 = vpack.c.bf16 %v7936_v5, %v7935_v0  ;;  %v7946_v5 = vld [vmem:[#allocation2 + $0x75] sm:$0xff] }
 0x377   :  { %14146 = vmatprep.mubr.msk.bf16.mxu1 %vm14962_vm0, %v14961_v33 }
 0x379   :  { %v17291_v39 = vpop.f32.mrb[28].mxu1 }
 0x37a   :  { %v14008_v28 = vpop.f32.mrb[29].mxu1 }
 0x37b   :  { %v17293_v61 = vpop.f32.mrb[30].mxu1  ;;  %v7937_v28 = vld [vmem:[#allocation2 + $0x2d] sm:$0xff] }
 0x37c   :  { %v14009_v3 = vpop.f32.mrb[31].mxu1 }
 0x37e   :  { %14147 = vmatmul.mubr.bf16.gmra.mrb[136].mxu1 %v7700_v29  ;;  %v7938_v29 = vld [vmem:[#allocation2 + $0x35] sm:$0xff] }
 0x37f   :  { %14150 = vmatprep.mubr.msk.bf16.mxu1 %vm14962_vm0, %v14961_v33 }
 0x381   :  { %v17297_v2 = vpop.f32.mrb[32].mxu1 }
 0x382   :  { %v14012_v14 = vpop.f32.mrb[33].mxu1 }
 0x383   :  { %v17299_v36 = vpop.f32.mrb[34].mxu1 }
 0x384   :  { %v14013_v40 = vpop.f32.mrb[35].mxu1 }
 0x386   :  { %14151 = vmatmul.mubr.bf16.gmra.mrb[140].mxu1 %v7701_v12 }
 0x387   :  { %14154 = vmatprep.mubr.msk.bf16.mxu1 %vm14962_vm0, %v14961_v33 }
 0x389   :  { %v17303_v10 = vpop.f32.mrb[36].mxu1 }
 0x38a   :  { %v14016_v17 = vpop.f32.mrb[37].mxu1 }
 0x38b   :  { %v17305_v13 = vpop.f32.mrb[38].mxu1 }
 0x38c   :  { %v14017_v18 = vpop.f32.mrb[39].mxu1 }
 0x38e   :  { %14155 = vmatmul.mubr.bf16.gmra.mrb[144].mxu1 %v7702_v44 }
 0x38f   :  { %14158 = vmatprep.mubr.msk.bf16.mxu1 %vm14962_vm0, %v14961_v33 }
 0x391   :  { %v17309_v48 = vpop.f32.mrb[40].mxu1 }
 0x392   :  { %v14020_v25 = vpop.f32.mrb[41].mxu1 }
 0x393   :  { %v17311_v49 = vpop.f32.mrb[42].mxu1  ;;  %v7942_v25 = vld [vmem:[#allocation2 + $0x55] sm:$0xff] }
 0x394   :  { %v14021_v53 = vpop.f32.mrb[43].mxu1 }
 0x396   :  { %14159 = vmatmul.mubr.bf16.gmra.mrb[148].mxu1 %v7703_v26 }
 0x397   :  { %14162 = vmatprep.mubr.msk.bf16.mxu1 %vm14962_vm0, %v14961_v33 }
 0x399   :  { %v17315_v35 = vpop.f32.mrb[44].mxu1 }
 0x39a   :  { %v14024_v31 = vpop.f32.mrb[45].mxu1 }
 0x39b   :  { %v17317_v45 = vpop.f32.mrb[46].mxu1 }
 0x39c   :  { %v14025_v42 = vpop.f32.mrb[47].mxu1 }
 0x39d   :  { %v7944_v42 = vld [vmem:[#allocation2 + $0x65] sm:$0xff] }
 0x39e   :  { %14163 = vmatmul.mubr.bf16.gmra.mrb[152].mxu1 %v7704_v38 }
 0x39f   :  { %14182 = vmatprep.mubr.msk.bf16.mxu1 %vm14962_vm0, %v14961_v33 }
 0x3a1   :  { %v17321_v56 = vpop.f32.mrb[48].mxu1 }
 0x3a2   :  { %v14028_v52 = vpop.f32.mrb[49].mxu1 }
 0x3a3   :  { %v17323_v58 = vpop.f32.mrb[50].mxu1 }
 0x3a4   :  { %v14029_v62 = vpop.f32.mrb[51].mxu1 }
 0x3a6   :  { %14183 = vmatmul.mubr.bf16.vlgmr.msra.gmra.mrb[156].mxu1 %v7959_v55 }
 0x3a7   :  { %14186 = vmatprep.mubr.msk.bf16.mxu1 %vm14962_vm0, %v14961_v33 }
 0x3a9   :  { %v7563_v7 = vpop.f32.mrb[52].mxu1 }
 0x3aa   :  { %v17328_v63 = vadd.f32 %v7563_v7, %v17225_v4  ;;  %v14048_v6 = vpop.f32.mrb[53].mxu1  ;;  %v7961_v4 = vpack.c.bf16 %v7938_v29, %v7937_v28  ;;  %v7948_v29 = vld [vmem:[#allocation2 + $0x85] sm:$0xff] }
 0x3ab   :  { %v7566_v50 = vpop.f32.mrb[54].mxu1 }
 0x3ac   :  { %v17331_v21 = vadd.f32 %v7566_v50, %v17227_v32  ;;  %v14049_v22 = vpop.f32.mrb[55].mxu1  ;;  %v7939_v32 = vld [vmem:[#allocation2 + $0x3d] sm:$0xff] }
 0x3ae   :  { %14187 = vmatmul.mubr.bf16.gmra.mrb[160].mxu1 %v7960_v15 }
 0x3af   :  { %14190 = vmatprep.mubr.msk.bf16.mxu1 %vm14962_vm0, %v14961_v33 }
 0x3b1   :  { %v7571_v3 = vpop.f32.mrb[56].mxu1 }
 0x3b2   :  { %v17336_v59 = vadd.f32 %v7571_v3, %v17239_v16  ;;  %v14052_v8 = vpop.f32.mrb[57].mxu1  ;;  %v7962_v16 = vpack.c.bf16 %v7940_v43, %v7939_v32  ;;  %v7950_v43 = vld [vmem:[#allocation2 + $0x95] sm:$0xff] }
 0x3b3   :  { %v7574_v14 = vpop.f32.mrb[58].mxu1 }
 0x3b4   :  { %v17339_v12 = vadd.f32 %v7574_v14, %v17241_v46  ;;  %v14053_v40 = vpop.f32.mrb[59].mxu1  ;;  %v7941_v46 = vld [vmem:[#allocation2 + $0x4d] sm:$0xff] }
 0x3b6   :  { %14191 = vmatmul.mubr.bf16.gmra.mrb[164].mxu1 %v7961_v4 }
 0x3b7   :  { %14194 = vmatprep.mubr.msk.bf16.mxu1 %vm14962_vm0, %v14961_v33 }
 0x3b9   :  { %v7579_v9 = vpop.f32.mrb[60].mxu1 }
 0x3ba   :  { %v17344_v17 = vadd.f32 %v7579_v9, %v17253_v19  ;;  %v14056_v44 = vpop.f32.mrb[61].mxu1  ;;  %v7963_v19 = vpack.c.bf16 %v7942_v25, %v7941_v46  ;;  %v7952_v25 = vld [vmem:[#allocation2 + $0xa5] sm:$0xff] }
 0x3bb   :  { %v7582_v18 = vpop.f32.mrb[62].mxu1 }
 0x3bc   :  { %v17347_v20 = vadd.f32 %v7582_v18, %v17255_v34  ;;  %v14057_v24 = vpop.f32.mrb[63].mxu1  ;;  %v7943_v34 = vld [vmem:[#allocation2 + $0x5d] sm:$0xff] }
 0x3be   :  { %14195 = vmatmul.mubr.bf16.gmra.mrb[168].mxu1 %v7962_v16 }
 0x3bf   :  { %14198 = vmatprep.mubr.msk.bf16.mxu1 %vm14962_vm0, %v14961_v33 }
 0x3c1   :  { %v7587_v26 = vpop.f32.mrb[64].mxu1 }
 0x3c2   :  { %v17352_v53 = vadd.f32 %v7587_v26, %v17267_v37  ;;  %v14060_v27 = vpop.f32.mrb[65].mxu1  ;;  %v7964_v37 = vpack.c.bf16 %v7944_v42, %v7943_v34  ;;  %v7954_v42 = vld [vmem:[#allocation2 + $0xb5] sm:$0xff] }
 0x3c3   :  { %v7590_v30 = vpop.f32.mrb[66].mxu1 }
 0x3c4   :  { %v17355_v31 = vadd.f32 %v7590_v30, %v17269_v41  ;;  %v14061_v38 = vpop.f32.mrb[67].mxu1  ;;  %v7945_v41 = vld [vmem:[#allocation2 + $0x6d] sm:$0xff] }
 0x3c6   :  { %14199 = vmatmul.mubr.bf16.gmra.mrb[172].mxu1 %v7963_v19 }
 0x3c7   :  { %14202 = vmatprep.mubr.msk.bf16.mxu1 %vm14962_vm0, %v14961_v33 }
 0x3c9   :  { %v7595_v47 = vpop.f32.mrb[68].mxu1 }
 0x3ca   :  { %v17360_v54 = vadd.f32 %v7595_v47, %v17273_v51  ;;  %v14064_v52 = vpop.f32.mrb[69].mxu1  ;;  %v7965_v51 = vpack.c.bf16 %v7946_v5, %v7945_v41  ;;  %v7956_v5 = vld [vmem:[#allocation2 + $0xc5] sm:$0xff] }
 0x3cb   :  { %v7598_v55 = vpop.f32.mrb[70].mxu1 }
 0x3cc   :  { %v17363_v62 = vadd.f32 %v7598_v55, %v17275_v57  ;;  %v14065_v0 = vpop.f32.mrb[71].mxu1  ;;  %v7947_v57 = vld [vmem:[#allocation2 + $0x7d] sm:$0xff] }
 0x3ce   :  { %14203 = vmatmul.mubr.bf16.gmra.mrb[176].mxu1 %v7964_v37 }
 0x3cf   :  { %14206 = vmatprep.mubr.msk.bf16.mxu1 %vm14962_vm0, %v14961_v33 }
 0x3d1   :  { %v7603_v7 = vpop.f32.mrb[72].mxu1 }
 0x3d2   :  { %v17368_v6 = vadd.f32 %v7603_v7, %v17279_v60  ;;  %v14068_v15 = vpop.f32.mrb[73].mxu1  ;;  %v7966_v60 = vpack.c.bf16 %v7948_v29, %v7947_v57  ;;  %v7958_v29 = vld [vmem:[#allocation2 + $0xd5] sm:$0xff] }
 0x3d3   :  { %v7606_v50 = vpop.f32.mrb[74].mxu1 }
 0x3d4   :  { %v17371_v22 = vadd.f32 %v7606_v50, %v17281_v1  ;;  %v14069_v28 = vpop.f32.mrb[75].mxu1  ;;  %v7949_v1 = vld [vmem:[#allocation2 + $0x8d] sm:$0xff] }
 0x3d6   :  { %14207 = vmatmul.mubr.bf16.gmra.mrb[180].mxu1 %v7965_v51 }
 0x3d7   :  { %14210 = vmatprep.mubr.msk.bf16.mxu1 %vm14962_vm0, %v14961_v33 }
 0x3d9   :  { %v7611_v3 = vpop.f32.mrb[76].mxu1 }
 0x3da   :  { %v17376_v8 = vadd.f32 %v7611_v3, %v17285_v11  ;;  %v14072_v4 = vpop.f32.mrb[77].mxu1  ;;  %v7967_v11 = vpack.c.bf16 %v7950_v43, %v7949_v1 }
 0x3db   :  { %v7614_v14 = vpop.f32.mrb[78].mxu1 }
 0x3dc   :  { %v17379_v40 = vadd.f32 %v7614_v14, %v17287_v23  ;;  %v14073_v32 = vpop.f32.mrb[79].mxu1  ;;  %v7951_v23 = vld [vmem:[#allocation2 + $0x9d] sm:$0xff] }
 0x3de   :  { %14211 = vmatmul.mubr.bf16.gmra.mrb[184].mxu1 %v7966_v60 }
 0x3df   :  { %14214 = vmatprep.mubr.msk.bf16.mxu1 %vm14962_vm0, %v14961_v33 }
 0x3e1   :  { %v7619_v9 = vpop.f32.mrb[80].mxu1 }
 0x3e2   :  { %v17384_v44 = vadd.f32 %v7619_v9, %v17291_v39  ;;  %v14076_v16 = vpop.f32.mrb[81].mxu1  ;;  %v7968_v39 = vpack.c.bf16 %v7952_v25, %v7951_v23 }
 0x3e3   :  { %v7622_v18 = vpop.f32.mrb[82].mxu1 }
 0x3e4   :  { %v17387_v24 = vadd.f32 %v7622_v18, %v17293_v61  ;;  %v14077_v46 = vpop.f32.mrb[83].mxu1  ;;  %v7953_v61 = vld [vmem:[#allocation2 + $0xad] sm:$0xff] }
 0x3e5   :  { %v14862_v18 = vld [vmem:[%s18375_s4 + $0x30] sm:$0xff]  }
 0x3e6   :  { %14215 = vmatmul.mubr.bf16.gmra.mrb[188].mxu1 %v7967_v11 }
 0x3e7   :  { %14218 = vmatprep.mubr.msk.bf16.mxu1 %vm14962_vm0, %v14961_v33 }
 0x3e9   :  { %v7627_v26 = vpop.f32.mrb[84].mxu1 }
 0x3ea   :  { %v17392_v27 = vadd.f32 %v7627_v26, %v17297_v2  ;;  %v14080_v19 = vpop.f32.mrb[85].mxu1  ;;  %v7969_v2 = vpack.c.bf16 %v7954_v42, %v7953_v61 }
 0x3eb   :  { %v7630_v30 = vpop.f32.mrb[86].mxu1  ;;  %v14863_v19 = vld [vmem:[%s18375_s4 + $0x38] sm:$0xff]  }
 0x3ec   :  { %v17395_v38 = vadd.f32 %v7630_v30, %v17299_v36  ;;  %v14081_v34 = vpop.f32.mrb[87].mxu1  ;;  %v7955_v36 = vld [vmem:[#allocation2 + $0xbd] sm:$0xff] }
 0x3ee   :  { %14219 = vmatmul.mubr.bf16.gmra.mrb[192].mxu1 %v7968_v39 }
 0x3ef   :  { %14222 = vmatprep.mubr.msk.bf16.mxu1 %vm14962_vm0, %v14961_v33 }
 0x3f1   :  { %v7635_v47 = vpop.f32.mrb[88].mxu1 }
 0x3f2   :  { %v17400_v52 = vadd.f32 %v7635_v47, %v17303_v10  ;;  %v14084_v37 = vpop.f32.mrb[89].mxu1  ;;  %v7970_v10 = vpack.c.bf16 %v7956_v5, %v7955_v36 }
 0x3f3   :  { %v7638_v55 = vpop.f32.mrb[90].mxu1 }
 0x3f4   :  { %v17403_v0 = vadd.f32 %v7638_v55, %v17305_v13  ;;  %v14085_v41 = vpop.f32.mrb[91].mxu1  ;;  %v7957_v13 = vld [vmem:[#allocation2 + $0xcd] sm:$0xff] }
 0x3f6   :  { %14223 = vmatmul.mubr.bf16.gmra.mrb[196].mxu1 %v7969_v2 }
 0x3f7   :  { %14226 = vmatprep.mubr.msk.bf16.mxu1 %vm14962_vm0, %v14961_v33 }
 0x3f9   :  { %v7643_v7 = vpop.f32.mrb[92].mxu1 }
 0x3fa   :  { %v17408_v15 = vadd.f32 %v7643_v7, %v17309_v48  ;;  %v14088_v51 = vpop.f32.mrb[93].mxu1  ;;  %v7971_v48 = vpack.c.bf16 %v7958_v29, %v7957_v13 }
 0x3fb   :  { %v7646_v50 = vpop.f32.mrb[94].mxu1 }
 0x3fc   :  { %v17411_v28 = vadd.f32 %v7646_v50, %v17311_v49  ;;  %v14089_v57 = vpop.f32.mrb[95].mxu1  ;;  %v14860_v49 = vld [vmem:[%s18375_s4 + $0x20] sm:$0xff]  }
 0x3fd   :  { %14234 = vmatprep.subr.bf16.mxu0 %v14860_v49 }
 0x3fe   :  { %14227 = vmatmul.mubr.bf16.gmra.mrb[200].mxu1 %v7970_v10  ;;  %14235 = vmatpush3.bf16.msra.mxu0 %v14860_v49 }
 0x3ff   :  { %14230 = vmatprep.mubr.msk.bf16.mxu1 %vm14962_vm0, %v14961_v33 }
 0x401   :  { %v7651_v3 = vpop.f32.mrb[96].mxu1 }
 0x402   :  { %v17416_v4 = vadd.f32 %v7651_v3, %v17315_v35  ;;  %v14092_v60 = vpop.f32.mrb[97].mxu1 }
 0x403   :  { %v7654_v14 = vpop.f32.mrb[98].mxu1 }
 0x404   :  { %v17419_v32 = vadd.f32 %v7654_v14, %v17317_v45  ;;  %v14093_v1 = vpop.f32.mrb[99].mxu1  ;;  %v14861_v45 = vld [vmem:[%s18375_s4 + $0x28] sm:$0xff]  }
 0x405   :  { %14236 = vmatprep.subr.bf16.mxu0 %v14861_v45 }
 0x406   :  { %14231 = vmatmul.mubr.bf16.gmra.mrb[204].mxu1 %v7971_v48  ;;  %14237 = vmatpush3.bf16.msra.mxu0 %v14861_v45 }
 0x407   :  { %14238 = vmatprep.subr.bf16.mxu0 %v14862_v18 }
 0x409   :  { %v7659_v43 = vpop.f32.mrb[100].mxu1 }
 0x40a   :  { %v17425_v33 = vadd.f32 %v7659_v43, %v17321_v56  ;;  %v14096_v9 = vpop.f32.mrb[101].mxu1  ;;  %14239 = vmatpush3.bf16.msra.mxu0 %v14862_v18 }
 0x40b   :  { %v7662_v35 = vpop.f32.mrb[102].mxu1  ;;  %14240 = vmatprep.subr.bf16.mxu0 %v14863_v19 }
 0x40c   :  { %v17428_v16 = vadd.f32 %v7662_v35, %v17323_v58  ;;  %v14097_v11 = vpop.f32.mrb[103].mxu1 }
 0x40e   :  { %14241 = vmatpush3.bf16.msra.mxu0 %v14863_v19 }
 0x411   :  { %v7804_v56 = vpop.f32.mrb[104].mxu1 }
 0x412   :  { %v17437_v46 = vadd.f32 %v7804_v56, %v17328_v63  ;;  %v14116_v23 = vpop.f32.mrb[105].mxu1 }
 0x413   :  { %v7807_v25 = vpop.f32.mrb[106].mxu1 }
 0x414   :  { %v17440_v58 = vadd.f32 %v7807_v25, %v17331_v21  ;;  %v14117_v26 = vpop.f32.mrb[107].mxu1 }
 0x419   :  { %v7812_v39 = vpop.f32.mrb[108].mxu1 }
 0x41a   :  { %v17446_v30 = vadd.f32 %v7812_v39, %v17336_v59  ;;  %v14120_v63 = vpop.f32.mrb[109].mxu1 }
 0x41b   :  { %v7815_v34 = vpop.f32.mrb[110].mxu1 }
 0x41c   :  { %v17449_v61 = vadd.f32 %v7815_v34, %v17339_v12  ;;  %v14121_v42 = vpop.f32.mrb[111].mxu1 }
 0x421   :  { %v7820_v47 = vpop.f32.mrb[112].mxu1 }
 0x422   :  { %v17452_v21 = vadd.f32 %v7820_v47, %v17344_v17  ;;  %v14124_v37 = vpop.f32.mrb[113].mxu1 }
 0x423   :  { %v7823_v2 = vpop.f32.mrb[114].mxu1 }
 0x424   :  { %v17455_v55 = vadd.f32 %v7823_v2, %v17347_v20  ;;  %v14125_v41 = vpop.f32.mrb[115].mxu1 }
 0x429   :  { %v7828_v36 = vpop.f32.mrb[116].mxu1 }
 0x42a   :  { %v17458_v59 = vadd.f32 %v7828_v36, %v17352_v53  ;;  %v14128_v5 = vpop.f32.mrb[117].mxu1 }
 0x42b   :  { %v7831_v7 = vpop.f32.mrb[118].mxu1 }
 0x42c   :  { %v17461_v12 = vadd.f32 %v7831_v7, %v17355_v31  ;;  %v14129_v51 = vpop.f32.mrb[119].mxu1 }
 0x431   :  { %v7836_v10 = vpop.f32.mrb[120].mxu1 }
 0x432   :  { %v17464_v17 = vadd.f32 %v7836_v10, %v17360_v54  ;;  %v14132_v50 = vpop.f32.mrb[121].mxu1 }
 0x433   :  { %v7839_v57 = vpop.f32.mrb[122].mxu1 }
 0x434   :  { %v17467_v20 = vadd.f32 %v7839_v57, %v17363_v62  ;;  %v14133_v13 = vpop.f32.mrb[123].mxu1  ;;  %v17481_v62 = vld [vmem:[%s18375_s4] sm:$0xff]  }
 0x435   :  { %14266 = vmatprep.subr.bf16.mxu0 %v17481_v62 }
 0x439   :  { %v7844_v29 = vpop.f32.mrb[124].mxu1 }
 0x43a   :  { %v17470_v53 = vadd.f32 %v7844_v29, %v17368_v6  ;;  %v14136_v3 = vpop.f32.mrb[125].mxu1 }
 0x43b   :  { %v7847_v60 = vpop.f32.mrb[126].mxu1 }
 0x43c   :  { %v17473_v31 = vadd.f32 %v7847_v60, %v17371_v22  ;;  %v14137_v48 = vpop.f32.mrb[127].mxu1 }
 0x441   :  { %v7852_v14 = vpop.f32.mrb[128].mxu1 }
 0x442   :  { %v17476_v54 = vadd.f32 %v7852_v14, %v17376_v8  ;;  %v14140_v1 = vpop.f32.mrb[129].mxu1 }
 0x443   :  { %v7855_v49 = vpop.f32.mrb[130].mxu1 }
 0x444   :  { %v17484_v6 = vadd.f32 %v7855_v49, %v17379_v40  ;;  %v14141_v43 = vpop.f32.mrb[131].mxu1 }
 0x449   :  { %v7860_v22 = vpop.f32.mrb[132].mxu1 }
 0x44a   :  { %v17488_v9 = vadd.f32 %v7860_v22, %v17384_v44  ;;  %v14144_v35 = vpop.f32.mrb[133].mxu1 }
 0x44b   :  { %v7863_v8 = vpop.f32.mrb[134].mxu1 }
 0x44c   :  { %v17491_v11 = vadd.f32 %v7863_v8, %v17387_v24  ;;  %v14145_v45 = vpop.f32.mrb[135].mxu1 }
 0x451   :  { %v7868_v18 = vpop.f32.mrb[136].mxu1 }
 0x452   :  { %v17494_v56 = vadd.f32 %v7868_v18, %v17392_v27  ;;  %v14148_v23 = vpop.f32.mrb[137].mxu1 }
 0x453   :  { %v7871_v40 = vpop.f32.mrb[138].mxu1 }
 0x454   :  { %v17497_v25 = vadd.f32 %v7871_v40, %v17395_v38  ;;  %v14149_v26 = vpop.f32.mrb[139].mxu1 }
 0x459   :  { %v7876_v19 = vpop.f32.mrb[140].mxu1 }
 0x45a   :  { %v17500_v44 = vadd.f32 %v7876_v19, %v17400_v52  ;;  %v14152_v39 = vpop.f32.mrb[141].mxu1 }
 0x45b   :  { %v7879_v63 = vpop.f32.mrb[142].mxu1 }
 0x45c   :  { %v17503_v24 = vadd.f32 %v7879_v63, %v17403_v0  ;;  %v14153_v34 = vpop.f32.mrb[143].mxu1 }
 0x461   :  { %v7884_v42 = vpop.f32.mrb[144].mxu1 }
 0x462   :  { %v17506_v27 = vadd.f32 %v7884_v42, %v17408_v15  ;;  %v14156_v47 = vpop.f32.mrb[145].mxu1 }
 0x463   :  { %v7887_v37 = vpop.f32.mrb[146].mxu1 }
 0x464   :  { %v17509_v38 = vadd.f32 %v7887_v37, %v17411_v28  ;;  %v14157_v2 = vpop.f32.mrb[147].mxu1 }
 0x469   :  { %v7892_v41 = vpop.f32.mrb[148].mxu1 }
 0x46a   :  { %v17512_v52 = vadd.f32 %v7892_v41, %v17416_v4  ;;  %v14160_v36 = vpop.f32.mrb[149].mxu1  ;;  %v17526_v4 = vld [vmem:[%s18374_s3] ss:$0 sm:$0xff] }
 0x46b   :  { %v7895_v5 = vpop.f32.mrb[150].mxu1 }
 0x46c   :  { %v17515_v0 = vadd.f32 %v7895_v5, %v17419_v32  ;;  %v14161_v7 = vpop.f32.mrb[151].mxu1 }
 0x471   :  { %v7900_v51 = vpop.f32.mrb[152].mxu1 }
 0x472   :  { %v17518_v15 = vadd.f32 %v7900_v51, %v17425_v33  ;;  %v14164_v10 = vpop.f32.mrb[153].mxu1 }
 0x473   :  { %v7903_v50 = vpop.f32.mrb[154].mxu1 }
 0x474   :  { %v17521_v28 = vadd.f32 %v7903_v50, %v17428_v16  ;;  %v14165_v57 = vpop.f32.mrb[155].mxu1 }
 0x479   :  { %v8071_v13 = vpop.f32.mrb[156].mxu1 }
 0x47a   :  { %v8174_v32 = vadd.f32 %v8071_v13, %v17437_v46  ;;  %v14184_v29 = vpop.f32.mrb[157].mxu1 }
 0x47b   :  { %v8074_v3 = vpop.f32.mrb[158].mxu1 }
 0x47c   :  { %v8207_v60 = vadd.f32 %v17526_v4, %v8174_v32  ;;  %v8175_v33 = vadd.f32 %v8074_v3, %v17440_v58  ;;  %v14185_v48 = vpop.f32.mrb[159].mxu1 }
 0x47e   :  { %v8233_v14 = vmax.f32 %v8207_v60, 0.0  ;;  %v8208_v16 = vadd.f32 %v17526_v4, %v8175_v33  ;;  %v14865_v33 = vld [vmem:[%s18375_s4 + $0x8] sm:$0xff]  }
 0x480   :  { %8260 = vst.msk [vmem:[#allocation3] sm:$0xff] %vm8259_vm1, %v8233_v14  ;;  %v8234_v1 = vmax.f32 %v8208_v16, 0.0 }
 0x481   :  { %v8079_v49 = vpop.f32.mrb[160].mxu1 }
 0x482   :  { %8261 = vst.msk [vmem:[#allocation3 + $0x8] sm:$0xff] %vm8259_vm1, %v8234_v1  ;;  %v8176_v43 = vadd.f32 %v8079_v49, %v17446_v30  ;;  %v14188_v46 = vpop.f32.mrb[161].mxu1 }
 0x483   :  { %v8082_v22 = vpop.f32.mrb[162].mxu1 }
 0x484   :  { %v8209_v35 = vadd.f32 %v17526_v4, %v8176_v43  ;;  %v8177_v8 = vadd.f32 %v8082_v22, %v17449_v61  ;;  %v14189_v58 = vpop.f32.mrb[163].mxu1 }
 0x485   :  { %v14866_v58 = vld [vmem:[%s18375_s4 + $0x10] sm:$0xff]  }
 0x486   :  { %v8235_v45 = vmax.f32 %v8209_v35, 0.0  ;;  %v8210_v18 = vadd.f32 %v17526_v4, %v8177_v8 }
 0x488   :  { %8262 = vst.msk [vmem:[#allocation3 + $0x10] sm:$0xff] %vm8259_vm1, %v8235_v45  ;;  %v8236_v23 = vmax.f32 %v8210_v18, 0.0 }
 0x489   :  { %v8087_v40 = vpop.f32.mrb[164].mxu1  ;;  %v8329_v47 = vld [vmem:[#allocation3 + $0x1] sm:$0xff] }
 0x48a   :  { %8263 = vst.msk [vmem:[#allocation3 + $0x18] sm:$0xff] %vm8259_vm1, %v8236_v23  ;;  %v8178_v26 = vadd.f32 %v8087_v40, %v17452_v21  ;;  %v14192_v19 = vpop.f32.mrb[165].mxu1 }
 0x48b   :  { %v8090_v30 = vpop.f32.mrb[166].mxu1  ;;  %v14867_v19 = vld [vmem:[%s18375_s4 + $0x18] sm:$0xff]  }
 0x48c   :  { %v8211_v39 = vadd.f32 %v17526_v4, %v8178_v26  ;;  %v8179_v63 = vadd.f32 %v8090_v30, %v17455_v55  ;;  %v14193_v34 = vpop.f32.mrb[167].mxu1 }
 0x48e   :  { %v8237_v61 = vmax.f32 %v8211_v39, 0.0  ;;  %v8212_v42 = vadd.f32 %v17526_v4, %v8179_v63 }
 0x48f   :  { %v8330_v37 = vld [vmem:[#allocation3 + $0x9] sm:$0xff] }
 0x490   :  { %8264 = vst.msk [vmem:[#allocation3 + $0x20] sm:$0xff] %vm8259_vm1, %v8237_v61  ;;  %v8238_v2 = vmax.f32 %v8212_v42, 0.0  ;;  %v8352_v41 = vpack.c.bf16 %v8330_v37, %v8329_v47 }
 0x491   :  { %v8095_v36 = vpop.f32.mrb[168].mxu1  ;;  %v8331_v13 = vld [vmem:[#allocation3 + $0x11] sm:$0xff] }
 0x492   :  { %8265 = vst.msk [vmem:[#allocation3 + $0x28] sm:$0xff] %vm8259_vm1, %v8238_v2  ;;  %v8180_v21 = vadd.f32 %v8095_v36, %v17458_v59  ;;  %v14196_v5 = vpop.f32.mrb[169].mxu1  ;;  %14242 = vmatprep.mubr.msk.bf16.mxu0 %vm8259_vm1, %v8352_v41  ;;  %v17551_v29 = vld [vmem:[#allocation3 + $0x18] sm:$0xff] }
 0x493   :  { %v8098_v7 = vpop.f32.mrb[170].mxu1 }
 0x494   :  { %v8213_v55 = vadd.f32 %v17526_v4, %v8180_v21  ;;  %v8181_v51 = vadd.f32 %v8098_v7, %v17461_v12  ;;  %v14197_v10 = vpop.f32.mrb[171].mxu1  ;;  %v17601_v21 = vld [vmem:[%s18375_s4 + $0x40] sm:$0xff]  }
 0x496   :  { %v8239_v50 = vmax.f32 %v8213_v55, 0.0  ;;  %v8214_v57 = vadd.f32 %v17526_v4, %v8181_v51 }
 0x497   :  { %v8332_v32 = vld [vmem:[#allocation3 + $0x19] sm:$0xff] }
 0x498   :  { %v17553_v3 = vld [vmem:[#allocation3 + $0x20] sm:$0xff]  ;;  %8266 = vst.msk [vmem:[#allocation3 + $0x30] sm:$0xff] %vm8259_vm1, %v8239_v50  ;;  %v8240_v59 = vmax.f32 %v8214_v57, 0.0  ;;  %v8353_v60 = vpack.c.bf16 %v8332_v32, %v8331_v13 }
 0x499   :  { %v8103_v48 = vpop.f32.mrb[172].mxu1  ;;  %v17561_v14 = vld [vmem:[#allocation3 + $0x1a] sm:$0xff]  ;;  %v17563_v16 = vld [vmem:[#allocation3 + $0x22] sm:$0xff] }
 0x49a   :  { %8267 = vst.msk [vmem:[#allocation3 + $0x38] sm:$0xff] %vm8259_vm1, %v8240_v59  ;;  %v8182_v1 = vadd.f32 %v8103_v48, %v17464_v17  ;;  %v14200_v49 = vpop.f32.mrb[173].mxu1  ;;  %14243 = vmatmul.mubr.msk.bf16.vlgmr.msra.gmra.mrb[0].mxu0 %vm8259_vm1, %v8353_v60  ;;  %v8333_v18 = vld [vmem:[#allocation3 + $0x21] sm:$0xff] }
 0x49b   :  { %v8106_v46 = vpop.f32.mrb[174].mxu1  ;;  %14267 = vmatpush3.bf16.msra.mxu0 %v17481_v62  ;;  %v17577_v40 = vld [vmem:[#allocation3 + $0x28] sm:$0xff] }
 0x49c   :  { %v8215_v22 = vadd.f32 %v17526_v4, %v8182_v1  ;;  %v8183_v35 = vadd.f32 %v8106_v46, %v17467_v20  ;;  %v14201_v8 = vpop.f32.mrb[175].mxu1  ;;  %14268 = vmatprep.subr.bf16.mxu0 %v14865_v33 }
 0x49e   :  { %v8241_v17 = vmax.f32 %v8215_v22, 0.0  ;;  %v8216_v45 = vadd.f32 %v17526_v4, %v8183_v35 }
 0x49f   :  { %v8334_v23 = vld [vmem:[#allocation3 + $0x29] sm:$0xff]  ;;  %14269 = vmatpush3.bf16.msra.mxu0 %v14865_v33 }
 0x4a0   :  { %v17579_v26 = vld [vmem:[#allocation3 + $0x30] sm:$0xff]  ;;  %8268 = vst.msk [vmem:[#allocation3 + $0x40] sm:$0xff] %vm8259_vm1, %v8241_v17  ;;  %v8242_v62 = vmax.f32 %v8216_v45, 0.0  ;;  %v8354_v20 = vpack.c.bf16 %v8334_v23, %v8333_v18  ;;  %14270 = vmatprep.subr.bf16.mxu0 %v14866_v58 }
 0x4a1   :  { %v8111_v39 = vpop.f32.mrb[176].mxu1  ;;  %v17587_v63 = vld [vmem:[#allocation3 + $0x2a] sm:$0xff]  ;;  %v17589_v34 = vld [vmem:[#allocation3 + $0x32] sm:$0xff] }
 0x4a2   :  { %8269 = vst.msk [vmem:[#allocation3 + $0x48] sm:$0xff] %vm8259_vm1, %v8242_v62  ;;  %v8184_v61 = vadd.f32 %v8111_v39, %v17470_v53  ;;  %v14204_v42 = vpop.f32.mrb[177].mxu1  ;;  %14246 = vmatprep.mubr.msk.bf16.mxu0 %vm8259_vm1, %v8354_v20  ;;  %v8335_v7 = vld [vmem:[#allocation3 + $0x31] sm:$0xff] }
 0x4a3   :  { %v8114_v37 = vpop.f32.mrb[178].mxu1  ;;  %14271 = vmatpush3.bf16.msra.mxu0 %v14866_v58  ;;  %v17604_v51 = vld [vmem:[#allocation3 + $0x38] sm:$0xff] }
 0x4a4   :  { %v8217_v2 = vadd.f32 %v17526_v4, %v8184_v61  ;;  %v8185_v41 = vadd.f32 %v8114_v37, %v17473_v31  ;;  %v14205_v36 = vpop.f32.mrb[179].mxu1  ;;  %14272 = vmatprep.subr.bf16.mxu0 %v14867_v19 }
 0x4a6   :  { %v8243_v53 = vmax.f32 %v8217_v2, 0.0  ;;  %v8218_v5 = vadd.f32 %v17526_v4, %v8185_v41 }
 0x4a7   :  { %v8336_v55 = vld [vmem:[#allocation3 + $0x39] sm:$0xff]  ;;  %14273 = vmatpush3.bf16.msra.mxu0 %v14867_v19 }
 0x4a8   :  { %v17606_v10 = vld [vmem:[#allocation3 + $0x40] sm:$0xff]  ;;  %8270 = vst.msk [vmem:[#allocation3 + $0x50] sm:$0xff] %vm8259_vm1, %v8243_v53  ;;  %v8244_v31 = vmax.f32 %v8218_v5, 0.0  ;;  %v8355_v50 = vpack.c.bf16 %v8336_v55, %v8335_v7  ;;  %14298 = vmatprep.subr.bf16.mxu0 %v17601_v21 }
 0x4a9   :  { %v8119_v13 = vpop.f32.mrb[180].mxu1  ;;  %v17612_v32 = vld [vmem:[#allocation3 + $0x3a] sm:$0xff]  ;;  %v17614_v59 = vld [vmem:[#allocation3 + $0x42] sm:$0xff] }
 0x4aa   :  { %8271 = vst.msk [vmem:[#allocation3 + $0x58] sm:$0xff] %vm8259_vm1, %v8244_v31  ;;  %v8186_v60 = vadd.f32 %v8119_v13, %v17476_v54  ;;  %v14208_v33 = vpop.f32.mrb[181].mxu1  ;;  %14247 = vmatmul.mubr.msk.bf16.gmra.mrb[4].mxu0 %vm8259_vm1, %v8355_v50  ;;  %v8337_v58 = vld [vmem:[#allocation3 + $0x41] sm:$0xff] }
 0x4ab   :  { %v8122_v1 = vpop.f32.mrb[182].mxu1  ;;  %v17624_v45 = vld [vmem:[#allocation3 + $0x48] sm:$0xff] }
 0x4ac   :  { %v8219_v49 = vadd.f32 %v17526_v4, %v8186_v60  ;;  %v8187_v46 = vadd.f32 %v8122_v1, %v17484_v6  ;;  %v14209_v22 = vpop.f32.mrb[183].mxu1 }
 0x4ae   :  { %v8245_v35 = vmax.f32 %v8219_v49, 0.0  ;;  %v8220_v8 = vadd.f32 %v17526_v4, %v8187_v46 }
 0x4af   :  { %v8338_v17 = vld [vmem:[#allocation3 + $0x49] sm:$0xff] }
 0x4b0   :  { %v17626_v54 = vld [vmem:[#allocation3 + $0x50] sm:$0xff]  ;;  %8272 = vst.msk [vmem:[#allocation3 + $0x60] sm:$0xff] %vm8259_vm1, %v8245_v35  ;;  %v8246_v18 = vmax.f32 %v8220_v8, 0.0  ;;  %v8356_v23 = vpack.c.bf16 %v8338_v17, %v8337_v58 }
 0x4b1   :  { %v8127_v20 = vpop.f32.mrb[184].mxu1  ;;  %v17631_v19 = vld [vmem:[#allocation3 + $0x4a] sm:$0xff]  ;;  %v17633_v6 = vld [vmem:[#allocation3 + $0x52] sm:$0xff] }
 0x4b2   :  { %8273 = vst.msk [vmem:[#allocation3 + $0x68] sm:$0xff] %vm8259_vm1, %v8246_v18  ;;  %v8188_v39 = vadd.f32 %v8127_v20, %v17488_v9  ;;  %v14212_v61 = vpop.f32.mrb[185].mxu1  ;;  %14250 = vmatprep.mubr.msk.bf16.mxu0 %vm8259_vm1, %v8356_v23  ;;  %v8339_v7 = vld [vmem:[#allocation3 + $0x51] sm:$0xff] }
 0x4b3   :  { %v8130_v37 = vpop.f32.mrb[186].mxu1  ;;  %v17643_v31 = vld [vmem:[#allocation3 + $0x58] sm:$0xff] }
 0x4b4   :  { %v8221_v2 = vadd.f32 %v17526_v4, %v8188_v39  ;;  %v8189_v41 = vadd.f32 %v8130_v37, %v17491_v11  ;;  %v14213_v36 = vpop.f32.mrb[187].mxu1 }
 0x4b6   :  { %v8247_v53 = vmax.f32 %v8221_v2, 0.0  ;;  %v8222_v5 = vadd.f32 %v17526_v4, %v8189_v41 }
 0x4b7   :  { %v8340_v55 = vld [vmem:[#allocation3 + $0x59] sm:$0xff] }
 0x4b8   :  { %v17645_v9 = vld [vmem:[#allocation3 + $0x60] sm:$0xff]  ;;  %8274 = vst.msk [vmem:[#allocation3 + $0x70] sm:$0xff] %vm8259_vm1, %v8247_v53  ;;  %v8248_v50 = vmax.f32 %v8222_v5, 0.0  ;;  %v8357_v13 = vpack.c.bf16 %v8340_v55, %v8339_v7 }
 0x4b9   :  { %v8135_v33 = vpop.f32.mrb[188].mxu1  ;;  %v17650_v1 = vld [vmem:[#allocation3 + $0x5a] sm:$0xff]  ;;  %v17652_v11 = vld [vmem:[#allocation3 + $0x62] sm:$0xff] }
 0x4ba   :  { %8275 = vst.msk [vmem:[#allocation3 + $0x78] sm:$0xff] %vm8259_vm1, %v8248_v50  ;;  %v8190_v49 = vadd.f32 %v8135_v33, %v17494_v56  ;;  %v14216_v46 = vpop.f32.mrb[189].mxu1  ;;  %14251 = vmatmul.mubr.msk.bf16.gmra.mrb[8].mxu0 %vm8259_vm1, %v8357_v13  ;;  %v8341_v20 = vld [vmem:[#allocation3 + $0x61] sm:$0xff] }
 0x4bb   :  { %v8138_v35 = vpop.f32.mrb[190].mxu1  ;;  %v17662_v61 = vld [vmem:[#allocation3 + $0x68] sm:$0xff] }
 0x4bc   :  { %v8223_v8 = vadd.f32 %v17526_v4, %v8190_v49  ;;  %v8191_v58 = vadd.f32 %v8138_v35, %v17497_v25  ;;  %v14217_v17 = vpop.f32.mrb[191].mxu1 }
 0x4be   :  { %v8249_v18 = vmax.f32 %v8223_v8, 0.0  ;;  %v8224_v23 = vadd.f32 %v17526_v4, %v8191_v58 }
 0x4bf   :  { %v8342_v39 = vld [vmem:[#allocation3 + $0x69] sm:$0xff] }
 0x4c0   :  { %v17664_v56 = vld [vmem:[#allocation3 + $0x70] sm:$0xff]  ;;  %8276 = vst.msk [vmem:[#allocation3 + $0x80] sm:$0xff] %vm8259_vm1, %v8249_v18  ;;  %v8250_v37 = vmax.f32 %v8224_v23, 0.0  ;;  %v8358_v2 = vpack.c.bf16 %v8342_v39, %v8341_v20 }
 0x4c1   :  { %v8143_v36 = vpop.f32.mrb[192].mxu1  ;;  %v17669_v53 = vld [vmem:[#allocation3 + $0x6a] sm:$0xff]  ;;  %v17671_v25 = vld [vmem:[#allocation3 + $0x72] sm:$0xff] }
 0x4c2   :  { %8277 = vst.msk [vmem:[#allocation3 + $0x88] sm:$0xff] %vm8259_vm1, %v8250_v37  ;;  %v8192_v5 = vadd.f32 %v8143_v36, %v17500_v44  ;;  %v14220_v7 = vpop.f32.mrb[193].mxu1  ;;  %14254 = vmatprep.mubr.msk.bf16.mxu0 %vm8259_vm1, %v8358_v2  ;;  %v17681_v8 = vld [vmem:[#allocation3 + $0x71] sm:$0xff] }
 0x4c3   :  { %v8146_v50 = vpop.f32.mrb[194].mxu1  ;;  %v17685_v44 = vld [vmem:[#allocation3 + $0x78] sm:$0xff] }
 0x4c4   :  { %v8225_v13 = vadd.f32 %v17526_v4, %v8192_v5  ;;  %v8193_v33 = vadd.f32 %v8146_v50, %v17503_v24  ;;  %v14221_v49 = vpop.f32.mrb[195].mxu1 }
 0x4c6   :  { %v8251_v46 = vmax.f32 %v8225_v13, 0.0  ;;  %v8226_v35 = vadd.f32 %v17526_v4, %v8193_v33 }
 0x4c7   :  { %v17683_v58 = vld [vmem:[#allocation3 + $0x79] sm:$0xff] }
 0x4c8   :  { %v17687_v17 = vld [vmem:[#allocation3 + $0x80] sm:$0xff]  ;;  %8278 = vst.msk [vmem:[#allocation3 + $0x90] sm:$0xff] %vm8259_vm1, %v8251_v46  ;;  %v8252_v18 = vmax.f32 %v8226_v35, 0.0  ;;  %v8359_v23 = vpack.c.bf16 %v17683_v58, %v17681_v8 }
 0x4c9   :  { %v8151_v20 = vpop.f32.mrb[196].mxu1  ;;  %v17694_v39 = vld [vmem:[#allocation3 + $0x81] sm:$0xff] }
 0x4ca   :  { %v17696_v37 = vld [vmem:[#allocation3 + $0x7a] sm:$0xff]  ;;  %v17698_v2 = vld [vmem:[#allocation3 + $0x82] sm:$0xff]  ;;  %8279 = vst.msk [vmem:[#allocation3 + $0x98] sm:$0xff] %vm8259_vm1, %v8252_v18  ;;  %v8194_v36 = vadd.f32 %v8151_v20, %v17506_v27  ;;  %v14224_v5 = vpop.f32.mrb[197].mxu1  ;;  %14255 = vmatmul.mubr.msk.bf16.gmra.mrb[12].mxu0 %vm8259_vm1, %v8359_v23 }
 0x4cb   :  { %v8154_v13 = vpop.f32.mrb[198].mxu1  ;;  %v17712_v27 = vld [vmem:[#allocation3 + $0x88] sm:$0xff] }
 0x4cc   :  { %v8227_v33 = vadd.f32 %v17526_v4, %v8194_v36  ;;  %v8195_v49 = vadd.f32 %v8154_v13, %v17509_v38  ;;  %v14225_v46 = vpop.f32.mrb[199].mxu1 }
 0x4ce   :  { %v8253_v35 = vmax.f32 %v8227_v33, 0.0  ;;  %v8228_v18 = vadd.f32 %v17526_v4, %v8195_v49 }
 0x4cf   :  { %v17710_v55 = vld [vmem:[#allocation3 + $0x89] sm:$0xff] }
 0x4d0   :  { %v17714_v23 = vld [vmem:[#allocation3 + $0x90] sm:$0xff]  ;;  %8280 = vst.msk [vmem:[#allocation3 + $0xa0] sm:$0xff] %vm8259_vm1, %v8253_v35  ;;  %v8254_v20 = vmax.f32 %v8228_v18, 0.0  ;;  %v8360_v5 = vpack.c.bf16 %v17710_v55, %v17694_v39 }
 0x4d1   :  { %v8159_v38 = vpop.f32.mrb[200].mxu1  ;;  %v17721_v13 = vld [vmem:[#allocation3 + $0x91] sm:$0xff] }
 0x4d2   :  { %v17723_v33 = vld [vmem:[#allocation3 + $0x8a] sm:$0xff]  ;;  %v17725_v49 = vld [vmem:[#allocation3 + $0x92] sm:$0xff]  ;;  %8281 = vst.msk [vmem:[#allocation3 + $0xa8] sm:$0xff] %vm8259_vm1, %v8254_v20  ;;  %v8196_v46 = vadd.f32 %v8159_v38, %v17512_v52  ;;  %v14228_v50 = vpop.f32.mrb[201].mxu1  ;;  %14258 = vmatprep.mubr.msk.bf16.mxu0 %vm8259_vm1, %v8360_v5 }
 0x4d3   :  { %v8162_v22 = vpop.f32.mrb[202].mxu1  ;;  %v17739_v52 = vld [vmem:[#allocation3 + $0x98] sm:$0xff]  ;;  %v9530_v30 = vld [vmem:[#allocation3 + $0x8e] sm:$0xff] }
 0x4d4   :  { %v8229_v42 = vadd.f32 %v17526_v4, %v8196_v46  ;;  %v8197_v48 = vadd.f32 %v8162_v22, %v17515_v0  ;;  %v14229_v47 = vpop.f32.mrb[203].mxu1 }
 0x4d6   :  { %v8255_v43 = vmax.f32 %v8229_v42, 0.0  ;;  %v8230_v20 = vadd.f32 %v17526_v4, %v8197_v48 }
 0x4d7   :  { %v17737_v7 = vld [vmem:[#allocation3 + $0x99] sm:$0xff] }
 0x4d8   :  { %v17741_v50 = vld [vmem:[#allocation3 + $0xa0] sm:$0xff]  ;;  %8282 = vst.msk [vmem:[#allocation3 + $0xb0] sm:$0xff] %vm8259_vm1, %v8255_v43  ;;  %v8256_v5 = vmax.f32 %v8230_v20, 0.0  ;;  %v8361_v38 = vpack.c.bf16 %v17737_v7, %v17721_v13 }
 0x4d9   :  { %v8167_v0 = vpop.f32.mrb[204].mxu1  ;;  %v17748_v47 = vld [vmem:[#allocation3 + $0xa1] sm:$0xff] }
 0x4da   :  { %v17750_v42 = vld [vmem:[#allocation3 + $0x9a] sm:$0xff]  ;;  %v17752_v48 = vld [vmem:[#allocation3 + $0xa2] sm:$0xff]  ;;  %8283 = vst.msk [vmem:[#allocation3 + $0xb8] sm:$0xff] %vm8259_vm1, %v8256_v5  ;;  %v8198_v22 = vadd.f32 %v8167_v0, %v17518_v15  ;;  %v14232_v18 = vpop.f32.mrb[205].mxu1  ;;  %14259 = vmatmul.mubr.msk.bf16.gmra.mrb[16].mxu0 %vm8259_vm1, %v8361_v38 }
 0x4db   :  { %v8170_v35 = vpop.f32.mrb[206].mxu1  ;;  %v8287_v18 = vld [vmem:[#allocation3 + $0x8] sm:$0xff]  ;;  %v8286_v43 = vld [vmem:[#allocation3] sm:$0xff] }
 0x4dc   :  { %v8231_v46 = vadd.f32 %v17526_v4, %v8198_v22  ;;  %v8199_v36 = vadd.f32 %v8170_v35, %v17521_v28  ;;  %v14233_v24 = vpop.f32.mrb[207].mxu1  ;;  %v8309_v28 = vpack.c.bf16 %v8287_v18, %v8286_v43  ;;  %v14870_v35 = vld [vmem:[%s18375_s4 + $0x50] sm:$0xff]   ;;  %v14871_v22 = vld [vmem:[%s18375_s4 + $0x58] sm:$0xff]   ;;  %v8313_v43 = vpack.c.bf16 %v17624_v45, %v17606_v10  ;;  %v9023_v62 = vld [vmem:[#allocation3 + $0xa4] sm:$0xff] }
 0x4dd   :  { %v8317_v18 = vpack.c.bf16 %v17712_v27, %v17687_v17 }
 0x4de   :  { %v8257_v41 = vmax.f32 %v8231_v46, 0.0  ;;  %v8232_v5 = vadd.f32 %v17526_v4, %v8199_v36  ;;  %v8288_v4 = vld [vmem:[#allocation3 + $0x10] sm:$0xff]  ;;  %v8311_v36 = vpack.c.bf16 %v17577_v40, %v17553_v3  ;;  %v8312_v46 = vpack.c.bf16 %v17604_v51, %v17579_v26 }
 0x4df   :  { %v17764_v60 = vld [vmem:[#allocation3 + $0xa9] sm:$0xff]  ;;  %v8351_v15 = vld [vmem:[#allocation3 + $0xb1] sm:$0xf]  ;;  %v8310_v24 = vpack.c.bf16 %v17551_v29, %v8288_v4 }
 0x4e0   :  { %8284 = vst.msk [vmem:[#allocation3 + $0xc0] sm:$0xff] %vm8259_vm1, %v8257_v41  ;;  %v8258_v38 = vmax.f32 %v8232_v5, 0.0  ;;  %v8362_v0 = vpack.c.bf16 %v17764_v60, %v17748_v47  ;;  %v8363_v20 = vpack.c.bf16 %v8351_v15, %v8351_v15  ;;  %v14869_v41 = vld [vmem:[%s18375_s4 + $0x48] sm:$0xff]   ;;  %v8315_v5 = vpack.c.bf16 %v17662_v61, %v17645_v9  ;;  %v8308_v4 = vld [vmem:[#allocation3 + $0xb0] sm:$0xf] }
 0x4e1   :  { %v8316_v15 = vpack.c.bf16 %v17685_v44, %v17664_v56  ;;  %v9024_v57 = vld [vmem:[#allocation3 + $0xac] sm:$0xff] }
 0x4e2   :  { %8285 = vst.msk [vmem:[#allocation3 + $0xc8] sm:$0xff] %vm8259_vm1, %v8258_v38  ;;  %14262 = vmatprep.mubr.msk.bf16.mxu0 %vm8259_vm1, %v8362_v0  ;;  %v17809_v38 = vld [vmem:[#allocation3 + $0xa8] sm:$0xff]  ;;  %v8318_v0 = vpack.c.bf16 %v17739_v52, %v17714_v23 }
 0x4e3   :  { %14263 = vmatmul.mubr.msk.bf16.gmra.mrb[20].mxu0 %vm8259_vm1, %v8363_v20  ;;  %v8314_v20 = vpack.c.bf16 %v17643_v31, %v17626_v54 }
 0x4e4   :  { %14274 = vmatprep.mubr.msk.bf16.mxu0 %vm8259_vm1, %v8309_v28  ;;  %v8319_v28 = vpack.c.bf16 %v17809_v38, %v17741_v50 }
 0x4eb   :  { %14275 = vmatmul.mubr.msk.bf16.vlgmr.msra.gmra.mrb[0].mxu0 %vm8259_vm1, %v8310_v24  ;;  %v8750_v24 = vld [vmem:[#allocation3 + $0xa] sm:$0xff] }
 0x4ec   :  { %14278 = vmatprep.mubr.msk.bf16.mxu0 %vm8259_vm1, %v8311_v36  ;;  %14299 = vmatpush3.bf16.msra.mxu0 %v17601_v21  ;;  %v14872_v21 = vld [vmem:[%s18375_s4 + $0x60] sm:$0xff]  }
 0x4ed   :  { %14300 = vmatprep.subr.bf16.mxu0 %v14869_v41  ;;  %v8749_v36 = vld [vmem:[#allocation3 + $0x2] sm:$0xff] }
 0x4f0   :  { %14301 = vmatpush3.bf16.msra.mxu0 %v14869_v41  ;;  %v8320_v41 = vpack.c.bf16 %v8308_v4, %v8308_v4  ;;  %v8778_v4 = vpack.c.bf16 %v17669_v53, %v17652_v11 }
 0x4f1   :  { %14302 = vmatprep.subr.bf16.mxu0 %v14870_v35 }
 0x4f3   :  { %14279 = vmatmul.mubr.msk.bf16.gmra.mrb[4].mxu0 %vm8259_vm1, %v8312_v46  ;;  %v8751_v46 = vld [vmem:[#allocation3 + $0x12] sm:$0xff] }
 0x4f4   :  { %14282 = vmatprep.mubr.msk.bf16.mxu0 %vm8259_vm1, %v8313_v43  ;;  %14303 = vmatpush3.bf16.msra.mxu0 %v14870_v35  ;;  %v8772_v35 = vpack.c.bf16 %v8750_v24, %v8749_v36  ;;  %v14873_v43 = vld [vmem:[%s18375_s4 + $0x68] sm:$0xff]   ;;  %v8779_v24 = vpack.c.bf16 %v17696_v37, %v17671_v25 }
 0x4f5   :  { %14304 = vmatprep.subr.bf16.mxu0 %v14871_v22  ;;  %v17854_v36 = vld [vmem:[#allocation3 + $0xaa] sm:$0xff] }
 0x4f6   :  { %18383 = vst [vmem:[#allocation13_spill] sm:$0xff] %v17854_v36 }
 0x4f8   :  { %14305 = vmatpush3.bf16.msra.mxu0 %v14871_v22  ;;  %v8773_v22 = vpack.c.bf16 %v17561_v14, %v8751_v46  ;;  %v8782_v46 = vpack.c.bf16 %v17854_v36, %v17752_v48  ;;  %v9534_v36 = vld [vmem:[#allocation3 + $0xae] sm:$0xff] }
 0x4f9   :  { %14330 = vmatprep.subr.bf16.mxu0 %v14872_v21 }
 0x4fb   :  { %14283 = vmatmul.mubr.msk.bf16.gmra.mrb[8].mxu0 %vm8259_vm1, %v8314_v20  ;;  %v8774_v20 = vpack.c.bf16 %v17587_v63, %v17563_v16 }
 0x4fc   :  { %14286 = vmatprep.mubr.msk.bf16.mxu0 %vm8259_vm1, %v8315_v5  ;;  %v14874_v5 = vld [vmem:[%s18375_s4 + $0x70] sm:$0xff]  }
 0x503   :  { %14287 = vmatmul.mubr.msk.bf16.gmra.mrb[12].mxu0 %vm8259_vm1, %v8316_v15  ;;  %v8775_v15 = vpack.c.bf16 %v17612_v32, %v17589_v34 }
 0x504   :  { %14290 = vmatprep.mubr.msk.bf16.mxu0 %vm8259_vm1, %v8317_v18  ;;  %v14875_v18 = vld [vmem:[%s18375_s4 + $0x78] sm:$0xff]  }
 0x50b   :  { %14291 = vmatmul.mubr.msk.bf16.gmra.mrb[16].mxu0 %vm8259_vm1, %v8318_v0  ;;  %v8776_v0 = vpack.c.bf16 %v17631_v19, %v17614_v59 }
 0x50c   :  { %14294 = vmatprep.mubr.msk.bf16.mxu0 %vm8259_vm1, %v8319_v28  ;;  %v8777_v28 = vpack.c.bf16 %v17650_v1, %v17633_v6 }
 0x513   :  { %14295 = vmatmul.mubr.msk.bf16.gmra.mrb[24].mxu0 %vm8259_vm1, %v8320_v41  ;;  %v8780_v41 = vpack.c.bf16 %v17723_v33, %v17698_v2 }
 0x514   :  { %14306 = vmatprep.mubr.msk.bf16.mxu0 %vm8259_vm1, %v8772_v35  ;;  %v8781_v35 = vpack.c.bf16 %v17750_v42, %v17725_v49 }
 0x51b   :  { %14307 = vmatmul.mubr.msk.bf16.vlgmr.msra.gmra.mrb[0].mxu0 %vm8259_vm1, %v8773_v22  ;;  %v8771_v22 = vld [vmem:[#allocation3 + $0xb2] sm:$0xf] }
 0x51c   :  { %14310 = vmatprep.mubr.msk.bf16.mxu0 %vm8259_vm1, %v8774_v20  ;;  %14331 = vmatpush3.bf16.msra.mxu0 %v14872_v21  ;;  %v14876_v21 = vld [vmem:[%s18375_s4 + $0x80] sm:$0xff]   ;;  %v8783_v20 = vpack.c.bf16 %v8771_v22, %v8771_v22 }
 0x51d   :  { %14332 = vmatprep.subr.bf16.mxu0 %v14873_v43  ;;  %v9011_v22 = vld [vmem:[#allocation3 + $0x44] sm:$0xff] }
 0x520   :  { %14333 = vmatpush3.bf16.msra.mxu0 %v14873_v43  ;;  %v9005_v43 = vld [vmem:[#allocation3 + $0x14] sm:$0xff] }
 0x521   :  { %14334 = vmatprep.subr.bf16.mxu0 %v14874_v5 }
 0x523   :  { %14311 = vmatmul.mubr.msk.bf16.gmra.mrb[4].mxu0 %vm8259_vm1, %v8775_v15 }
 0x524   :  { %14314 = vmatprep.mubr.msk.bf16.mxu0 %vm8259_vm1, %v8776_v0  ;;  %14335 = vmatpush3.bf16.msra.mxu0 %v14874_v5  ;;  %v9004_v5 = vld [vmem:[#allocation3 + $0xc] sm:$0xff]  ;;  %v9009_v0 = vld [vmem:[#allocation3 + $0x34] sm:$0xff] }
 0x525   :  { %14336 = vmatprep.subr.bf16.mxu0 %v14875_v18  ;;  %v9027_v15 = vpack.c.bf16 %v9005_v43, %v9004_v5  ;;  %v9013_v43 = vld [vmem:[#allocation3 + $0x54] sm:$0xff] }
 0x528   :  { %14337 = vmatpush3.bf16.msra.mxu0 %v14875_v18  ;;  %v9007_v18 = vld [vmem:[#allocation3 + $0x24] sm:$0xff] }
 0x529   :  { %14362 = vmatprep.subr.bf16.mxu0 %v14876_v21 }
 0x52b   :  { %14315 = vmatmul.mubr.msk.bf16.gmra.mrb[8].mxu0 %vm8259_vm1, %v8777_v28  ;;  %v9006_v28 = vld [vmem:[#allocation3 + $0x1c] sm:$0xff] }
 0x52c   :  { %14318 = vmatprep.mubr.msk.bf16.mxu0 %vm8259_vm1, %v8778_v4  ;;  %v9028_v4 = vpack.c.bf16 %v9007_v18, %v9006_v28  ;;  %v14879_v18 = vld [vmem:[%s18375_s4 + $0x98] sm:$0xff]   ;;  %v9015_v28 = vld [vmem:[#allocation3 + $0x64] sm:$0xff] }
 0x533   :  { %14319 = vmatmul.mubr.msk.bf16.gmra.mrb[12].mxu0 %vm8259_vm1, %v8779_v24  ;;  %v9008_v24 = vld [vmem:[#allocation3 + $0x2c] sm:$0xff] }
 0x534   :  { %14322 = vmatprep.mubr.msk.bf16.mxu0 %vm8259_vm1, %v8780_v41  ;;  %v14877_v41 = vld [vmem:[%s18375_s4 + $0x88] sm:$0xff]  }
 0x53b   :  { %14323 = vmatmul.mubr.msk.bf16.gmra.mrb[16].mxu0 %vm8259_vm1, %v8781_v35  ;;  %v9029_v35 = vpack.c.bf16 %v9009_v0, %v9008_v24  ;;  %v9014_v24 = vld [vmem:[#allocation3 + $0x5c] sm:$0xff] }
 0x53c   :  { %14326 = vmatprep.mubr.msk.bf16.mxu0 %vm8259_vm1, %v8782_v46  ;;  %v14878_v46 = vld [vmem:[%s18375_s4 + $0x90] sm:$0xff]  }
 0x543   :  { %14327 = vmatmul.mubr.msk.bf16.gmra.mrb[28].mxu0 %vm8259_vm1, %v8783_v20  ;;  %v9010_v20 = vld [vmem:[#allocation3 + $0x3c] sm:$0xff] }
 0x544   :  { %14338 = vmatprep.mubr.msk.bf16.mxu0 %vm8259_vm1, %v9027_v15  ;;  %v9030_v5 = vpack.c.bf16 %v9011_v22, %v9010_v20  ;;  %v9012_v15 = vld [vmem:[#allocation3 + $0x4c] sm:$0xff]  ;;  %v9021_v20 = vld [vmem:[#allocation3 + $0x94] sm:$0xff] }
 0x545   :  { %v9031_v0 = vpack.c.bf16 %v9013_v43, %v9012_v15  ;;  %v9019_v43 = vld [vmem:[#allocation3 + $0x84] sm:$0xff]  ;;  %v9020_v15 = vld [vmem:[#allocation3 + $0x8c] sm:$0xff] }
 0x54b   :  { %14339 = vmatmul.mubr.msk.bf16.vlgmr.msra.gmra.mrb[0].mxu0 %vm8259_vm1, %v9028_v4  ;;  %v9017_v4 = vld [vmem:[#allocation3 + $0x74] sm:$0xff] }
 0x54c   :  { %14342 = vmatprep.mubr.msk.bf16.mxu0 %vm8259_vm1, %v9029_v35  ;;  %14363 = vmatpush3.bf16.msra.mxu0 %v14876_v21  ;;  %v14880_v21 = vld [vmem:[%s18375_s4 + $0xa0] sm:$0xff]   ;;  %v9016_v35 = vld [vmem:[#allocation3 + $0x6c] sm:$0xff] }
 0x54d   :  { %14364 = vmatprep.subr.bf16.mxu0 %v14877_v41  ;;  %v9033_v22 = vpack.c.bf16 %v9017_v4, %v9016_v35  ;;  %v9260_v35 = vld [vmem:[#allocation3 + $0x15] sm:$0xff] }
 0x550   :  { %14365 = vmatpush3.bf16.msra.mxu0 %v14877_v41  ;;  %v9032_v41 = vpack.c.bf16 %v9015_v28, %v9014_v24  ;;  %v9022_v28 = vld [vmem:[#allocation3 + $0x9c] sm:$0xff] }
 0x551   :  { %14366 = vmatprep.subr.bf16.mxu0 %v14878_v46  ;;  %v9036_v24 = vpack.c.bf16 %v9023_v62, %v9022_v28  ;;  %v9263_v62 = vld [vmem:[#allocation3 + $0x2d] sm:$0xff] }
 0x552   :  { %v14882_v28 = vld [vmem:[%s18375_s4 + $0xb0] sm:$0xff]  }
 0x553   :  { %14343 = vmatmul.mubr.msk.bf16.gmra.mrb[4].mxu0 %vm8259_vm1, %v9030_v5 }
 0x554   :  { %14346 = vmatprep.mubr.msk.bf16.mxu0 %vm8259_vm1, %v9031_v0  ;;  %14367 = vmatpush3.bf16.msra.mxu0 %v14878_v46  ;;  %v9018_v46 = vld [vmem:[#allocation3 + $0x7c] sm:$0xff]  ;;  %v9035_v0 = vpack.c.bf16 %v9021_v20, %v9020_v15  ;;  %v9262_v20 = vld [vmem:[#allocation3 + $0x25] sm:$0xff] }
 0x555   :  { %14368 = vmatprep.subr.bf16.mxu0 %v14879_v18  ;;  %v9034_v5 = vpack.c.bf16 %v9019_v43, %v9018_v46  ;;  %v9259_v43 = vld [vmem:[#allocation3 + $0xd] sm:$0xff]  ;;  %v9261_v15 = vld [vmem:[#allocation3 + $0x1d] sm:$0xff] }
 0x556   :  { %v9282_v46 = vpack.c.bf16 %v9260_v35, %v9259_v43  ;;  %v14883_v43 = vld [vmem:[%s18375_s4 + $0xb8] sm:$0xff]  }
 0x558   :  { %14369 = vmatpush3.bf16.msra.mxu0 %v14879_v18  ;;  %v9025_v18 = vld [vmem:[#allocation3 + $0xb4] sm:$0xff] }
 0x559   :  { %14394 = vmatprep.subr.bf16.mxu0 %v14880_v21  ;;  %v9037_v4 = vpack.c.bf16 %v9025_v18, %v9024_v57  ;;  %v14881_v57 = vld [vmem:[%s18375_s4 + $0xa8] sm:$0xff]  }
 0x55b   :  { %14347 = vmatmul.mubr.msk.bf16.gmra.mrb[8].mxu0 %vm8259_vm1, %v9032_v41  ;;  %v9026_v41 = vld [vmem:[#allocation3 + $0xbc] sm:$0xf] }
 0x55c   :  { %14350 = vmatprep.mubr.msk.bf16.mxu0 %vm8259_vm1, %v9033_v22  ;;  %v9038_v22 = vpack.c.bf16 %v9026_v41, %v9026_v41  ;;  %v9265_v41 = vld [vmem:[#allocation3 + $0x3d] sm:$0xff] }
 0x563   :  { %14351 = vmatmul.mubr.msk.bf16.gmra.mrb[12].mxu0 %vm8259_vm1, %v9034_v5  ;;  %v9264_v5 = vld [vmem:[#allocation3 + $0x35] sm:$0xff] }
 0x564   :  { %14354 = vmatprep.mubr.msk.bf16.mxu0 %vm8259_vm1, %v9035_v0  ;;  %v9283_v0 = vpack.c.bf16 %v9262_v20, %v9261_v15  ;;  %v9284_v18 = vpack.c.bf16 %v9264_v5, %v9263_v62  ;;  %v9270_v20 = vld [vmem:[#allocation3 + $0x65] sm:$0xff]  ;;  %v9272_v5 = vld [vmem:[#allocation3 + $0x75] sm:$0xff]  ;;  %v9269_v15 = vld [vmem:[#allocation3 + $0x5d] sm:$0xff] }
 0x565   :  { %v9271_v62 = vld [vmem:[#allocation3 + $0x6d] sm:$0xff] }
 0x56b   :  { %14355 = vmatmul.mubr.msk.bf16.gmra.mrb[16].mxu0 %vm8259_vm1, %v9036_v24  ;;  %v9266_v24 = vld [vmem:[#allocation3 + $0x45] sm:$0xff] }
 0x56c   :  { %14358 = vmatprep.mubr.msk.bf16.mxu0 %vm8259_vm1, %v9037_v4  ;;  %v9268_v4 = vld [vmem:[#allocation3 + $0x55] sm:$0xff]  ;;  %v9285_v35 = vpack.c.bf16 %v9266_v24, %v9265_v41  ;;  %v9275_v41 = vld [vmem:[#allocation3 + $0x8d] sm:$0xff] }
 0x56d   :  { %v9276_v24 = vld [vmem:[#allocation3 + $0x95] sm:$0xff] }
 0x573   :  { %14359 = vmatmul.mubr.msk.bf16.gmra.mrb[32].mxu0 %vm8259_vm1, %v9038_v22  ;;  %v9267_v22 = vld [vmem:[#allocation3 + $0x4d] sm:$0xff] }
 0x574   :  { %14370 = vmatprep.mubr.msk.bf16.mxu0 %vm8259_vm1, %v9282_v46  ;;  %v9286_v46 = vpack.c.bf16 %v9268_v4, %v9267_v22  ;;  %v9278_v22 = vld [vmem:[#allocation3 + $0xa5] sm:$0xff] }
 0x57b   :  { %14371 = vmatmul.mubr.msk.bf16.vlgmr.msra.gmra.mrb[0].mxu0 %vm8259_vm1, %v9283_v0  ;;  %v9287_v0 = vpack.c.bf16 %v9270_v20, %v9269_v15  ;;  %v9279_v15 = vld [vmem:[#allocation3 + $0xad] sm:$0xff] }
 0x57c   :  { %14374 = vmatprep.mubr.msk.bf16.mxu0 %vm8259_vm1, %v9284_v18  ;;  %14395 = vmatpush3.bf16.msra.mxu0 %v14880_v21  ;;  %v14884_v21 = vld [vmem:[%s18375_s4 + $0xc0] sm:$0xff]  }
 0x57d   :  { %14396 = vmatprep.subr.bf16.mxu0 %v14881_v57  ;;  %v9274_v18 = vld [vmem:[#allocation3 + $0x85] sm:$0xff] }
 0x580   :  { %14397 = vmatpush3.bf16.msra.mxu0 %v14881_v57  ;;  %v9288_v57 = vpack.c.bf16 %v9272_v5, %v9271_v62  ;;  %v9515_v62 = vld [vmem:[#allocation3 + $0x16] sm:$0xff] }
 0x581   :  { %14398 = vmatprep.subr.bf16.mxu0 %v14882_v28 }
 0x583   :  { %14375 = vmatmul.mubr.msk.bf16.gmra.mrb[4].mxu0 %vm8259_vm1, %v9285_v35  ;;  %v9290_v35 = vpack.c.bf16 %v9276_v24, %v9275_v41  ;;  %v9517_v24 = vld [vmem:[#allocation3 + $0x26] sm:$0xff]  ;;  %v9516_v41 = vld [vmem:[#allocation3 + $0x1e] sm:$0xff] }
 0x584   :  { %14378 = vmatprep.mubr.msk.bf16.mxu0 %vm8259_vm1, %v9286_v46  ;;  %14399 = vmatpush3.bf16.msra.mxu0 %v14882_v28  ;;  %v9273_v28 = vld [vmem:[#allocation3 + $0x7d] sm:$0xff] }
 0x585   :  { %14400 = vmatprep.subr.bf16.mxu0 %v14883_v43  ;;  %v9289_v4 = vpack.c.bf16 %v9274_v18, %v9273_v28  ;;  %v9277_v46 = vld [vmem:[#allocation3 + $0x9d] sm:$0xff]  ;;  %v9514_v18 = vld [vmem:[#allocation3 + $0xe] sm:$0xff] }
 0x586   :  { %v9291_v20 = vpack.c.bf16 %v9278_v22, %v9277_v46  ;;  %v9537_v28 = vpack.c.bf16 %v9515_v62, %v9514_v18  ;;  %v9518_v22 = vld [vmem:[#allocation3 + $0x2e] sm:$0xff]  ;;  %v14887_v18 = vld [vmem:[%s18375_s4 + $0xd8] sm:$0xff]  }
 0x588   :  { %14401 = vmatpush3.bf16.msra.mxu0 %v14883_v43  ;;  %v9280_v43 = vld [vmem:[#allocation3 + $0xb5] sm:$0xff] }
 0x589   :  { %14426 = vmatprep.subr.bf16.mxu0 %v14884_v21  ;;  %v9292_v5 = vpack.c.bf16 %v9280_v43, %v9279_v15  ;;  %v14885_v43 = vld [vmem:[%s18375_s4 + $0xc8] sm:$0xff]  }
 0x58a   :  { %v9521_v15 = vld [vmem:[#allocation3 + $0x46] sm:$0xff] }
 0x58b   :  { %14379 = vmatmul.mubr.msk.bf16.gmra.mrb[8].mxu0 %vm8259_vm1, %v9287_v0  ;;  %v9281_v0 = vld [vmem:[#allocation3 + $0xbd] sm:$0xf] }
 0x58c   :  { %14382 = vmatprep.mubr.msk.bf16.mxu0 %vm8259_vm1, %v9288_v57  ;;  %v9293_v57 = vpack.c.bf16 %v9281_v0, %v9281_v0  ;;  %v9520_v0 = vld [vmem:[#allocation3 + $0x3e] sm:$0xff] }
 0x58d   :  { %v9540_v62 = vpack.c.bf16 %v9521_v15, %v9520_v0 }
 0x593   :  { %14383 = vmatmul.mubr.msk.bf16.gmra.mrb[12].mxu0 %vm8259_vm1, %v9289_v4  ;;  %v9519_v4 = vld [vmem:[#allocation3 + $0x36] sm:$0xff] }
 0x594   :  { %14386 = vmatprep.mubr.msk.bf16.mxu0 %vm8259_vm1, %v9290_v35  ;;  %v9538_v35 = vpack.c.bf16 %v9517_v24, %v9516_v41  ;;  %v9539_v46 = vpack.c.bf16 %v9519_v4, %v9518_v22  ;;  %v9525_v4 = vld [vmem:[#allocation3 + $0x66] sm:$0xff] }
 0x59b   :  { %14387 = vmatmul.mubr.msk.bf16.gmra.mrb[16].mxu0 %vm8259_vm1, %v9291_v20  ;;  %v14886_v20 = vld [vmem:[%s18375_s4 + $0xd0] sm:$0xff]  }
 0x59c   :  { %14390 = vmatprep.mubr.msk.bf16.mxu0 %vm8259_vm1, %v9292_v5  ;;  %v9523_v5 = vld [vmem:[#allocation3 + $0x56] sm:$0xff] }
 0x5a3   :  { %14391 = vmatmul.mubr.msk.bf16.gmra.mrb[36].mxu0 %vm8259_vm1, %v9293_v57  ;;  %v9522_v57 = vld [vmem:[#allocation3 + $0x4e] sm:$0xff] }
 0x5a4   :  { %14402 = vmatprep.mubr.msk.bf16.mxu0 %vm8259_vm1, %v9537_v28  ;;  %v9541_v28 = vpack.c.bf16 %v9523_v5, %v9522_v57  ;;  %v9526_v5 = vld [vmem:[#allocation3 + $0x6e] sm:$0xff]  ;;  %v9528_v57 = vld [vmem:[#allocation3 + $0x7e] sm:$0xff] }
 0x5ab   :  { %14403 = vmatmul.mubr.msk.bf16.vlgmr.msra.gmra.mrb[0].mxu0 %vm8259_vm1, %v9538_v35  ;;  %v9527_v35 = vld [vmem:[#allocation3 + $0x76] sm:$0xff] }
 0x5ac   :  { %14406 = vmatprep.mubr.msk.bf16.mxu0 %vm8259_vm1, %v9539_v46  ;;  %14427 = vmatpush3.bf16.msra.mxu0 %v14884_v21  ;;  %v14888_v21 = vld [vmem:[%s18375_s4 + $0xe0] sm:$0xff]   ;;  %v9543_v0 = vpack.c.bf16 %v9527_v35, %v9526_v5 }
 0x5ad   :  { %14428 = vmatprep.subr.bf16.mxu0 %v14885_v43 }
 0x5b0   :  { %14429 = vmatpush3.bf16.msra.mxu0 %v14885_v43  ;;  %v9524_v43 = vld [vmem:[#allocation3 + $0x5e] sm:$0xff] }
 0x5b1   :  { %14430 = vmatprep.subr.bf16.mxu0 %v14886_v20  ;;  %v9542_v15 = vpack.c.bf16 %v9525_v4, %v9524_v43  ;;  %v9532_v4 = vld [vmem:[#allocation3 + $0x9e] sm:$0xff] }
 0x5b3   :  { %14407 = vmatmul.mubr.msk.bf16.gmra.mrb[4].mxu0 %vm8259_vm1, %v9540_v62  ;;  %v9531_v62 = vld [vmem:[#allocation3 + $0x96] sm:$0xff] }
 0x5b4   :  { %14410 = vmatprep.mubr.msk.bf16.mxu0 %vm8259_vm1, %v9541_v28  ;;  %14431 = vmatpush3.bf16.msra.mxu0 %v14886_v20  ;;  %v9529_v20 = vld [vmem:[#allocation3 + $0x86] sm:$0xff]  ;;  %v9545_v12 = vpack.c.bf16 %v9531_v62, %v9530_v30  ;;  %v18384_v30 = vpack.c.bf16 %v17553_v3, %v17551_v29  ;;  %v14890_v29 = vld [vmem:[%s18375_s4 + $0xf0] sm:$0xff]   ;;  %v14891_v3 = vld [vmem:[%s18375_s4 + $0xf8] sm:$0xff]  }
 0x5b5   :  { %14432 = vmatprep.subr.bf16.mxu0 %v14887_v18  ;;  %v9544_v28 = vpack.c.bf16 %v9529_v20, %v9528_v57 }
 0x5b6   :  { %v14264_v24 = vpop.f32.mrb[20].mxu0 }
 0x5b7   :  { %v8547_v41 = vpop.f32.mrb[21].mxu0 }
 0x5b8   :  { %v14265_v22 = vpop.f32.mrb[22].mxu0  ;;  %14433 = vmatpush3.bf16.msra.mxu0 %v14887_v18  ;;  %v9533_v18 = vld [vmem:[#allocation3 + $0xa6] sm:$0xff] }
 0x5b9   :  { %v8550_v46 = vpop.f32.mrb[23].mxu0  ;;  %14458 = vmatprep.subr.bf16.mxu0 %v14888_v21  ;;  %v9535_v22 = vld [vmem:[#allocation3 + $0xb6] sm:$0xff]  ;;  %v9546_v43 = vpack.c.bf16 %v9533_v18, %v9532_v4  ;;  %v10026_v4 = vld [vmem:[#allocation3 + $0x29] sm:$0xff] }
 0x5ba   :  { %v9547_v35 = vpack.c.bf16 %v9535_v22, %v9534_v36  ;;  %v18385_v36 = vpack.c.bf16 %v17579_v26, %v17577_v40  ;;  %v18387_v40 = vpack.c.bf16 %v17626_v54, %v17624_v45  ;;  %v18388_v26 = vpack.c.bf16 %v17645_v9, %v17643_v31 }
 0x5bb   :  { %14411 = vmatmul.mubr.msk.bf16.gmra.mrb[8].mxu0 %vm8259_vm1, %v9542_v15  ;;  %v9536_v15 = vld [vmem:[#allocation3 + $0xbe] sm:$0xf]  ;;  %v18389_v31 = vpack.c.bf16 %v17664_v56, %v17662_v61  ;;  %v18390_v9 = vpack.c.bf16 %v17687_v17, %v17685_v44  ;;  %v9791_v44 = vld [vmem:[#allocation3 + $0xc8] sm:$0xf] }
 0x5bc   :  { %14414 = vmatprep.mubr.msk.bf16.mxu0 %vm8259_vm1, %v9543_v0  ;;  %v9548_v5 = vpack.c.bf16 %v9536_v15, %v9536_v15  ;;  %v18386_v0 = vpack.c.bf16 %v17606_v10, %v17604_v51  ;;  %v14892_v51 = vld [vmem:[%s18375_s4 + $0x100] sm:$0xff]   ;;  %v9789_v56 = vld [vmem:[#allocation3 + $0xb8] sm:$0xff] }
 0x5bd   :  { %v10025_v17 = vld [vmem:[#allocation3 + $0x21] sm:$0xff] }
 0x5c3   :  { %14415 = vmatmul.mubr.msk.bf16.gmra.mrb[12].mxu0 %vm8259_vm1, %v9544_v28  ;;  %v9790_v28 = vld [vmem:[#allocation3 + $0xc0] sm:$0xff] }
 0x5c4   :  { %14418 = vmatprep.mubr.msk.bf16.mxu0 %vm8259_vm1, %v9545_v12  ;;  %v14889_v12 = vld [vmem:[%s18375_s4 + $0xe8] sm:$0xff]   ;;  %v9802_v18 = vpack.c.bf16 %v9790_v28, %v9789_v56  ;;  %v10044_v28 = vld [vmem:[#allocation3 + $0xb9] sm:$0xff] }
 0x5cb   :  { %14419 = vmatmul.mubr.msk.bf16.gmra.mrb[16].mxu0 %vm8259_vm1, %v9546_v43 }
 0x5cc   :  { %14422 = vmatprep.mubr.msk.bf16.mxu0 %vm8259_vm1, %v9547_v35  ;;  %v14893_v35 = vld [vmem:[%s18375_s4 + $0x108] sm:$0xff]  }
 0x5d3   :  { %14423 = vmatmul.mubr.msk.bf16.gmra.mrb[40].mxu0 %vm8259_vm1, %v9548_v5  ;;  %v14894_v5 = vld [vmem:[%s18375_s4 + $0x110] sm:$0xff]  }
 0x5d4   :  { %14434 = vmatprep.mubr.msk.bf16.mxu0 %vm8259_vm1, %v18384_v30  ;;  %v10031_v30 = vld [vmem:[#allocation3 + $0x51] sm:$0xff] }
 0x5db   :  { %14435 = vmatmul.mubr.msk.bf16.vlgmr.msra.gmra.mrb[0].mxu0 %vm8259_vm1, %v18385_v36  ;;  %v10030_v36 = vld [vmem:[#allocation3 + $0x49] sm:$0xff] }
 0x5dc   :  { %14438 = vmatprep.mubr.msk.bf16.mxu0 %vm8259_vm1, %v18386_v0  ;;  %14459 = vmatpush3.bf16.msra.mxu0 %v14888_v21  ;;  %v10050_v0 = vpack.c.bf16 %v10031_v30, %v10030_v36 }
 0x5dd   :  { %14460 = vmatprep.subr.bf16.mxu0 %v14889_v12 }
 0x5e0   :  { %14461 = vmatpush3.bf16.msra.mxu0 %v14889_v12  ;;  %v10033_v12 = vld [vmem:[#allocation3 + $0x61] sm:$0xff] }
 0x5e1   :  { %14462 = vmatprep.subr.bf16.mxu0 %v14890_v29 }
 0x5e3   :  { %14439 = vmatmul.mubr.msk.bf16.gmra.mrb[4].mxu0 %vm8259_vm1, %v18387_v40 }
 0x5e4   :  { %14442 = vmatprep.mubr.msk.bf16.mxu0 %vm8259_vm1, %v18388_v26  ;;  %14463 = vmatpush3.bf16.msra.mxu0 %v14890_v29  ;;  %v10032_v29 = vld [vmem:[#allocation3 + $0x59] sm:$0xff] }
 0x5e5   :  { %14464 = vmatprep.subr.bf16.mxu0 %v14891_v3  ;;  %v10051_v40 = vpack.c.bf16 %v10033_v12, %v10032_v29 }
 0x5e6   :  { %v14296_v10 = vpop.f32.mrb[24].mxu0 }
 0x5e7   :  { %v8744_v21 = vadd.f32 %v14296_v10, %v14264_v24  ;;  %v8735_v20 = vpop.f32.mrb[25].mxu0  ;;  %v18391_v24 = vpack.c.bf16 %v17714_v23, %v17712_v27  ;;  %v9803_v27 = vpack.c.bf16 %v9791_v44, %v9791_v44  ;;  %v10024_v23 = vld [vmem:[#allocation3 + $0x19] sm:$0xff] }
 0x5e8   :  { %v8736_v62 = vadd.f32 %v8735_v20, %v8547_v41  ;;  %v14297_v57 = vpop.f32.mrb[26].mxu0  ;;  %14465 = vmatpush3.bf16.msra.mxu0 %v14891_v3  ;;  %v18392_v41 = vpack.c.bf16 %v17741_v50, %v17739_v52  ;;  %v10047_v22 = vpack.c.bf16 %v10025_v17, %v10024_v23  ;;  %v10027_v52 = vld [vmem:[#allocation3 + $0x31] sm:$0xff]  ;;  %v10029_v50 = vld [vmem:[#allocation3 + $0x41] sm:$0xff] }
 0x5e9   :  { %v8738_v45 = vpop.f32.mrb[27].mxu0  ;;  %14490 = vmatprep.subr.bf16.mxu0 %v14892_v51  ;;  %v10048_v43 = vpack.c.bf16 %v10027_v52, %v10026_v4  ;;  %v14895_v3 = vld [vmem:[%s18375_s4 + $0x118] sm:$0xff]  }
 0x5ea   :  { %v8739_v54 = vadd.f32 %v8738_v45, %v8550_v46  ;;  %v9788_v46 = vld [vmem:[#allocation3 + $0xb0] sm:$0xff]  ;;  %v10299_v17 = vld [vmem:[#allocation3 + $0xba] sm:$0xff] }
 0x5eb   :  { %14443 = vmatmul.mubr.msk.bf16.gmra.mrb[8].mxu0 %vm8259_vm1, %v18389_v31  ;;  %v9801_v61 = vpack.c.bf16 %v9788_v46, %v17809_v38  ;;  %v10028_v38 = vld [vmem:[#allocation3 + $0x39] sm:$0xff]  ;;  %v10034_v45 = vld [vmem:[#allocation3 + $0x69] sm:$0xff]  ;;  %v18394_v46 = vpack.c.bf16 %v17721_v13, %v17710_v55  ;;  %v18396_v55 = vpack.c.bf16 %v17563_v16, %v17561_v14  ;;  %v18399_v13 = vpack.c.bf16 %v17633_v6, %v17631_v19 }
 0x5ec   :  { %14446 = vmatprep.mubr.msk.bf16.mxu0 %vm8259_vm1, %v18390_v9  ;;  %v10049_v15 = vpack.c.bf16 %v10029_v50, %v10028_v38  ;;  %v10052_v9 = vpack.c.bf16 %v17681_v8, %v10034_v45  ;;  %v10045_v8 = vld [vmem:[#allocation3 + $0xc1] sm:$0xff]  ;;  %v18400_v14 = vpack.c.bf16 %v17652_v11, %v17650_v1  ;;  %v18403_v19 = vpack.c.bf16 %v17725_v49, %v17723_v33  ;;  %v10298_v1 = vld [vmem:[#allocation3 + $0xb2] sm:$0xff] }
 0x5ed   :  { %v18404_v6 = vpack.c.bf16 %v17752_v48, %v17750_v42  ;;  %v10300_v11 = vld [vmem:[#allocation3 + $0xc2] sm:$0xff] }
 0x5f3   :  { %14447 = vmatmul.mubr.msk.bf16.gmra.mrb[12].mxu0 %vm8259_vm1, %v18391_v24 }
 0x5f4   :  { %14450 = vmatprep.mubr.msk.bf16.mxu0 %vm8259_vm1, %v18392_v41  ;;  %v18393_v41 = vpack.c.bf16 %v17694_v39, %v17683_v58  ;;  %v10046_v58 = vld [vmem:[#allocation3 + $0xc9] sm:$0xf] }
 0x5f5   :  { %v10058_v39 = vpack.c.bf16 %v10046_v58, %v10046_v58 }
 0x5fb   :  { %14451 = vmatmul.mubr.msk.bf16.gmra.mrb[16].mxu0 %vm8259_vm1, %v9801_v61  ;;  %v10057_v61 = vpack.c.bf16 %v10045_v8, %v10044_v28 }
 0x5fc   :  { %14454 = vmatprep.mubr.msk.bf16.mxu0 %vm8259_vm1, %v9802_v18 }
 0x603   :  { %14455 = vmatmul.mubr.msk.bf16.gmra.mrb[44].mxu0 %vm8259_vm1, %v9803_v27  ;;  %v10312_v27 = vpack.c.bf16 %v10300_v11, %v10299_v17 }
 0x604   :  { %14466 = vmatprep.mubr.msk.bf16.mxu0 %vm8259_vm1, %v10047_v22 }
 0x60b   :  { %14467 = vmatmul.mubr.msk.bf16.vlgmr.msra.gmra.mrb[0].mxu0 %vm8259_vm1, %v10048_v43 }
 0x60c   :  { %14470 = vmatprep.mubr.msk.bf16.mxu0 %vm8259_vm1, %v10049_v15  ;;  %14491 = vmatpush3.bf16.msra.mxu0 %v14892_v51 }
 0x60d   :  { %14492 = vmatprep.subr.bf16.mxu0 %v14893_v35 }
 0x610   :  { %14493 = vmatpush3.bf16.msra.mxu0 %v14893_v35 }
 0x611   :  { %14494 = vmatprep.subr.bf16.mxu0 %v14894_v5 }
 0x613   :  { %14471 = vmatmul.mubr.msk.bf16.gmra.mrb[4].mxu0 %vm8259_vm1, %v10050_v0 }
 0x614   :  { %14474 = vmatprep.mubr.msk.bf16.mxu0 %vm8259_vm1, %v10051_v40  ;;  %14495 = vmatpush3.bf16.msra.mxu0 %v14894_v5 }
 0x615   :  { %14496 = vmatprep.subr.bf16.mxu0 %v14895_v3 }
 0x616   :  { %v14328_v26 = vpop.f32.mrb[28].mxu0 }
 0x617   :  { %v9003_v51 = vadd.f32 %v14328_v26, %v8744_v21  ;;  %v8967_v10 = vpop.f32.mrb[29].mxu0  ;;  %v18395_v21 = vpack.c.bf16 %v17748_v47, %v17737_v7  ;;  %v18397_v7 = vpack.c.bf16 %v17589_v34, %v17587_v63 }
 0x618   :  { %v9001_v20 = vadd.f32 %v8967_v10, %v8736_v62  ;;  %v14329_v57 = vpop.f32.mrb[30].mxu0  ;;  %14497 = vmatpush3.bf16.msra.mxu0 %v14895_v3  ;;  %v10043_v62 = vld [vmem:[#allocation3 + $0xb1] sm:$0xff] }
 0x619   :  { %v8970_v31 = vpop.f32.mrb[31].mxu0 }
 0x61a   :  { %v9002_v24 = vadd.f32 %v8970_v31, %v8739_v54  ;;  %v10056_v54 = vpack.c.bf16 %v10043_v62, %v17764_v60  ;;  %v18398_v60 = vpack.c.bf16 %v17614_v59, %v17612_v32  ;;  %v18401_v32 = vpack.c.bf16 %v17671_v25, %v17669_v53  ;;  %v18405_v53 = vld [vmem:[#allocation13_spill] sm:$0xff] }
 0x61b   :  { %14475 = vmatmul.mubr.msk.bf16.gmra.mrb[8].mxu0 %vm8259_vm1, %v10052_v9  ;;  %v18402_v59 = vpack.c.bf16 %v17698_v2, %v17696_v37  ;;  %v10311_v25 = vpack.c.bf16 %v10298_v1, %v18405_v53  ;;  %v10301_v37 = vld [vmem:[#allocation3 + $0xca] sm:$0xf]  ;;  %v18068_v9 = vld [vmem:[%s18376_s5] ss:$0 sm:$0xff]  ;;  %s14964_s5 = smov 64  }
 0x61c   :  { %14478 = vmatprep.mubr.msk.bf16.mxu0 %vm8259_vm1, %v18393_v41  ;;  %v10313_v2 = vpack.c.bf16 %v10301_v37, %v10301_v37  ;;  %v14963_v37 = vmov 1983009808  }
 0x623   :  { %14479 = vmatmul.mubr.msk.bf16.gmra.mrb[12].mxu0 %vm8259_vm1, %v18394_v46 }
 0x624   :  { %14482 = vmatprep.mubr.msk.bf16.mxu0 %vm8259_vm1, %v18395_v21 }
 0x62b   :  { %14483 = vmatmul.mubr.msk.bf16.gmra.mrb[16].mxu0 %vm8259_vm1, %v10056_v54 }
 0x62c   :  { %14486 = vmatprep.mubr.msk.bf16.mxu0 %vm8259_vm1, %v10057_v61 }
 0x633   :  { %14487 = vmatmul.mubr.msk.bf16.gmra.mrb[48].mxu0 %vm8259_vm1, %v10058_v39 }
 0x634   :  { %14498 = vmatprep.mubr.msk.bf16.mxu0 %vm8259_vm1, %v18396_v55 }
 0x63b   :  { %14499 = vmatmul.mubr.msk.bf16.vlgmr.msra.gmra.mrb[0].mxu0 %vm8259_vm1, %v18397_v7 }
 0x63c   :  { %14502 = vmatprep.mubr.msk.bf16.mxu0 %vm8259_vm1, %v18398_v60 }
 0x643   :  { %14503 = vmatmul.mubr.msk.bf16.gmra.mrb[4].mxu0 %vm8259_vm1, %v18399_v13 }
 0x644   :  { %14506 = vmatprep.mubr.msk.bf16.mxu0 %vm8259_vm1, %v18400_v14 }
 0x646   :  { %v14360_v16 = vpop.f32.mrb[32].mxu0 }
 0x647   :  { %v9258_v47 = vadd.f32 %v14360_v16, %v9003_v51  ;;  %v9222_v63 = vpop.f32.mrb[33].mxu0 }
 0x648   :  { %v9256_v34 = vadd.f32 %v9222_v63, %v9001_v20  ;;  %v14361_v56 = vpop.f32.mrb[34].mxu0 }
 0x649   :  { %v9225_v18 = vpop.f32.mrb[35].mxu0 }
 0x64a   :  { %v9257_v44 = vadd.f32 %v9225_v18, %v9002_v24 }
 0x64b   :  { %14507 = vmatmul.mubr.msk.bf16.gmra.mrb[8].mxu0 %vm8259_vm1, %v18401_v32 }
 0x64c   :  { %14510 = vmatprep.mubr.msk.bf16.mxu0 %vm8259_vm1, %v18402_v59 }
 0x653   :  { %14511 = vmatmul.mubr.msk.bf16.gmra.mrb[12].mxu0 %vm8259_vm1, %v18403_v19 }
 0x654   :  { %14514 = vmatprep.mubr.msk.bf16.mxu0 %vm8259_vm1, %v18404_v6 }
 0x65b   :  { %14515 = vmatmul.mubr.msk.bf16.gmra.mrb[16].mxu0 %vm8259_vm1, %v10311_v25 }
 0x65c   :  { %14518 = vmatprep.mubr.msk.bf16.mxu0 %vm8259_vm1, %v10312_v27 }
 0x663   :  { %14519 = vmatmul.mubr.msk.bf16.gmra.mrb[52].mxu0 %vm8259_vm1, %v10313_v2  ;;  %v10618_v2 = vunpack.c.l.s4 %v14963_v37 }
 0x676   :  { %v14392_v33 = vpop.f32.mrb[36].mxu0 }
 0x677   :  { %v9513_v49 = vadd.f32 %v14392_v33, %v9258_v47  ;;  %v9477_v23 = vpop.f32.mrb[37].mxu0  ;;  %v10620_v33 = vlaneseq }
 0x678   :  { %v9511_v42 = vadd.f32 %v9477_v23, %v9256_v34  ;;  %v14393_v48 = vpop.f32.mrb[38].mxu0 }
 0x679   :  { %v9480_v22 = vpop.f32.mrb[39].mxu0 }
 0x67a   :  { %v9512_v52 = vadd.f32 %v9480_v22, %v9257_v44 }
 0x6a6   :  { %v14424_v50 = vpop.f32.mrb[40].mxu0 }
 0x6a7   :  { %v9768_v4 = vadd.f32 %v14424_v50, %v9513_v49  ;;  %v9732_v43 = vpop.f32.mrb[41].mxu0  ;;  %v10619_v50 = vunpack.c.0.s8 %v10618_v2 }
 0x6a8   :  { %v9766_v38 = vadd.f32 %v9732_v43, %v9511_v42  ;;  %v14425_v35 = vpop.f32.mrb[42].mxu0 }
 0x6a9   :  { %v9735_v15 = vpop.f32.mrb[43].mxu0 }
 0x6aa   :  { %v9767_v5 = vadd.f32 %v9735_v15, %v9512_v52 }
 0x6d6   :  { %v14456_v30 = vpop.f32.mrb[44].mxu0 }
 0x6d7   :  { %v10023_v12 = vadd.f32 %v14456_v30, %v9768_v4  ;;  %v9987_v36 = vpop.f32.mrb[45].mxu0  ;;  %v18092_v4 = vshrl.u32 %v10620_v33, 7 }
 0x6d8   :  { %v10021_v0 = vadd.f32 %v9987_v36, %v9766_v38  ;;  %v14457_v29 = vpop.f32.mrb[46].mxu0 }
 0x6d9   :  { %v9990_v3 = vpop.f32.mrb[47].mxu0 }
 0x6da   :  { %v10022_v40 = vadd.f32 %v9990_v3, %v9767_v5  ;;  %v18098_v5 = vsub.s32 %v10619_v50, %v18092_v4 }
 0x706   :  { %v14488_v26 = vpop.f32.mrb[48].mxu0 }
 0x707   :  { %v18059_v51 = vadd.f32 %v14488_v26, %v10023_v12  ;;  %v10242_v10 = vpop.f32.mrb[49].mxu0 }
 0x708   :  { %v18061_v20 = vadd.f32 %v10242_v10, %v10021_v0  ;;  %v14489_v57 = vpop.f32.mrb[50].mxu0 }
 0x709   :  { %v10245_v45 = vpop.f32.mrb[51].mxu0 }
 0x70a   :  { %v18063_v31 = vadd.f32 %v10245_v45, %v10022_v40 }
 0x70e   :  { %v14500_v24 = vpop.f32.mrb[0].mxu0 }
 0x70f   :  { %v10543_v41 = vadd.f32 %v14500_v24, %v18068_v9  ;;  %v10417_v46 = vpop.f32.mrb[1].mxu0 }
 0x710   :  { %v10541_v21 = vadd.f32 %v18068_v9, %v10417_v46  ;;  %v14501_v62 = vpop.f32.mrb[2].mxu0 }
 0x711   :  { %v10566_v8 = vmax.f32 %v10543_v41, 0.0  ;;  %v10544_v54 = vadd.f32 %v14501_v62, %v18068_v9  ;;  %v10420_v28 = vpop.f32.mrb[3].mxu0 }
 0x712   :  { %v10564_v61 = vmax.f32 %v10541_v21, 0.0  ;;  %v10542_v58 = vadd.f32 %v18068_v9, %v10420_v28 }
 0x713   :  { %10589 = vst.msk [vmem:[#allocation4 + $0x10] sm:$0xff] %vm8259_vm1, %v10566_v8  ;;  %v10567_v39 = vmax.f32 %v10544_v54, 0.0 }
 0x714   :  { %10587 = vst.msk [vmem:[#allocation4] sm:$0xff] %vm8259_vm1, %v10564_v61  ;;  %v10565_v55 = vmax.f32 %v10542_v58, 0.0 }
 0x715   :  { %10590 = vst.msk [vmem:[#allocation4 + $0x18] sm:$0xff] %vm8259_vm1, %v10567_v39 }
 0x716   :  { %10588 = vst.msk [vmem:[#allocation4 + $0x8] sm:$0xff] %vm8259_vm1, %v10565_v55  ;;  %v14504_v7 = vpop.f32.mrb[4].mxu0 }
 0x717   :  { %v10547_v60 = vadd.f32 %v14504_v7, %v18068_v9  ;;  %v10433_v13 = vpop.f32.mrb[5].mxu0 }
 0x718   :  { %v10545_v14 = vadd.f32 %v18068_v9, %v10433_v13  ;;  %v14505_v16 = vpop.f32.mrb[6].mxu0 }
 0x719   :  { %v10570_v47 = vmax.f32 %v10547_v60, 0.0  ;;  %v10548_v63 = vadd.f32 %v14505_v16, %v18068_v9  ;;  %v10436_v34 = vpop.f32.mrb[7].mxu0 }
 0x71a   :  { %v10568_v56 = vmax.f32 %v10545_v14, 0.0  ;;  %v10546_v18 = vadd.f32 %v18068_v9, %v10436_v34 }
 0x71b   :  { %10593 = vst.msk [vmem:[#allocation4 + $0x30] sm:$0xff] %vm8259_vm1, %v10570_v47  ;;  %v10571_v44 = vmax.f32 %v10548_v63, 0.0 }
 0x71c   :  { %10591 = vst.msk [vmem:[#allocation4 + $0x20] sm:$0xff] %vm8259_vm1, %v10568_v56  ;;  %v10569_v32 = vmax.f32 %v10546_v18, 0.0 }
 0x71d   :  { %10594 = vst.msk [vmem:[#allocation4 + $0x38] sm:$0xff] %vm8259_vm1, %v10571_v44 }
 0x71e   :  { %10592 = vst.msk [vmem:[#allocation4 + $0x28] sm:$0xff] %vm8259_vm1, %v10569_v32  ;;  %v14508_v59 = vpop.f32.mrb[8].mxu0 }
 0x71f   :  { %v10449_v19 = vpop.f32.mrb[9].mxu0 }
 0x720   :  { %v10549_v6 = vadd.f32 %v18068_v9, %v10449_v19  ;;  %v14509_v1 = vpop.f32.mrb[10].mxu0 }
 0x721   :  { %v10452_v11 = vpop.f32.mrb[11].mxu0 }
 0x722   :  { %v10572_v53 = vmax.f32 %v10549_v6, 0.0 }
 0x724   :  { %10595 = vst.msk [vmem:[#allocation4 + $0x40] sm:$0xff] %vm8259_vm1, %v10572_v53 }
 0x726   :  { %v14512_v25 = vpop.f32.mrb[12].mxu0 }
 0x727   :  { %v10555_v17 = vadd.f32 %v14512_v25, %v18068_v9  ;;  %v10465_v27 = vpop.f32.mrb[13].mxu0 }
 0x728   :  { %v14513_v49 = vpop.f32.mrb[14].mxu0 }
 0x729   :  { %v10578_v23 = vmax.f32 %v10555_v17, 0.0  ;;  %v10556_v42 = vadd.f32 %v14513_v49, %v18068_v9  ;;  %v10468_v48 = vpop.f32.mrb[15].mxu0 }
 0x72a   :  { %v10554_v22 = vadd.f32 %v18068_v9, %v10468_v48 }
 0x72b   :  { %10601 = vst.msk [vmem:[#allocation4 + $0x70] sm:$0xff] %vm8259_vm1, %v10578_v23  ;;  %v10579_v52 = vmax.f32 %v10556_v42, 0.0 }
 0x72c   :  { %v10577_v43 = vmax.f32 %v10554_v22, 0.0 }
 0x72d   :  { %10602 = vst.msk [vmem:[#allocation4 + $0x78] sm:$0xff] %vm8259_vm1, %v10579_v52 }
 0x72e   :  { %10600 = vst.msk [vmem:[#allocation4 + $0x68] sm:$0xff] %vm8259_vm1, %v10577_v43  ;;  %v14516_v38 = vpop.f32.mrb[16].mxu0 }
 0x72f   :  { %v10559_v35 = vadd.f32 %v14516_v38, %v18068_v9  ;;  %v10481_v15 = vpop.f32.mrb[17].mxu0 }
 0x730   :  { %v10557_v30 = vadd.f32 %v18068_v9, %v10481_v15  ;;  %v14517_v12 = vpop.f32.mrb[18].mxu0 }
 0x731   :  { %v10582_v36 = vmax.f32 %v10559_v35, 0.0  ;;  %v10560_v0 = vadd.f32 %v14517_v12, %v18068_v9  ;;  %v10484_v29 = vpop.f32.mrb[19].mxu0 }
 0x732   :  { %v10580_v3 = vmax.f32 %v10557_v30, 0.0  ;;  %v10558_v40 = vadd.f32 %v18068_v9, %v10484_v29  ;;  %v10650_v26 = vld [vmem:[#allocation4 + $0x5] ss:$108 sm:$0x3] }
 0x733   :  { %10605 = vst.msk [vmem:[#allocation4 + $0x90] sm:$0xff] %vm8259_vm1, %v10582_v36  ;;  %v10583_v10 = vmax.f32 %v10560_v0, 0.0  ;;  %v10658_v57 = vrot.slane %v10650_v26, %v18098_v5  ;;  %v10667_v45 = vld [vmem:[#allocation4 + $0x7] ss:$108 sm:$0x3] }
 0x734   :  { %10603 = vst.msk [vmem:[#allocation4 + $0x80] sm:$0xff] %vm8259_vm1, %v10580_v3  ;;  %v10581_v24 = vmax.f32 %v10558_v40, 0.0  ;;  %v10684_v41 = vld [vmem:[#allocation4 + $0xc] ss:$108 sm:$0x3]  ;;  %v10675_v28 = vrot.slane %v10667_v45, %v18098_v5 }
 0x735   :  { %10606 = vst.msk [vmem:[#allocation4 + $0x98] sm:$0xff] %vm8259_vm1, %v10583_v10  ;;  %10659 = vrot.lane.b32.xlu1 %v10658_v57, %s14964_s5  ;;  %v10692_v46 = vrot.slane %v10684_v41, %v18098_v5  ;;  %v10718_v62 = vld [vmem:[#allocation4 + $0x10] ss:$108 sm:$0x3] }
 0x736   :  { %10604 = vst.msk [vmem:[#allocation4 + $0x88] sm:$0xff] %vm8259_vm1, %v10581_v24  ;;  %v14520_v21 = vpop.f32.mrb[52].mxu0  ;;  %v10701_v39 = vld [vmem:[#allocation4 + $0xe] ss:$108 sm:$0x3]  ;;  %v10726_v60 = vrot.slane %v10718_v62, %v18098_v5 }
 0x737   :  { %v10533_v8 = vadd.f32 %v14520_v21, %v18059_v51  ;;  %10693 = vrot.lane.b32.xlu0 %v10692_v46, %s14964_s5  ;;  %v10497_v54 = vpop.f32.mrb[53].mxu0  ;;  %v10647_v13 = vld [vmem:[#allocation4 + $0x4] ss:$108 sm:$0x3] }
 0x738   :  { %v10531_v61 = vadd.f32 %v10497_v54, %v18061_v20  ;;  %v14521_v58 = vpop.f32.mrb[54].mxu0  ;;  %v10615_v16 = vld [vmem:[#allocation4 + $0x1] ss:$108 sm:$0x3]  ;;  %10648 = vst.msk [vmem:[#allocation5 + $0x4] sm:$0x3] %vm10612_vm2, %v10647_v13  ;;  %v10709_v20 = vrot.slane %v10701_v39, %v18098_v5 }
 0x739   :  { %v10563_v55 = vadd.f32 %v18068_v9, %v10533_v8  ;;  %10676 = vrot.lane.b32.xlu1 %v10675_v28, %s14964_s5  ;;  %v10500_v7 = vpop.f32.mrb[55].mxu0  ;;  %v10735_v56 = vld [vmem:[#allocation4 + $0x12] ss:$108 sm:$0x3]  ;;  %v10623_v18 = vrot.slane %v10615_v16, %v18098_v5 }
 0x73a   :  { %v10561_v51 = vadd.f32 %v18068_v9, %v10531_v61  ;;  %v10532_v14 = vadd.f32 %v10500_v7, %v18063_v31  ;;  %v10633_v44 = vld [vmem:[#allocation4 + $0x3] ss:$108 sm:$0x3]  ;;  %v10743_v32 = vrot.slane %v10735_v56, %v18098_v5  ;;  %v10837_v59 = vld [vmem:[#allocation4 + $0x24] ss:$108 sm:$0x3] }
 0x73b   :  { %v10586_v47 = vmax.f32 %v10563_v55, 0.0  ;;  %10727 = vrot.lane.b32.xlu0 %v10726_v60, %s14964_s5  ;;  %v10854_v19 = vld [vmem:[#allocation4 + $0x26] ss:$108 sm:$0x3]  ;;  %v10845_v53 = vrot.slane %v10837_v59, %v18098_v5 }
 0x73c   :  { %v10584_v63 = vmax.f32 %v10561_v51, 0.0  ;;  %v10562_v34 = vadd.f32 %v18068_v9, %v10532_v14  ;;  %v10641_v9 = vrot.slane %v10633_v44, %v18098_v5  ;;  %v10681_v6 = vld [vmem:[#allocation4 + $0x8] ss:$108 sm:$0x3]  ;;  %v10862_v2 = vrot.slane %v10854_v19, %v18098_v5 }
 0x73d   :  { %10610 = vst.msk [vmem:[#allocation4 + $0xb0] sm:$0xf] %vm10609_vm3, %v10586_v47  ;;  %10710 = vrot.lane.b32.xlu1 %v10709_v20, %s14964_s5  ;;  %v10664_v1 = vld [vmem:[#allocation4 + $0x6] ss:$108 sm:$0x3] }
 0x73e   :  { %10607 = vst.msk [vmem:[#allocation4 + $0xa0] sm:$0xff] %vm8259_vm1, %v10584_v63  ;;  %v10585_v31 = vmax.f32 %v10562_v34, 0.0  ;;  %v10715_v11 = vld [vmem:[#allocation4 + $0xf] ss:$108 sm:$0x3] }
 0x73f   :  { %10624 = vrot.lane.b32.xlu0 %v10623_v18, %s14964_s5  ;;  %10682 = vst.msk [vmem:[#allocation5 + $0x8] sm:$0x3] %vm10612_vm2, %v10681_v6  ;;  %10665 = vst.msk [vmem:[#allocation5 + $0x6] sm:$0x3] %vm10612_vm2, %v10664_v1 }
 0x740   :  { %10608 = vst.msk [vmem:[#allocation4 + $0xa8] sm:$0xff] %vm8259_vm1, %v10585_v31  ;;  %v10698_v25 = vld [vmem:[#allocation4 + $0xd] ss:$108 sm:$0x3] }
 0x741   :  { %10744 = vrot.lane.b32.xlu1 %v10743_v32, %s14964_s5  ;;  %10716 = vst.msk [vmem:[#allocation5 + $0xc] sm:$0x3] %vm10612_vm2, %v10715_v11  ;;  %v10611_v17 = vld [vmem:[#allocation4] ss:$108 sm:$0x3] }
 0x742   :  { %v10871_v27 = vld [vmem:[#allocation4 + $0x28] ss:$108 sm:$0x3]  ;;  %10699 = vst.msk [vmem:[#allocation5 + $0xa] sm:$0x3] %vm10612_vm2, %v10698_v25 }
 0x743   :  { %10642 = vrot.lane.b32.xlu0 %v10641_v9, %s14964_s5  ;;  %10613 = vst.msk [vmem:[#allocation5] sm:$0x3] %vm10612_vm2, %v10611_v17  ;;  %v10732_v37 = vld [vmem:[#allocation4 + $0x11] ss:$108 sm:$0x3]  ;;  %v10879_v42 = vrot.slane %v10871_v27, %v18098_v5 }
 0x744   :  { %v10888_v33 = vld [vmem:[#allocation4 + $0x2a] ss:$108 sm:$0x3]  ;;  %10733 = vst.msk [vmem:[#allocation5 + $0xe] sm:$0x3] %vm10612_vm2, %v10732_v37 }
 0x745   :  { %10846 = vrot.lane.b32.xlu1 %v10845_v53, %s14964_s5  ;;  %v10630_v49 = vld [vmem:[#allocation4 + $0x2] ss:$108 sm:$0x3]  ;;  %v10834_v23 = vld [vmem:[#allocation4 + $0x20] ss:$108 sm:$0x3]  ;;  %v10896_v52 = vrot.slane %v10888_v33, %v18098_v5 }
 0x746   :  { %10631 = vst.msk [vmem:[#allocation5 + $0x2] sm:$0x3] %vm10612_vm2, %v10630_v49  ;;  %10835 = vst.msk [vmem:[#allocation5 + $0x1a] sm:$0x3] %vm10612_vm2, %v10834_v23 }
 0x747   :  { %10863 = vrot.lane.b32.xlu0 %v10862_v2, %s14964_s5  ;;  %v10769_v48 = vld [vmem:[#allocation4 + $0x19] ss:$108 sm:$0x3]  ;;  %v10752_v22 = vld [vmem:[#allocation4 + $0x14] ss:$108 sm:$0x3] }
 0x748   :  { %v10851_v50 = vld [vmem:[#allocation4 + $0x25] ss:$108 sm:$0x3]  ;;  %v10868_v43 = vld [vmem:[#allocation4 + $0x27] ss:$108 sm:$0x3]  ;;  %v10777_v30 = vrot.slane %v10769_v48, %v18098_v5  ;;  %v10760_v40 = vrot.slane %v10752_v22, %v18098_v5 }
 0x749   :  { %10880 = vrot.lane.b32.xlu1 %v10879_v42, %s14964_s5  ;;  %v10905_v38 = vld [vmem:[#allocation4 + $0x2c] ss:$108 sm:$0x3]  ;;  %10852 = vst.msk [vmem:[#allocation5 + $0x1c] sm:$0x3] %vm10612_vm2, %v10851_v50 }
 0x74a   :  { %10869 = vst.msk [vmem:[#allocation5 + $0x1e] sm:$0x3] %vm10612_vm2, %v10868_v43  ;;  %v10885_v35 = vld [vmem:[#allocation4 + $0x29] ss:$108 sm:$0x3]  ;;  %v10913_v41 = vrot.slane %v10905_v38, %v18098_v5 }
 0x74b   :  { %v10766_v15 = vld [vmem:[#allocation4 + $0x18] ss:$108 sm:$0x3]  ;;  %10897 = vrot.lane.b32.xlu0 %v10896_v52, %s14964_s5  ;;  %10886 = vst.msk [vmem:[#allocation5 + $0x20] sm:$0x3] %vm10612_vm2, %v10885_v35 }
 0x74c   :  { %10767 = vst.msk [vmem:[#allocation5 + $0x12] sm:$0x3] %vm10612_vm2, %v10766_v15  ;;  %v10749_v12 = vld [vmem:[#allocation4 + $0x13] ss:$108 sm:$0x3] }
 0x74d   :  { %v10902_v36 = vld [vmem:[#allocation4 + $0x2b] ss:$108 sm:$0x3]  ;;  %v10786_v0 = vld [vmem:[#allocation4 + $0x1b] ss:$108 sm:$0x3]  ;;  %10778 = vrot.lane.b32.xlu1 %v10777_v30, %s14964_s5 }
 0x74e   :  { %10750 = vst.msk [vmem:[#allocation5 + $0x10] sm:$0x3] %vm10612_vm2, %v10749_v12  ;;  %10903 = vst.msk [vmem:[#allocation5 + $0x22] sm:$0x3] %vm10612_vm2, %v10902_v36  ;;  %v10794_v54 = vrot.slane %v10786_v0, %v18098_v5 }
 0x74f   :  { %v10783_v29 = vld [vmem:[#allocation4 + $0x1a] ss:$108 sm:$0x3]  ;;  %v10936_v3 = vld [vmem:[#allocation4 + $0x32] ss:$108 sm:$0x3]  ;;  %10761 = vrot.lane.b32.xlu0 %v10760_v40, %s14964_s5 }
 0x750   :  { %10784 = vst.msk [vmem:[#allocation5 + $0x14] sm:$0x3] %vm10612_vm2, %v10783_v29  ;;  %10937 = vst.msk [vmem:[#allocation5 + $0x26] sm:$0x3] %vm10612_vm2, %v10936_v3 }
 0x751   :  { %v10919_v26 = vld [vmem:[#allocation4 + $0x30] ss:$108 sm:$0x3]  ;;  %v10939_v57 = vld [vmem:[#allocation4 + $0x33] ss:$108 sm:$0x3]  ;;  %10914 = vrot.lane.b32.xlu1 %v10913_v41, %s14964_s5 }
 0x752   :  { %v10800_v10 = vld [vmem:[#allocation4 + $0x1c] ss:$108 sm:$0x3]  ;;  %10920 = vst.msk [vmem:[#allocation5 + $0x24] sm:$0x3] %vm10612_vm2, %v10919_v26  ;;  %v10947_v39 = vrot.slane %v10939_v57, %v18098_v5 }
 0x753   :  { %10801 = vst.msk [vmem:[#allocation5 + $0x16] sm:$0x3] %vm10612_vm2, %v10800_v10  ;;  %v10817_v45 = vld [vmem:[#allocation4 + $0x1e] ss:$108 sm:$0x3]  ;;  %10795 = vrot.lane.b32.xlu0 %v10794_v54, %s14964_s5 }
 0x754   :  { %v10970_v24 = vld [vmem:[#allocation4 + $0x36] ss:$108 sm:$0x3]  ;;  %10818 = vst.msk [vmem:[#allocation5 + $0x18] sm:$0x3] %vm10612_vm2, %v10817_v45 }
 0x755   :  { %10971 = vst.msk [vmem:[#allocation5 + $0x2a] sm:$0x3] %vm10612_vm2, %v10970_v24  ;;  %v10953_v46 = vld [vmem:[#allocation4 + $0x34] ss:$108 sm:$0x3]  ;;  %10948 = vrot.lane.b32.xlu1 %v10947_v39, %s14964_s5 }
 0x756   :  { %v11004_v21 = vld [vmem:[#allocation4 + $0x3d] ss:$108 sm:$0x3]  ;;  %10954 = vst.msk [vmem:[#allocation5 + $0x28] sm:$0x3] %vm10612_vm2, %v10953_v46 }
 0x757   :  { %11005 = vst.msk [vmem:[#allocation5 + $0x2e] sm:$0x3] %vm10612_vm2, %v11004_v21  ;;  %v10987_v62 = vld [vmem:[#allocation4 + $0x38] ss:$108 sm:$0x3] }
 0x758   :  { %v11038_v8 = vld [vmem:[#allocation4 + $0x41] ss:$108 sm:$0x3]  ;;  %10988 = vst.msk [vmem:[#allocation5 + $0x2c] sm:$0x3] %vm10612_vm2, %v10987_v62 }
 0x759   :  { %11039 = vst.msk [vmem:[#allocation5 + $0x32] sm:$0x3] %vm10612_vm2, %v11038_v8  ;;  %v11021_v28 = vld [vmem:[#allocation4 + $0x3f] ss:$108 sm:$0x3] }
 0x75a   :  { %v11055_v61 = vld [vmem:[#allocation4 + $0x43] ss:$108 sm:$0x3]  ;;  %v10922_v58 = vld [vmem:[#allocation4 + $0x31] ss:$108 sm:$0x3] }
 0x75b   :  { %11022 = vst.msk [vmem:[#allocation5 + $0x30] sm:$0x3] %vm10612_vm2, %v11021_v28  ;;  %11056 = vst.msk [vmem:[#allocation5 + $0x34] sm:$0x3] %vm10612_vm2, %v11055_v61  ;;  %v10930_v7 = vrot.slane %v10922_v58, %v18098_v5 }
 0x75c   :  { %v10803_v55 = vld [vmem:[#allocation4 + $0x1d] ss:$108 sm:$0x3]  ;;  %v10820_v60 = vld [vmem:[#allocation4 + $0x1f] ss:$108 sm:$0x3] }
 0x75d   :  { %10931 = vrot.lane.b32.xlu0 %v10930_v7, %s14964_s5  ;;  %v10811_v13 = vrot.slane %v10803_v55, %v18098_v5  ;;  %v10973_v51 = vld [vmem:[#allocation4 + $0x37] ss:$108 sm:$0x3]  ;;  %v10828_v14 = vrot.slane %v10820_v60, %v18098_v5  ;;  %v10956_v16 = vld [vmem:[#allocation4 + $0x35] ss:$108 sm:$0x3] }
 0x75e   :  { %v10981_v47 = vrot.slane %v10973_v51, %v18098_v5  ;;  %v11007_v20 = vld [vmem:[#allocation4 + $0x3e] ss:$108 sm:$0x3]  ;;  %v10964_v63 = vrot.slane %v10956_v16, %v18098_v5  ;;  %v10990_v34 = vld [vmem:[#allocation4 + $0x3c] ss:$108 sm:$0x3] }
 0x75f   :  { %10812 = vrot.lane.b32.xlu1 %v10811_v13, %s14964_s5  ;;  %v11015_v56 = vrot.slane %v11007_v20, %v18098_v5  ;;  %v11041_v18 = vld [vmem:[#allocation4 + $0x42] ss:$108 sm:$0x3]  ;;  %v10998_v31 = vrot.slane %v10990_v34, %v18098_v5  ;;  %v11024_v44 = vld [vmem:[#allocation4 + $0x40] ss:$108 sm:$0x3] }
 0x760   :  { %v11049_v32 = vrot.slane %v11041_v18, %v18098_v5  ;;  %v11032_v59 = vrot.slane %v11024_v44, %v18098_v5  ;;  %v11058_v9 = vld [vmem:[#allocation4 + $0x44] ss:$108 sm:$0x3] }
 0x761   :  { %10829 = vrot.lane.b32.xlu0 %v10828_v14, %s14964_s5  ;;  %v11066_v19 = vrot.slane %v11058_v9, %v18098_v5 }
 0x763   :  { %10982 = vrot.lane.b32.xlu1 %v10981_v47, %s14964_s5 }
 0x765   :  { %10965 = vrot.lane.b32.xlu0 %v10964_v63, %s14964_s5 }
 0x767   :  { %11016 = vrot.lane.b32.xlu1 %v11015_v56, %s14964_s5 }
 0x769   :  { %10999 = vrot.lane.b32.xlu0 %v10998_v31, %s14964_s5 }
 0x76b   :  { %11050 = vrot.lane.b32.xlu1 %v11049_v32, %s14964_s5 }
 0x76d   :  { %11033 = vrot.lane.b32.xlu0 %v11032_v59, %s14964_s5 }
 0x771   :  { %11067 = vrot.lane.b32.xlu0 %v11066_v19, %s14964_s5 }
 0x7a7   :  { %v10660_v6 = vpop.permute.xlu1 %10659 }
 0x7a8   :  { %10662 = vst.msk [vmem:[#allocation5 + $0x4] sm:$0x3] %vm10627_vm4, %v10660_v6 }
 0x7a9   :  { %v10694_v1 = vpop.permute.xlu0 %10693 }
 0x7aa   :  { %10696 = vst.msk [vmem:[#allocation5 + $0x8] sm:$0x3] %vm10627_vm4, %v10694_v1 }
 0x7ab   :  { %v10677_v11 = vpop.permute.xlu1 %10676 }
 0x7ac   :  { %10679 = vst.msk [vmem:[#allocation5 + $0x6] sm:$0x3] %vm10627_vm4, %v10677_v11 }
 0x7ad   :  { %v10728_v53 = vpop.permute.xlu0 %10727 }
 0x7ae   :  { %10730 = vst.msk [vmem:[#allocation5 + $0xc] sm:$0x3] %vm10627_vm4, %v10728_v53 }
 0x7af   :  { %v10711_v25 = vpop.permute.xlu1 %10710 }
 0x7b0   :  { %10713 = vst.msk [vmem:[#allocation5 + $0xa] sm:$0x3] %vm10627_vm4, %v10711_v25 }
 0x7b1   :  { %v10625_v17 = vpop.permute.xlu0 %10624 }
 0x7b2   :  { %10628 = vst.msk [vmem:[#allocation5] sm:$0x3] %vm10627_vm4, %v10625_v17 }
 0x7b3   :  { %v10745_v27 = vpop.permute.xlu1 %10744 }
 0x7b4   :  { %10747 = vst.msk [vmem:[#allocation5 + $0xe] sm:$0x3] %vm10627_vm4, %v10745_v27 }
 0x7b5   :  { %v10643_v37 = vpop.permute.xlu0 %10642 }
 0x7b6   :  { %10645 = vst.msk [vmem:[#allocation5 + $0x2] sm:$0x3] %vm10627_vm4, %v10643_v37 }
 0x7b7   :  { %v10847_v2 = vpop.permute.xlu1 %10846 }
 0x7b8   :  { %10849 = vst.msk [vmem:[#allocation5 + $0x1a] sm:$0x3] %vm10627_vm4, %v10847_v2 }
 0x7b9   :  { %v10864_v33 = vpop.permute.xlu0 %10863 }
 0x7ba   :  { %10866 = vst.msk [vmem:[#allocation5 + $0x1c] sm:$0x3] %vm10627_vm4, %v10864_v33 }
 0x7bb   :  { %v10881_v49 = vpop.permute.xlu1 %10880 }
 0x7bc   :  { %10883 = vst.msk [vmem:[#allocation5 + $0x1e] sm:$0x3] %vm10627_vm4, %v10881_v49 }
 0x7bd   :  { %v10898_v23 = vpop.permute.xlu0 %10897 }
 0x7be   :  { %10900 = vst.msk [vmem:[#allocation5 + $0x20] sm:$0x3] %vm10627_vm4, %v10898_v23 }
 0x7bf   :  { %v10779_v42 = vpop.permute.xlu1 %10778 }
 0x7c0   :  { %10781 = vst.msk [vmem:[#allocation5 + $0x12] sm:$0x3] %vm10627_vm4, %v10779_v42 }
 0x7c1   :  { %v10762_v48 = vpop.permute.xlu0 %10761 }
 0x7c2   :  { %10764 = vst.msk [vmem:[#allocation5 + $0x10] sm:$0x3] %vm10627_vm4, %v10762_v48 }
 0x7c3   :  { %v10915_v22 = vpop.permute.xlu1 %10914 }
 0x7c4   :  { %10917 = vst.msk [vmem:[#allocation5 + $0x22] sm:$0x3] %vm10627_vm4, %v10915_v22 }
 0x7c5   :  { %v10796_v52 = vpop.permute.xlu0 %10795 }
 0x7c6   :  { %10798 = vst.msk [vmem:[#allocation5 + $0x14] sm:$0x3] %vm10627_vm4, %v10796_v52 }
 0x7c7   :  { %v10949_v50 = vpop.permute.xlu1 %10948 }
 0x7c8   :  { %10951 = vst.msk [vmem:[#allocation5 + $0x26] sm:$0x3] %vm10627_vm4, %v10949_v50 }
 0x7cf   :  { %v10932_v43 = vpop.permute.xlu0 %10931 }
 0x7d0   :  { %10934 = vst.msk [vmem:[#allocation5 + $0x24] sm:$0x3] %vm10627_vm4, %v10932_v43 }
 0x7d1   :  { %v10813_v38 = vpop.permute.xlu1 %10812 }
 0x7d2   :  { %10815 = vst.msk [vmem:[#allocation5 + $0x16] sm:$0x3] %vm10627_vm4, %v10813_v38 }
 0x7d3   :  { %v10830_v35 = vpop.permute.xlu0 %10829 }
 0x7d4   :  { %10832 = vst.msk [vmem:[#allocation5 + $0x18] sm:$0x3] %vm10627_vm4, %v10830_v35 }
 0x7d5   :  { %v10983_v15 = vpop.permute.xlu1 %10982 }
 0x7d6   :  { %10985 = vst.msk [vmem:[#allocation5 + $0x2a] sm:$0x3] %vm10627_vm4, %v10983_v15 }
 0x7d7   :  { %v10966_v30 = vpop.permute.xlu0 %10965 }
 0x7d8   :  { %10968 = vst.msk [vmem:[#allocation5 + $0x28] sm:$0x3] %vm10627_vm4, %v10966_v30 }
 0x7d9   :  { %v11017_v12 = vpop.permute.xlu1 %11016 }
 0x7da   :  { %11019 = vst.msk [vmem:[#allocation5 + $0x2e] sm:$0x3] %vm10627_vm4, %v11017_v12 }
 0x7db   :  { %v11000_v36 = vpop.permute.xlu0 %10999 }
 0x7dc   :  { %11002 = vst.msk [vmem:[#allocation5 + $0x2c] sm:$0x3] %vm10627_vm4, %v11000_v36 }
 0x7dd   :  { %v11051_v0 = vpop.permute.xlu1 %11050 }
 0x7de   :  { %11053 = vst.msk [vmem:[#allocation5 + $0x32] sm:$0x3] %vm10627_vm4, %v11051_v0 }
 0x7df   :  { %v11034_v29 = vpop.permute.xlu0 %11033 }
 0x7e0   :  { %11036 = vst.msk [vmem:[#allocation5 + $0x30] sm:$0x3] %vm10627_vm4, %v11034_v29 }
 0x7e3   :  { %v11068_v3 = vpop.permute.xlu0 %11067 }
 0x7e4   :  { %11070 = vst.msk [vmem:[#allocation5 + $0x34] sm:$0x3] %vm10627_vm4, %v11068_v3 }
 0x7e5   :  { %14941 = dma.done.wait [#allocation7], 110592 }
 0x7e6   :  { %14942 = vsyncadd [#allocation7], 4294856704  ;;  %v11262_v40 = vld [vmem:[#allocation6 + $0x8] sm:$0xff]  ;;  %v11264_v26 = vld [vmem:[#allocation6 + $0x18] sm:$0xff] }
 0x7e7   :  { %v11261_v10 = vld [vmem:[#allocation6] sm:$0xff]  ;;  %12147 = vmatprep.subr.bf16.mxu1 %v11262_v40  ;;  %12721 = vmatprep.subr.bf16.mxu0 %v11264_v26  ;;  %v11263_v57 = vld [vmem:[#allocation6 + $0x10] sm:$0xff]  ;;  %v11266_v45 = vld [vmem:[#allocation6 + $0x28] sm:$0xff] }
 0x7e8   :  { %v11268_v24 = vld [vmem:[#allocation6 + $0x38] sm:$0xff]  ;;  %12148 = vmatpush1.bf16.msra.mxu1 %v11261_v10  ;;  %12722 = vmatpush1.bf16.msra.mxu0 %v11263_v57  ;;  %v11265_v41 = vld [vmem:[#allocation6 + $0x20] sm:$0xff]  ;;  %v11267_v46 = vld [vmem:[#allocation6 + $0x30] sm:$0xff] }
 0x7e9   :  { %12149 = vmatprep.subr.bf16.mxu1 %v11266_v45  ;;  %12723 = vmatprep.subr.bf16.mxu0 %v11268_v24  ;;  %v11270_v21 = vld [vmem:[#allocation6 + $0x48] sm:$0xff]  ;;  %v11272_v62 = vld [vmem:[#allocation6 + $0x58] sm:$0xff]  ;;  %v11269_v8 = vld [vmem:[#allocation6 + $0x40] sm:$0xff] }
 0x7ea   :  { %v11271_v54 = vld [vmem:[#allocation6 + $0x50] sm:$0xff]  ;;  %v11274_v28 = vld [vmem:[#allocation6 + $0x68] sm:$0xff]  ;;  %v11276_v61 = vld [vmem:[#allocation6 + $0x78] sm:$0xff] }
 0x7eb   :  { %v11273_v58 = vld [vmem:[#allocation6 + $0x60] sm:$0xff]  ;;  %v11275_v39 = vld [vmem:[#allocation6 + $0x70] sm:$0xff]  ;;  %v11278_v55 = vld [vmem:[#allocation6 + $0x88] sm:$0xff] }
 0x7ec   :  { %12150 = vmatpush1.bf16.msra.mxu1 %v11265_v41  ;;  %12724 = vmatpush1.bf16.msra.mxu0 %v11267_v46  ;;  %v11280_v7 = vld [vmem:[#allocation6 + $0x98] sm:$0xff]  ;;  %v11277_v60 = vld [vmem:[#allocation6 + $0x80] sm:$0xff]  ;;  %v11279_v13 = vld [vmem:[#allocation6 + $0x90] sm:$0xff] }
 0x7ed   :  { %12151 = vmatprep.subr.bf16.mxu1 %v11270_v21  ;;  %12725 = vmatprep.subr.bf16.mxu0 %v11272_v62  ;;  %v11282_v51 = vld [vmem:[#allocation6 + $0xa8] sm:$0xff]  ;;  %v11284_v14 = vld [vmem:[#allocation6 + $0xb8] sm:$0xff]  ;;  %v11281_v16 = vld [vmem:[#allocation6 + $0xa0] sm:$0xff] }
 0x7ee   :  { %v11283_v47 = vld [vmem:[#allocation6 + $0xb0] sm:$0xff]  ;;  %v11286_v20 = vld [vmem:[#allocation6 + $0xc8] sm:$0xff]  ;;  %v11288_v63 = vld [vmem:[#allocation6 + $0xd8] sm:$0xff] }
 0x7ef   :  { %v18223_v34 = vld [vmem:[#allocation5] sm:$0xff]  ;;  %v11285_v18 = vld [vmem:[#allocation6 + $0xc0] sm:$0xff]  ;;  %v11292_v32 = vld [vmem:[#allocation6 + $0xf8] sm:$0xff] }
 0x7f0   :  { %12152 = vmatpush1.bf16.msra.mxu1 %v11269_v8  ;;  %12726 = vmatpush1.bf16.msra.mxu0 %v11271_v54  ;;  %v18227_v56 = vrot.slane %v18223_v34, %v18098_v5  ;;  %v11287_v31 = vld [vmem:[#allocation6 + $0xd0] sm:$0xff]  ;;  %v11290_v44 = vld [vmem:[#allocation6 + $0xe8] sm:$0xff]  ;;  %v11289_v19 = vld [vmem:[#allocation6 + $0xe0] sm:$0xff]  ;;  %v11089_v40 = vcombine.high %v18223_v34, %v18223_v34 }
 0x7f1   :  { %12153 = vmatprep.subr.bf16.mxu1 %v11274_v28  ;;  %12727 = vmatprep.subr.bf16.mxu0 %v11276_v61  ;;  %v11291_v6 = vld [vmem:[#allocation6 + $0xf0] sm:$0xff]  ;;  %v11294_v1 = vld [vmem:[#allocation6 + $0x108] sm:$0xff]  ;;  %v11296_v11 = vld [vmem:[#allocation6 + $0x118] sm:$0xff] }
 0x7f2   :  { %v11104_v59 = vcombine.high %v18227_v56, %v18227_v56  ;;  %v11293_v53 = vld [vmem:[#allocation6 + $0x100] sm:$0xff]  ;;  %v11295_v25 = vld [vmem:[#allocation6 + $0x110] sm:$0xff]  ;;  %v11298_v17 = vld [vmem:[#allocation6 + $0x128] sm:$0xff]  ;;  %v18234_v24 = vrot.slane %v11089_v40, %v18098_v5  ;;  %v11234_v54 = vpack.c.bf16 %v18227_v56, %v18227_v56 }
 0x7f3   :  { %v11300_v27 = vld [vmem:[#allocation6 + $0x138] sm:$0xff]  ;;  %v11297_v37 = vld [vmem:[#allocation6 + $0x120] sm:$0xff]  ;;  %v11299_v2 = vld [vmem:[#allocation6 + $0x130] sm:$0xff] }
 0x7f4   :  { %12154 = vmatpush1.bf16.msra.mxu1 %v11273_v58  ;;  %12728 = vmatpush1.bf16.msra.mxu0 %v11275_v39  ;;  %v11235_v9 = vpack.c.bf16 %v11104_v59, %v11104_v59  ;;  %v11302_v33 = vld [vmem:[#allocation6 + $0x148] sm:$0xff]  ;;  %v11304_v49 = vld [vmem:[#allocation6 + $0x158] sm:$0xff]  ;;  %v11301_v23 = vld [vmem:[#allocation6 + $0x140] sm:$0xff]  ;;  %v11105_v8 = vcombine.high %v18234_v24, %v18234_v24 }
 0x7f5   :  { %12155 = vmatprep.subr.bf16.mxu1 %v11278_v55  ;;  %12729 = vmatprep.subr.bf16.mxu0 %v11280_v7  ;;  %v11303_v42 = vld [vmem:[#allocation6 + $0x150] sm:$0xff]  ;;  %v11306_v48 = vld [vmem:[#allocation6 + $0x168] sm:$0xff]  ;;  %v11308_v22 = vld [vmem:[#allocation6 + $0x178] sm:$0xff] }
 0x7f6   :  { %12179 = vmatprep.mubr.bf16.mxu1 %v11235_v9  ;;  %12753 = vmatprep.mubr.bf16.mxu0 %v11235_v9  ;;  %v11305_v52 = vld [vmem:[#allocation6 + $0x160] sm:$0xff]  ;;  %v11307_v50 = vld [vmem:[#allocation6 + $0x170] sm:$0xff]  ;;  %v11310_v43 = vld [vmem:[#allocation6 + $0x188] sm:$0xff]  ;;  %v11237_v55 = vpack.c.bf16 %v11105_v8, %v11105_v8 }
 0x7f7   :  { %v11312_v38 = vld [vmem:[#allocation6 + $0x198] sm:$0xff]  ;;  %v11309_v35 = vld [vmem:[#allocation6 + $0x180] sm:$0xff]  ;;  %v11311_v15 = vld [vmem:[#allocation6 + $0x190] sm:$0xff] }
 0x7f8   :  { %12156 = vmatpush1.bf16.msra.mxu1 %v11277_v60  ;;  %12730 = vmatpush1.bf16.msra.mxu0 %v11279_v13  ;;  %v11314_v30 = vld [vmem:[#allocation6 + $0x1a8] sm:$0xff]  ;;  %v11316_v12 = vld [vmem:[#allocation6 + $0x1b8] sm:$0xff]  ;;  %v11313_v36 = vld [vmem:[#allocation6 + $0x1a0] sm:$0xff] }
 0x7f9   :  { %12157 = vmatprep.subr.bf16.mxu1 %v11282_v51  ;;  %12731 = vmatprep.subr.bf16.mxu0 %v11284_v14  ;;  %v11315_v0 = vld [vmem:[#allocation6 + $0x1b0] sm:$0xff]  ;;  %v11318_v29 = vld [vmem:[#allocation6 + $0x1c8] sm:$0xff]  ;;  %v11320_v3 = vld [vmem:[#allocation6 + $0x1d8] sm:$0xff] }
 0x7fa   :  { %v11317_v26 = vld [vmem:[#allocation6 + $0x1c0] sm:$0xff]  ;;  %v11319_v10 = vld [vmem:[#allocation6 + $0x1d0] sm:$0xff]  ;;  %v11322_v57 = vld [vmem:[#allocation6 + $0x1e8] sm:$0xff] }
 0x7fb   :  { %v11324_v45 = vld [vmem:[#allocation6 + $0x1f8] sm:$0xff]  ;;  %v11321_v41 = vld [vmem:[#allocation6 + $0x1e0] sm:$0xff]  ;;  %v11323_v46 = vld [vmem:[#allocation6 + $0x1f0] sm:$0xff] }
 0x7fc   :  { %12158 = vmatpush1.bf16.msra.mxu1 %v11281_v16  ;;  %12732 = vmatpush1.bf16.msra.mxu0 %v11283_v47  ;;  %v11326_v21 = vld [vmem:[#allocation6 + $0x208] sm:$0xff]  ;;  %v11328_v62 = vld [vmem:[#allocation6 + $0x218] sm:$0xff]  ;;  %v11325_v28 = vld [vmem:[#allocation6 + $0x200] sm:$0xff] }
 0x7fd   :  { %12159 = vmatprep.subr.bf16.mxu1 %v11286_v20  ;;  %12733 = vmatprep.subr.bf16.mxu0 %v11288_v63  ;;  %v11327_v61 = vld [vmem:[#allocation6 + $0x210] sm:$0xff]  ;;  %v11330_v58 = vld [vmem:[#allocation6 + $0x228] sm:$0xff]  ;;  %v11332_v39 = vld [vmem:[#allocation6 + $0x238] sm:$0xff] }
 0x7fe   :  { %v11329_v7 = vld [vmem:[#allocation6 + $0x220] sm:$0xff]  ;;  %v11331_v60 = vld [vmem:[#allocation6 + $0x230] sm:$0xff]  ;;  %v11334_v13 = vld [vmem:[#allocation6 + $0x248] sm:$0xff] }
 0x7ff   :  { %v11336_v51 = vld [vmem:[#allocation6 + $0x258] sm:$0xff]  ;;  %v11333_v14 = vld [vmem:[#allocation6 + $0x240] sm:$0xff]  ;;  %v11335_v16 = vld [vmem:[#allocation6 + $0x250] sm:$0xff] }
 0x800   :  { %12160 = vmatpush1.bf16.msra.mxu1 %v11285_v18  ;;  %12734 = vmatpush1.bf16.msra.mxu0 %v11287_v31  ;;  %v11338_v47 = vld [vmem:[#allocation6 + $0x268] sm:$0xff]  ;;  %v11340_v20 = vld [vmem:[#allocation6 + $0x278] sm:$0xff]  ;;  %v11337_v63 = vld [vmem:[#allocation6 + $0x260] sm:$0xff] }
 0x801   :  { %12161 = vmatprep.subr.bf16.mxu1 %v11290_v44  ;;  %12735 = vmatprep.subr.bf16.mxu0 %v11292_v32  ;;  %v11339_v34 = vld [vmem:[#allocation6 + $0x270] sm:$0xff]  ;;  %v11342_v56 = vld [vmem:[#allocation6 + $0x288] sm:$0xff]  ;;  %v11344_v18 = vld [vmem:[#allocation6 + $0x298] sm:$0xff] }
 0x802   :  { %v11341_v31 = vld [vmem:[#allocation6 + $0x280] sm:$0xff]  ;;  %v11343_v44 = vld [vmem:[#allocation6 + $0x290] sm:$0xff]  ;;  %v11346_v32 = vld [vmem:[#allocation6 + $0x2a8] sm:$0xff] }
 0x803   :  { %v11348_v59 = vld [vmem:[#allocation6 + $0x2b8] sm:$0xff]  ;;  %v11345_v9 = vld [vmem:[#allocation6 + $0x2a0] sm:$0xff]  ;;  %v11375_v40 = vld [vmem:[#allocation6 + $0x390] sm:$0xff] }
 0x804   :  { %12162 = vmatpush1.bf16.msra.mxu1 %v11289_v19  ;;  %12736 = vmatpush1.bf16.msra.mxu0 %v11291_v6  ;;  %v11347_v19 = vld [vmem:[#allocation6 + $0x2b0] sm:$0xff]  ;;  %v11350_v6 = vld [vmem:[#allocation6 + $0x2c8] sm:$0xff] }
 0x805   :  { %12163 = vmatprep.subr.bf16.mxu1 %v11294_v1  ;;  %12737 = vmatprep.subr.bf16.mxu0 %v11296_v11  ;;  %v11352_v1 = vld [vmem:[#allocation6 + $0x2d8] sm:$0xff]  ;;  %v11349_v11 = vld [vmem:[#allocation6 + $0x2c0] sm:$0xff]  ;;  %v11383_v8 = vld [vmem:[#allocation6 + $0x3d0] sm:$0xff] }
 0x808   :  { %12164 = vmatpush1.bf16.msra.mxu1 %v11293_v53  ;;  %12738 = vmatpush1.bf16.msra.mxu0 %v11295_v25  ;;  %v11351_v53 = vld [vmem:[#allocation6 + $0x2d0] sm:$0xff]  ;;  %v11354_v25 = vld [vmem:[#allocation6 + $0x2e8] sm:$0xff] }
 0x809   :  { %12165 = vmatprep.subr.bf16.mxu1 %v11298_v17  ;;  %12739 = vmatprep.subr.bf16.mxu0 %v11300_v27  ;;  %v11356_v17 = vld [vmem:[#allocation6 + $0x2f8] sm:$0xff]  ;;  %v11353_v27 = vld [vmem:[#allocation6 + $0x2e0] sm:$0xff] }
 0x80c   :  { %12166 = vmatpush1.bf16.msra.mxu1 %v11297_v37  ;;  %12740 = vmatpush1.bf16.msra.mxu0 %v11299_v2  ;;  %v11355_v37 = vld [vmem:[#allocation6 + $0x2f0] sm:$0xff]  ;;  %v11358_v2 = vld [vmem:[#allocation6 + $0x308] sm:$0xff] }
 0x80d   :  { %12167 = vmatprep.subr.bf16.mxu1 %v11302_v33  ;;  %12741 = vmatprep.subr.bf16.mxu0 %v11304_v49  ;;  %v11360_v33 = vld [vmem:[#allocation6 + $0x318] sm:$0xff]  ;;  %v11357_v49 = vld [vmem:[#allocation6 + $0x300] sm:$0xff] }
 0x810   :  { %12168 = vmatpush1.bf16.msra.mxu1 %v11301_v23  ;;  %12742 = vmatpush1.bf16.msra.mxu0 %v11303_v42  ;;  %v11359_v23 = vld [vmem:[#allocation6 + $0x310] sm:$0xff]  ;;  %v11362_v42 = vld [vmem:[#allocation6 + $0x328] sm:$0xff] }
 0x811   :  { %12169 = vmatprep.subr.bf16.mxu1 %v11306_v48  ;;  %12743 = vmatprep.subr.bf16.mxu0 %v11308_v22  ;;  %v11364_v48 = vld [vmem:[#allocation6 + $0x338] sm:$0xff]  ;;  %v11361_v22 = vld [vmem:[#allocation6 + $0x320] sm:$0xff] }
 0x814   :  { %12170 = vmatpush1.bf16.msra.mxu1 %v11305_v52  ;;  %12744 = vmatpush1.bf16.msra.mxu0 %v11307_v50  ;;  %v11363_v52 = vld [vmem:[#allocation6 + $0x330] sm:$0xff]  ;;  %v11366_v50 = vld [vmem:[#allocation6 + $0x348] sm:$0xff] }
 0x815   :  { %12171 = vmatprep.subr.bf16.mxu1 %v11310_v43  ;;  %12745 = vmatprep.subr.bf16.mxu0 %v11312_v38  ;;  %v11368_v43 = vld [vmem:[#allocation6 + $0x358] sm:$0xff]  ;;  %v11365_v38 = vld [vmem:[#allocation6 + $0x340] sm:$0xff] }
 0x818   :  { %12172 = vmatpush1.bf16.msra.mxu1 %v11309_v35  ;;  %12746 = vmatpush1.bf16.msra.mxu0 %v11311_v15  ;;  %v11367_v35 = vld [vmem:[#allocation6 + $0x350] sm:$0xff]  ;;  %v11370_v15 = vld [vmem:[#allocation6 + $0x368] sm:$0xff] }
 0x819   :  { %12173 = vmatprep.subr.bf16.mxu1 %v11314_v30  ;;  %12747 = vmatprep.subr.bf16.mxu0 %v11316_v12  ;;  %v11372_v30 = vld [vmem:[#allocation6 + $0x378] sm:$0xff]  ;;  %v11369_v12 = vld [vmem:[#allocation6 + $0x360] sm:$0xff] }
 0x81c   :  { %12174 = vmatpush1.bf16.msra.mxu1 %v11313_v36  ;;  %12748 = vmatpush1.bf16.msra.mxu0 %v11315_v0  ;;  %v11371_v36 = vld [vmem:[#allocation6 + $0x370] sm:$0xff]  ;;  %v11374_v0 = vld [vmem:[#allocation6 + $0x388] sm:$0xff] }
 0x81d   :  { %12175 = vmatprep.subr.bf16.mxu1 %v11318_v29  ;;  %12749 = vmatprep.subr.bf16.mxu0 %v11320_v3  ;;  %v11376_v29 = vld [vmem:[#allocation6 + $0x398] sm:$0xff]  ;;  %v11373_v3 = vld [vmem:[#allocation6 + $0x380] sm:$0xff] }
 0x820   :  { %12176 = vmatpush1.bf16.msra.mxu1 %v11317_v26  ;;  %12750 = vmatpush1.bf16.msra.mxu0 %v11319_v10  ;;  %v11378_v26 = vld [vmem:[#allocation6 + $0x3a8] sm:$0xff]  ;;  %v11380_v10 = vld [vmem:[#allocation6 + $0x3b8] sm:$0xff] }
 0x821   :  { %12177 = vmatprep.subr.bf16.mxu1 %v11322_v57  ;;  %12751 = vmatprep.subr.bf16.mxu0 %v11324_v45  ;;  %v11377_v57 = vld [vmem:[#allocation6 + $0x3a0] sm:$0xff]  ;;  %v11379_v45 = vld [vmem:[#allocation6 + $0x3b0] sm:$0xff] }
 0x824   :  { %12178 = vmatpush1.bf16.msra.mxu1 %v11321_v41  ;;  %12752 = vmatpush1.bf16.msra.mxu0 %v11323_v46  ;;  %v11382_v41 = vld [vmem:[#allocation6 + $0x3c8] sm:$0xff]  ;;  %v11384_v46 = vld [vmem:[#allocation6 + $0x3d8] sm:$0xff] }
 0x825   :  { %12188 = vmatprep.subr.bf16.mxu1 %v11326_v21  ;;  %12762 = vmatprep.subr.bf16.mxu0 %v11328_v62  ;;  %v18240_v21 = vld [vmem:[#allocation5 + $0x8] sm:$0xff]  ;;  %v11381_v62 = vld [vmem:[#allocation6 + $0x3c0] sm:$0xff] }
 0x827   :  { %12180 = vmatmul.mubr.bf16.vlgmr.msra.gmra.mrb[208].mxu1 %v11234_v54  ;;  %12754 = vmatmul.mubr.bf16.vlgmr.msra.gmra.mrb[56].mxu0 %v11234_v54  ;;  %v11386_v54 = vld [vmem:[#allocation6 + $0x3e8] sm:$0xff] }
 0x828   :  { %12189 = vmatpush1.bf16.msra.mxu1 %v11325_v28  ;;  %12763 = vmatpush1.bf16.msra.mxu0 %v11327_v61  ;;  %v11388_v28 = vld [vmem:[#allocation6 + $0x3f8] sm:$0xff]  ;;  %v18244_v61 = vrot.slane %v18240_v21, %v18098_v5 }
 0x829   :  { %12190 = vmatprep.subr.bf16.mxu1 %v11330_v58  ;;  %12764 = vmatprep.subr.bf16.mxu0 %v11332_v39  ;;  %v11385_v58 = vld [vmem:[#allocation6 + $0x3e0] sm:$0xff]  ;;  %v11387_v39 = vld [vmem:[#allocation6 + $0x3f0] sm:$0xff] }
 0x82a   :  { %12220 = vmatprep.mubr.bf16.mxu1 %v11237_v55  ;;  %12794 = vmatprep.mubr.bf16.mxu0 %v11237_v55  ;;  %v11390_v55 = vld [vmem:[#allocation6 + $0x408] sm:$0xff] }
 0x82c   :  { %12191 = vmatpush1.bf16.msra.mxu1 %v11329_v7  ;;  %12765 = vmatpush1.bf16.msra.mxu0 %v11331_v60  ;;  %v11392_v7 = vld [vmem:[#allocation6 + $0x418] sm:$0xff]  ;;  %v11121_v60 = vcombine.high %v18244_v61, %v18244_v61 }
 0x82d   :  { %12192 = vmatprep.subr.bf16.mxu1 %v11334_v13  ;;  %12766 = vmatprep.subr.bf16.mxu0 %v11336_v51  ;;  %v11236_v13 = vpack.c.bf16 %v18234_v24, %v18234_v24  ;;  %v11389_v51 = vld [vmem:[#allocation6 + $0x400] sm:$0xff] }
 0x82e   :  { %v11397_v24 = vld [vmem:[#allocation6 + $0x440] sm:$0xff] }
 0x830   :  { %12193 = vmatpush1.bf16.msra.mxu1 %v11333_v14  ;;  %12767 = vmatpush1.bf16.msra.mxu0 %v11335_v16  ;;  %v11391_v14 = vld [vmem:[#allocation6 + $0x410] sm:$0xff]  ;;  %v11394_v16 = vld [vmem:[#allocation6 + $0x428] sm:$0xff] }
 0x831   :  { %12194 = vmatprep.subr.bf16.mxu1 %v11338_v47  ;;  %12768 = vmatprep.subr.bf16.mxu0 %v11340_v20  ;;  %v11396_v47 = vld [vmem:[#allocation6 + $0x438] sm:$0xff]  ;;  %v11239_v20 = vpack.c.bf16 %v11121_v60, %v11121_v60  ;;  %v11445_v60 = vld [vmem:[#allocation6 + $0x5c0] sm:$0xff] }
 0x834   :  { %12195 = vmatpush1.bf16.msra.mxu1 %v11337_v63  ;;  %12769 = vmatpush1.bf16.msra.mxu0 %v11339_v34  ;;  %v11393_v63 = vld [vmem:[#allocation6 + $0x420] sm:$0xff]  ;;  %v11395_v34 = vld [vmem:[#allocation6 + $0x430] sm:$0xff] }
 0x835   :  { %12196 = vmatprep.subr.bf16.mxu1 %v11342_v56  ;;  %12770 = vmatprep.subr.bf16.mxu0 %v11344_v18  ;;  %v11398_v56 = vld [vmem:[#allocation6 + $0x448] sm:$0xff]  ;;  %v11400_v18 = vld [vmem:[#allocation6 + $0x458] sm:$0xff] }
 0x838   :  { %12197 = vmatpush1.bf16.msra.mxu1 %v11341_v31  ;;  %12771 = vmatpush1.bf16.msra.mxu0 %v11343_v44  ;;  %v11399_v31 = vld [vmem:[#allocation6 + $0x450] sm:$0xff]  ;;  %v11402_v44 = vld [vmem:[#allocation6 + $0x468] sm:$0xff] }
 0x839   :  { %12198 = vmatprep.subr.bf16.mxu1 %v11346_v32  ;;  %12772 = vmatprep.subr.bf16.mxu0 %v11348_v59  ;;  %v11404_v32 = vld [vmem:[#allocation6 + $0x478] sm:$0xff]  ;;  %v11401_v59 = vld [vmem:[#allocation6 + $0x460] sm:$0xff] }
 0x83c   :  { %12199 = vmatpush1.bf16.msra.mxu1 %v11345_v9  ;;  %12773 = vmatpush1.bf16.msra.mxu0 %v11347_v19  ;;  %v11403_v9 = vld [vmem:[#allocation6 + $0x470] sm:$0xff]  ;;  %v11406_v19 = vld [vmem:[#allocation6 + $0x488] sm:$0xff] }
 0x83d   :  { %12200 = vmatprep.subr.bf16.mxu1 %v11350_v6  ;;  %12774 = vmatprep.subr.bf16.mxu0 %v11352_v1  ;;  %v11408_v6 = vld [vmem:[#allocation6 + $0x498] sm:$0xff]  ;;  %v11405_v1 = vld [vmem:[#allocation6 + $0x480] sm:$0xff] }
 0x840   :  { %12201 = vmatpush1.bf16.msra.mxu1 %v11349_v11  ;;  %12775 = vmatpush1.bf16.msra.mxu0 %v11351_v53  ;;  %v11407_v11 = vld [vmem:[#allocation6 + $0x490] sm:$0xff]  ;;  %v11410_v53 = vld [vmem:[#allocation6 + $0x4a8] sm:$0xff] }
 0x841   :  { %12202 = vmatprep.subr.bf16.mxu1 %v11354_v25  ;;  %12776 = vmatprep.subr.bf16.mxu0 %v11356_v17  ;;  %v11412_v25 = vld [vmem:[#allocation6 + $0x4b8] sm:$0xff]  ;;  %v11409_v17 = vld [vmem:[#allocation6 + $0x4a0] sm:$0xff] }
 0x844   :  { %12203 = vmatpush1.bf16.msra.mxu1 %v11353_v27  ;;  %12777 = vmatpush1.bf16.msra.mxu0 %v11355_v37  ;;  %v11411_v27 = vld [vmem:[#allocation6 + $0x4b0] sm:$0xff]  ;;  %v11414_v37 = vld [vmem:[#allocation6 + $0x4c8] sm:$0xff] }
 0x845   :  { %12204 = vmatprep.subr.bf16.mxu1 %v11358_v2  ;;  %12778 = vmatprep.subr.bf16.mxu0 %v11360_v33  ;;  %v11416_v2 = vld [vmem:[#allocation6 + $0x4d8] sm:$0xff]  ;;  %v11413_v33 = vld [vmem:[#allocation6 + $0x4c0] sm:$0xff] }
 0x848   :  { %12205 = vmatpush1.bf16.msra.mxu1 %v11357_v49  ;;  %12779 = vmatpush1.bf16.msra.mxu0 %v11359_v23  ;;  %v11415_v49 = vld [vmem:[#allocation6 + $0x4d0] sm:$0xff]  ;;  %v11418_v23 = vld [vmem:[#allocation6 + $0x4e8] sm:$0xff] }
 0x849   :  { %12206 = vmatprep.subr.bf16.mxu1 %v11362_v42  ;;  %12780 = vmatprep.subr.bf16.mxu0 %v11364_v48  ;;  %v11420_v42 = vld [vmem:[#allocation6 + $0x4f8] sm:$0xff]  ;;  %v11417_v48 = vld [vmem:[#allocation6 + $0x4e0] sm:$0xff] }
 0x84c   :  { %12207 = vmatpush1.bf16.msra.mxu1 %v11361_v22  ;;  %12781 = vmatpush1.bf16.msra.mxu0 %v11363_v52  ;;  %v11419_v22 = vld [vmem:[#allocation6 + $0x4f0] sm:$0xff]  ;;  %v11422_v52 = vld [vmem:[#allocation6 + $0x508] sm:$0xff] }
 0x84d   :  { %12208 = vmatprep.subr.bf16.mxu1 %v11366_v50  ;;  %12782 = vmatprep.subr.bf16.mxu0 %v11368_v43  ;;  %v11424_v50 = vld [vmem:[#allocation6 + $0x518] sm:$0xff]  ;;  %v11421_v43 = vld [vmem:[#allocation6 + $0x500] sm:$0xff] }
 0x850   :  { %12209 = vmatpush1.bf16.msra.mxu1 %v11365_v38  ;;  %12783 = vmatpush1.bf16.msra.mxu0 %v11367_v35  ;;  %v11423_v38 = vld [vmem:[#allocation6 + $0x510] sm:$0xff]  ;;  %v11426_v35 = vld [vmem:[#allocation6 + $0x528] sm:$0xff] }
 0x851   :  { %12210 = vmatprep.subr.bf16.mxu1 %v11370_v15  ;;  %12784 = vmatprep.subr.bf16.mxu0 %v11372_v30  ;;  %v11428_v15 = vld [vmem:[#allocation6 + $0x538] sm:$0xff]  ;;  %v11425_v30 = vld [vmem:[#allocation6 + $0x520] sm:$0xff] }
 0x854   :  { %12211 = vmatpush1.bf16.msra.mxu1 %v11369_v12  ;;  %12785 = vmatpush1.bf16.msra.mxu0 %v11371_v36  ;;  %v11427_v12 = vld [vmem:[#allocation6 + $0x530] sm:$0xff]  ;;  %v11430_v36 = vld [vmem:[#allocation6 + $0x548] sm:$0xff] }
 0x855   :  { %12212 = vmatprep.subr.bf16.mxu1 %v11374_v0  ;;  %12786 = vmatprep.subr.bf16.mxu0 %v11376_v29  ;;  %v11432_v0 = vld [vmem:[#allocation6 + $0x558] sm:$0xff]  ;;  %v11429_v29 = vld [vmem:[#allocation6 + $0x540] sm:$0xff] }
 0x858   :  { %12213 = vmatpush1.bf16.msra.mxu1 %v11373_v3  ;;  %12787 = vmatpush1.bf16.msra.mxu0 %v11375_v40  ;;  %v11431_v3 = vld [vmem:[#allocation6 + $0x550] sm:$0xff]  ;;  %v11434_v40 = vld [vmem:[#allocation6 + $0x568] sm:$0xff] }
 0x859   :  { %12214 = vmatprep.subr.bf16.mxu1 %v11378_v26  ;;  %12788 = vmatprep.subr.bf16.mxu0 %v11380_v10  ;;  %v11436_v26 = vld [vmem:[#allocation6 + $0x578] sm:$0xff]  ;;  %v11433_v10 = vld [vmem:[#allocation6 + $0x560] sm:$0xff] }
 0x85c   :  { %12215 = vmatpush1.bf16.msra.mxu1 %v11377_v57  ;;  %12789 = vmatpush1.bf16.msra.mxu0 %v11379_v45  ;;  %v11435_v57 = vld [vmem:[#allocation6 + $0x570] sm:$0xff]  ;;  %v11438_v45 = vld [vmem:[#allocation6 + $0x588] sm:$0xff] }
 0x85d   :  { %12216 = vmatprep.subr.bf16.mxu1 %v11382_v41  ;;  %12790 = vmatprep.subr.bf16.mxu0 %v11384_v46  ;;  %v11440_v41 = vld [vmem:[#allocation6 + $0x598] sm:$0xff]  ;;  %v11437_v46 = vld [vmem:[#allocation6 + $0x580] sm:$0xff] }
 0x860   :  { %12217 = vmatpush1.bf16.msra.mxu1 %v11381_v62  ;;  %12791 = vmatpush1.bf16.msra.mxu0 %v11383_v8  ;;  %v11439_v62 = vld [vmem:[#allocation6 + $0x590] sm:$0xff]  ;;  %v11442_v8 = vld [vmem:[#allocation6 + $0x5a8] sm:$0xff] }
 0x861   :  { %12218 = vmatprep.subr.bf16.mxu1 %v11386_v54  ;;  %12792 = vmatprep.subr.bf16.mxu0 %v11388_v28  ;;  %v11444_v54 = vld [vmem:[#allocation6 + $0x5b8] sm:$0xff]  ;;  %v11441_v28 = vld [vmem:[#allocation6 + $0x5a0] sm:$0xff] }
 0x864   :  { %12219 = vmatpush1.bf16.msra.mxu1 %v11385_v58  ;;  %12793 = vmatpush1.bf16.msra.mxu0 %v11387_v39  ;;  %v11443_v58 = vld [vmem:[#allocation6 + $0x5b0] sm:$0xff]  ;;  %v11446_v39 = vld [vmem:[#allocation6 + $0x5c8] sm:$0xff] }
 0x865   :  { %12229 = vmatprep.subr.bf16.mxu1 %v11390_v55  ;;  %12803 = vmatprep.subr.bf16.mxu0 %v11392_v7  ;;  %v11448_v55 = vld [vmem:[#allocation6 + $0x5d8] sm:$0xff]  ;;  %v11106_v7 = vcombine.high %v18240_v21, %v18240_v21 }
 0x867   :  { %12221 = vmatmul.mubr.bf16.vlgmr.msra.gmra.mrb[208].mxu1 %v11236_v13  ;;  %12795 = vmatmul.mubr.bf16.vlgmr.msra.gmra.mrb[56].mxu0 %v11236_v13  ;;  %v11447_v13 = vld [vmem:[#allocation6 + $0x5d0] sm:$0xff] }
 0x868   :  { %12230 = vmatpush1.bf16.msra.mxu1 %v11389_v51  ;;  %12804 = vmatpush1.bf16.msra.mxu0 %v11391_v14  ;;  %v11450_v51 = vld [vmem:[#allocation6 + $0x5e8] sm:$0xff]  ;;  %v11452_v14 = vld [vmem:[#allocation6 + $0x5f8] sm:$0xff] }
 0x869   :  { %12231 = vmatprep.subr.bf16.mxu1 %v11394_v16  ;;  %12805 = vmatprep.subr.bf16.mxu0 %v11396_v47  ;;  %v18253_v16 = vrot.slane %v11106_v7, %v18098_v5  ;;  %v11449_v47 = vld [vmem:[#allocation6 + $0x5e0] sm:$0xff]  ;;  %v11503_v7 = vld [vmem:[#allocation6 + $0x790] sm:$0xff] }
 0x86a   :  { %12261 = vmatprep.mubr.bf16.mxu1 %v11239_v20  ;;  %12835 = vmatprep.mubr.bf16.mxu0 %v11239_v20  ;;  %v11451_v20 = vld [vmem:[#allocation6 + $0x5f0] sm:$0xff] }
 0x86b   :  { %v11122_v21 = vcombine.high %v18253_v16, %v18253_v16 }
 0x86c   :  { %12232 = vmatpush1.bf16.msra.mxu1 %v11393_v63  ;;  %12806 = vmatpush1.bf16.msra.mxu0 %v11395_v34  ;;  %v11454_v63 = vld [vmem:[#allocation6 + $0x608] sm:$0xff]  ;;  %v11456_v34 = vld [vmem:[#allocation6 + $0x618] sm:$0xff] }
 0x86d   :  { %12233 = vmatprep.subr.bf16.mxu1 %v11398_v56  ;;  %12807 = vmatprep.subr.bf16.mxu0 %v11400_v18  ;;  %v11238_v56 = vpack.c.bf16 %v18244_v61, %v18244_v61  ;;  %v11453_v18 = vld [vmem:[#allocation6 + $0x600] sm:$0xff] }
 0x86e   :  { %v11461_v61 = vld [vmem:[#allocation6 + $0x640] sm:$0xff] }
 0x870   :  { %12234 = vmatpush1.bf16.msra.mxu1 %v11397_v24  ;;  %12808 = vmatpush1.bf16.msra.mxu0 %v11399_v31  ;;  %v11455_v24 = vld [vmem:[#allocation6 + $0x610] sm:$0xff]  ;;  %v11458_v31 = vld [vmem:[#allocation6 + $0x628] sm:$0xff] }
 0x871   :  { %12235 = vmatprep.subr.bf16.mxu1 %v11402_v44  ;;  %12809 = vmatprep.subr.bf16.mxu0 %v11404_v32  ;;  %v11460_v44 = vld [vmem:[#allocation6 + $0x638] sm:$0xff]  ;;  %v11241_v32 = vpack.c.bf16 %v11122_v21, %v11122_v21  ;;  %v11511_v21 = vld [vmem:[#allocation6 + $0x7d0] sm:$0xff] }
 0x874   :  { %12236 = vmatpush1.bf16.msra.mxu1 %v11401_v59  ;;  %12810 = vmatpush1.bf16.msra.mxu0 %v11403_v9  ;;  %v11457_v59 = vld [vmem:[#allocation6 + $0x620] sm:$0xff]  ;;  %v11459_v9 = vld [vmem:[#allocation6 + $0x630] sm:$0xff] }
 0x875   :  { %12237 = vmatprep.subr.bf16.mxu1 %v11406_v19  ;;  %12811 = vmatprep.subr.bf16.mxu0 %v11408_v6  ;;  %v11462_v19 = vld [vmem:[#allocation6 + $0x648] sm:$0xff]  ;;  %v11464_v6 = vld [vmem:[#allocation6 + $0x658] sm:$0xff] }
 0x878   :  { %12238 = vmatpush1.bf16.msra.mxu1 %v11405_v1  ;;  %12812 = vmatpush1.bf16.msra.mxu0 %v11407_v11  ;;  %v11463_v1 = vld [vmem:[#allocation6 + $0x650] sm:$0xff]  ;;  %v11466_v11 = vld [vmem:[#allocation6 + $0x668] sm:$0xff] }
 0x879   :  { %12239 = vmatprep.subr.bf16.mxu1 %v11410_v53  ;;  %12813 = vmatprep.subr.bf16.mxu0 %v11412_v25  ;;  %v11468_v53 = vld [vmem:[#allocation6 + $0x678] sm:$0xff]  ;;  %v11465_v25 = vld [vmem:[#allocation6 + $0x660] sm:$0xff] }
 0x87c   :  { %12240 = vmatpush1.bf16.msra.mxu1 %v11409_v17  ;;  %12814 = vmatpush1.bf16.msra.mxu0 %v11411_v27  ;;  %v11467_v17 = vld [vmem:[#allocation6 + $0x670] sm:$0xff]  ;;  %v11470_v27 = vld [vmem:[#allocation6 + $0x688] sm:$0xff] }
 0x87d   :  { %12241 = vmatprep.subr.bf16.mxu1 %v11414_v37  ;;  %12815 = vmatprep.subr.bf16.mxu0 %v11416_v2  ;;  %v11472_v37 = vld [vmem:[#allocation6 + $0x698] sm:$0xff]  ;;  %v11469_v2 = vld [vmem:[#allocation6 + $0x680] sm:$0xff] }
 0x880   :  { %12242 = vmatpush1.bf16.msra.mxu1 %v11413_v33  ;;  %12816 = vmatpush1.bf16.msra.mxu0 %v11415_v49  ;;  %v11471_v33 = vld [vmem:[#allocation6 + $0x690] sm:$0xff]  ;;  %v11474_v49 = vld [vmem:[#allocation6 + $0x6a8] sm:$0xff] }
 0x881   :  { %12243 = vmatprep.subr.bf16.mxu1 %v11418_v23  ;;  %12817 = vmatprep.subr.bf16.mxu0 %v11420_v42  ;;  %v11476_v23 = vld [vmem:[#allocation6 + $0x6b8] sm:$0xff]  ;;  %v11473_v42 = vld [vmem:[#allocation6 + $0x6a0] sm:$0xff] }
 0x884   :  { %12244 = vmatpush1.bf16.msra.mxu1 %v11417_v48  ;;  %12818 = vmatpush1.bf16.msra.mxu0 %v11419_v22  ;;  %v11475_v48 = vld [vmem:[#allocation6 + $0x6b0] sm:$0xff]  ;;  %v11478_v22 = vld [vmem:[#allocation6 + $0x6c8] sm:$0xff] }
 0x885   :  { %12245 = vmatprep.subr.bf16.mxu1 %v11422_v52  ;;  %12819 = vmatprep.subr.bf16.mxu0 %v11424_v50  ;;  %v11480_v52 = vld [vmem:[#allocation6 + $0x6d8] sm:$0xff]  ;;  %v11477_v50 = vld [vmem:[#allocation6 + $0x6c0] sm:$0xff] }
 0x888   :  { %12246 = vmatpush1.bf16.msra.mxu1 %v11421_v43  ;;  %12820 = vmatpush1.bf16.msra.mxu0 %v11423_v38  ;;  %v11479_v43 = vld [vmem:[#allocation6 + $0x6d0] sm:$0xff]  ;;  %v11482_v38 = vld [vmem:[#allocation6 + $0x6e8] sm:$0xff] }
 0x889   :  { %12247 = vmatprep.subr.bf16.mxu1 %v11426_v35  ;;  %12821 = vmatprep.subr.bf16.mxu0 %v11428_v15  ;;  %v11484_v35 = vld [vmem:[#allocation6 + $0x6f8] sm:$0xff]  ;;  %v11481_v15 = vld [vmem:[#allocation6 + $0x6e0] sm:$0xff] }
 0x88c   :  { %12248 = vmatpush1.bf16.msra.mxu1 %v11425_v30  ;;  %12822 = vmatpush1.bf16.msra.mxu0 %v11427_v12  ;;  %v11483_v30 = vld [vmem:[#allocation6 + $0x6f0] sm:$0xff]  ;;  %v11486_v12 = vld [vmem:[#allocation6 + $0x708] sm:$0xff] }
 0x88d   :  { %12249 = vmatprep.subr.bf16.mxu1 %v11430_v36  ;;  %12823 = vmatprep.subr.bf16.mxu0 %v11432_v0  ;;  %v11488_v36 = vld [vmem:[#allocation6 + $0x718] sm:$0xff]  ;;  %v11485_v0 = vld [vmem:[#allocation6 + $0x700] sm:$0xff] }
 0x890   :  { %12250 = vmatpush1.bf16.msra.mxu1 %v11429_v29  ;;  %12824 = vmatpush1.bf16.msra.mxu0 %v11431_v3  ;;  %v11487_v29 = vld [vmem:[#allocation6 + $0x710] sm:$0xff]  ;;  %v11490_v3 = vld [vmem:[#allocation6 + $0x728] sm:$0xff] }
 0x891   :  { %12251 = vmatprep.subr.bf16.mxu1 %v11434_v40  ;;  %12825 = vmatprep.subr.bf16.mxu0 %v11436_v26  ;;  %v11492_v40 = vld [vmem:[#allocation6 + $0x738] sm:$0xff]  ;;  %v11489_v26 = vld [vmem:[#allocation6 + $0x720] sm:$0xff] }
 0x894   :  { %12252 = vmatpush1.bf16.msra.mxu1 %v11433_v10  ;;  %12826 = vmatpush1.bf16.msra.mxu0 %v11435_v57  ;;  %v11491_v10 = vld [vmem:[#allocation6 + $0x730] sm:$0xff]  ;;  %v11494_v57 = vld [vmem:[#allocation6 + $0x748] sm:$0xff] }
 0x895   :  { %12253 = vmatprep.subr.bf16.mxu1 %v11438_v45  ;;  %12827 = vmatprep.subr.bf16.mxu0 %v11440_v41  ;;  %v11496_v45 = vld [vmem:[#allocation6 + $0x758] sm:$0xff]  ;;  %v11493_v41 = vld [vmem:[#allocation6 + $0x740] sm:$0xff] }
 0x898   :  { %12254 = vmatpush1.bf16.msra.mxu1 %v11437_v46  ;;  %12828 = vmatpush1.bf16.msra.mxu0 %v11439_v62  ;;  %v11495_v46 = vld [vmem:[#allocation6 + $0x750] sm:$0xff]  ;;  %v11498_v62 = vld [vmem:[#allocation6 + $0x768] sm:$0xff] }
 0x899   :  { %12255 = vmatprep.subr.bf16.mxu1 %v11442_v8  ;;  %12829 = vmatprep.subr.bf16.mxu0 %v11444_v54  ;;  %v11500_v8 = vld [vmem:[#allocation6 + $0x778] sm:$0xff]  ;;  %v11497_v54 = vld [vmem:[#allocation6 + $0x760] sm:$0xff] }
 0x89c   :  { %12256 = vmatpush1.bf16.msra.mxu1 %v11441_v28  ;;  %12830 = vmatpush1.bf16.msra.mxu0 %v11443_v58  ;;  %v11499_v28 = vld [vmem:[#allocation6 + $0x770] sm:$0xff]  ;;  %v11502_v58 = vld [vmem:[#allocation6 + $0x788] sm:$0xff] }
 0x89d   :  { %12257 = vmatprep.subr.bf16.mxu1 %v11446_v39  ;;  %12831 = vmatprep.subr.bf16.mxu0 %v11448_v55  ;;  %v11504_v39 = vld [vmem:[#allocation6 + $0x798] sm:$0xff]  ;;  %v11501_v55 = vld [vmem:[#allocation6 + $0x780] sm:$0xff] }
 0x8a0   :  { %12258 = vmatpush1.bf16.msra.mxu1 %v11445_v60  ;;  %12832 = vmatpush1.bf16.msra.mxu0 %v11447_v13  ;;  %v11506_v60 = vld [vmem:[#allocation6 + $0x7a8] sm:$0xff]  ;;  %v11508_v13 = vld [vmem:[#allocation6 + $0x7b8] sm:$0xff] }
 0x8a1   :  { %12259 = vmatprep.subr.bf16.mxu1 %v11450_v51  ;;  %12833 = vmatprep.subr.bf16.mxu0 %v11452_v14  ;;  %v11505_v51 = vld [vmem:[#allocation6 + $0x7a0] sm:$0xff]  ;;  %v11507_v14 = vld [vmem:[#allocation6 + $0x7b0] sm:$0xff] }
 0x8a4   :  { %12260 = vmatpush1.bf16.msra.mxu1 %v11449_v47  ;;  %12834 = vmatpush1.bf16.msra.mxu0 %v11451_v20  ;;  %v11510_v47 = vld [vmem:[#allocation6 + $0x7c8] sm:$0xff]  ;;  %v11512_v20 = vld [vmem:[#allocation6 + $0x7d8] sm:$0xff] }
 0x8a5   :  { %12270 = vmatprep.subr.bf16.mxu1 %v11454_v63  ;;  %12844 = vmatprep.subr.bf16.mxu0 %v11456_v34  ;;  %v18259_v63 = vld [vmem:[#allocation5 + $0x10] sm:$0xff] }
 0x8a6   :  { %v11509_v34 = vld [vmem:[#allocation6 + $0x7c0] sm:$0xff] }
 0x8a7   :  { %12262 = vmatmul.mubr.bf16.vlgmr.msra.gmra.mrb[208].mxu1 %v11238_v56  ;;  %12836 = vmatmul.mubr.bf16.vlgmr.msra.gmra.mrb[56].mxu0 %v11238_v56  ;;  %v11514_v56 = vld [vmem:[#allocation6 + $0x7e8] sm:$0xff] }
 0x8a8   :  { %12271 = vmatpush1.bf16.msra.mxu1 %v11453_v18  ;;  %12845 = vmatpush1.bf16.msra.mxu0 %v11455_v24  ;;  %v11516_v18 = vld [vmem:[#allocation6 + $0x7f8] sm:$0xff]  ;;  %v18263_v24 = vrot.slane %v18259_v63, %v18098_v5 }
 0x8a9   :  { %12272 = vmatprep.subr.bf16.mxu1 %v11458_v31  ;;  %12846 = vmatprep.subr.bf16.mxu0 %v11460_v44  ;;  %v11513_v31 = vld [vmem:[#allocation6 + $0x7e0] sm:$0xff]  ;;  %v11515_v44 = vld [vmem:[#allocation6 + $0x7f0] sm:$0xff] }
 0x8aa   :  { %12302 = vmatprep.mubr.bf16.mxu1 %v11241_v32  ;;  %12876 = vmatprep.mubr.bf16.mxu0 %v11241_v32  ;;  %v11518_v32 = vld [vmem:[#allocation6 + $0x808] sm:$0xff] }
 0x8ac   :  { %12273 = vmatpush1.bf16.msra.mxu1 %v11457_v59  ;;  %12847 = vmatpush1.bf16.msra.mxu0 %v11459_v9  ;;  %v11520_v59 = vld [vmem:[#allocation6 + $0x818] sm:$0xff]  ;;  %v11138_v9 = vcombine.high %v18263_v24, %v18263_v24 }
 0x8ad   :  { %12274 = vmatprep.subr.bf16.mxu1 %v11462_v19  ;;  %12848 = vmatprep.subr.bf16.mxu0 %v11464_v6  ;;  %v11240_v19 = vpack.c.bf16 %v18253_v16, %v18253_v16  ;;  %v11517_v6 = vld [vmem:[#allocation6 + $0x800] sm:$0xff] }
 0x8ae   :  { %v11525_v16 = vld [vmem:[#allocation6 + $0x840] sm:$0xff] }
 0x8b0   :  { %12275 = vmatpush1.bf16.msra.mxu1 %v11461_v61  ;;  %12849 = vmatpush1.bf16.msra.mxu0 %v11463_v1  ;;  %v11519_v61 = vld [vmem:[#allocation6 + $0x810] sm:$0xff]  ;;  %v11522_v1 = vld [vmem:[#allocation6 + $0x828] sm:$0xff] }
 0x8b1   :  { %12276 = vmatprep.subr.bf16.mxu1 %v11466_v11  ;;  %12850 = vmatprep.subr.bf16.mxu0 %v11468_v53  ;;  %v11524_v11 = vld [vmem:[#allocation6 + $0x838] sm:$0xff]  ;;  %v11243_v53 = vpack.c.bf16 %v11138_v9, %v11138_v9  ;;  %v11573_v9 = vld [vmem:[#allocation6 + $0x9c0] sm:$0xff] }
 0x8b4   :  { %12277 = vmatpush1.bf16.msra.mxu1 %v11465_v25  ;;  %12851 = vmatpush1.bf16.msra.mxu0 %v11467_v17  ;;  %v11521_v25 = vld [vmem:[#allocation6 + $0x820] sm:$0xff]  ;;  %v11523_v17 = vld [vmem:[#allocation6 + $0x830] sm:$0xff] }
 0x8b5   :  { %12278 = vmatprep.subr.bf16.mxu1 %v11470_v27  ;;  %12852 = vmatprep.subr.bf16.mxu0 %v11472_v37  ;;  %v11526_v27 = vld [vmem:[#allocation6 + $0x848] sm:$0xff]  ;;  %v11528_v37 = vld [vmem:[#allocation6 + $0x858] sm:$0xff] }
 0x8b8   :  { %12279 = vmatpush1.bf16.msra.mxu1 %v11469_v2  ;;  %12853 = vmatpush1.bf16.msra.mxu0 %v11471_v33  ;;  %v11527_v2 = vld [vmem:[#allocation6 + $0x850] sm:$0xff]  ;;  %v11530_v33 = vld [vmem:[#allocation6 + $0x868] sm:$0xff] }
 0x8b9   :  { %12280 = vmatprep.subr.bf16.mxu1 %v11474_v49  ;;  %12854 = vmatprep.subr.bf16.mxu0 %v11476_v23  ;;  %v11532_v49 = vld [vmem:[#allocation6 + $0x878] sm:$0xff]  ;;  %v11529_v23 = vld [vmem:[#allocation6 + $0x860] sm:$0xff] }
 0x8bc   :  { %12281 = vmatpush1.bf16.msra.mxu1 %v11473_v42  ;;  %12855 = vmatpush1.bf16.msra.mxu0 %v11475_v48  ;;  %v11531_v42 = vld [vmem:[#allocation6 + $0x870] sm:$0xff]  ;;  %v11534_v48 = vld [vmem:[#allocation6 + $0x888] sm:$0xff] }
 0x8bd   :  { %12282 = vmatprep.subr.bf16.mxu1 %v11478_v22  ;;  %12856 = vmatprep.subr.bf16.mxu0 %v11480_v52  ;;  %v11536_v22 = vld [vmem:[#allocation6 + $0x898] sm:$0xff]  ;;  %v11533_v52 = vld [vmem:[#allocation6 + $0x880] sm:$0xff] }
 0x8c0   :  { %12283 = vmatpush1.bf16.msra.mxu1 %v11477_v50  ;;  %12857 = vmatpush1.bf16.msra.mxu0 %v11479_v43  ;;  %v11535_v50 = vld [vmem:[#allocation6 + $0x890] sm:$0xff]  ;;  %v11538_v43 = vld [vmem:[#allocation6 + $0x8a8] sm:$0xff] }
 0x8c1   :  { %12284 = vmatprep.subr.bf16.mxu1 %v11482_v38  ;;  %12858 = vmatprep.subr.bf16.mxu0 %v11484_v35  ;;  %v11540_v38 = vld [vmem:[#allocation6 + $0x8b8] sm:$0xff]  ;;  %v11537_v35 = vld [vmem:[#allocation6 + $0x8a0] sm:$0xff] }
 0x8c4   :  { %12285 = vmatpush1.bf16.msra.mxu1 %v11481_v15  ;;  %12859 = vmatpush1.bf16.msra.mxu0 %v11483_v30  ;;  %v11539_v15 = vld [vmem:[#allocation6 + $0x8b0] sm:$0xff]  ;;  %v11542_v30 = vld [vmem:[#allocation6 + $0x8c8] sm:$0xff] }
 0x8c5   :  { %12286 = vmatprep.subr.bf16.mxu1 %v11486_v12  ;;  %12860 = vmatprep.subr.bf16.mxu0 %v11488_v36  ;;  %v11544_v12 = vld [vmem:[#allocation6 + $0x8d8] sm:$0xff]  ;;  %v11541_v36 = vld [vmem:[#allocation6 + $0x8c0] sm:$0xff] }
 0x8c8   :  { %12287 = vmatpush1.bf16.msra.mxu1 %v11485_v0  ;;  %12861 = vmatpush1.bf16.msra.mxu0 %v11487_v29  ;;  %v11543_v0 = vld [vmem:[#allocation6 + $0x8d0] sm:$0xff]  ;;  %v11546_v29 = vld [vmem:[#allocation6 + $0x8e8] sm:$0xff] }
 0x8c9   :  { %12288 = vmatprep.subr.bf16.mxu1 %v11490_v3  ;;  %12862 = vmatprep.subr.bf16.mxu0 %v11492_v40  ;;  %v11548_v3 = vld [vmem:[#allocation6 + $0x8f8] sm:$0xff]  ;;  %v11545_v40 = vld [vmem:[#allocation6 + $0x8e0] sm:$0xff] }
 0x8cc   :  { %12289 = vmatpush1.bf16.msra.mxu1 %v11489_v26  ;;  %12863 = vmatpush1.bf16.msra.mxu0 %v11491_v10  ;;  %v11547_v26 = vld [vmem:[#allocation6 + $0x8f0] sm:$0xff]  ;;  %v11550_v10 = vld [vmem:[#allocation6 + $0x908] sm:$0xff] }
 0x8cd   :  { %12290 = vmatprep.subr.bf16.mxu1 %v11494_v57  ;;  %12864 = vmatprep.subr.bf16.mxu0 %v11496_v45  ;;  %v11552_v57 = vld [vmem:[#allocation6 + $0x918] sm:$0xff]  ;;  %v11549_v45 = vld [vmem:[#allocation6 + $0x900] sm:$0xff] }
 0x8d0   :  { %12291 = vmatpush1.bf16.msra.mxu1 %v11493_v41  ;;  %12865 = vmatpush1.bf16.msra.mxu0 %v11495_v46  ;;  %v11551_v41 = vld [vmem:[#allocation6 + $0x910] sm:$0xff]  ;;  %v11554_v46 = vld [vmem:[#allocation6 + $0x928] sm:$0xff] }
 0x8d1   :  { %12292 = vmatprep.subr.bf16.mxu1 %v11498_v62  ;;  %12866 = vmatprep.subr.bf16.mxu0 %v11500_v8  ;;  %v11556_v62 = vld [vmem:[#allocation6 + $0x938] sm:$0xff]  ;;  %v11553_v8 = vld [vmem:[#allocation6 + $0x920] sm:$0xff] }
 0x8d4   :  { %12293 = vmatpush1.bf16.msra.mxu1 %v11497_v54  ;;  %12867 = vmatpush1.bf16.msra.mxu0 %v11499_v28  ;;  %v11555_v54 = vld [vmem:[#allocation6 + $0x930] sm:$0xff]  ;;  %v11558_v28 = vld [vmem:[#allocation6 + $0x948] sm:$0xff] }
 0x8d5   :  { %12294 = vmatprep.subr.bf16.mxu1 %v11502_v58  ;;  %12868 = vmatprep.subr.bf16.mxu0 %v11504_v39  ;;  %v11560_v58 = vld [vmem:[#allocation6 + $0x958] sm:$0xff]  ;;  %v11557_v39 = vld [vmem:[#allocation6 + $0x940] sm:$0xff] }
 0x8d8   :  { %12295 = vmatpush1.bf16.msra.mxu1 %v11501_v55  ;;  %12869 = vmatpush1.bf16.msra.mxu0 %v11503_v7  ;;  %v11559_v55 = vld [vmem:[#allocation6 + $0x950] sm:$0xff]  ;;  %v11562_v7 = vld [vmem:[#allocation6 + $0x968] sm:$0xff] }
 0x8d9   :  { %12296 = vmatprep.subr.bf16.mxu1 %v11506_v60  ;;  %12870 = vmatprep.subr.bf16.mxu0 %v11508_v13  ;;  %v11564_v60 = vld [vmem:[#allocation6 + $0x978] sm:$0xff]  ;;  %v11561_v13 = vld [vmem:[#allocation6 + $0x960] sm:$0xff] }
 0x8dc   :  { %12297 = vmatpush1.bf16.msra.mxu1 %v11505_v51  ;;  %12871 = vmatpush1.bf16.msra.mxu0 %v11507_v14  ;;  %v11563_v51 = vld [vmem:[#allocation6 + $0x970] sm:$0xff]  ;;  %v11566_v14 = vld [vmem:[#allocation6 + $0x988] sm:$0xff] }
 0x8dd   :  { %12298 = vmatprep.subr.bf16.mxu1 %v11510_v47  ;;  %12872 = vmatprep.subr.bf16.mxu0 %v11512_v20  ;;  %v11568_v47 = vld [vmem:[#allocation6 + $0x998] sm:$0xff]  ;;  %v11565_v20 = vld [vmem:[#allocation6 + $0x980] sm:$0xff] }
 0x8e0   :  { %12299 = vmatpush1.bf16.msra.mxu1 %v11509_v34  ;;  %12873 = vmatpush1.bf16.msra.mxu0 %v11511_v21  ;;  %v11567_v34 = vld [vmem:[#allocation6 + $0x990] sm:$0xff]  ;;  %v11570_v21 = vld [vmem:[#allocation6 + $0x9a8] sm:$0xff] }
 0x8e1   :  { %12300 = vmatprep.subr.bf16.mxu1 %v11514_v56  ;;  %12874 = vmatprep.subr.bf16.mxu0 %v11516_v18  ;;  %v11572_v56 = vld [vmem:[#allocation6 + $0x9b8] sm:$0xff]  ;;  %v11569_v18 = vld [vmem:[#allocation6 + $0x9a0] sm:$0xff] }
 0x8e4   :  { %12301 = vmatpush1.bf16.msra.mxu1 %v11513_v31  ;;  %12875 = vmatpush1.bf16.msra.mxu0 %v11515_v44  ;;  %v11571_v31 = vld [vmem:[#allocation6 + $0x9b0] sm:$0xff]  ;;  %v11574_v44 = vld [vmem:[#allocation6 + $0x9c8] sm:$0xff] }
 0x8e5   :  { %12311 = vmatprep.subr.bf16.mxu1 %v11518_v32  ;;  %12885 = vmatprep.subr.bf16.mxu0 %v11520_v59  ;;  %v11576_v32 = vld [vmem:[#allocation6 + $0x9d8] sm:$0xff]  ;;  %v11123_v59 = vcombine.high %v18259_v63, %v18259_v63 }
 0x8e7   :  { %12303 = vmatmul.mubr.bf16.vlgmr.msra.gmra.mrb[208].mxu1 %v11240_v19  ;;  %12877 = vmatmul.mubr.bf16.vlgmr.msra.gmra.mrb[56].mxu0 %v11240_v19  ;;  %v11575_v19 = vld [vmem:[#allocation6 + $0x9d0] sm:$0xff] }
 0x8e8   :  { %12312 = vmatpush1.bf16.msra.mxu1 %v11517_v6  ;;  %12886 = vmatpush1.bf16.msra.mxu0 %v11519_v61  ;;  %v11578_v6 = vld [vmem:[#allocation6 + $0x9e8] sm:$0xff]  ;;  %v11580_v61 = vld [vmem:[#allocation6 + $0x9f8] sm:$0xff] }
 0x8e9   :  { %12313 = vmatprep.subr.bf16.mxu1 %v11522_v1  ;;  %12887 = vmatprep.subr.bf16.mxu0 %v11524_v11  ;;  %v18272_v1 = vrot.slane %v11123_v59, %v18098_v5  ;;  %v11577_v11 = vld [vmem:[#allocation6 + $0x9e0] sm:$0xff]  ;;  %v11631_v59 = vld [vmem:[#allocation6 + $0xb90] sm:$0xff] }
 0x8ea   :  { %12343 = vmatprep.mubr.bf16.mxu1 %v11243_v53  ;;  %12917 = vmatprep.mubr.bf16.mxu0 %v11243_v53  ;;  %v11579_v53 = vld [vmem:[#allocation6 + $0x9f0] sm:$0xff] }
 0x8eb   :  { %v11139_v63 = vcombine.high %v18272_v1, %v18272_v1 }
 0x8ec   :  { %12314 = vmatpush1.bf16.msra.mxu1 %v11521_v25  ;;  %12888 = vmatpush1.bf16.msra.mxu0 %v11523_v17  ;;  %v11582_v25 = vld [vmem:[#allocation6 + $0xa08] sm:$0xff]  ;;  %v11584_v17 = vld [vmem:[#allocation6 + $0xa18] sm:$0xff] }
 0x8ed   :  { %12315 = vmatprep.subr.bf16.mxu1 %v11526_v27  ;;  %12889 = vmatprep.subr.bf16.mxu0 %v11528_v37  ;;  %v11242_v27 = vpack.c.bf16 %v18263_v24, %v18263_v24  ;;  %v11581_v37 = vld [vmem:[#allocation6 + $0xa00] sm:$0xff] }
 0x8ee   :  { %v11589_v24 = vld [vmem:[#allocation6 + $0xa40] sm:$0xff] }
 0x8f0   :  { %12316 = vmatpush1.bf16.msra.mxu1 %v11525_v16  ;;  %12890 = vmatpush1.bf16.msra.mxu0 %v11527_v2  ;;  %v11583_v16 = vld [vmem:[#allocation6 + $0xa10] sm:$0xff]  ;;  %v11586_v2 = vld [vmem:[#allocation6 + $0xa28] sm:$0xff] }
 0x8f1   :  { %12317 = vmatprep.subr.bf16.mxu1 %v11530_v33  ;;  %12891 = vmatprep.subr.bf16.mxu0 %v11532_v49  ;;  %v11588_v33 = vld [vmem:[#allocation6 + $0xa38] sm:$0xff]  ;;  %v11245_v49 = vpack.c.bf16 %v11139_v63, %v11139_v63  ;;  %v11639_v63 = vld [vmem:[#allocation6 + $0xbd0] sm:$0xff] }
 0x8f4   :  { %12318 = vmatpush1.bf16.msra.mxu1 %v11529_v23  ;;  %12892 = vmatpush1.bf16.msra.mxu0 %v11531_v42  ;;  %v11585_v23 = vld [vmem:[#allocation6 + $0xa20] sm:$0xff]  ;;  %v11587_v42 = vld [vmem:[#allocation6 + $0xa30] sm:$0xff] }
 0x8f5   :  { %12319 = vmatprep.subr.bf16.mxu1 %v11534_v48  ;;  %12893 = vmatprep.subr.bf16.mxu0 %v11536_v22  ;;  %v11590_v48 = vld [vmem:[#allocation6 + $0xa48] sm:$0xff]  ;;  %v11592_v22 = vld [vmem:[#allocation6 + $0xa58] sm:$0xff] }
 0x8f8   :  { %12320 = vmatpush1.bf16.msra.mxu1 %v11533_v52  ;;  %12894 = vmatpush1.bf16.msra.mxu0 %v11535_v50  ;;  %v11591_v52 = vld [vmem:[#allocation6 + $0xa50] sm:$0xff]  ;;  %v11594_v50 = vld [vmem:[#allocation6 + $0xa68] sm:$0xff] }
 0x8f9   :  { %12321 = vmatprep.subr.bf16.mxu1 %v11538_v43  ;;  %12895 = vmatprep.subr.bf16.mxu0 %v11540_v38  ;;  %v11596_v43 = vld [vmem:[#allocation6 + $0xa78] sm:$0xff]  ;;  %v11593_v38 = vld [vmem:[#allocation6 + $0xa60] sm:$0xff] }
 0x8fc   :  { %12322 = vmatpush1.bf16.msra.mxu1 %v11537_v35  ;;  %12896 = vmatpush1.bf16.msra.mxu0 %v11539_v15  ;;  %v11595_v35 = vld [vmem:[#allocation6 + $0xa70] sm:$0xff]  ;;  %v11598_v15 = vld [vmem:[#allocation6 + $0xa88] sm:$0xff] }
 0x8fd   :  { %12323 = vmatprep.subr.bf16.mxu1 %v11542_v30  ;;  %12897 = vmatprep.subr.bf16.mxu0 %v11544_v12  ;;  %v11600_v30 = vld [vmem:[#allocation6 + $0xa98] sm:$0xff]  ;;  %v11597_v12 = vld [vmem:[#allocation6 + $0xa80] sm:$0xff] }
 0x900   :  { %12324 = vmatpush1.bf16.msra.mxu1 %v11541_v36  ;;  %12898 = vmatpush1.bf16.msra.mxu0 %v11543_v0  ;;  %v11599_v36 = vld [vmem:[#allocation6 + $0xa90] sm:$0xff]  ;;  %v11602_v0 = vld [vmem:[#allocation6 + $0xaa8] sm:$0xff] }
 0x901   :  { %12325 = vmatprep.subr.bf16.mxu1 %v11546_v29  ;;  %12899 = vmatprep.subr.bf16.mxu0 %v11548_v3  ;;  %v11604_v29 = vld [vmem:[#allocation6 + $0xab8] sm:$0xff]  ;;  %v11601_v3 = vld [vmem:[#allocation6 + $0xaa0] sm:$0xff] }
 0x904   :  { %12326 = vmatpush1.bf16.msra.mxu1 %v11545_v40  ;;  %12900 = vmatpush1.bf16.msra.mxu0 %v11547_v26  ;;  %v11603_v40 = vld [vmem:[#allocation6 + $0xab0] sm:$0xff]  ;;  %v11606_v26 = vld [vmem:[#allocation6 + $0xac8] sm:$0xff] }
 0x905   :  { %12327 = vmatprep.subr.bf16.mxu1 %v11550_v10  ;;  %12901 = vmatprep.subr.bf16.mxu0 %v11552_v57  ;;  %v11608_v10 = vld [vmem:[#allocation6 + $0xad8] sm:$0xff]  ;;  %v11605_v57 = vld [vmem:[#allocation6 + $0xac0] sm:$0xff] }
 0x908   :  { %12328 = vmatpush1.bf16.msra.mxu1 %v11549_v45  ;;  %12902 = vmatpush1.bf16.msra.mxu0 %v11551_v41  ;;  %v11607_v45 = vld [vmem:[#allocation6 + $0xad0] sm:$0xff]  ;;  %v11610_v41 = vld [vmem:[#allocation6 + $0xae8] sm:$0xff] }
 0x909   :  { %12329 = vmatprep.subr.bf16.mxu1 %v11554_v46  ;;  %12903 = vmatprep.subr.bf16.mxu0 %v11556_v62  ;;  %v11612_v46 = vld [vmem:[#allocation6 + $0xaf8] sm:$0xff]  ;;  %v11609_v62 = vld [vmem:[#allocation6 + $0xae0] sm:$0xff] }
 0x90c   :  { %12330 = vmatpush1.bf16.msra.mxu1 %v11553_v8  ;;  %12904 = vmatpush1.bf16.msra.mxu0 %v11555_v54  ;;  %v11611_v8 = vld [vmem:[#allocation6 + $0xaf0] sm:$0xff]  ;;  %v11614_v54 = vld [vmem:[#allocation6 + $0xb08] sm:$0xff] }
 0x90d   :  { %12331 = vmatprep.subr.bf16.mxu1 %v11558_v28  ;;  %12905 = vmatprep.subr.bf16.mxu0 %v11560_v58  ;;  %v11616_v28 = vld [vmem:[#allocation6 + $0xb18] sm:$0xff]  ;;  %v11613_v58 = vld [vmem:[#allocation6 + $0xb00] sm:$0xff] }
 0x910   :  { %12332 = vmatpush1.bf16.msra.mxu1 %v11557_v39  ;;  %12906 = vmatpush1.bf16.msra.mxu0 %v11559_v55  ;;  %v11615_v39 = vld [vmem:[#allocation6 + $0xb10] sm:$0xff]  ;;  %v11618_v55 = vld [vmem:[#allocation6 + $0xb28] sm:$0xff] }
 0x911   :  { %12333 = vmatprep.subr.bf16.mxu1 %v11562_v7  ;;  %12907 = vmatprep.subr.bf16.mxu0 %v11564_v60  ;;  %v11620_v7 = vld [vmem:[#allocation6 + $0xb38] sm:$0xff]  ;;  %v11617_v60 = vld [vmem:[#allocation6 + $0xb20] sm:$0xff] }
 0x914   :  { %12334 = vmatpush1.bf16.msra.mxu1 %v11561_v13  ;;  %12908 = vmatpush1.bf16.msra.mxu0 %v11563_v51  ;;  %v11619_v13 = vld [vmem:[#allocation6 + $0xb30] sm:$0xff]  ;;  %v11622_v51 = vld [vmem:[#allocation6 + $0xb48] sm:$0xff] }
 0x915   :  { %12335 = vmatprep.subr.bf16.mxu1 %v11566_v14  ;;  %12909 = vmatprep.subr.bf16.mxu0 %v11568_v47  ;;  %v11624_v14 = vld [vmem:[#allocation6 + $0xb58] sm:$0xff]  ;;  %v11621_v47 = vld [vmem:[#allocation6 + $0xb40] sm:$0xff] }
 0x918   :  { %12336 = vmatpush1.bf16.msra.mxu1 %v11565_v20  ;;  %12910 = vmatpush1.bf16.msra.mxu0 %v11567_v34  ;;  %v11623_v20 = vld [vmem:[#allocation6 + $0xb50] sm:$0xff]  ;;  %v11626_v34 = vld [vmem:[#allocation6 + $0xb68] sm:$0xff] }
 0x919   :  { %12337 = vmatprep.subr.bf16.mxu1 %v11570_v21  ;;  %12911 = vmatprep.subr.bf16.mxu0 %v11572_v56  ;;  %v11628_v21 = vld [vmem:[#allocation6 + $0xb78] sm:$0xff]  ;;  %v11625_v56 = vld [vmem:[#allocation6 + $0xb60] sm:$0xff] }
 0x91c   :  { %12338 = vmatpush1.bf16.msra.mxu1 %v11569_v18  ;;  %12912 = vmatpush1.bf16.msra.mxu0 %v11571_v31  ;;  %v11627_v18 = vld [vmem:[#allocation6 + $0xb70] sm:$0xff]  ;;  %v11630_v31 = vld [vmem:[#allocation6 + $0xb88] sm:$0xff] }
 0x91d   :  { %12339 = vmatprep.subr.bf16.mxu1 %v11574_v44  ;;  %12913 = vmatprep.subr.bf16.mxu0 %v11576_v32  ;;  %v11632_v44 = vld [vmem:[#allocation6 + $0xb98] sm:$0xff]  ;;  %v11629_v32 = vld [vmem:[#allocation6 + $0xb80] sm:$0xff] }
 0x920   :  { %12340 = vmatpush1.bf16.msra.mxu1 %v11573_v9  ;;  %12914 = vmatpush1.bf16.msra.mxu0 %v11575_v19  ;;  %v11634_v9 = vld [vmem:[#allocation6 + $0xba8] sm:$0xff]  ;;  %v11636_v19 = vld [vmem:[#allocation6 + $0xbb8] sm:$0xff] }
 0x921   :  { %12341 = vmatprep.subr.bf16.mxu1 %v11578_v6  ;;  %12915 = vmatprep.subr.bf16.mxu0 %v11580_v61  ;;  %v11633_v6 = vld [vmem:[#allocation6 + $0xba0] sm:$0xff]  ;;  %v11635_v61 = vld [vmem:[#allocation6 + $0xbb0] sm:$0xff] }
 0x924   :  { %12342 = vmatpush1.bf16.msra.mxu1 %v11577_v11  ;;  %12916 = vmatpush1.bf16.msra.mxu0 %v11579_v53  ;;  %v11638_v11 = vld [vmem:[#allocation6 + $0xbc8] sm:$0xff]  ;;  %v11640_v53 = vld [vmem:[#allocation6 + $0xbd8] sm:$0xff] }
 0x925   :  { %12352 = vmatprep.subr.bf16.mxu1 %v11582_v25  ;;  %12926 = vmatprep.subr.bf16.mxu0 %v11584_v17  ;;  %v18278_v25 = vld [vmem:[#allocation5 + $0x18] sm:$0xff] }
 0x926   :  { %v11637_v17 = vld [vmem:[#allocation6 + $0xbc0] sm:$0xff] }
 0x927   :  { %12344 = vmatmul.mubr.bf16.vlgmr.msra.gmra.mrb[208].mxu1 %v11242_v27  ;;  %12918 = vmatmul.mubr.bf16.vlgmr.msra.gmra.mrb[56].mxu0 %v11242_v27  ;;  %v11642_v27 = vld [vmem:[#allocation6 + $0xbe8] sm:$0xff] }
 0x928   :  { %12353 = vmatpush1.bf16.msra.mxu1 %v11581_v37  ;;  %12927 = vmatpush1.bf16.msra.mxu0 %v11583_v16  ;;  %v11644_v37 = vld [vmem:[#allocation6 + $0xbf8] sm:$0xff]  ;;  %v18282_v16 = vrot.slane %v18278_v25, %v18098_v5 }
 0x929   :  { %12354 = vmatprep.subr.bf16.mxu1 %v11586_v2  ;;  %12928 = vmatprep.subr.bf16.mxu0 %v11588_v33  ;;  %v11641_v2 = vld [vmem:[#allocation6 + $0xbe0] sm:$0xff]  ;;  %v11643_v33 = vld [vmem:[#allocation6 + $0xbf0] sm:$0xff] }
 0x92a   :  { %12384 = vmatprep.mubr.bf16.mxu1 %v11245_v49  ;;  %12958 = vmatprep.mubr.bf16.mxu0 %v11245_v49  ;;  %v11646_v49 = vld [vmem:[#allocation6 + $0xc08] sm:$0xff] }
 0x92c   :  { %12355 = vmatpush1.bf16.msra.mxu1 %v11585_v23  ;;  %12929 = vmatpush1.bf16.msra.mxu0 %v11587_v42  ;;  %v11648_v23 = vld [vmem:[#allocation6 + $0xc18] sm:$0xff]  ;;  %v11155_v42 = vcombine.high %v18282_v16, %v18282_v16 }
 0x92d   :  { %12356 = vmatprep.subr.bf16.mxu1 %v11590_v48  ;;  %12930 = vmatprep.subr.bf16.mxu0 %v11592_v22  ;;  %v11244_v48 = vpack.c.bf16 %v18272_v1, %v18272_v1  ;;  %v11645_v22 = vld [vmem:[#allocation6 + $0xc00] sm:$0xff] }
 0x92e   :  { %v11653_v1 = vld [vmem:[#allocation6 + $0xc40] sm:$0xff] }
 0x930   :  { %12357 = vmatpush1.bf16.msra.mxu1 %v11589_v24  ;;  %12931 = vmatpush1.bf16.msra.mxu0 %v11591_v52  ;;  %v11647_v24 = vld [vmem:[#allocation6 + $0xc10] sm:$0xff]  ;;  %v11650_v52 = vld [vmem:[#allocation6 + $0xc28] sm:$0xff] }
 0x931   :  { %12358 = vmatprep.subr.bf16.mxu1 %v11594_v50  ;;  %12932 = vmatprep.subr.bf16.mxu0 %v11596_v43  ;;  %v11652_v50 = vld [vmem:[#allocation6 + $0xc38] sm:$0xff]  ;;  %v11247_v43 = vpack.c.bf16 %v11155_v42, %v11155_v42  ;;  %v11701_v42 = vld [vmem:[#allocation6 + $0xdc0] sm:$0xff] }
 0x934   :  { %12359 = vmatpush1.bf16.msra.mxu1 %v11593_v38  ;;  %12933 = vmatpush1.bf16.msra.mxu0 %v11595_v35  ;;  %v11649_v38 = vld [vmem:[#allocation6 + $0xc20] sm:$0xff]  ;;  %v11651_v35 = vld [vmem:[#allocation6 + $0xc30] sm:$0xff] }
 0x935   :  { %12360 = vmatprep.subr.bf16.mxu1 %v11598_v15  ;;  %12934 = vmatprep.subr.bf16.mxu0 %v11600_v30  ;;  %v11654_v15 = vld [vmem:[#allocation6 + $0xc48] sm:$0xff]  ;;  %v11656_v30 = vld [vmem:[#allocation6 + $0xc58] sm:$0xff] }
 0x938   :  { %12361 = vmatpush1.bf16.msra.mxu1 %v11597_v12  ;;  %12935 = vmatpush1.bf16.msra.mxu0 %v11599_v36  ;;  %v11655_v12 = vld [vmem:[#allocation6 + $0xc50] sm:$0xff]  ;;  %v11658_v36 = vld [vmem:[#allocation6 + $0xc68] sm:$0xff] }
 0x939   :  { %12362 = vmatprep.subr.bf16.mxu1 %v11602_v0  ;;  %12936 = vmatprep.subr.bf16.mxu0 %v11604_v29  ;;  %v11660_v0 = vld [vmem:[#allocation6 + $0xc78] sm:$0xff]  ;;  %v11657_v29 = vld [vmem:[#allocation6 + $0xc60] sm:$0xff] }
 0x93c   :  { %12363 = vmatpush1.bf16.msra.mxu1 %v11601_v3  ;;  %12937 = vmatpush1.bf16.msra.mxu0 %v11603_v40  ;;  %v11659_v3 = vld [vmem:[#allocation6 + $0xc70] sm:$0xff]  ;;  %v11662_v40 = vld [vmem:[#allocation6 + $0xc88] sm:$0xff] }
 0x93d   :  { %12364 = vmatprep.subr.bf16.mxu1 %v11606_v26  ;;  %12938 = vmatprep.subr.bf16.mxu0 %v11608_v10  ;;  %v11664_v26 = vld [vmem:[#allocation6 + $0xc98] sm:$0xff]  ;;  %v11661_v10 = vld [vmem:[#allocation6 + $0xc80] sm:$0xff] }
 0x940   :  { %12365 = vmatpush1.bf16.msra.mxu1 %v11605_v57  ;;  %12939 = vmatpush1.bf16.msra.mxu0 %v11607_v45  ;;  %v11663_v57 = vld [vmem:[#allocation6 + $0xc90] sm:$0xff]  ;;  %v11666_v45 = vld [vmem:[#allocation6 + $0xca8] sm:$0xff] }
 0x941   :  { %12366 = vmatprep.subr.bf16.mxu1 %v11610_v41  ;;  %12940 = vmatprep.subr.bf16.mxu0 %v11612_v46  ;;  %v11668_v41 = vld [vmem:[#allocation6 + $0xcb8] sm:$0xff]  ;;  %v11665_v46 = vld [vmem:[#allocation6 + $0xca0] sm:$0xff] }
 0x944   :  { %12367 = vmatpush1.bf16.msra.mxu1 %v11609_v62  ;;  %12941 = vmatpush1.bf16.msra.mxu0 %v11611_v8  ;;  %v11667_v62 = vld [vmem:[#allocation6 + $0xcb0] sm:$0xff]  ;;  %v11670_v8 = vld [vmem:[#allocation6 + $0xcc8] sm:$0xff] }
 0x945   :  { %12368 = vmatprep.subr.bf16.mxu1 %v11614_v54  ;;  %12942 = vmatprep.subr.bf16.mxu0 %v11616_v28  ;;  %v11672_v54 = vld [vmem:[#allocation6 + $0xcd8] sm:$0xff]  ;;  %v11669_v28 = vld [vmem:[#allocation6 + $0xcc0] sm:$0xff] }
 0x948   :  { %12369 = vmatpush1.bf16.msra.mxu1 %v11613_v58  ;;  %12943 = vmatpush1.bf16.msra.mxu0 %v11615_v39  ;;  %v11671_v58 = vld [vmem:[#allocation6 + $0xcd0] sm:$0xff]  ;;  %v11674_v39 = vld [vmem:[#allocation6 + $0xce8] sm:$0xff] }
 0x949   :  { %12370 = vmatprep.subr.bf16.mxu1 %v11618_v55  ;;  %12944 = vmatprep.subr.bf16.mxu0 %v11620_v7  ;;  %v11676_v55 = vld [vmem:[#allocation6 + $0xcf8] sm:$0xff]  ;;  %v11673_v7 = vld [vmem:[#allocation6 + $0xce0] sm:$0xff] }
 0x94c   :  { %12371 = vmatpush1.bf16.msra.mxu1 %v11617_v60  ;;  %12945 = vmatpush1.bf16.msra.mxu0 %v11619_v13  ;;  %v11675_v60 = vld [vmem:[#allocation6 + $0xcf0] sm:$0xff]  ;;  %v11678_v13 = vld [vmem:[#allocation6 + $0xd08] sm:$0xff] }
 0x94d   :  { %12372 = vmatprep.subr.bf16.mxu1 %v11622_v51  ;;  %12946 = vmatprep.subr.bf16.mxu0 %v11624_v14  ;;  %v11680_v51 = vld [vmem:[#allocation6 + $0xd18] sm:$0xff]  ;;  %v11677_v14 = vld [vmem:[#allocation6 + $0xd00] sm:$0xff] }
 0x950   :  { %12373 = vmatpush1.bf16.msra.mxu1 %v11621_v47  ;;  %12947 = vmatpush1.bf16.msra.mxu0 %v11623_v20  ;;  %v11679_v47 = vld [vmem:[#allocation6 + $0xd10] sm:$0xff]  ;;  %v11682_v20 = vld [vmem:[#allocation6 + $0xd28] sm:$0xff] }
 0x951   :  { %12374 = vmatprep.subr.bf16.mxu1 %v11626_v34  ;;  %12948 = vmatprep.subr.bf16.mxu0 %v11628_v21  ;;  %v11684_v34 = vld [vmem:[#allocation6 + $0xd38] sm:$0xff]  ;;  %v11681_v21 = vld [vmem:[#allocation6 + $0xd20] sm:$0xff] }
 0x954   :  { %12375 = vmatpush1.bf16.msra.mxu1 %v11625_v56  ;;  %12949 = vmatpush1.bf16.msra.mxu0 %v11627_v18  ;;  %v11683_v56 = vld [vmem:[#allocation6 + $0xd30] sm:$0xff]  ;;  %v11686_v18 = vld [vmem:[#allocation6 + $0xd48] sm:$0xff] }
 0x955   :  { %12376 = vmatprep.subr.bf16.mxu1 %v11630_v31  ;;  %12950 = vmatprep.subr.bf16.mxu0 %v11632_v44  ;;  %v11688_v31 = vld [vmem:[#allocation6 + $0xd58] sm:$0xff]  ;;  %v11685_v44 = vld [vmem:[#allocation6 + $0xd40] sm:$0xff] }
 0x958   :  { %12377 = vmatpush1.bf16.msra.mxu1 %v11629_v32  ;;  %12951 = vmatpush1.bf16.msra.mxu0 %v11631_v59  ;;  %v11687_v32 = vld [vmem:[#allocation6 + $0xd50] sm:$0xff]  ;;  %v11690_v59 = vld [vmem:[#allocation6 + $0xd68] sm:$0xff] }
 0x959   :  { %12378 = vmatprep.subr.bf16.mxu1 %v11634_v9  ;;  %12952 = vmatprep.subr.bf16.mxu0 %v11636_v19  ;;  %v11692_v9 = vld [vmem:[#allocation6 + $0xd78] sm:$0xff]  ;;  %v11689_v19 = vld [vmem:[#allocation6 + $0xd60] sm:$0xff] }
 0x95c   :  { %12379 = vmatpush1.bf16.msra.mxu1 %v11633_v6  ;;  %12953 = vmatpush1.bf16.msra.mxu0 %v11635_v61  ;;  %v11691_v6 = vld [vmem:[#allocation6 + $0xd70] sm:$0xff]  ;;  %v11694_v61 = vld [vmem:[#allocation6 + $0xd88] sm:$0xff] }
 0x95d   :  { %12380 = vmatprep.subr.bf16.mxu1 %v11638_v11  ;;  %12954 = vmatprep.subr.bf16.mxu0 %v11640_v53  ;;  %v11696_v11 = vld [vmem:[#allocation6 + $0xd98] sm:$0xff]  ;;  %v11693_v53 = vld [vmem:[#allocation6 + $0xd80] sm:$0xff] }
 0x960   :  { %12381 = vmatpush1.bf16.msra.mxu1 %v11637_v17  ;;  %12955 = vmatpush1.bf16.msra.mxu0 %v11639_v63  ;;  %v11695_v17 = vld [vmem:[#allocation6 + $0xd90] sm:$0xff]  ;;  %v11698_v63 = vld [vmem:[#allocation6 + $0xda8] sm:$0xff] }
 0x961   :  { %12382 = vmatprep.subr.bf16.mxu1 %v11642_v27  ;;  %12956 = vmatprep.subr.bf16.mxu0 %v11644_v37  ;;  %v11700_v27 = vld [vmem:[#allocation6 + $0xdb8] sm:$0xff]  ;;  %v11697_v37 = vld [vmem:[#allocation6 + $0xda0] sm:$0xff] }
 0x964   :  { %12383 = vmatpush1.bf16.msra.mxu1 %v11641_v2  ;;  %12957 = vmatpush1.bf16.msra.mxu0 %v11643_v33  ;;  %v11699_v2 = vld [vmem:[#allocation6 + $0xdb0] sm:$0xff]  ;;  %v11702_v33 = vld [vmem:[#allocation6 + $0xdc8] sm:$0xff] }
 0x965   :  { %12393 = vmatprep.subr.bf16.mxu1 %v11646_v49  ;;  %12967 = vmatprep.subr.bf16.mxu0 %v11648_v23  ;;  %v11704_v49 = vld [vmem:[#allocation6 + $0xdd8] sm:$0xff]  ;;  %v11140_v23 = vcombine.high %v18278_v25, %v18278_v25 }
 0x967   :  { %12385 = vmatmul.mubr.bf16.vlgmr.msra.gmra.mrb[208].mxu1 %v11244_v48  ;;  %12959 = vmatmul.mubr.bf16.vlgmr.msra.gmra.mrb[56].mxu0 %v11244_v48  ;;  %v11703_v48 = vld [vmem:[#allocation6 + $0xdd0] sm:$0xff] }
 0x968   :  { %12394 = vmatpush1.bf16.msra.mxu1 %v11645_v22  ;;  %12968 = vmatpush1.bf16.msra.mxu0 %v11647_v24  ;;  %v11706_v22 = vld [vmem:[#allocation6 + $0xde8] sm:$0xff]  ;;  %v11708_v24 = vld [vmem:[#allocation6 + $0xdf8] sm:$0xff] }
 0x969   :  { %12395 = vmatprep.subr.bf16.mxu1 %v11650_v52  ;;  %12969 = vmatprep.subr.bf16.mxu0 %v11652_v50  ;;  %v18291_v52 = vrot.slane %v11140_v23, %v18098_v5  ;;  %v11705_v50 = vld [vmem:[#allocation6 + $0xde0] sm:$0xff]  ;;  %v11759_v23 = vld [vmem:[#allocation6 + $0xf90] sm:$0xff] }
 0x96a   :  { %12425 = vmatprep.mubr.bf16.mxu1 %v11247_v43  ;;  %12999 = vmatprep.mubr.bf16.mxu0 %v11247_v43  ;;  %v11707_v43 = vld [vmem:[#allocation6 + $0xdf0] sm:$0xff] }
 0x96b   :  { %v11156_v25 = vcombine.high %v18291_v52, %v18291_v52 }
 0x96c   :  { %12396 = vmatpush1.bf16.msra.mxu1 %v11649_v38  ;;  %12970 = vmatpush1.bf16.msra.mxu0 %v11651_v35  ;;  %v11710_v38 = vld [vmem:[#allocation6 + $0xe08] sm:$0xff]  ;;  %v11712_v35 = vld [vmem:[#allocation6 + $0xe18] sm:$0xff] }
 0x96d   :  { %12397 = vmatprep.subr.bf16.mxu1 %v11654_v15  ;;  %12971 = vmatprep.subr.bf16.mxu0 %v11656_v30  ;;  %v11246_v15 = vpack.c.bf16 %v18282_v16, %v18282_v16  ;;  %v11709_v30 = vld [vmem:[#allocation6 + $0xe00] sm:$0xff] }
 0x96e   :  { %v11717_v16 = vld [vmem:[#allocation6 + $0xe40] sm:$0xff] }
 0x970   :  { %12398 = vmatpush1.bf16.msra.mxu1 %v11653_v1  ;;  %12972 = vmatpush1.bf16.msra.mxu0 %v11655_v12  ;;  %v11711_v1 = vld [vmem:[#allocation6 + $0xe10] sm:$0xff]  ;;  %v11714_v12 = vld [vmem:[#allocation6 + $0xe28] sm:$0xff] }
 0x971   :  { %12399 = vmatprep.subr.bf16.mxu1 %v11658_v36  ;;  %12973 = vmatprep.subr.bf16.mxu0 %v11660_v0  ;;  %v11716_v36 = vld [vmem:[#allocation6 + $0xe38] sm:$0xff]  ;;  %v11249_v0 = vpack.c.bf16 %v11156_v25, %v11156_v25  ;;  %v11767_v25 = vld [vmem:[#allocation6 + $0xfd0] sm:$0xff] }
 0x974   :  { %12400 = vmatpush1.bf16.msra.mxu1 %v11657_v29  ;;  %12974 = vmatpush1.bf16.msra.mxu0 %v11659_v3  ;;  %v11713_v29 = vld [vmem:[#allocation6 + $0xe20] sm:$0xff]  ;;  %v11715_v3 = vld [vmem:[#allocation6 + $0xe30] sm:$0xff] }
 0x975   :  { %12401 = vmatprep.subr.bf16.mxu1 %v11662_v40  ;;  %12975 = vmatprep.subr.bf16.mxu0 %v11664_v26  ;;  %v11718_v40 = vld [vmem:[#allocation6 + $0xe48] sm:$0xff]  ;;  %v11720_v26 = vld [vmem:[#allocation6 + $0xe58] sm:$0xff] }
 0x978   :  { %12402 = vmatpush1.bf16.msra.mxu1 %v11661_v10  ;;  %12976 = vmatpush1.bf16.msra.mxu0 %v11663_v57  ;;  %v11719_v10 = vld [vmem:[#allocation6 + $0xe50] sm:$0xff]  ;;  %v11722_v57 = vld [vmem:[#allocation6 + $0xe68] sm:$0xff] }
 0x979   :  { %12403 = vmatprep.subr.bf16.mxu1 %v11666_v45  ;;  %12977 = vmatprep.subr.bf16.mxu0 %v11668_v41  ;;  %v11724_v45 = vld [vmem:[#allocation6 + $0xe78] sm:$0xff]  ;;  %v11721_v41 = vld [vmem:[#allocation6 + $0xe60] sm:$0xff] }
 0x97c   :  { %12404 = vmatpush1.bf16.msra.mxu1 %v11665_v46  ;;  %12978 = vmatpush1.bf16.msra.mxu0 %v11667_v62  ;;  %v11723_v46 = vld [vmem:[#allocation6 + $0xe70] sm:$0xff]  ;;  %v11726_v62 = vld [vmem:[#allocation6 + $0xe88] sm:$0xff] }
 0x97d   :  { %12405 = vmatprep.subr.bf16.mxu1 %v11670_v8  ;;  %12979 = vmatprep.subr.bf16.mxu0 %v11672_v54  ;;  %v11728_v8 = vld [vmem:[#allocation6 + $0xe98] sm:$0xff]  ;;  %v11725_v54 = vld [vmem:[#allocation6 + $0xe80] sm:$0xff] }
 0x980   :  { %12406 = vmatpush1.bf16.msra.mxu1 %v11669_v28  ;;  %12980 = vmatpush1.bf16.msra.mxu0 %v11671_v58  ;;  %v11727_v28 = vld [vmem:[#allocation6 + $0xe90] sm:$0xff]  ;;  %v11730_v58 = vld [vmem:[#allocation6 + $0xea8] sm:$0xff] }
 0x981   :  { %12407 = vmatprep.subr.bf16.mxu1 %v11674_v39  ;;  %12981 = vmatprep.subr.bf16.mxu0 %v11676_v55  ;;  %v11732_v39 = vld [vmem:[#allocation6 + $0xeb8] sm:$0xff]  ;;  %v11729_v55 = vld [vmem:[#allocation6 + $0xea0] sm:$0xff] }
 0x984   :  { %12408 = vmatpush1.bf16.msra.mxu1 %v11673_v7  ;;  %12982 = vmatpush1.bf16.msra.mxu0 %v11675_v60  ;;  %v11731_v7 = vld [vmem:[#allocation6 + $0xeb0] sm:$0xff]  ;;  %v11734_v60 = vld [vmem:[#allocation6 + $0xec8] sm:$0xff] }
 0x985   :  { %12409 = vmatprep.subr.bf16.mxu1 %v11678_v13  ;;  %12983 = vmatprep.subr.bf16.mxu0 %v11680_v51  ;;  %v11736_v13 = vld [vmem:[#allocation6 + $0xed8] sm:$0xff]  ;;  %v11733_v51 = vld [vmem:[#allocation6 + $0xec0] sm:$0xff] }
 0x988   :  { %12410 = vmatpush1.bf16.msra.mxu1 %v11677_v14  ;;  %12984 = vmatpush1.bf16.msra.mxu0 %v11679_v47  ;;  %v11735_v14 = vld [vmem:[#allocation6 + $0xed0] sm:$0xff]  ;;  %v11738_v47 = vld [vmem:[#allocation6 + $0xee8] sm:$0xff] }
 0x989   :  { %12411 = vmatprep.subr.bf16.mxu1 %v11682_v20  ;;  %12985 = vmatprep.subr.bf16.mxu0 %v11684_v34  ;;  %v11740_v20 = vld [vmem:[#allocation6 + $0xef8] sm:$0xff]  ;;  %v11737_v34 = vld [vmem:[#allocation6 + $0xee0] sm:$0xff] }
 0x98c   :  { %12412 = vmatpush1.bf16.msra.mxu1 %v11681_v21  ;;  %12986 = vmatpush1.bf16.msra.mxu0 %v11683_v56  ;;  %v11739_v21 = vld [vmem:[#allocation6 + $0xef0] sm:$0xff]  ;;  %v11742_v56 = vld [vmem:[#allocation6 + $0xf08] sm:$0xff] }
 0x98d   :  { %12413 = vmatprep.subr.bf16.mxu1 %v11686_v18  ;;  %12987 = vmatprep.subr.bf16.mxu0 %v11688_v31  ;;  %v11744_v18 = vld [vmem:[#allocation6 + $0xf18] sm:$0xff]  ;;  %v11741_v31 = vld [vmem:[#allocation6 + $0xf00] sm:$0xff] }
 0x990   :  { %12414 = vmatpush1.bf16.msra.mxu1 %v11685_v44  ;;  %12988 = vmatpush1.bf16.msra.mxu0 %v11687_v32  ;;  %v11743_v44 = vld [vmem:[#allocation6 + $0xf10] sm:$0xff]  ;;  %v11746_v32 = vld [vmem:[#allocation6 + $0xf28] sm:$0xff] }
 0x991   :  { %12415 = vmatprep.subr.bf16.mxu1 %v11690_v59  ;;  %12989 = vmatprep.subr.bf16.mxu0 %v11692_v9  ;;  %v11748_v59 = vld [vmem:[#allocation6 + $0xf38] sm:$0xff]  ;;  %v11745_v9 = vld [vmem:[#allocation6 + $0xf20] sm:$0xff] }
 0x994   :  { %12416 = vmatpush1.bf16.msra.mxu1 %v11689_v19  ;;  %12990 = vmatpush1.bf16.msra.mxu0 %v11691_v6  ;;  %v11747_v19 = vld [vmem:[#allocation6 + $0xf30] sm:$0xff]  ;;  %v11750_v6 = vld [vmem:[#allocation6 + $0xf48] sm:$0xff] }
 0x995   :  { %12417 = vmatprep.subr.bf16.mxu1 %v11694_v61  ;;  %12991 = vmatprep.subr.bf16.mxu0 %v11696_v11  ;;  %v11752_v61 = vld [vmem:[#allocation6 + $0xf58] sm:$0xff]  ;;  %v11749_v11 = vld [vmem:[#allocation6 + $0xf40] sm:$0xff] }
 0x998   :  { %12418 = vmatpush1.bf16.msra.mxu1 %v11693_v53  ;;  %12992 = vmatpush1.bf16.msra.mxu0 %v11695_v17  ;;  %v11751_v53 = vld [vmem:[#allocation6 + $0xf50] sm:$0xff]  ;;  %v11754_v17 = vld [vmem:[#allocation6 + $0xf68] sm:$0xff] }
 0x999   :  { %12419 = vmatprep.subr.bf16.mxu1 %v11698_v63  ;;  %12993 = vmatprep.subr.bf16.mxu0 %v11700_v27  ;;  %v11756_v63 = vld [vmem:[#allocation6 + $0xf78] sm:$0xff]  ;;  %v11753_v27 = vld [vmem:[#allocation6 + $0xf60] sm:$0xff] }
 0x99c   :  { %12420 = vmatpush1.bf16.msra.mxu1 %v11697_v37  ;;  %12994 = vmatpush1.bf16.msra.mxu0 %v11699_v2  ;;  %v11755_v37 = vld [vmem:[#allocation6 + $0xf70] sm:$0xff]  ;;  %v11758_v2 = vld [vmem:[#allocation6 + $0xf88] sm:$0xff] }
 0x99d   :  { %12421 = vmatprep.subr.bf16.mxu1 %v11702_v33  ;;  %12995 = vmatprep.subr.bf16.mxu0 %v11704_v49  ;;  %v11760_v33 = vld [vmem:[#allocation6 + $0xf98] sm:$0xff]  ;;  %v11757_v49 = vld [vmem:[#allocation6 + $0xf80] sm:$0xff] }
 0x9a0   :  { %12422 = vmatpush1.bf16.msra.mxu1 %v11701_v42  ;;  %12996 = vmatpush1.bf16.msra.mxu0 %v11703_v48  ;;  %v11762_v42 = vld [vmem:[#allocation6 + $0xfa8] sm:$0xff]  ;;  %v11764_v48 = vld [vmem:[#allocation6 + $0xfb8] sm:$0xff] }
 0x9a1   :  { %12423 = vmatprep.subr.bf16.mxu1 %v11706_v22  ;;  %12997 = vmatprep.subr.bf16.mxu0 %v11708_v24  ;;  %v11761_v22 = vld [vmem:[#allocation6 + $0xfa0] sm:$0xff]  ;;  %v11763_v24 = vld [vmem:[#allocation6 + $0xfb0] sm:$0xff] }
 0x9a4   :  { %12424 = vmatpush1.bf16.msra.mxu1 %v11705_v50  ;;  %12998 = vmatpush1.bf16.msra.mxu0 %v11707_v43  ;;  %v11766_v50 = vld [vmem:[#allocation6 + $0xfc8] sm:$0xff]  ;;  %v11768_v43 = vld [vmem:[#allocation6 + $0xfd8] sm:$0xff] }
 0x9a5   :  { %12434 = vmatprep.subr.bf16.mxu1 %v11710_v38  ;;  %13008 = vmatprep.subr.bf16.mxu0 %v11712_v35  ;;  %v18297_v38 = vld [vmem:[#allocation5 + $0x20] sm:$0xff]  ;;  %v11765_v35 = vld [vmem:[#allocation6 + $0xfc0] sm:$0xff] }
 0x9a7   :  { %12426 = vmatmul.mubr.bf16.vlgmr.msra.gmra.mrb[208].mxu1 %v11246_v15  ;;  %13000 = vmatmul.mubr.bf16.vlgmr.msra.gmra.mrb[56].mxu0 %v11246_v15  ;;  %v11770_v15 = vld [vmem:[#allocation6 + $0xfe8] sm:$0xff] }
 0x9a8   :  { %12435 = vmatpush1.bf16.msra.mxu1 %v11709_v30  ;;  %13009 = vmatpush1.bf16.msra.mxu0 %v11711_v1  ;;  %v11772_v30 = vld [vmem:[#allocation6 + $0xff8] sm:$0xff]  ;;  %v18301_v1 = vrot.slane %v18297_v38, %v18098_v5 }
 0x9a9   :  { %12436 = vmatprep.subr.bf16.mxu1 %v11714_v12  ;;  %13010 = vmatprep.subr.bf16.mxu0 %v11716_v36  ;;  %v11769_v12 = vld [vmem:[#allocation6 + $0xfe0] sm:$0xff]  ;;  %v11771_v36 = vld [vmem:[#allocation6 + $0xff0] sm:$0xff] }
 0x9aa   :  { %12466 = vmatprep.mubr.bf16.mxu1 %v11249_v0  ;;  %13040 = vmatprep.mubr.bf16.mxu0 %v11249_v0  ;;  %v11774_v0 = vld [vmem:[#allocation6 + $0x1008] sm:$0xff] }
 0x9ac   :  { %12437 = vmatpush1.bf16.msra.mxu1 %v11713_v29  ;;  %13011 = vmatpush1.bf16.msra.mxu0 %v11715_v3  ;;  %v11776_v29 = vld [vmem:[#allocation6 + $0x1018] sm:$0xff]  ;;  %v11172_v3 = vcombine.high %v18301_v1, %v18301_v1 }
 0x9ad   :  { %12438 = vmatprep.subr.bf16.mxu1 %v11718_v40  ;;  %13012 = vmatprep.subr.bf16.mxu0 %v11720_v26  ;;  %v11248_v40 = vpack.c.bf16 %v18291_v52, %v18291_v52  ;;  %v11773_v26 = vld [vmem:[#allocation6 + $0x1000] sm:$0xff] }
 0x9ae   :  { %v11781_v52 = vld [vmem:[#allocation6 + $0x1040] sm:$0xff] }
 0x9b0   :  { %12439 = vmatpush1.bf16.msra.mxu1 %v11717_v16  ;;  %13013 = vmatpush1.bf16.msra.mxu0 %v11719_v10  ;;  %v11775_v16 = vld [vmem:[#allocation6 + $0x1010] sm:$0xff]  ;;  %v11778_v10 = vld [vmem:[#allocation6 + $0x1028] sm:$0xff] }
 0x9b1   :  { %12440 = vmatprep.subr.bf16.mxu1 %v11722_v57  ;;  %13014 = vmatprep.subr.bf16.mxu0 %v11724_v45  ;;  %v11780_v57 = vld [vmem:[#allocation6 + $0x1038] sm:$0xff]  ;;  %v11251_v45 = vpack.c.bf16 %v11172_v3, %v11172_v3  ;;  %v11829_v3 = vld [vmem:[#allocation6 + $0x11c0] sm:$0xff] }
 0x9b4   :  { %12441 = vmatpush1.bf16.msra.mxu1 %v11721_v41  ;;  %13015 = vmatpush1.bf16.msra.mxu0 %v11723_v46  ;;  %v11777_v41 = vld [vmem:[#allocation6 + $0x1020] sm:$0xff]  ;;  %v11779_v46 = vld [vmem:[#allocation6 + $0x1030] sm:$0xff] }
 0x9b5   :  { %12442 = vmatprep.subr.bf16.mxu1 %v11726_v62  ;;  %13016 = vmatprep.subr.bf16.mxu0 %v11728_v8  ;;  %v11782_v62 = vld [vmem:[#allocation6 + $0x1048] sm:$0xff]  ;;  %v11784_v8 = vld [vmem:[#allocation6 + $0x1058] sm:$0xff] }
 0x9b8   :  { %12443 = vmatpush1.bf16.msra.mxu1 %v11725_v54  ;;  %13017 = vmatpush1.bf16.msra.mxu0 %v11727_v28  ;;  %v11783_v54 = vld [vmem:[#allocation6 + $0x1050] sm:$0xff]  ;;  %v11786_v28 = vld [vmem:[#allocation6 + $0x1068] sm:$0xff] }
 0x9b9   :  { %12444 = vmatprep.subr.bf16.mxu1 %v11730_v58  ;;  %13018 = vmatprep.subr.bf16.mxu0 %v11732_v39  ;;  %v11788_v58 = vld [vmem:[#allocation6 + $0x1078] sm:$0xff]  ;;  %v11785_v39 = vld [vmem:[#allocation6 + $0x1060] sm:$0xff] }
 0x9bc   :  { %12445 = vmatpush1.bf16.msra.mxu1 %v11729_v55  ;;  %13019 = vmatpush1.bf16.msra.mxu0 %v11731_v7  ;;  %v11787_v55 = vld [vmem:[#allocation6 + $0x1070] sm:$0xff]  ;;  %v11790_v7 = vld [vmem:[#allocation6 + $0x1088] sm:$0xff] }
 0x9bd   :  { %12446 = vmatprep.subr.bf16.mxu1 %v11734_v60  ;;  %13020 = vmatprep.subr.bf16.mxu0 %v11736_v13  ;;  %v11792_v60 = vld [vmem:[#allocation6 + $0x1098] sm:$0xff]  ;;  %v11789_v13 = vld [vmem:[#allocation6 + $0x1080] sm:$0xff] }
 0x9c0   :  { %12447 = vmatpush1.bf16.msra.mxu1 %v11733_v51  ;;  %13021 = vmatpush1.bf16.msra.mxu0 %v11735_v14  ;;  %v11791_v51 = vld [vmem:[#allocation6 + $0x1090] sm:$0xff]  ;;  %v11794_v14 = vld [vmem:[#allocation6 + $0x10a8] sm:$0xff] }
 0x9c1   :  { %12448 = vmatprep.subr.bf16.mxu1 %v11738_v47  ;;  %13022 = vmatprep.subr.bf16.mxu0 %v11740_v20  ;;  %v11796_v47 = vld [vmem:[#allocation6 + $0x10b8] sm:$0xff]  ;;  %v11793_v20 = vld [vmem:[#allocation6 + $0x10a0] sm:$0xff] }
 0x9c4   :  { %12449 = vmatpush1.bf16.msra.mxu1 %v11737_v34  ;;  %13023 = vmatpush1.bf16.msra.mxu0 %v11739_v21  ;;  %v11795_v34 = vld [vmem:[#allocation6 + $0x10b0] sm:$0xff]  ;;  %v11798_v21 = vld [vmem:[#allocation6 + $0x10c8] sm:$0xff] }
 0x9c5   :  { %12450 = vmatprep.subr.bf16.mxu1 %v11742_v56  ;;  %13024 = vmatprep.subr.bf16.mxu0 %v11744_v18  ;;  %v11800_v56 = vld [vmem:[#allocation6 + $0x10d8] sm:$0xff]  ;;  %v11797_v18 = vld [vmem:[#allocation6 + $0x10c0] sm:$0xff] }
 0x9c8   :  { %12451 = vmatpush1.bf16.msra.mxu1 %v11741_v31  ;;  %13025 = vmatpush1.bf16.msra.mxu0 %v11743_v44  ;;  %v11799_v31 = vld [vmem:[#allocation6 + $0x10d0] sm:$0xff]  ;;  %v11802_v44 = vld [vmem:[#allocation6 + $0x10e8] sm:$0xff] }
 0x9c9   :  { %12452 = vmatprep.subr.bf16.mxu1 %v11746_v32  ;;  %13026 = vmatprep.subr.bf16.mxu0 %v11748_v59  ;;  %v11804_v32 = vld [vmem:[#allocation6 + $0x10f8] sm:$0xff]  ;;  %v11801_v59 = vld [vmem:[#allocation6 + $0x10e0] sm:$0xff] }
 0x9cc   :  { %12453 = vmatpush1.bf16.msra.mxu1 %v11745_v9  ;;  %13027 = vmatpush1.bf16.msra.mxu0 %v11747_v19  ;;  %v11803_v9 = vld [vmem:[#allocation6 + $0x10f0] sm:$0xff]  ;;  %v11806_v19 = vld [vmem:[#allocation6 + $0x1108] sm:$0xff] }
 0x9cd   :  { %12454 = vmatprep.subr.bf16.mxu1 %v11750_v6  ;;  %13028 = vmatprep.subr.bf16.mxu0 %v11752_v61  ;;  %v11808_v6 = vld [vmem:[#allocation6 + $0x1118] sm:$0xff]  ;;  %v11805_v61 = vld [vmem:[#allocation6 + $0x1100] sm:$0xff] }
 0x9d0   :  { %12455 = vmatpush1.bf16.msra.mxu1 %v11749_v11  ;;  %13029 = vmatpush1.bf16.msra.mxu0 %v11751_v53  ;;  %v11807_v11 = vld [vmem:[#allocation6 + $0x1110] sm:$0xff]  ;;  %v11810_v53 = vld [vmem:[#allocation6 + $0x1128] sm:$0xff] }
 0x9d1   :  { %12456 = vmatprep.subr.bf16.mxu1 %v11754_v17  ;;  %13030 = vmatprep.subr.bf16.mxu0 %v11756_v63  ;;  %v11812_v17 = vld [vmem:[#allocation6 + $0x1138] sm:$0xff]  ;;  %v11809_v63 = vld [vmem:[#allocation6 + $0x1120] sm:$0xff] }
 0x9d4   :  { %12457 = vmatpush1.bf16.msra.mxu1 %v11753_v27  ;;  %13031 = vmatpush1.bf16.msra.mxu0 %v11755_v37  ;;  %v11811_v27 = vld [vmem:[#allocation6 + $0x1130] sm:$0xff]  ;;  %v11814_v37 = vld [vmem:[#allocation6 + $0x1148] sm:$0xff] }
 0x9d5   :  { %12458 = vmatprep.subr.bf16.mxu1 %v11758_v2  ;;  %13032 = vmatprep.subr.bf16.mxu0 %v11760_v33  ;;  %v11816_v2 = vld [vmem:[#allocation6 + $0x1158] sm:$0xff]  ;;  %v11813_v33 = vld [vmem:[#allocation6 + $0x1140] sm:$0xff] }
 0x9d8   :  { %12459 = vmatpush1.bf16.msra.mxu1 %v11757_v49  ;;  %13033 = vmatpush1.bf16.msra.mxu0 %v11759_v23  ;;  %v11815_v49 = vld [vmem:[#allocation6 + $0x1150] sm:$0xff]  ;;  %v11818_v23 = vld [vmem:[#allocation6 + $0x1168] sm:$0xff] }
 0x9d9   :  { %12460 = vmatprep.subr.bf16.mxu1 %v11762_v42  ;;  %13034 = vmatprep.subr.bf16.mxu0 %v11764_v48  ;;  %v11820_v42 = vld [vmem:[#allocation6 + $0x1178] sm:$0xff]  ;;  %v11817_v48 = vld [vmem:[#allocation6 + $0x1160] sm:$0xff] }
 0x9dc   :  { %12461 = vmatpush1.bf16.msra.mxu1 %v11761_v22  ;;  %13035 = vmatpush1.bf16.msra.mxu0 %v11763_v24  ;;  %v11819_v22 = vld [vmem:[#allocation6 + $0x1170] sm:$0xff]  ;;  %v11822_v24 = vld [vmem:[#allocation6 + $0x1188] sm:$0xff] }
 0x9dd   :  { %12462 = vmatprep.subr.bf16.mxu1 %v11766_v50  ;;  %13036 = vmatprep.subr.bf16.mxu0 %v11768_v43  ;;  %v11824_v50 = vld [vmem:[#allocation6 + $0x1198] sm:$0xff]  ;;  %v11821_v43 = vld [vmem:[#allocation6 + $0x1180] sm:$0xff] }
 0x9e0   :  { %12463 = vmatpush1.bf16.msra.mxu1 %v11765_v35  ;;  %13037 = vmatpush1.bf16.msra.mxu0 %v11767_v25  ;;  %v11823_v35 = vld [vmem:[#allocation6 + $0x1190] sm:$0xff]  ;;  %v11826_v25 = vld [vmem:[#allocation6 + $0x11a8] sm:$0xff] }
 0x9e1   :  { %12464 = vmatprep.subr.bf16.mxu1 %v11770_v15  ;;  %13038 = vmatprep.subr.bf16.mxu0 %v11772_v30  ;;  %v11828_v15 = vld [vmem:[#allocation6 + $0x11b8] sm:$0xff]  ;;  %v11825_v30 = vld [vmem:[#allocation6 + $0x11a0] sm:$0xff] }
 0x9e4   :  { %12465 = vmatpush1.bf16.msra.mxu1 %v11769_v12  ;;  %13039 = vmatpush1.bf16.msra.mxu0 %v11771_v36  ;;  %v11827_v12 = vld [vmem:[#allocation6 + $0x11b0] sm:$0xff]  ;;  %v11830_v36 = vld [vmem:[#allocation6 + $0x11c8] sm:$0xff] }
 0x9e5   :  { %12475 = vmatprep.subr.bf16.mxu1 %v11774_v0  ;;  %13049 = vmatprep.subr.bf16.mxu0 %v11776_v29  ;;  %v11832_v0 = vld [vmem:[#allocation6 + $0x11d8] sm:$0xff]  ;;  %v11157_v29 = vcombine.high %v18297_v38, %v18297_v38 }
 0x9e7   :  { %12467 = vmatmul.mubr.bf16.vlgmr.msra.gmra.mrb[208].mxu1 %v11248_v40  ;;  %13041 = vmatmul.mubr.bf16.vlgmr.msra.gmra.mrb[56].mxu0 %v11248_v40  ;;  %v11831_v40 = vld [vmem:[#allocation6 + $0x11d0] sm:$0xff] }
 0x9e8   :  { %12476 = vmatpush1.bf16.msra.mxu1 %v11773_v26  ;;  %13050 = vmatpush1.bf16.msra.mxu0 %v11775_v16  ;;  %v11834_v26 = vld [vmem:[#allocation6 + $0x11e8] sm:$0xff]  ;;  %v11836_v16 = vld [vmem:[#allocation6 + $0x11f8] sm:$0xff] }
 0x9e9   :  { %12477 = vmatprep.subr.bf16.mxu1 %v11778_v10  ;;  %13051 = vmatprep.subr.bf16.mxu0 %v11780_v57  ;;  %v18310_v10 = vrot.slane %v11157_v29, %v18098_v5  ;;  %v11833_v57 = vld [vmem:[#allocation6 + $0x11e0] sm:$0xff]  ;;  %v11887_v29 = vld [vmem:[#allocation6 + $0x1390] sm:$0xff] }
 0x9ea   :  { %12507 = vmatprep.mubr.bf16.mxu1 %v11251_v45  ;;  %13081 = vmatprep.mubr.bf16.mxu0 %v11251_v45  ;;  %v11835_v45 = vld [vmem:[#allocation6 + $0x11f0] sm:$0xff] }
 0x9eb   :  { %v11173_v38 = vcombine.high %v18310_v10, %v18310_v10 }
 0x9ec   :  { %12478 = vmatpush1.bf16.msra.mxu1 %v11777_v41  ;;  %13052 = vmatpush1.bf16.msra.mxu0 %v11779_v46  ;;  %v11838_v41 = vld [vmem:[#allocation6 + $0x1208] sm:$0xff]  ;;  %v11840_v46 = vld [vmem:[#allocation6 + $0x1218] sm:$0xff] }
 0x9ed   :  { %12479 = vmatprep.subr.bf16.mxu1 %v11782_v62  ;;  %13053 = vmatprep.subr.bf16.mxu0 %v11784_v8  ;;  %v11250_v62 = vpack.c.bf16 %v18301_v1, %v18301_v1  ;;  %v11837_v8 = vld [vmem:[#allocation6 + $0x1200] sm:$0xff] }
 0x9ee   :  { %v11845_v1 = vld [vmem:[#allocation6 + $0x1240] sm:$0xff] }
 0x9f0   :  { %12480 = vmatpush1.bf16.msra.mxu1 %v11781_v52  ;;  %13054 = vmatpush1.bf16.msra.mxu0 %v11783_v54  ;;  %v11839_v52 = vld [vmem:[#allocation6 + $0x1210] sm:$0xff]  ;;  %v11842_v54 = vld [vmem:[#allocation6 + $0x1228] sm:$0xff] }
 0x9f1   :  { %12481 = vmatprep.subr.bf16.mxu1 %v11786_v28  ;;  %13055 = vmatprep.subr.bf16.mxu0 %v11788_v58  ;;  %v11844_v28 = vld [vmem:[#allocation6 + $0x1238] sm:$0xff]  ;;  %v11253_v58 = vpack.c.bf16 %v11173_v38, %v11173_v38  ;;  %v11895_v38 = vld [vmem:[#allocation6 + $0x13d0] sm:$0xff] }
 0x9f4   :  { %12482 = vmatpush1.bf16.msra.mxu1 %v11785_v39  ;;  %13056 = vmatpush1.bf16.msra.mxu0 %v11787_v55  ;;  %v11841_v39 = vld [vmem:[#allocation6 + $0x1220] sm:$0xff]  ;;  %v11843_v55 = vld [vmem:[#allocation6 + $0x1230] sm:$0xff] }
 0x9f5   :  { %12483 = vmatprep.subr.bf16.mxu1 %v11790_v7  ;;  %13057 = vmatprep.subr.bf16.mxu0 %v11792_v60  ;;  %v11846_v7 = vld [vmem:[#allocation6 + $0x1248] sm:$0xff]  ;;  %v11848_v60 = vld [vmem:[#allocation6 + $0x1258] sm:$0xff] }
 0x9f8   :  { %12484 = vmatpush1.bf16.msra.mxu1 %v11789_v13  ;;  %13058 = vmatpush1.bf16.msra.mxu0 %v11791_v51  ;;  %v11847_v13 = vld [vmem:[#allocation6 + $0x1250] sm:$0xff]  ;;  %v11850_v51 = vld [vmem:[#allocation6 + $0x1268] sm:$0xff] }
 0x9f9   :  { %12485 = vmatprep.subr.bf16.mxu1 %v11794_v14  ;;  %13059 = vmatprep.subr.bf16.mxu0 %v11796_v47  ;;  %v11852_v14 = vld [vmem:[#allocation6 + $0x1278] sm:$0xff]  ;;  %v11849_v47 = vld [vmem:[#allocation6 + $0x1260] sm:$0xff] }
 0x9fc   :  { %12486 = vmatpush1.bf16.msra.mxu1 %v11793_v20  ;;  %13060 = vmatpush1.bf16.msra.mxu0 %v11795_v34  ;;  %v11851_v20 = vld [vmem:[#allocation6 + $0x1270] sm:$0xff]  ;;  %v11854_v34 = vld [vmem:[#allocation6 + $0x1288] sm:$0xff] }
 0x9fd   :  { %12487 = vmatprep.subr.bf16.mxu1 %v11798_v21  ;;  %13061 = vmatprep.subr.bf16.mxu0 %v11800_v56  ;;  %v11856_v21 = vld [vmem:[#allocation6 + $0x1298] sm:$0xff]  ;;  %v11853_v56 = vld [vmem:[#allocation6 + $0x1280] sm:$0xff] }
 0xa00   :  { %12488 = vmatpush1.bf16.msra.mxu1 %v11797_v18  ;;  %13062 = vmatpush1.bf16.msra.mxu0 %v11799_v31  ;;  %v11855_v18 = vld [vmem:[#allocation6 + $0x1290] sm:$0xff]  ;;  %v11858_v31 = vld [vmem:[#allocation6 + $0x12a8] sm:$0xff] }
 0xa01   :  { %12489 = vmatprep.subr.bf16.mxu1 %v11802_v44  ;;  %13063 = vmatprep.subr.bf16.mxu0 %v11804_v32  ;;  %v11860_v44 = vld [vmem:[#allocation6 + $0x12b8] sm:$0xff]  ;;  %v11857_v32 = vld [vmem:[#allocation6 + $0x12a0] sm:$0xff] }
 0xa04   :  { %12490 = vmatpush1.bf16.msra.mxu1 %v11801_v59  ;;  %13064 = vmatpush1.bf16.msra.mxu0 %v11803_v9  ;;  %v11859_v59 = vld [vmem:[#allocation6 + $0x12b0] sm:$0xff]  ;;  %v11862_v9 = vld [vmem:[#allocation6 + $0x12c8] sm:$0xff] }
 0xa05   :  { %12491 = vmatprep.subr.bf16.mxu1 %v11806_v19  ;;  %13065 = vmatprep.subr.bf16.mxu0 %v11808_v6  ;;  %v11864_v19 = vld [vmem:[#allocation6 + $0x12d8] sm:$0xff]  ;;  %v11861_v6 = vld [vmem:[#allocation6 + $0x12c0] sm:$0xff] }
 0xa08   :  { %12492 = vmatpush1.bf16.msra.mxu1 %v11805_v61  ;;  %13066 = vmatpush1.bf16.msra.mxu0 %v11807_v11  ;;  %v11863_v61 = vld [vmem:[#allocation6 + $0x12d0] sm:$0xff]  ;;  %v11866_v11 = vld [vmem:[#allocation6 + $0x12e8] sm:$0xff] }
 0xa09   :  { %12493 = vmatprep.subr.bf16.mxu1 %v11810_v53  ;;  %13067 = vmatprep.subr.bf16.mxu0 %v11812_v17  ;;  %v11868_v53 = vld [vmem:[#allocation6 + $0x12f8] sm:$0xff]  ;;  %v11865_v17 = vld [vmem:[#allocation6 + $0x12e0] sm:$0xff] }
 0xa0c   :  { %12494 = vmatpush1.bf16.msra.mxu1 %v11809_v63  ;;  %13068 = vmatpush1.bf16.msra.mxu0 %v11811_v27  ;;  %v11867_v63 = vld [vmem:[#allocation6 + $0x12f0] sm:$0xff]  ;;  %v11870_v27 = vld [vmem:[#allocation6 + $0x1308] sm:$0xff] }
 0xa0d   :  { %12495 = vmatprep.subr.bf16.mxu1 %v11814_v37  ;;  %13069 = vmatprep.subr.bf16.mxu0 %v11816_v2  ;;  %v11872_v37 = vld [vmem:[#allocation6 + $0x1318] sm:$0xff]  ;;  %v11869_v2 = vld [vmem:[#allocation6 + $0x1300] sm:$0xff] }
 0xa10   :  { %12496 = vmatpush1.bf16.msra.mxu1 %v11813_v33  ;;  %13070 = vmatpush1.bf16.msra.mxu0 %v11815_v49  ;;  %v11871_v33 = vld [vmem:[#allocation6 + $0x1310] sm:$0xff]  ;;  %v11874_v49 = vld [vmem:[#allocation6 + $0x1328] sm:$0xff] }
 0xa11   :  { %12497 = vmatprep.subr.bf16.mxu1 %v11818_v23  ;;  %13071 = vmatprep.subr.bf16.mxu0 %v11820_v42  ;;  %v11876_v23 = vld [vmem:[#allocation6 + $0x1338] sm:$0xff]  ;;  %v11873_v42 = vld [vmem:[#allocation6 + $0x1320] sm:$0xff] }
 0xa14   :  { %12498 = vmatpush1.bf16.msra.mxu1 %v11817_v48  ;;  %13072 = vmatpush1.bf16.msra.mxu0 %v11819_v22  ;;  %v11875_v48 = vld [vmem:[#allocation6 + $0x1330] sm:$0xff]  ;;  %v11878_v22 = vld [vmem:[#allocation6 + $0x1348] sm:$0xff] }
 0xa15   :  { %12499 = vmatprep.subr.bf16.mxu1 %v11822_v24  ;;  %13073 = vmatprep.subr.bf16.mxu0 %v11824_v50  ;;  %v11880_v24 = vld [vmem:[#allocation6 + $0x1358] sm:$0xff]  ;;  %v11877_v50 = vld [vmem:[#allocation6 + $0x1340] sm:$0xff] }
 0xa18   :  { %12500 = vmatpush1.bf16.msra.mxu1 %v11821_v43  ;;  %13074 = vmatpush1.bf16.msra.mxu0 %v11823_v35  ;;  %v11879_v43 = vld [vmem:[#allocation6 + $0x1350] sm:$0xff]  ;;  %v11882_v35 = vld [vmem:[#allocation6 + $0x1368] sm:$0xff] }
 0xa19   :  { %12501 = vmatprep.subr.bf16.mxu1 %v11826_v25  ;;  %13075 = vmatprep.subr.bf16.mxu0 %v11828_v15  ;;  %v11884_v25 = vld [vmem:[#allocation6 + $0x1378] sm:$0xff]  ;;  %v11881_v15 = vld [vmem:[#allocation6 + $0x1360] sm:$0xff] }
 0xa1c   :  { %12502 = vmatpush1.bf16.msra.mxu1 %v11825_v30  ;;  %13076 = vmatpush1.bf16.msra.mxu0 %v11827_v12  ;;  %v11883_v30 = vld [vmem:[#allocation6 + $0x1370] sm:$0xff]  ;;  %v11886_v12 = vld [vmem:[#allocation6 + $0x1388] sm:$0xff] }
 0xa1d   :  { %12503 = vmatprep.subr.bf16.mxu1 %v11830_v36  ;;  %13077 = vmatprep.subr.bf16.mxu0 %v11832_v0  ;;  %v11888_v36 = vld [vmem:[#allocation6 + $0x1398] sm:$0xff]  ;;  %v11885_v0 = vld [vmem:[#allocation6 + $0x1380] sm:$0xff] }
 0xa20   :  { %12504 = vmatpush1.bf16.msra.mxu1 %v11829_v3  ;;  %13078 = vmatpush1.bf16.msra.mxu0 %v11831_v40  ;;  %v11890_v3 = vld [vmem:[#allocation6 + $0x13a8] sm:$0xff]  ;;  %v11892_v40 = vld [vmem:[#allocation6 + $0x13b8] sm:$0xff] }
 0xa21   :  { %12505 = vmatprep.subr.bf16.mxu1 %v11834_v26  ;;  %13079 = vmatprep.subr.bf16.mxu0 %v11836_v16  ;;  %v11889_v26 = vld [vmem:[#allocation6 + $0x13a0] sm:$0xff]  ;;  %v11891_v16 = vld [vmem:[#allocation6 + $0x13b0] sm:$0xff] }
 0xa24   :  { %12506 = vmatpush1.bf16.msra.mxu1 %v11833_v57  ;;  %13080 = vmatpush1.bf16.msra.mxu0 %v11835_v45  ;;  %v11894_v57 = vld [vmem:[#allocation6 + $0x13c8] sm:$0xff]  ;;  %v11896_v45 = vld [vmem:[#allocation6 + $0x13d8] sm:$0xff] }
 0xa25   :  { %12516 = vmatprep.subr.bf16.mxu1 %v11838_v41  ;;  %13090 = vmatprep.subr.bf16.mxu0 %v11840_v46  ;;  %v18316_v41 = vld [vmem:[#allocation5 + $0x28] sm:$0xff]  ;;  %v11893_v46 = vld [vmem:[#allocation6 + $0x13c0] sm:$0xff] }
 0xa27   :  { %12508 = vmatmul.mubr.bf16.vlgmr.msra.gmra.mrb[208].mxu1 %v11250_v62  ;;  %13082 = vmatmul.mubr.bf16.vlgmr.msra.gmra.mrb[56].mxu0 %v11250_v62  ;;  %v11898_v62 = vld [vmem:[#allocation6 + $0x13e8] sm:$0xff] }
 0xa28   :  { %12517 = vmatpush1.bf16.msra.mxu1 %v11837_v8  ;;  %13091 = vmatpush1.bf16.msra.mxu0 %v11839_v52  ;;  %v11900_v8 = vld [vmem:[#allocation6 + $0x13f8] sm:$0xff]  ;;  %v18320_v52 = vrot.slane %v18316_v41, %v18098_v5 }
 0xa29   :  { %12518 = vmatprep.subr.bf16.mxu1 %v11842_v54  ;;  %13092 = vmatprep.subr.bf16.mxu0 %v11844_v28  ;;  %v11897_v54 = vld [vmem:[#allocation6 + $0x13e0] sm:$0xff]  ;;  %v11899_v28 = vld [vmem:[#allocation6 + $0x13f0] sm:$0xff] }
 0xa2a   :  { %12548 = vmatprep.mubr.bf16.mxu1 %v11253_v58  ;;  %13122 = vmatprep.mubr.bf16.mxu0 %v11253_v58  ;;  %v11902_v58 = vld [vmem:[#allocation6 + $0x1408] sm:$0xff] }
 0xa2c   :  { %12519 = vmatpush1.bf16.msra.mxu1 %v11841_v39  ;;  %13093 = vmatpush1.bf16.msra.mxu0 %v11843_v55  ;;  %v11904_v39 = vld [vmem:[#allocation6 + $0x1418] sm:$0xff]  ;;  %v11189_v55 = vcombine.high %v18320_v52, %v18320_v52 }
 0xa2d   :  { %12520 = vmatprep.subr.bf16.mxu1 %v11846_v7  ;;  %13094 = vmatprep.subr.bf16.mxu0 %v11848_v60  ;;  %v11252_v7 = vpack.c.bf16 %v18310_v10, %v18310_v10  ;;  %v11901_v60 = vld [vmem:[#allocation6 + $0x1400] sm:$0xff] }
 0xa2e   :  { %v11909_v10 = vld [vmem:[#allocation6 + $0x1440] sm:$0xff] }
 0xa30   :  { %12521 = vmatpush1.bf16.msra.mxu1 %v11845_v1  ;;  %13095 = vmatpush1.bf16.msra.mxu0 %v11847_v13  ;;  %v11903_v1 = vld [vmem:[#allocation6 + $0x1410] sm:$0xff]  ;;  %v11906_v13 = vld [vmem:[#allocation6 + $0x1428] sm:$0xff] }
 0xa31   :  { %12522 = vmatprep.subr.bf16.mxu1 %v11850_v51  ;;  %13096 = vmatprep.subr.bf16.mxu0 %v11852_v14  ;;  %v11908_v51 = vld [vmem:[#allocation6 + $0x1438] sm:$0xff]  ;;  %v11255_v14 = vpack.c.bf16 %v11189_v55, %v11189_v55  ;;  %v11957_v55 = vld [vmem:[#allocation6 + $0x15c0] sm:$0xff] }
 0xa34   :  { %12523 = vmatpush1.bf16.msra.mxu1 %v11849_v47  ;;  %13097 = vmatpush1.bf16.msra.mxu0 %v11851_v20  ;;  %v11905_v47 = vld [vmem:[#allocation6 + $0x1420] sm:$0xff]  ;;  %v11907_v20 = vld [vmem:[#allocation6 + $0x1430] sm:$0xff] }
 0xa35   :  { %12524 = vmatprep.subr.bf16.mxu1 %v11854_v34  ;;  %13098 = vmatprep.subr.bf16.mxu0 %v11856_v21  ;;  %v11910_v34 = vld [vmem:[#allocation6 + $0x1448] sm:$0xff]  ;;  %v11912_v21 = vld [vmem:[#allocation6 + $0x1458] sm:$0xff] }
 0xa38   :  { %12525 = vmatpush1.bf16.msra.mxu1 %v11853_v56  ;;  %13099 = vmatpush1.bf16.msra.mxu0 %v11855_v18  ;;  %v11911_v56 = vld [vmem:[#allocation6 + $0x1450] sm:$0xff]  ;;  %v11914_v18 = vld [vmem:[#allocation6 + $0x1468] sm:$0xff] }
 0xa39   :  { %12526 = vmatprep.subr.bf16.mxu1 %v11858_v31  ;;  %13100 = vmatprep.subr.bf16.mxu0 %v11860_v44  ;;  %v11916_v31 = vld [vmem:[#allocation6 + $0x1478] sm:$0xff]  ;;  %v11913_v44 = vld [vmem:[#allocation6 + $0x1460] sm:$0xff] }
 0xa3c   :  { %12527 = vmatpush1.bf16.msra.mxu1 %v11857_v32  ;;  %13101 = vmatpush1.bf16.msra.mxu0 %v11859_v59  ;;  %v11915_v32 = vld [vmem:[#allocation6 + $0x1470] sm:$0xff]  ;;  %v11918_v59 = vld [vmem:[#allocation6 + $0x1488] sm:$0xff] }
 0xa3d   :  { %12528 = vmatprep.subr.bf16.mxu1 %v11862_v9  ;;  %13102 = vmatprep.subr.bf16.mxu0 %v11864_v19  ;;  %v11920_v9 = vld [vmem:[#allocation6 + $0x1498] sm:$0xff]  ;;  %v11917_v19 = vld [vmem:[#allocation6 + $0x1480] sm:$0xff] }
 0xa40   :  { %12529 = vmatpush1.bf16.msra.mxu1 %v11861_v6  ;;  %13103 = vmatpush1.bf16.msra.mxu0 %v11863_v61  ;;  %v11919_v6 = vld [vmem:[#allocation6 + $0x1490] sm:$0xff]  ;;  %v11922_v61 = vld [vmem:[#allocation6 + $0x14a8] sm:$0xff] }
 0xa41   :  { %12530 = vmatprep.subr.bf16.mxu1 %v11866_v11  ;;  %13104 = vmatprep.subr.bf16.mxu0 %v11868_v53  ;;  %v11924_v11 = vld [vmem:[#allocation6 + $0x14b8] sm:$0xff]  ;;  %v11921_v53 = vld [vmem:[#allocation6 + $0x14a0] sm:$0xff] }
 0xa44   :  { %12531 = vmatpush1.bf16.msra.mxu1 %v11865_v17  ;;  %13105 = vmatpush1.bf16.msra.mxu0 %v11867_v63  ;;  %v11923_v17 = vld [vmem:[#allocation6 + $0x14b0] sm:$0xff]  ;;  %v11926_v63 = vld [vmem:[#allocation6 + $0x14c8] sm:$0xff] }
 0xa45   :  { %12532 = vmatprep.subr.bf16.mxu1 %v11870_v27  ;;  %13106 = vmatprep.subr.bf16.mxu0 %v11872_v37  ;;  %v11928_v27 = vld [vmem:[#allocation6 + $0x14d8] sm:$0xff]  ;;  %v11925_v37 = vld [vmem:[#allocation6 + $0x14c0] sm:$0xff] }
 0xa48   :  { %12533 = vmatpush1.bf16.msra.mxu1 %v11869_v2  ;;  %13107 = vmatpush1.bf16.msra.mxu0 %v11871_v33  ;;  %v11927_v2 = vld [vmem:[#allocation6 + $0x14d0] sm:$0xff]  ;;  %v11930_v33 = vld [vmem:[#allocation6 + $0x14e8] sm:$0xff] }
 0xa49   :  { %12534 = vmatprep.subr.bf16.mxu1 %v11874_v49  ;;  %13108 = vmatprep.subr.bf16.mxu0 %v11876_v23  ;;  %v11932_v49 = vld [vmem:[#allocation6 + $0x14f8] sm:$0xff]  ;;  %v11929_v23 = vld [vmem:[#allocation6 + $0x14e0] sm:$0xff] }
 0xa4c   :  { %12535 = vmatpush1.bf16.msra.mxu1 %v11873_v42  ;;  %13109 = vmatpush1.bf16.msra.mxu0 %v11875_v48  ;;  %v11931_v42 = vld [vmem:[#allocation6 + $0x14f0] sm:$0xff]  ;;  %v11934_v48 = vld [vmem:[#allocation6 + $0x1508] sm:$0xff] }
 0xa4d   :  { %12536 = vmatprep.subr.bf16.mxu1 %v11878_v22  ;;  %13110 = vmatprep.subr.bf16.mxu0 %v11880_v24  ;;  %v11936_v22 = vld [vmem:[#allocation6 + $0x1518] sm:$0xff]  ;;  %v11933_v24 = vld [vmem:[#allocation6 + $0x1500] sm:$0xff] }
 0xa50   :  { %12537 = vmatpush1.bf16.msra.mxu1 %v11877_v50  ;;  %13111 = vmatpush1.bf16.msra.mxu0 %v11879_v43  ;;  %v11935_v50 = vld [vmem:[#allocation6 + $0x1510] sm:$0xff]  ;;  %v11938_v43 = vld [vmem:[#allocation6 + $0x1528] sm:$0xff] }
 0xa51   :  { %12538 = vmatprep.subr.bf16.mxu1 %v11882_v35  ;;  %13112 = vmatprep.subr.bf16.mxu0 %v11884_v25  ;;  %v11940_v35 = vld [vmem:[#allocation6 + $0x1538] sm:$0xff]  ;;  %v11937_v25 = vld [vmem:[#allocation6 + $0x1520] sm:$0xff] }
 0xa54   :  { %12539 = vmatpush1.bf16.msra.mxu1 %v11881_v15  ;;  %13113 = vmatpush1.bf16.msra.mxu0 %v11883_v30  ;;  %v11939_v15 = vld [vmem:[#allocation6 + $0x1530] sm:$0xff]  ;;  %v11942_v30 = vld [vmem:[#allocation6 + $0x1548] sm:$0xff] }
 0xa55   :  { %12540 = vmatprep.subr.bf16.mxu1 %v11886_v12  ;;  %13114 = vmatprep.subr.bf16.mxu0 %v11888_v36  ;;  %v11944_v12 = vld [vmem:[#allocation6 + $0x1558] sm:$0xff]  ;;  %v11941_v36 = vld [vmem:[#allocation6 + $0x1540] sm:$0xff] }
 0xa58   :  { %12541 = vmatpush1.bf16.msra.mxu1 %v11885_v0  ;;  %13115 = vmatpush1.bf16.msra.mxu0 %v11887_v29  ;;  %v11943_v0 = vld [vmem:[#allocation6 + $0x1550] sm:$0xff]  ;;  %v11946_v29 = vld [vmem:[#allocation6 + $0x1568] sm:$0xff] }
 0xa59   :  { %12542 = vmatprep.subr.bf16.mxu1 %v11890_v3  ;;  %13116 = vmatprep.subr.bf16.mxu0 %v11892_v40  ;;  %v11948_v3 = vld [vmem:[#allocation6 + $0x1578] sm:$0xff]  ;;  %v11945_v40 = vld [vmem:[#allocation6 + $0x1560] sm:$0xff] }
 0xa5c   :  { %12543 = vmatpush1.bf16.msra.mxu1 %v11889_v26  ;;  %13117 = vmatpush1.bf16.msra.mxu0 %v11891_v16  ;;  %v11947_v26 = vld [vmem:[#allocation6 + $0x1570] sm:$0xff]  ;;  %v11950_v16 = vld [vmem:[#allocation6 + $0x1588] sm:$0xff] }
 0xa5d   :  { %12544 = vmatprep.subr.bf16.mxu1 %v11894_v57  ;;  %13118 = vmatprep.subr.bf16.mxu0 %v11896_v45  ;;  %v11952_v57 = vld [vmem:[#allocation6 + $0x1598] sm:$0xff]  ;;  %v11949_v45 = vld [vmem:[#allocation6 + $0x1580] sm:$0xff] }
 0xa60   :  { %12545 = vmatpush1.bf16.msra.mxu1 %v11893_v46  ;;  %13119 = vmatpush1.bf16.msra.mxu0 %v11895_v38  ;;  %v11951_v46 = vld [vmem:[#allocation6 + $0x1590] sm:$0xff]  ;;  %v11954_v38 = vld [vmem:[#allocation6 + $0x15a8] sm:$0xff] }
 0xa61   :  { %12546 = vmatprep.subr.bf16.mxu1 %v11898_v62  ;;  %13120 = vmatprep.subr.bf16.mxu0 %v11900_v8  ;;  %v11956_v62 = vld [vmem:[#allocation6 + $0x15b8] sm:$0xff]  ;;  %v11953_v8 = vld [vmem:[#allocation6 + $0x15a0] sm:$0xff] }
 0xa64   :  { %12547 = vmatpush1.bf16.msra.mxu1 %v11897_v54  ;;  %13121 = vmatpush1.bf16.msra.mxu0 %v11899_v28  ;;  %v11955_v54 = vld [vmem:[#allocation6 + $0x15b0] sm:$0xff]  ;;  %v11958_v28 = vld [vmem:[#allocation6 + $0x15c8] sm:$0xff] }
 0xa65   :  { %12557 = vmatprep.subr.bf16.mxu1 %v11902_v58  ;;  %13131 = vmatprep.subr.bf16.mxu0 %v11904_v39  ;;  %v11960_v58 = vld [vmem:[#allocation6 + $0x15d8] sm:$0xff]  ;;  %v11174_v39 = vcombine.high %v18316_v41, %v18316_v41 }
 0xa67   :  { %12549 = vmatmul.mubr.bf16.vlgmr.msra.gmra.mrb[208].mxu1 %v11252_v7  ;;  %13123 = vmatmul.mubr.bf16.vlgmr.msra.gmra.mrb[56].mxu0 %v11252_v7  ;;  %v11959_v7 = vld [vmem:[#allocation6 + $0x15d0] sm:$0xff] }
 0xa68   :  { %12558 = vmatpush1.bf16.msra.mxu1 %v11901_v60  ;;  %13132 = vmatpush1.bf16.msra.mxu0 %v11903_v1  ;;  %v11962_v60 = vld [vmem:[#allocation6 + $0x15e8] sm:$0xff]  ;;  %v11964_v1 = vld [vmem:[#allocation6 + $0x15f8] sm:$0xff] }
 0xa69   :  { %12559 = vmatprep.subr.bf16.mxu1 %v11906_v13  ;;  %13133 = vmatprep.subr.bf16.mxu0 %v11908_v51  ;;  %v18329_v13 = vrot.slane %v11174_v39, %v18098_v5  ;;  %v11961_v51 = vld [vmem:[#allocation6 + $0x15e0] sm:$0xff]  ;;  %v12015_v39 = vld [vmem:[#allocation6 + $0x1790] sm:$0xff] }
 0xa6a   :  { %12589 = vmatprep.mubr.bf16.mxu1 %v11255_v14  ;;  %13163 = vmatprep.mubr.bf16.mxu0 %v11255_v14  ;;  %v11963_v14 = vld [vmem:[#allocation6 + $0x15f0] sm:$0xff] }
 0xa6b   :  { %v11190_v41 = vcombine.high %v18329_v13, %v18329_v13 }
 0xa6c   :  { %12560 = vmatpush1.bf16.msra.mxu1 %v11905_v47  ;;  %13134 = vmatpush1.bf16.msra.mxu0 %v11907_v20  ;;  %v11966_v47 = vld [vmem:[#allocation6 + $0x1608] sm:$0xff]  ;;  %v11968_v20 = vld [vmem:[#allocation6 + $0x1618] sm:$0xff] }
 0xa6d   :  { %12561 = vmatprep.subr.bf16.mxu1 %v11910_v34  ;;  %13135 = vmatprep.subr.bf16.mxu0 %v11912_v21  ;;  %v11254_v34 = vpack.c.bf16 %v18320_v52, %v18320_v52  ;;  %v11965_v21 = vld [vmem:[#allocation6 + $0x1600] sm:$0xff] }
 0xa6e   :  { %v11973_v52 = vld [vmem:[#allocation6 + $0x1640] sm:$0xff] }
 0xa70   :  { %12562 = vmatpush1.bf16.msra.mxu1 %v11909_v10  ;;  %13136 = vmatpush1.bf16.msra.mxu0 %v11911_v56  ;;  %v11967_v10 = vld [vmem:[#allocation6 + $0x1610] sm:$0xff]  ;;  %v11970_v56 = vld [vmem:[#allocation6 + $0x1628] sm:$0xff] }
 0xa71   :  { %12563 = vmatprep.subr.bf16.mxu1 %v11914_v18  ;;  %13137 = vmatprep.subr.bf16.mxu0 %v11916_v31  ;;  %v11972_v18 = vld [vmem:[#allocation6 + $0x1638] sm:$0xff]  ;;  %v11257_v31 = vpack.c.bf16 %v11190_v41, %v11190_v41  ;;  %v12023_v41 = vld [vmem:[#allocation6 + $0x17d0] sm:$0xff] }
 0xa74   :  { %12564 = vmatpush1.bf16.msra.mxu1 %v11913_v44  ;;  %13138 = vmatpush1.bf16.msra.mxu0 %v11915_v32  ;;  %v11969_v44 = vld [vmem:[#allocation6 + $0x1620] sm:$0xff]  ;;  %v11971_v32 = vld [vmem:[#allocation6 + $0x1630] sm:$0xff] }
 0xa75   :  { %12565 = vmatprep.subr.bf16.mxu1 %v11918_v59  ;;  %13139 = vmatprep.subr.bf16.mxu0 %v11920_v9  ;;  %v11974_v59 = vld [vmem:[#allocation6 + $0x1648] sm:$0xff]  ;;  %v11976_v9 = vld [vmem:[#allocation6 + $0x1658] sm:$0xff] }
 0xa78   :  { %12566 = vmatpush1.bf16.msra.mxu1 %v11917_v19  ;;  %13140 = vmatpush1.bf16.msra.mxu0 %v11919_v6  ;;  %v11975_v19 = vld [vmem:[#allocation6 + $0x1650] sm:$0xff]  ;;  %v11978_v6 = vld [vmem:[#allocation6 + $0x1668] sm:$0xff] }
 0xa79   :  { %12567 = vmatprep.subr.bf16.mxu1 %v11922_v61  ;;  %13141 = vmatprep.subr.bf16.mxu0 %v11924_v11  ;;  %v11980_v61 = vld [vmem:[#allocation6 + $0x1678] sm:$0xff]  ;;  %v11977_v11 = vld [vmem:[#allocation6 + $0x1660] sm:$0xff] }
 0xa7c   :  { %12568 = vmatpush1.bf16.msra.mxu1 %v11921_v53  ;;  %13142 = vmatpush1.bf16.msra.mxu0 %v11923_v17  ;;  %v11979_v53 = vld [vmem:[#allocation6 + $0x1670] sm:$0xff]  ;;  %v11982_v17 = vld [vmem:[#allocation6 + $0x1688] sm:$0xff] }
 0xa7d   :  { %12569 = vmatprep.subr.bf16.mxu1 %v11926_v63  ;;  %13143 = vmatprep.subr.bf16.mxu0 %v11928_v27  ;;  %v11984_v63 = vld [vmem:[#allocation6 + $0x1698] sm:$0xff]  ;;  %v11981_v27 = vld [vmem:[#allocation6 + $0x1680] sm:$0xff] }
 0xa80   :  { %12570 = vmatpush1.bf16.msra.mxu1 %v11925_v37  ;;  %13144 = vmatpush1.bf16.msra.mxu0 %v11927_v2  ;;  %v11983_v37 = vld [vmem:[#allocation6 + $0x1690] sm:$0xff]  ;;  %v11986_v2 = vld [vmem:[#allocation6 + $0x16a8] sm:$0xff] }
 0xa81   :  { %12571 = vmatprep.subr.bf16.mxu1 %v11930_v33  ;;  %13145 = vmatprep.subr.bf16.mxu0 %v11932_v49  ;;  %v11988_v33 = vld [vmem:[#allocation6 + $0x16b8] sm:$0xff]  ;;  %v11985_v49 = vld [vmem:[#allocation6 + $0x16a0] sm:$0xff] }
 0xa84   :  { %12572 = vmatpush1.bf16.msra.mxu1 %v11929_v23  ;;  %13146 = vmatpush1.bf16.msra.mxu0 %v11931_v42  ;;  %v11987_v23 = vld [vmem:[#allocation6 + $0x16b0] sm:$0xff]  ;;  %v11990_v42 = vld [vmem:[#allocation6 + $0x16c8] sm:$0xff] }
 0xa85   :  { %12573 = vmatprep.subr.bf16.mxu1 %v11934_v48  ;;  %13147 = vmatprep.subr.bf16.mxu0 %v11936_v22  ;;  %v11992_v48 = vld [vmem:[#allocation6 + $0x16d8] sm:$0xff]  ;;  %v11989_v22 = vld [vmem:[#allocation6 + $0x16c0] sm:$0xff] }
 0xa88   :  { %12574 = vmatpush1.bf16.msra.mxu1 %v11933_v24  ;;  %13148 = vmatpush1.bf16.msra.mxu0 %v11935_v50  ;;  %v11991_v24 = vld [vmem:[#allocation6 + $0x16d0] sm:$0xff]  ;;  %v11994_v50 = vld [vmem:[#allocation6 + $0x16e8] sm:$0xff] }
 0xa89   :  { %12575 = vmatprep.subr.bf16.mxu1 %v11938_v43  ;;  %13149 = vmatprep.subr.bf16.mxu0 %v11940_v35  ;;  %v11996_v43 = vld [vmem:[#allocation6 + $0x16f8] sm:$0xff]  ;;  %v11993_v35 = vld [vmem:[#allocation6 + $0x16e0] sm:$0xff] }
 0xa8c   :  { %12576 = vmatpush1.bf16.msra.mxu1 %v11937_v25  ;;  %13150 = vmatpush1.bf16.msra.mxu0 %v11939_v15  ;;  %v11995_v25 = vld [vmem:[#allocation6 + $0x16f0] sm:$0xff]  ;;  %v11998_v15 = vld [vmem:[#allocation6 + $0x1708] sm:$0xff] }
 0xa8d   :  { %12577 = vmatprep.subr.bf16.mxu1 %v11942_v30  ;;  %13151 = vmatprep.subr.bf16.mxu0 %v11944_v12  ;;  %v12000_v30 = vld [vmem:[#allocation6 + $0x1718] sm:$0xff]  ;;  %v11997_v12 = vld [vmem:[#allocation6 + $0x1700] sm:$0xff] }
 0xa90   :  { %12578 = vmatpush1.bf16.msra.mxu1 %v11941_v36  ;;  %13152 = vmatpush1.bf16.msra.mxu0 %v11943_v0  ;;  %v11999_v36 = vld [vmem:[#allocation6 + $0x1710] sm:$0xff]  ;;  %v12002_v0 = vld [vmem:[#allocation6 + $0x1728] sm:$0xff] }
 0xa91   :  { %12579 = vmatprep.subr.bf16.mxu1 %v11946_v29  ;;  %13153 = vmatprep.subr.bf16.mxu0 %v11948_v3  ;;  %v12004_v29 = vld [vmem:[#allocation6 + $0x1738] sm:$0xff]  ;;  %v12001_v3 = vld [vmem:[#allocation6 + $0x1720] sm:$0xff] }
 0xa94   :  { %12580 = vmatpush1.bf16.msra.mxu1 %v11945_v40  ;;  %13154 = vmatpush1.bf16.msra.mxu0 %v11947_v26  ;;  %v12003_v40 = vld [vmem:[#allocation6 + $0x1730] sm:$0xff]  ;;  %v12006_v26 = vld [vmem:[#allocation6 + $0x1748] sm:$0xff] }
 0xa95   :  { %12581 = vmatprep.subr.bf16.mxu1 %v11950_v16  ;;  %13155 = vmatprep.subr.bf16.mxu0 %v11952_v57  ;;  %v12008_v16 = vld [vmem:[#allocation6 + $0x1758] sm:$0xff]  ;;  %v12005_v57 = vld [vmem:[#allocation6 + $0x1740] sm:$0xff] }
 0xa98   :  { %12582 = vmatpush1.bf16.msra.mxu1 %v11949_v45  ;;  %13156 = vmatpush1.bf16.msra.mxu0 %v11951_v46  ;;  %v12007_v45 = vld [vmem:[#allocation6 + $0x1750] sm:$0xff]  ;;  %v12010_v46 = vld [vmem:[#allocation6 + $0x1768] sm:$0xff] }
 0xa99   :  { %12583 = vmatprep.subr.bf16.mxu1 %v11954_v38  ;;  %13157 = vmatprep.subr.bf16.mxu0 %v11956_v62  ;;  %v12012_v38 = vld [vmem:[#allocation6 + $0x1778] sm:$0xff]  ;;  %v12009_v62 = vld [vmem:[#allocation6 + $0x1760] sm:$0xff] }
 0xa9c   :  { %12584 = vmatpush1.bf16.msra.mxu1 %v11953_v8  ;;  %13158 = vmatpush1.bf16.msra.mxu0 %v11955_v54  ;;  %v12011_v8 = vld [vmem:[#allocation6 + $0x1770] sm:$0xff]  ;;  %v12014_v54 = vld [vmem:[#allocation6 + $0x1788] sm:$0xff] }
 0xa9d   :  { %12585 = vmatprep.subr.bf16.mxu1 %v11958_v28  ;;  %13159 = vmatprep.subr.bf16.mxu0 %v11960_v58  ;;  %v12016_v28 = vld [vmem:[#allocation6 + $0x1798] sm:$0xff]  ;;  %v12013_v58 = vld [vmem:[#allocation6 + $0x1780] sm:$0xff] }
 0xaa0   :  { %12586 = vmatpush1.bf16.msra.mxu1 %v11957_v55  ;;  %13160 = vmatpush1.bf16.msra.mxu0 %v11959_v7  ;;  %v12018_v55 = vld [vmem:[#allocation6 + $0x17a8] sm:$0xff]  ;;  %v12020_v7 = vld [vmem:[#allocation6 + $0x17b8] sm:$0xff] }
 0xaa1   :  { %12587 = vmatprep.subr.bf16.mxu1 %v11962_v60  ;;  %13161 = vmatprep.subr.bf16.mxu0 %v11964_v1  ;;  %v12017_v60 = vld [vmem:[#allocation6 + $0x17a0] sm:$0xff]  ;;  %v12019_v1 = vld [vmem:[#allocation6 + $0x17b0] sm:$0xff] }
 0xaa4   :  { %12588 = vmatpush1.bf16.msra.mxu1 %v11961_v51  ;;  %13162 = vmatpush1.bf16.msra.mxu0 %v11963_v14  ;;  %v12022_v51 = vld [vmem:[#allocation6 + $0x17c8] sm:$0xff]  ;;  %v12024_v14 = vld [vmem:[#allocation6 + $0x17d8] sm:$0xff] }
 0xaa5   :  { %12598 = vmatprep.subr.bf16.mxu1 %v11966_v47  ;;  %13172 = vmatprep.subr.bf16.mxu0 %v11968_v20  ;;  %v18335_v47 = vld [vmem:[#allocation5 + $0x30] sm:$0x3f]  ;;  %v12021_v20 = vld [vmem:[#allocation6 + $0x17c0] sm:$0xff] }
 0xaa7   :  { %12590 = vmatmul.mubr.bf16.vlgmr.msra.gmra.mrb[208].mxu1 %v11254_v34  ;;  %13164 = vmatmul.mubr.bf16.vlgmr.msra.gmra.mrb[56].mxu0 %v11254_v34  ;;  %v12026_v34 = vld [vmem:[#allocation6 + $0x17e8] sm:$0xff] }
 0xaa8   :  { %12599 = vmatpush1.bf16.msra.mxu1 %v11965_v21  ;;  %13173 = vmatpush1.bf16.msra.mxu0 %v11967_v10  ;;  %v12028_v21 = vld [vmem:[#allocation6 + $0x17f8] sm:$0xff]  ;;  %v18339_v10 = vrot.slane %v18335_v47, %v18098_v5 }
 0xaa9   :  { %12600 = vmatprep.subr.bf16.mxu1 %v11970_v56  ;;  %13174 = vmatprep.subr.bf16.mxu0 %v11972_v18  ;;  %v12025_v56 = vld [vmem:[#allocation6 + $0x17e0] sm:$0xff]  ;;  %v12027_v18 = vld [vmem:[#allocation6 + $0x17f0] sm:$0xff] }
 0xaaa   :  { %12630 = vmatprep.mubr.bf16.mxu1 %v11257_v31  ;;  %13204 = vmatprep.mubr.bf16.mxu0 %v11257_v31  ;;  %v12030_v31 = vld [vmem:[#allocation6 + $0x1808] sm:$0xff] }
 0xaac   :  { %12601 = vmatpush1.bf16.msra.mxu1 %v11969_v44  ;;  %13175 = vmatpush1.bf16.msra.mxu0 %v11971_v32  ;;  %v12032_v44 = vld [vmem:[#allocation6 + $0x1818] sm:$0xff]  ;;  %v11206_v32 = vcombine.high %v18339_v10, %v18339_v10 }
 0xaad   :  { %12602 = vmatprep.subr.bf16.mxu1 %v11974_v59  ;;  %13176 = vmatprep.subr.bf16.mxu0 %v11976_v9  ;;  %v11256_v59 = vpack.c.bf16 %v18329_v13, %v18329_v13  ;;  %v12029_v9 = vld [vmem:[#allocation6 + $0x1800] sm:$0xff] }
 0xaae   :  { %v12037_v13 = vld [vmem:[#allocation6 + $0x1840] sm:$0xff] }
 0xab0   :  { %12603 = vmatpush1.bf16.msra.mxu1 %v11973_v52  ;;  %13177 = vmatpush1.bf16.msra.mxu0 %v11975_v19  ;;  %v12031_v52 = vld [vmem:[#allocation6 + $0x1810] sm:$0xff]  ;;  %v12034_v19 = vld [vmem:[#allocation6 + $0x1828] sm:$0xff] }
 0xab1   :  { %12604 = vmatprep.subr.bf16.mxu1 %v11978_v6  ;;  %13178 = vmatprep.subr.bf16.mxu0 %v11980_v61  ;;  %v12036_v6 = vld [vmem:[#allocation6 + $0x1838] sm:$0xff]  ;;  %v11259_v61 = vpack.c.bf16 %v11206_v32, %v11206_v32  ;;  %v12087_v32 = vld [vmem:[#allocation6 + $0x19d0] sm:$0xff] }
 0xab4   :  { %12605 = vmatpush1.bf16.msra.mxu1 %v11977_v11  ;;  %13179 = vmatpush1.bf16.msra.mxu0 %v11979_v53  ;;  %v12033_v11 = vld [vmem:[#allocation6 + $0x1820] sm:$0xff]  ;;  %v12035_v53 = vld [vmem:[#allocation6 + $0x1830] sm:$0xff] }
 0xab5   :  { %12606 = vmatprep.subr.bf16.mxu1 %v11982_v17  ;;  %13180 = vmatprep.subr.bf16.mxu0 %v11984_v63  ;;  %v12038_v17 = vld [vmem:[#allocation6 + $0x1848] sm:$0xff]  ;;  %v12040_v63 = vld [vmem:[#allocation6 + $0x1858] sm:$0xff] }
 0xab8   :  { %12607 = vmatpush1.bf16.msra.mxu1 %v11981_v27  ;;  %13181 = vmatpush1.bf16.msra.mxu0 %v11983_v37  ;;  %v12039_v27 = vld [vmem:[#allocation6 + $0x1850] sm:$0xff]  ;;  %v12042_v37 = vld [vmem:[#allocation6 + $0x1868] sm:$0xff] }
 0xab9   :  { %12608 = vmatprep.subr.bf16.mxu1 %v11986_v2  ;;  %13182 = vmatprep.subr.bf16.mxu0 %v11988_v33  ;;  %v12044_v2 = vld [vmem:[#allocation6 + $0x1878] sm:$0xff]  ;;  %v12041_v33 = vld [vmem:[#allocation6 + $0x1860] sm:$0xff] }
 0xabc   :  { %12609 = vmatpush1.bf16.msra.mxu1 %v11985_v49  ;;  %13183 = vmatpush1.bf16.msra.mxu0 %v11987_v23  ;;  %v12043_v49 = vld [vmem:[#allocation6 + $0x1870] sm:$0xff]  ;;  %v12046_v23 = vld [vmem:[#allocation6 + $0x1888] sm:$0xff] }
 0xabd   :  { %12610 = vmatprep.subr.bf16.mxu1 %v11990_v42  ;;  %13184 = vmatprep.subr.bf16.mxu0 %v11992_v48  ;;  %v12048_v42 = vld [vmem:[#allocation6 + $0x1898] sm:$0xff]  ;;  %v12045_v48 = vld [vmem:[#allocation6 + $0x1880] sm:$0xff] }
 0xac0   :  { %12611 = vmatpush1.bf16.msra.mxu1 %v11989_v22  ;;  %13185 = vmatpush1.bf16.msra.mxu0 %v11991_v24  ;;  %v12047_v22 = vld [vmem:[#allocation6 + $0x1890] sm:$0xff]  ;;  %v12050_v24 = vld [vmem:[#allocation6 + $0x18a8] sm:$0xff] }
 0xac1   :  { %12612 = vmatprep.subr.bf16.mxu1 %v11994_v50  ;;  %13186 = vmatprep.subr.bf16.mxu0 %v11996_v43  ;;  %v12052_v50 = vld [vmem:[#allocation6 + $0x18b8] sm:$0xff]  ;;  %v12049_v43 = vld [vmem:[#allocation6 + $0x18a0] sm:$0xff] }
 0xac4   :  { %12613 = vmatpush1.bf16.msra.mxu1 %v11993_v35  ;;  %13187 = vmatpush1.bf16.msra.mxu0 %v11995_v25  ;;  %v12051_v35 = vld [vmem:[#allocation6 + $0x18b0] sm:$0xff]  ;;  %v12054_v25 = vld [vmem:[#allocation6 + $0x18c8] sm:$0xff] }
 0xac5   :  { %12614 = vmatprep.subr.bf16.mxu1 %v11998_v15  ;;  %13188 = vmatprep.subr.bf16.mxu0 %v12000_v30  ;;  %v12056_v15 = vld [vmem:[#allocation6 + $0x18d8] sm:$0xff]  ;;  %v12053_v30 = vld [vmem:[#allocation6 + $0x18c0] sm:$0xff] }
 0xac8   :  { %12615 = vmatpush1.bf16.msra.mxu1 %v11997_v12  ;;  %13189 = vmatpush1.bf16.msra.mxu0 %v11999_v36  ;;  %v12055_v12 = vld [vmem:[#allocation6 + $0x18d0] sm:$0xff]  ;;  %v12058_v36 = vld [vmem:[#allocation6 + $0x18e8] sm:$0xff] }
 0xac9   :  { %12616 = vmatprep.subr.bf16.mxu1 %v12002_v0  ;;  %13190 = vmatprep.subr.bf16.mxu0 %v12004_v29  ;;  %v12060_v0 = vld [vmem:[#allocation6 + $0x18f8] sm:$0xff]  ;;  %v12057_v29 = vld [vmem:[#allocation6 + $0x18e0] sm:$0xff] }
 0xacc   :  { %12617 = vmatpush1.bf16.msra.mxu1 %v12001_v3  ;;  %13191 = vmatpush1.bf16.msra.mxu0 %v12003_v40  ;;  %v12059_v3 = vld [vmem:[#allocation6 + $0x18f0] sm:$0xff]  ;;  %v12062_v40 = vld [vmem:[#allocation6 + $0x1908] sm:$0xff] }
 0xacd   :  { %12618 = vmatprep.subr.bf16.mxu1 %v12006_v26  ;;  %13192 = vmatprep.subr.bf16.mxu0 %v12008_v16  ;;  %v12064_v26 = vld [vmem:[#allocation6 + $0x1918] sm:$0xff]  ;;  %v12061_v16 = vld [vmem:[#allocation6 + $0x1900] sm:$0xff] }
 0xad0   :  { %12619 = vmatpush1.bf16.msra.mxu1 %v12005_v57  ;;  %13193 = vmatpush1.bf16.msra.mxu0 %v12007_v45  ;;  %v12063_v57 = vld [vmem:[#allocation6 + $0x1910] sm:$0xff]  ;;  %v12066_v45 = vld [vmem:[#allocation6 + $0x1928] sm:$0xff] }
 0xad1   :  { %12620 = vmatprep.subr.bf16.mxu1 %v12010_v46  ;;  %13194 = vmatprep.subr.bf16.mxu0 %v12012_v38  ;;  %v12068_v46 = vld [vmem:[#allocation6 + $0x1938] sm:$0xff]  ;;  %v12065_v38 = vld [vmem:[#allocation6 + $0x1920] sm:$0xff] }
 0xad4   :  { %12621 = vmatpush1.bf16.msra.mxu1 %v12009_v62  ;;  %13195 = vmatpush1.bf16.msra.mxu0 %v12011_v8  ;;  %v12067_v62 = vld [vmem:[#allocation6 + $0x1930] sm:$0xff]  ;;  %v12070_v8 = vld [vmem:[#allocation6 + $0x1948] sm:$0xff] }
 0xad5   :  { %12622 = vmatprep.subr.bf16.mxu1 %v12014_v54  ;;  %13196 = vmatprep.subr.bf16.mxu0 %v12016_v28  ;;  %v12072_v54 = vld [vmem:[#allocation6 + $0x1958] sm:$0xff]  ;;  %v12069_v28 = vld [vmem:[#allocation6 + $0x1940] sm:$0xff] }
 0xad8   :  { %12623 = vmatpush1.bf16.msra.mxu1 %v12013_v58  ;;  %13197 = vmatpush1.bf16.msra.mxu0 %v12015_v39  ;;  %v12071_v58 = vld [vmem:[#allocation6 + $0x1950] sm:$0xff]  ;;  %v12074_v39 = vld [vmem:[#allocation6 + $0x1968] sm:$0xff] }
 0xad9   :  { %12624 = vmatprep.subr.bf16.mxu1 %v12018_v55  ;;  %13198 = vmatprep.subr.bf16.mxu0 %v12020_v7  ;;  %v12076_v55 = vld [vmem:[#allocation6 + $0x1978] sm:$0xff]  ;;  %v12073_v7 = vld [vmem:[#allocation6 + $0x1960] sm:$0xff] }
 0xadc   :  { %12625 = vmatpush1.bf16.msra.mxu1 %v12017_v60  ;;  %13199 = vmatpush1.bf16.msra.mxu0 %v12019_v1  ;;  %v12075_v60 = vld [vmem:[#allocation6 + $0x1970] sm:$0xff]  ;;  %v12078_v1 = vld [vmem:[#allocation6 + $0x1988] sm:$0xff] }
 0xadd   :  { %12626 = vmatprep.subr.bf16.mxu1 %v12022_v51  ;;  %13200 = vmatprep.subr.bf16.mxu0 %v12024_v14  ;;  %v12080_v51 = vld [vmem:[#allocation6 + $0x1998] sm:$0xff]  ;;  %v12077_v14 = vld [vmem:[#allocation6 + $0x1980] sm:$0xff] }
 0xae0   :  { %12627 = vmatpush1.bf16.msra.mxu1 %v12021_v20  ;;  %13201 = vmatpush1.bf16.msra.mxu0 %v12023_v41  ;;  %v12079_v20 = vld [vmem:[#allocation6 + $0x1990] sm:$0xff]  ;;  %v12082_v41 = vld [vmem:[#allocation6 + $0x19a8] sm:$0xff] }
 0xae1   :  { %12628 = vmatprep.subr.bf16.mxu1 %v12026_v34  ;;  %13202 = vmatprep.subr.bf16.mxu0 %v12028_v21  ;;  %v12084_v34 = vld [vmem:[#allocation6 + $0x19b8] sm:$0xff]  ;;  %v12081_v21 = vld [vmem:[#allocation6 + $0x19a0] sm:$0xff] }
 0xae4   :  { %12629 = vmatpush1.bf16.msra.mxu1 %v12025_v56  ;;  %13203 = vmatpush1.bf16.msra.mxu0 %v12027_v18  ;;  %v12083_v56 = vld [vmem:[#allocation6 + $0x19b0] sm:$0xff]  ;;  %v12086_v18 = vld [vmem:[#allocation6 + $0x19c8] sm:$0xff] }
 0xae5   :  { %12639 = vmatprep.subr.bf16.mxu1 %v12030_v31  ;;  %13213 = vmatprep.subr.bf16.mxu0 %v12032_v44  ;;  %v12088_v31 = vld [vmem:[#allocation6 + $0x19d8] sm:$0xff]  ;;  %v12085_v44 = vld [vmem:[#allocation6 + $0x19c0] sm:$0xff] }
 0xae7   :  { %12631 = vmatmul.mubr.bf16.vlgmr.msra.gmra.mrb[208].mxu1 %v11256_v59  ;;  %13205 = vmatmul.mubr.bf16.vlgmr.msra.gmra.mrb[56].mxu0 %v11256_v59  ;;  %v12090_v59 = vld [vmem:[#allocation6 + $0x19e8] sm:$0xff] }
 0xae8   :  { %12640 = vmatpush1.bf16.msra.mxu1 %v12029_v9  ;;  %13214 = vmatpush1.bf16.msra.mxu0 %v12031_v52  ;;  %v12092_v9 = vld [vmem:[#allocation6 + $0x19f8] sm:$0xff]  ;;  %v12089_v52 = vld [vmem:[#allocation6 + $0x19e0] sm:$0xff] }
 0xae9   :  { %12641 = vmatprep.subr.bf16.mxu1 %v12034_v19  ;;  %13215 = vmatprep.subr.bf16.mxu0 %v12036_v6  ;;  %v12091_v19 = vld [vmem:[#allocation6 + $0x19f0] sm:$0xff]  ;;  %v12094_v6 = vld [vmem:[#allocation6 + $0x1a08] sm:$0xff] }
 0xaea   :  { %12671 = vmatprep.mubr.bf16.mxu1 %v11259_v61  ;;  %13245 = vmatprep.mubr.bf16.mxu0 %v11259_v61  ;;  %v12096_v61 = vld [vmem:[#allocation6 + $0x1a18] sm:$0xff] }
 0xaec   :  { %12642 = vmatpush1.bf16.msra.mxu1 %v12033_v11  ;;  %13216 = vmatpush1.bf16.msra.mxu0 %v12035_v53  ;;  %v11258_v11 = vpack.c.bf16 %v18339_v10, %v18339_v10  ;;  %v12093_v53 = vld [vmem:[#allocation6 + $0x1a00] sm:$0xff] }
 0xaed   :  { %12643 = vmatprep.subr.bf16.mxu1 %v12038_v17  ;;  %13217 = vmatprep.subr.bf16.mxu0 %v12040_v63  ;;  %v12095_v17 = vld [vmem:[#allocation6 + $0x1a10] sm:$0xff]  ;;  %v12098_v63 = vld [vmem:[#allocation6 + $0x1a28] sm:$0xff]  ;;  %v12101_v10 = vld [vmem:[#allocation6 + $0x1a40] sm:$0xff] }
 0xaf0   :  { %12644 = vmatpush1.bf16.msra.mxu1 %v12037_v13  ;;  %13218 = vmatpush1.bf16.msra.mxu0 %v12039_v27  ;;  %v12100_v13 = vld [vmem:[#allocation6 + $0x1a38] sm:$0xff]  ;;  %v12097_v27 = vld [vmem:[#allocation6 + $0x1a20] sm:$0xff] }
 0xaf1   :  { %12645 = vmatprep.subr.bf16.mxu1 %v12042_v37  ;;  %13219 = vmatprep.subr.bf16.mxu0 %v12044_v2  ;;  %v12099_v37 = vld [vmem:[#allocation6 + $0x1a30] sm:$0xff]  ;;  %v12102_v2 = vld [vmem:[#allocation6 + $0x1a48] sm:$0xff] }
 0xaf4   :  { %12646 = vmatpush1.bf16.msra.mxu1 %v12041_v33  ;;  %13220 = vmatpush1.bf16.msra.mxu0 %v12043_v49  ;;  %v12104_v33 = vld [vmem:[#allocation6 + $0x1a58] sm:$0xff]  ;;  %v14965_v49 = vmov 0  }
 0xaf5   :  { %12647 = vmatprep.subr.bf16.mxu1 %v12046_v23  ;;  %13221 = vmatprep.subr.bf16.mxu0 %v12048_v42  ;;  %v12103_v23 = vld [vmem:[#allocation6 + $0x1a50] sm:$0xff]  ;;  %v12106_v42 = vld [vmem:[#allocation6 + $0x1a68] sm:$0xff] }
 0xaf8   :  { %12648 = vmatpush1.bf16.msra.mxu1 %v12045_v48  ;;  %13222 = vmatpush1.bf16.msra.mxu0 %v12047_v22  ;;  %v12108_v48 = vld [vmem:[#allocation6 + $0x1a78] sm:$0xff]  ;;  %v12105_v22 = vld [vmem:[#allocation6 + $0x1a60] sm:$0xff] }
 0xaf9   :  { %12649 = vmatprep.subr.bf16.mxu1 %v12050_v24  ;;  %13223 = vmatprep.subr.bf16.mxu0 %v12052_v50  ;;  %v12107_v24 = vld [vmem:[#allocation6 + $0x1a70] sm:$0xff]  ;;  %v12110_v50 = vld [vmem:[#allocation6 + $0x1a88] sm:$0xff] }
 0xafc   :  { %12650 = vmatpush1.bf16.msra.mxu1 %v12049_v43  ;;  %13224 = vmatpush1.bf16.msra.mxu0 %v12051_v35  ;;  %v12112_v43 = vld [vmem:[#allocation6 + $0x1a98] sm:$0xff]  ;;  %v12109_v35 = vld [vmem:[#allocation6 + $0x1a80] sm:$0xff] }
 0xafd   :  { %12651 = vmatprep.subr.bf16.mxu1 %v12054_v25  ;;  %13225 = vmatprep.subr.bf16.mxu0 %v12056_v15  ;;  %v12111_v25 = vld [vmem:[#allocation6 + $0x1a90] sm:$0xff]  ;;  %v12114_v15 = vld [vmem:[#allocation6 + $0x1aa8] sm:$0xff] }
 0xb00   :  { %12652 = vmatpush1.bf16.msra.mxu1 %v12053_v30  ;;  %13226 = vmatpush1.bf16.msra.mxu0 %v12055_v12  ;;  %v12116_v30 = vld [vmem:[#allocation6 + $0x1ab8] sm:$0xff]  ;;  %v12113_v12 = vld [vmem:[#allocation6 + $0x1aa0] sm:$0xff] }
 0xb01   :  { %12653 = vmatprep.subr.bf16.mxu1 %v12058_v36  ;;  %13227 = vmatprep.subr.bf16.mxu0 %v12060_v0  ;;  %v12115_v36 = vld [vmem:[#allocation6 + $0x1ab0] sm:$0xff]  ;;  %v12118_v0 = vld [vmem:[#allocation6 + $0x1ac8] sm:$0xff] }
 0xb04   :  { %12654 = vmatpush1.bf16.msra.mxu1 %v12057_v29  ;;  %13228 = vmatpush1.bf16.msra.mxu0 %v12059_v3  ;;  %v12120_v29 = vld [vmem:[#allocation6 + $0x1ad8] sm:$0xff]  ;;  %v11191_v3 = vcombine.high %v18335_v47, %v18335_v47  ;;  %v12129_v47 = vsub.s32 0, %v18092_v4 }
 0xb05   :  { %12655 = vmatprep.subr.bf16.mxu1 %v12062_v40  ;;  %13229 = vmatprep.subr.bf16.mxu0 %v12064_v26  ;;  %v12117_v40 = vld [vmem:[#allocation6 + $0x1ac0] sm:$0xff]  ;;  %v12119_v26 = vld [vmem:[#allocation6 + $0x1ad0] sm:$0xff] }
 0xb08   :  { %12656 = vmatpush1.bf16.msra.mxu1 %v12061_v16  ;;  %13230 = vmatpush1.bf16.msra.mxu0 %v12063_v57  ;;  %v12122_v16 = vld [vmem:[#allocation6 + $0x1ae8] sm:$0xff]  ;;  %v12124_v57 = vld [vmem:[#allocation6 + $0x1af8] sm:$0xff] }
 0xb09   :  { %12657 = vmatprep.subr.bf16.mxu1 %v12066_v45  ;;  %13231 = vmatprep.subr.bf16.mxu0 %v12068_v46  ;;  %v11205_v45 = vrot.slane %v11191_v3, %v18098_v5  ;;  %v12121_v46 = vld [vmem:[#allocation6 + $0x1ae0] sm:$0xff] }
 0xb0c   :  { %12658 = vmatpush1.bf16.msra.mxu1 %v12065_v38  ;;  %13232 = vmatpush1.bf16.msra.mxu0 %v12067_v62  ;;  %v12123_v38 = vld [vmem:[#allocation6 + $0x1af0] sm:$0xff]  ;;  %v11260_v62 = vpack.c.bf16 %v11205_v45, %v11205_v45 }
 0xb0d   :  { %12659 = vmatprep.subr.bf16.mxu1 %v12070_v8  ;;  %13233 = vmatprep.subr.bf16.mxu0 %v12072_v54  ;;  %v12137_v8 = vsub.s32 2, %v18092_v4  ;;  %v12125_v54 = vld [vmem:[%s18378_s7] sm:$0xf]  ;;  %s14966_s7 = smov [#allocation8]  }
 0xb0e   :  { %s13328_s13 = sshll.u32 %s14966_s7, 4  ;;  %s13329_s13 = int_to_ptr.vmem [resolvable:$true] %s13328_s13 }
 0xb0f   :  { %s14903_s14 = scalar_lea.vmem %s13329_s13, 128  ;;  %p14908_p3 = scmp.lt.s32.totalorder %s13329_s13, %s13329_s13 }
 0xb10   :  { %12660 = vmatpush1.bf16.msra.mxu1 %v12069_v28  ;;  %13234 = vmatpush1.bf16.msra.mxu0 %v12071_v58  ;;  %v12133_v28 = vsub.s32 1, %v18092_v4  ;;  %v12141_v58 = vsub.s32 3, %v18092_v4  ;;  %p14904_p2 = scmp.ne.s32.totalorder %s13329_s13, %s14903_s14  ;;  %p14909_p4 = scmp.lt.s32.totalorder %s14903_s14, %s14903_s14 }
 0xb11   :  { %12661 = vmatprep.subr.bf16.mxu1 %v12074_v39  ;;  %13235 = vmatprep.subr.bf16.mxu0 %v12076_v55  ;;  %v12130_v39 = vrot.slane %v12125_v54, %v12129_v47  ;;  %v12138_v55 = vrot.slane %v12125_v54, %v12137_v8 }
 0xb12   :  { %p14910_p5 = por %p14909_p4, %p14908_p3 }
 0xb14   :  { %12662 = vmatpush1.bf16.msra.mxu1 %v12073_v7  ;;  %13236 = vmatpush1.bf16.msra.mxu0 %v12075_v60  ;;  %v12134_v7 = vrot.slane %v12125_v54, %v12133_v28  ;;  %v12142_v60 = vrot.slane %v12125_v54, %v12141_v58  ;;  %p14911_p6 = pnand %p14910_p5, %p14904_p2 }
 0xb15   :  { %12663 = vmatprep.subr.bf16.mxu1 %v12078_v1  ;;  %13237 = vmatprep.subr.bf16.mxu0 %v12080_v51 }
 0xb18   :  { %12664 = vmatpush1.bf16.msra.mxu1 %v12077_v14  ;;  %13238 = vmatpush1.bf16.msra.mxu0 %v12079_v20 }
 0xb19   :  { %12665 = vmatprep.subr.bf16.mxu1 %v12082_v41  ;;  %13239 = vmatprep.subr.bf16.mxu0 %v12084_v34 }
 0xb1c   :  { %12666 = vmatpush1.bf16.msra.mxu1 %v12081_v21  ;;  %13240 = vmatpush1.bf16.msra.mxu0 %v12083_v56 }
 0xb1d   :  { %12667 = vmatprep.subr.bf16.mxu1 %v12086_v18  ;;  %13241 = vmatprep.subr.bf16.mxu0 %v12088_v31 }
 0xb20   :  { %12668 = vmatpush1.bf16.msra.mxu1 %v12085_v44  ;;  %13242 = vmatpush1.bf16.msra.mxu0 %v12087_v32 }
 0xb21   :  { %12669 = vmatprep.subr.bf16.mxu1 %v12090_v59  ;;  %13243 = vmatprep.subr.bf16.mxu0 %v12092_v9 }
 0xb24   :  { %12670 = vmatpush1.bf16.msra.mxu1 %v12089_v52  ;;  %13244 = vmatpush1.bf16.msra.mxu0 %v12091_v19 }
 0xb25   :  { %12680 = vmatprep.subr.bf16.mxu1 %v12094_v6  ;;  %13254 = vmatprep.subr.bf16.mxu0 %v12096_v61 }
 0xb27   :  { %12672 = vmatmul.mubr.bf16.vlgmr.msra.gmra.mrb[208].mxu1 %v11258_v11  ;;  %13246 = vmatmul.mubr.bf16.vlgmr.msra.gmra.mrb[56].mxu0 %v11258_v11 }
 0xb28   :  { %12681 = vmatpush1.bf16.msra.mxu1 %v12093_v53  ;;  %13255 = vmatpush1.bf16.msra.mxu0 %v12095_v17 }
 0xb29   :  { %12682 = vmatprep.subr.bf16.mxu1 %v12098_v63  ;;  %13256 = vmatprep.subr.bf16.mxu0 %v12100_v13 }
 0xb2a   :  { %12712 = vmatprep.mubr.bf16.mxu1 %v14965_v49  ;;  %13286 = vmatprep.mubr.bf16.mxu0 %v14965_v49 }
 0xb2c   :  { %12683 = vmatpush1.bf16.msra.mxu1 %v12097_v27  ;;  %13257 = vmatpush1.bf16.msra.mxu0 %v12099_v37 }
 0xb2d   :  { %12684 = vmatprep.subr.bf16.mxu1 %v12102_v2  ;;  %13258 = vmatprep.subr.bf16.mxu0 %v12104_v33 }
 0xb30   :  { %12685 = vmatpush1.bf16.msra.mxu1 %v12101_v10  ;;  %13259 = vmatpush1.bf16.msra.mxu0 %v12103_v23 }
 0xb31   :  { %12686 = vmatprep.subr.bf16.mxu1 %v12106_v42  ;;  %13260 = vmatprep.subr.bf16.mxu0 %v12108_v48 }
 0xb34   :  { %12687 = vmatpush1.bf16.msra.mxu1 %v12105_v22  ;;  %13261 = vmatpush1.bf16.msra.mxu0 %v12107_v24 }
 0xb35   :  { %12688 = vmatprep.subr.bf16.mxu1 %v12110_v50  ;;  %13262 = vmatprep.subr.bf16.mxu0 %v12112_v43 }
 0xb38   :  { %12689 = vmatpush1.bf16.msra.mxu1 %v12109_v35  ;;  %13263 = vmatpush1.bf16.msra.mxu0 %v12111_v25 }
 0xb39   :  { %12690 = vmatprep.subr.bf16.mxu1 %v12114_v15  ;;  %13264 = vmatprep.subr.bf16.mxu0 %v12116_v30 }
 0xb3c   :  { %12691 = vmatpush1.bf16.msra.mxu1 %v12113_v12  ;;  %13265 = vmatpush1.bf16.msra.mxu0 %v12115_v36 }
 0xb3d   :  { %12692 = vmatprep.subr.bf16.mxu1 %v12118_v0  ;;  %13266 = vmatprep.subr.bf16.mxu0 %v12120_v29 }
 0xb40   :  { %12693 = vmatpush1.bf16.msra.mxu1 %v12117_v40  ;;  %13267 = vmatpush1.bf16.msra.mxu0 %v12119_v26 }
 0xb41   :  { %12694 = vmatprep.subr.bf16.mxu1 %v12122_v16  ;;  %13268 = vmatprep.subr.bf16.mxu0 %v12124_v57 }
 0xb44   :  { %12695 = vmatpush1.bf16.msra.mxu1 %v12121_v46  ;;  %13269 = vmatpush1.bf16.msra.mxu0 %v12123_v38 }
 0xb47   :  { %12713 = vmatmul.mubr.bf16.vlgmr.msra.gmra.mrb[208].mxu1 %v11260_v62  ;;  %13287 = vmatmul.mubr.bf16.vlgmr.msra.gmra.mrb[56].mxu0 %v11260_v62 }
 0xc1a   :  { %v12714_v1 = vpop.f32.mrb[208].mxu1  ;;  %v13288_v51 = vpop.f32.mrb[56].mxu0 }
 0xc1b   :  { %v14522_v14 = vadd.f32 %v12714_v1, %v12130_v39  ;;  %v14524_v20 = vadd.f32 %v13288_v51, %v12138_v55  ;;  %v12716_v41 = vpop.f32.mrb[209].mxu1  ;;  %v13290_v34 = vpop.f32.mrb[57].mxu0 }
 0xc1c   :  { %v14523_v21 = vadd.f32 %v12716_v41, %v12134_v7  ;;  %v14525_v56 = vadd.f32 %v13290_v34, %v12142_v60  ;;  %v12718_v18 = vpop.f32.mrb[210].mxu1  ;;  %v13292_v31 = vpop.f32.mrb[58].mxu0 }
 0xc1d   :  { %v13295_v44 = vmax.f32 %v14522_v14, 0.0  ;;  %v13297_v32 = vmax.f32 %v14524_v20, 0.0  ;;  %v12719_v59 = vpop.f32.mrb[211].mxu1  ;;  %v13293_v9 = vpop.f32.mrb[59].mxu0 }
 0xc1e   :  { %v13296_v52 = vmax.f32 %v14523_v21, 0.0  ;;  %v13298_v4 = vmax.f32 %v14525_v56, 0.0 }
 0xc20   :  { %v13303_v19 = vcombine.low %v13295_v44, %v13296_v52  ;;  %v13304_v6 = vcombine.low %v13297_v32, %v13298_v4 }
 0xc22   :  { %v13311_v61 = vrot.slane %v13303_v19, %v18098_v5  ;;  %v13318_v11 = vrot.slane %v13304_v6, %v18098_v5 }
 0xc24   :  { %v13319_v53 = vcombine.low %v13311_v61, %v13318_v11 }
 0xc26   :  { %13321 = vst [vmem:[#allocation8] sm:$0xff] %v13319_v53 }
 0xc27   :  { %14914 = shalt.err (!%p14911_p6)
}
 0xc28   :  { %s14915_s2 = scalar_lea.hbm %s18379_s8, 128 }
 0xc29   :  { %p14916_p7 = scmp.ne.s32.totalorder %s18379_s8, %s14915_s2  ;;  %p14919_p8 = scmp.lt.u32.totalorder %s14915_s2, %s18379_s8 }
 0xc2b   :  { %p14921_p9 = pnand %p14919_p8, %p14916_p7 }
 0xc2d   :  { %14924 = shalt.err (!%p14921_p9)
}
 0xc2e   :  { %13331 = dma.vmem_to_hbm [thread:$0]  %s13329_s13, 128, %s18379_s8, [#allocation9]  }
 0xc2f   :  { %14943 = dma.done.wait [#allocation9], 128  }
 0xc30   :  { %14944 = vsyncadd [#allocation9], 4294967168 }
 0xc31   :  { %13335 = vsyncpa [#allocation9], 1 }
 0xc32   :  { %13336 = vsyncmov [#allocation7] }
 0xc35   :  { %s13337_s22 = vpop.sfrf %13336 }
 0xc36   :  { %p13733_p10 = scmp.ne.s32.totalorder %s13337_s22, 0 }
 0xc38   :  { %13341 = shalt.err (%p13733_p10)  }

</bundles_post_ra>
